<compile_context>
chip_gen: v7x
topology: tpu7x:2x2x1
jax: 0.10.0
libtpu: 0.0.40
codegen_flags: <defaults>
</compile_context>

<pallas_src>
import functools

import jax
import jax.numpy as jnp
import numpy as np
from jax import lax
from jax.experimental import pallas as pl
from jax.experimental.pallas import tpu as pltpu


# ----------------------------------------------------------------------------
# Tile / VMEM sizing helpers
# ----------------------------------------------------------------------------
def _round_up(x, m):
    return ((x + m - 1) // m) * m


def _cdiv(a, b):
    return (a + b - 1) // b


def _vmem_budget_and_limit():
    """Generation-aware VMEM budget + scoped limit (bytes)."""
    try:
        cap = int(pltpu.get_tpu_info().vmem_capacity_bytes)
    except Exception:  # non-TPU trace or API change: assume v7x-sized VMEM
        cap = 64 * 1024 * 1024
    # ~80 MiB on v5e/v6e (128 MiB physical), ~40 MiB on v7x (64 MiB physical),
    # leaving headroom for Mosaic internal scratch + pipelining metadata.
    budget = min(5 * cap // 8, cap - 16 * 1024 * 1024)
    budget = max(budget, 8 * 1024 * 1024)
    limit = min(cap, budget + 16 * 1024 * 1024)
    return budget, limit


def _pick_tile_p(requested, n, num_persons, feat_len, table_itemsize,
                 scores_itemsize, budget_bytes):
    """Largest persons tile (multiple of 128) whose double-buffered working
    set fits the budget, then capped so the grid keeps >=2 (even) steps so
    megacore (v7x) can shard the persons axis across both TensorCores."""
    max_tile = _round_up(num_persons, 128)
    tile_p = min(_round_up(max(requested, 128), 128), max_tile)

    def working_set(tp):
        return (2 * n * feat_len * table_itemsize        # features (double-buffered)
                + 2 * tp * feat_len * table_itemsize     # table tile (double-buffered)
                + 2 * n * tp * scores_itemsize           # scores tile (double-buffered)
                + n * feat_len * table_itemsize)         # gather staging scratch

    while tile_p > 128 and working_set(tile_p) > budget_bytes:
        tile_p = max(128, ((tile_p // 2) // 128) * 128)

    if num_persons > 256:
        steps = _cdiv(num_persons, tile_p)
        steps = max(steps, 2)
        if steps % 2:
            steps += 1
        tile_p = min(tile_p, _round_up(_cdiv(num_persons, steps), 128))
    return tile_p


# ----------------------------------------------------------------------------
# Fused kernel:
#   scores tile j  = features @ lookup_table[tile_j].T        (every step)
#   pos_feats[i]   = lookup_table[row_ids[i]]                  (step 0 only)
# ----------------------------------------------------------------------------
def _fused_kernel(ids_ref, npos_ref, f_ref, lt_ref, table_hbm, scores_ref,
                  pos_hbm, gbuf, sems, *, dot_precision):
    # ids_ref:    (N,) int32 packed positive ids (SMEM, scalar-prefetched)
    # npos_ref:   (1,) int32 number of positives (SMEM, scalar-prefetched)
    # f_ref:      (N, feat_len)       resident features block (VMEM)
    # lt_ref:     (tile_p, feat_len)  streamed persons tile (VMEM)
    # table_hbm:  (num_persons, feat_len) full table left in HBM (pl.ANY)
    # scores_ref: (N, tile_p)         lane-dense scores tile (VMEM)
    # pos_hbm:    (N, feat_len)       pos_feats output left in HBM (pl.ANY)
    # gbuf:       (N, feat_len)       VMEM staging for the gathered rows
    # sems:       (N + 1,)            DMA semaphores (one per row + writeback)
    j = pl.program_id(0)
    n_rows = gbuf.shape[0]

    # -- step 0: kick off the (tiny) row gather so it overlaps the first
    # -- matmul tile.  Everything completes inside this step so the persons
    # -- axis can stay "parallel" (megacore-safe on v7x).
    @pl.when(j == 0)
    def _start_gather():
        npos = npos_ref[0]
        for i in range(n_rows):        # N is small & static -> unrolled issue
            @pl.when(i < npos)         # skip DMAs for padded tail rows
            def _(i=i):
                pltpu.make_async_copy(
                    table_hbm.at[pl.ds(ids_ref[i], 1), :],
                    gbuf.at[pl.ds(i, 1), :],
                    sems.at[i]).start()

    # -- MXU: (N, K) x (P, K) -> (N, P), contracting feat_len on both sides
    # -- (no materialized transpose); f32 accumulation, cast only on store.
    scores_ref[...] = lax.dot_general(
        f_ref[...],
        lt_ref[...],
        dimension_numbers=(((1,), (1,)), ((), ())),
        preferred_element_type=jnp.float32,
        precision=dot_precision,
    ).astype(scores_ref.dtype)

    @pl.when(j == 0)
    def _finish_gather():
        npos = npos_ref[0]
        for i in range(n_rows):
            @pl.when(i < npos)
            def _(i=i):
                pltpu.make_async_copy(
                    table_hbm.at[pl.ds(ids_ref[i], 1), :],
                    gbuf.at[pl.ds(i, 1), :],
                    sems.at[i]).wait()
        # Write the fixed-shape gathered block back to HBM.  Rows >= num_pos
        # were never DMA'd (uninitialized scratch); the wrapper zeroes them
        # with the `valid` mask -- keep the two in sync.
        cp = pltpu.make_async_copy(gbuf, pos_hbm, sems.at[n_rows])
        cp.start()
        cp.wait()


def _labeled_matching_pallas(features, lookup_table, row_ids, num_pos, *,
                             tile_p, scores_dtype):
    n, feat_len = features.shape
    num_persons, feat_len2 = lookup_table.shape
    assert feat_len == feat_len2
    table_dtype = lookup_table.dtype
    # Stream the table in its stored dtype (store the queue in bf16 to halve
    # the dominant HBM stream); accumulation stays f32 in the MXU.
    features = features.astype(table_dtype)
    table_isz = jnp.dtype(table_dtype).itemsize
    scores_isz = jnp.dtype(scores_dtype).itemsize

    budget, vmem_limit = _vmem_budget_and_limit()
    tp = _pick_tile_p(tile_p, n, num_persons, feat_len, table_isz,
                      scores_isz, budget)
    grid = (_cdiv(num_persons, tp),)   # ragged last tile masked by Pallas

    # Full f32 precision for an f32 queue (matches the PyTorch reference);
    # native single-pass path for bf16.
    dot_precision = (lax.Precision.HIGHEST if table_dtype == jnp.float32
                     else lax.Precision.DEFAULT)

    cost = pl.CostEstimate(
        flops=2 * n * num_persons * feat_len,
        transcendentals=0,
        bytes_accessed=(n * feat_len * table_isz                 # features
                        + num_persons * feat_len * table_isz     # table stream
                        + n * num_persons * scores_isz           # scores out
                        + 2 * n * feat_len * table_isz),         # row gather
    )

    grid_spec = pltpu.PrefetchScalarGridSpec(
        num_scalar_prefetch=2,                                   # ids, num_pos
        grid=grid,
        in_specs=[
            pl.BlockSpec((n, feat_len), lambda j, ids, npos: (0, 0)),       # resident
            pl.BlockSpec((tp, feat_len), lambda j, ids, npos: (j, 0)),      # streamed
            pl.BlockSpec(memory_space=pl.ANY),                              # gather src
        ],
        out_specs=(
            pl.BlockSpec((n, tp), lambda j, ids, npos: (0, j)),             # lane-dense
            pl.BlockSpec(memory_space=pl.ANY),                              # pos_feats
        ),
        scratch_shapes=[
            pltpu.VMEM((n, feat_len), table_dtype),   # gather staging
            pltpu.SemaphoreType.DMA((n + 1,)),        # per-row sems + writeback sem
        ],
    )

    return pl.pallas_call(
        functools.partial(_fused_kernel, dot_precision=dot_precision),
        grid_spec=grid_spec,
        out_shape=(jax.ShapeDtypeStruct((n, num_persons), scores_dtype),
                   jax.ShapeDtypeStruct((n, feat_len), table_dtype)),
        compiler_params=pltpu.CompilerParams(
            dimension_semantics=("parallel",),
            vmem_limit_bytes=int(vmem_limit),
        ),
        cost_estimate=cost,
    )(row_ids.astype(jnp.int32),
      jnp.reshape(num_pos, (1,)).astype(jnp.int32),
      features, lookup_table, lookup_table)


# ----------------------------------------------------------------------------
# Fixed-shape, fully-jittable forward (mirrors LabeledMatchingLayerQueue.forward)
# ----------------------------------------------------------------------------
def _compact_positive_labels(pid_labels):
    """Fixed-shape equivalent of pid_labels[pid_labels > 0]: positives packed
    to the front (original order preserved), tail padded with 0, plus count."""
    n = pid_labels.shape[0]
    pid_labels = pid_labels.astype(jnp.int32)
    mask = pid_labels > 0
    num_pos = jnp.sum(mask.astype(jnp.int32))
    order = jnp.argsort(jnp.where(mask, 0, 1), stable=True)   # positives first
    packed = pid_labels[order]
    valid = jnp.arange(n, dtype=jnp.int32) < num_pos
    packed = jnp.where(valid, packed, 0)
    return packed, valid, num_pos


@functools.partial(jax.jit, static_argnames=("tile_p", "scores_dtype"))
def labeled_matching_forward(features, pid_labels, lookup_table, *,
                             tile_p=2048, scores_dtype=jnp.float32):
    """Returns (scores, pos_feats, pos_pids, num_pos).

    pos_feats / pos_pids have fixed shape (N, feat_len) / (N,); only the first
    num_pos rows are meaningful (caller slices to recover the dynamic-shape
    PyTorch outputs).  No host sync inside the forward.
    """
    num_persons = lookup_table.shape[0]
    pos_pids, valid, num_pos = _compact_positive_labels(pid_labels)
    # Clip so every gather DMA stays in bounds; rows >= num_pos issue no DMA
    # in the kernel and are zeroed below -- keep these two in sync.
    safe_ids = jnp.clip(pos_pids, 0, num_persons - 1)
    scores, pos_feats = _labeled_matching_pallas(
        features, lookup_table, safe_ids, num_pos,
        tile_p=tile_p, scores_dtype=scores_dtype)
    pos_feats = jnp.where(valid[:, None], pos_feats,
                          jnp.zeros((), lookup_table.dtype))
    return scores, pos_feats, pos_pids, num_pos


# ----------------------------------------------------------------------------
# Demo / self-check
# ----------------------------------------------------------------------------
if __name__ == "__main__":
    key = jax.random.PRNGKey(0)
    k_feat, k_table, k_feat2, k_table2 = jax.random.split(key, 4)

    # Small, TPU-friendly shapes consistent with the module
    # (module defaults are num_persons=5532, feat_len=256; N = #proposals).
    NUM_PERSONS, FEAT_LEN, N = 2048, 256, 8

    features = jax.random.normal(k_feat, (N, FEAT_LEN), dtype=jnp.float32)
    lookup_table = jax.random.normal(k_table, (NUM_PERSONS, FEAT_LEN),
                                     dtype=jnp.float32)
    # Deterministic labels: -1 = background, 0 excluded by `> 0`, mix of ids.
    pid_labels = jnp.array([-1, 3, 0, 17, 2047, -1, 512, 5], dtype=jnp.int32)

    scores, pos_feats, pos_pids, num_pos = labeled_matching_forward(
        features, pid_labels, lookup_table)
    jax.block_until_ready((scores, pos_feats, pos_pids, num_pos))

    # ---- f32 reference check (exact module semantics) ----
    feats_np = np.asarray(features)
    table_np = np.asarray(lookup_table)
    labels_np = np.asarray(pid_labels)
    ref_scores = feats_np @ table_np.T
    ref_pids = labels_np[labels_np > 0]
    ref_feats = table_np[ref_pids]

    k = int(num_pos)
    assert k == ref_pids.shape[0]
    np.testing.assert_array_equal(np.asarray(pos_pids)[:k], ref_pids)
    np.testing.assert_allclose(np.asarray(scores), ref_scores,
                               rtol=1e-4, atol=1e-3)
    np.testing.assert_allclose(np.asarray(pos_feats)[:k], ref_feats,
                               rtol=1e-6, atol=1e-6)
    assert not np.any(np.asarray(pos_feats)[k:])   # padded rows zeroed

    # ---- bf16-queue variant (halves the HBM table stream; f32 accumulation) ----
    table_bf16 = lookup_table.astype(jnp.bfloat16)
    feats_bf16 = features.astype(jnp.bfloat16)
    scores_bf, pos_feats_bf, pos_pids_bf, num_pos_bf = labeled_matching_forward(
        feats_bf16, pid_labels, table_bf16)
    jax.block_until_ready(scores_bf)

    ref_scores_bf = (np.asarray(feats_bf16.astype(jnp.float32))
                     @ np.asarray(table_bf16.astype(jnp.float32)).T)
    np.testing.assert_allclose(np.asarray(scores_bf), ref_scores_bf,
                               rtol=1e-2, atol=1e-2)
    kb = int(num_pos_bf)
    np.testing.assert_array_equal(np.asarray(pos_pids_bf)[:kb], ref_pids)
    np.testing.assert_array_equal(
        np.asarray(pos_feats_bf.astype(jnp.float32))[:kb],
        np.asarray(table_bf16.astype(jnp.float32))[ref_pids])

    # Optional bf16 scores writeback (accumulation stays f32 in the MXU).
    scores_bf16_out, _, _, _ = labeled_matching_forward(
        feats_bf16, pid_labels, table_bf16, scores_dtype=jnp.bfloat16)
    jax.block_until_ready(scores_bf16_out)
    assert scores_bf16_out.dtype == jnp.bfloat16
    np.testing.assert_allclose(np.asarray(scores_bf16_out.astype(jnp.float32)),
                               ref_scores_bf, rtol=2e-2, atol=2e-1)

    # ---- ragged persons tile (num_persons not a multiple of the tile) ----
    NP2 = 1500
    features2 = jax.random.normal(k_feat2, (N, FEAT_LEN), dtype=jnp.float32)
    table2 = jax.random.normal(k_table2, (NP2, FEAT_LEN), dtype=jnp.float32)
    labels2 = jnp.array([7, -1, 0, 1499, 1, -1, 250, 3], dtype=jnp.int32)
    s2, pf2, pp2, n2 = labeled_matching_forward(features2, labels2, table2)
    jax.block_until_ready(s2)

    ref_s2 = np.asarray(features2) @ np.asarray(table2).T
    lab2_np = np.asarray(labels2)
    ref_p2 = lab2_np[lab2_np > 0]
    k2 = int(n2)
    assert k2 == ref_p2.shape[0]
    np.testing.assert_array_equal(np.asarray(pp2)[:k2], ref_p2)
    np.testing.assert_allclose(np.asarray(s2), ref_s2, rtol=1e-4, atol=1e-3)
    np.testing.assert_allclose(np.asarray(pf2)[:k2], np.asarray(table2)[ref_p2],
                               rtol=1e-6, atol=1e-6)

    print("KERNEL_OK")
</pallas_src>

<mosaic_0001>
module attributes {stable_mosaic.version = 11 : i64} {
  func.func @_fused_kernel(%arg0: i32, %arg1: memref<8xi32, #tpu.memory_space<smem>>, %arg2: memref<1xi32, #tpu.memory_space<smem>>, %arg3: memref<8x256xf32, #tpu.memory_space<vmem>>, %arg4: memref<1024x256xf32, #tpu.memory_space<vmem>>, %arg5: memref<2048x256xf32, #tpu.memory_space<any>>, %arg6: memref<8x1024xf32, #tpu.memory_space<vmem>>, %arg7: memref<8x256xf32, #tpu.memory_space<any>>, %arg8: memref<8x256xf32, #tpu.memory_space<vmem>>, %arg9: memref<9x!tpu.dma_semaphore, #tpu.memory_space<semaphore_mem>>) attributes {dimension_semantics = [#tpu.dimension_semantics<parallel>], iteration_bounds = array<i64: 2>, scalar_prefetch = 2 : i64, scratch_operands = 2 : i64, tpu.core_type = #tpu.core_type<tc>, window_params = [{pipeline_mode = #tpu.pipeline_mode<synchronous>, transform_indices = @transform_0, window_bounds = array<i64: 8, 256>}, {transform_indices = @transform_1, window_bounds = array<i64: 1024, 256>}, {}, {transform_indices = @transform_3, window_bounds = array<i64: 8, 1024>}, {}]} {
    %c0_i32 = arith.constant 0 : i32
    %0 = arith.cmpi eq, %arg0, %c0_i32 : i32
    %1 = arith.extui %0 : i1 to i32
    %c0_i32_0 = arith.constant 0 : i32
    %2 = arith.cmpi ne, %1, %c0_i32_0 : i32
    scf.if %2 {
      %c0_8 = arith.constant 0 : index
      %10 = memref.load %arg2[%c0_8] : memref<1xi32, #tpu.memory_space<smem>>
      %c0_i32_9 = arith.constant 0 : i32
      %11 = arith.cmpi sgt, %10, %c0_i32_9 : i32
      %12 = arith.extui %11 : i1 to i32
      %c0_i32_10 = arith.constant 0 : i32
      %13 = arith.cmpi ne, %12, %c0_i32_10 : i32
      scf.if %13 {
        %c0_18 = arith.constant 0 : index
        %35 = memref.load %arg1[%c0_18] : memref<8xi32, #tpu.memory_space<smem>>
        %c0_i32_19 = arith.constant 0 : i32
        %c0_i32_20 = arith.constant 0 : i32
        %36 = tpu.memref_slice %arg5[%35, %c0_i32_20] : memref<2048x256xf32, #tpu.memory_space<any>> -> memref<1x256xf32, #tpu.memory_space<any>>
        %c0_i32_21 = arith.constant 0 : i32
        %c0_i32_22 = arith.constant 0 : i32
        %37 = tpu.memref_slice %arg8[%c0_i32_21, %c0_i32_22] : memref<8x256xf32, #tpu.memory_space<vmem>> -> memref<1x256xf32, #tpu.memory_space<vmem>>
        %38 = tpu.memref_slice %arg9[%c0_i32_19] : memref<9x!tpu.dma_semaphore, #tpu.memory_space<semaphore_mem>> -> memref<1x!tpu.dma_semaphore, #tpu.memory_space<semaphore_mem>>
        %39 = tpu.memref_squeeze %38 : memref<1x!tpu.dma_semaphore, #tpu.memory_space<semaphore_mem>> -> memref<!tpu.dma_semaphore, #tpu.memory_space<semaphore_mem>>
        tpu.enqueue_dma source(%36 : memref<1x256xf32, #tpu.memory_space<any>>) target(%37 : memref<1x256xf32, #tpu.memory_space<vmem>>) target_semaphore(%39 : memref<!tpu.dma_semaphore, #tpu.memory_space<semaphore_mem>>)
      } else {
      }
      %c1_i32 = arith.constant 1 : i32
      %14 = arith.cmpi sgt, %10, %c1_i32 : i32
      %15 = arith.extui %14 : i1 to i32
      %c0_i32_11 = arith.constant 0 : i32
      %16 = arith.cmpi ne, %15, %c0_i32_11 : i32
      scf.if %16 {
        %c1 = arith.constant 1 : index
        %35 = memref.load %arg1[%c1] : memref<8xi32, #tpu.memory_space<smem>>
        %c1_i32_18 = arith.constant 1 : i32
        %c0_i32_19 = arith.constant 0 : i32
        %36 = tpu.memref_slice %arg5[%35, %c0_i32_19] : memref<2048x256xf32, #tpu.memory_space<any>> -> memref<1x256xf32, #tpu.memory_space<any>>
        %c1_i32_20 = arith.constant 1 : i32
        %c0_i32_21 = arith.constant 0 : i32
        %37 = tpu.memref_slice %arg8[%c1_i32_20, %c0_i32_21] : memref<8x256xf32, #tpu.memory_space<vmem>> -> memref<1x256xf32, #tpu.memory_space<vmem>>
        %38 = tpu.memref_slice %arg9[%c1_i32_18] : memref<9x!tpu.dma_semaphore, #tpu.memory_space<semaphore_mem>> -> memref<1x!tpu.dma_semaphore, #tpu.memory_space<semaphore_mem>>
        %39 = tpu.memref_squeeze %38 : memref<1x!tpu.dma_semaphore, #tpu.memory_space<semaphore_mem>> -> memref<!tpu.dma_semaphore, #tpu.memory_space<semaphore_mem>>
        tpu.enqueue_dma source(%36 : memref<1x256xf32, #tpu.memory_space<any>>) target(%37 : memref<1x256xf32, #tpu.memory_space<vmem>>) target_semaphore(%39 : memref<!tpu.dma_semaphore, #tpu.memory_space<semaphore_mem>>)
      } else {
      }
      %c2_i32 = arith.constant 2 : i32
      %17 = arith.cmpi sgt, %10, %c2_i32 : i32
      %18 = arith.extui %17 : i1 to i32
      %c0_i32_12 = arith.constant 0 : i32
      %19 = arith.cmpi ne, %18, %c0_i32_12 : i32
      scf.if %19 {
        %c2 = arith.constant 2 : index
        %35 = memref.load %arg1[%c2] : memref<8xi32, #tpu.memory_space<smem>>
        %c2_i32_18 = arith.constant 2 : i32
        %c0_i32_19 = arith.constant 0 : i32
        %36 = tpu.memref_slice %arg5[%35, %c0_i32_19] : memref<2048x256xf32, #tpu.memory_space<any>> -> memref<1x256xf32, #tpu.memory_space<any>>
        %c2_i32_20 = arith.constant 2 : i32
        %c0_i32_21 = arith.constant 0 : i32
        %37 = tpu.memref_slice %arg8[%c2_i32_20, %c0_i32_21] : memref<8x256xf32, #tpu.memory_space<vmem>> -> memref<1x256xf32, #tpu.memory_space<vmem>>
        %38 = tpu.memref_slice %arg9[%c2_i32_18] : memref<9x!tpu.dma_semaphore, #tpu.memory_space<semaphore_mem>> -> memref<1x!tpu.dma_semaphore, #tpu.memory_space<semaphore_mem>>
        %39 = tpu.memref_squeeze %38 : memref<1x!tpu.dma_semaphore, #tpu.memory_space<semaphore_mem>> -> memref<!tpu.dma_semaphore, #tpu.memory_space<semaphore_mem>>
        tpu.enqueue_dma source(%36 : memref<1x256xf32, #tpu.memory_space<any>>) target(%37 : memref<1x256xf32, #tpu.memory_space<vmem>>) target_semaphore(%39 : memref<!tpu.dma_semaphore, #tpu.memory_space<semaphore_mem>>)
      } else {
      }
      %c3_i32 = arith.constant 3 : i32
      %20 = arith.cmpi sgt, %10, %c3_i32 : i32
      %21 = arith.extui %20 : i1 to i32
      %c0_i32_13 = arith.constant 0 : i32
      %22 = arith.cmpi ne, %21, %c0_i32_13 : i32
      scf.if %22 {
        %c3 = arith.constant 3 : index
        %35 = memref.load %arg1[%c3] : memref<8xi32, #tpu.memory_space<smem>>
        %c3_i32_18 = arith.constant 3 : i32
        %c0_i32_19 = arith.constant 0 : i32
        %36 = tpu.memref_slice %arg5[%35, %c0_i32_19] : memref<2048x256xf32, #tpu.memory_space<any>> -> memref<1x256xf32, #tpu.memory_space<any>>
        %c3_i32_20 = arith.constant 3 : i32
        %c0_i32_21 = arith.constant 0 : i32
        %37 = tpu.memref_slice %arg8[%c3_i32_20, %c0_i32_21] : memref<8x256xf32, #tpu.memory_space<vmem>> -> memref<1x256xf32, #tpu.memory_space<vmem>>
        %38 = tpu.memref_slice %arg9[%c3_i32_18] : memref<9x!tpu.dma_semaphore, #tpu.memory_space<semaphore_mem>> -> memref<1x!tpu.dma_semaphore, #tpu.memory_space<semaphore_mem>>
        %39 = tpu.memref_squeeze %38 : memref<1x!tpu.dma_semaphore, #tpu.memory_space<semaphore_mem>> -> memref<!tpu.dma_semaphore, #tpu.memory_space<semaphore_mem>>
        tpu.enqueue_dma source(%36 : memref<1x256xf32, #tpu.memory_space<any>>) target(%37 : memref<1x256xf32, #tpu.memory_space<vmem>>) target_semaphore(%39 : memref<!tpu.dma_semaphore, #tpu.memory_space<semaphore_mem>>)
      } else {
      }
      %c4_i32 = arith.constant 4 : i32
      %23 = arith.cmpi sgt, %10, %c4_i32 : i32
      %24 = arith.extui %23 : i1 to i32
      %c0_i32_14 = arith.constant 0 : i32
      %25 = arith.cmpi ne, %24, %c0_i32_14 : i32
      scf.if %25 {
        %c4 = arith.constant 4 : index
        %35 = memref.load %arg1[%c4] : memref<8xi32, #tpu.memory_space<smem>>
        %c4_i32_18 = arith.constant 4 : i32
        %c0_i32_19 = arith.constant 0 : i32
        %36 = tpu.memref_slice %arg5[%35, %c0_i32_19] : memref<2048x256xf32, #tpu.memory_space<any>> -> memref<1x256xf32, #tpu.memory_space<any>>
        %c4_i32_20 = arith.constant 4 : i32
        %c0_i32_21 = arith.constant 0 : i32
        %37 = tpu.memref_slice %arg8[%c4_i32_20, %c0_i32_21] : memref<8x256xf32, #tpu.memory_space<vmem>> -> memref<1x256xf32, #tpu.memory_space<vmem>>
        %38 = tpu.memref_slice %arg9[%c4_i32_18] : memref<9x!tpu.dma_semaphore, #tpu.memory_space<semaphore_mem>> -> memref<1x!tpu.dma_semaphore, #tpu.memory_space<semaphore_mem>>
        %39 = tpu.memref_squeeze %38 : memref<1x!tpu.dma_semaphore, #tpu.memory_space<semaphore_mem>> -> memref<!tpu.dma_semaphore, #tpu.memory_space<semaphore_mem>>
        tpu.enqueue_dma source(%36 : memref<1x256xf32, #tpu.memory_space<any>>) target(%37 : memref<1x256xf32, #tpu.memory_space<vmem>>) target_semaphore(%39 : memref<!tpu.dma_semaphore, #tpu.memory_space<semaphore_mem>>)
      } else {
      }
      %c5_i32 = arith.constant 5 : i32
      %26 = arith.cmpi sgt, %10, %c5_i32 : i32
      %27 = arith.extui %26 : i1 to i32
      %c0_i32_15 = arith.constant 0 : i32
      %28 = arith.cmpi ne, %27, %c0_i32_15 : i32
      scf.if %28 {
        %c5 = arith.constant 5 : index
        %35 = memref.load %arg1[%c5] : memref<8xi32, #tpu.memory_space<smem>>
        %c5_i32_18 = arith.constant 5 : i32
        %c0_i32_19 = arith.constant 0 : i32
        %36 = tpu.memref_slice %arg5[%35, %c0_i32_19] : memref<2048x256xf32, #tpu.memory_space<any>> -> memref<1x256xf32, #tpu.memory_space<any>>
        %c5_i32_20 = arith.constant 5 : i32
        %c0_i32_21 = arith.constant 0 : i32
        %37 = tpu.memref_slice %arg8[%c5_i32_20, %c0_i32_21] : memref<8x256xf32, #tpu.memory_space<vmem>> -> memref<1x256xf32, #tpu.memory_space<vmem>>
        %38 = tpu.memref_slice %arg9[%c5_i32_18] : memref<9x!tpu.dma_semaphore, #tpu.memory_space<semaphore_mem>> -> memref<1x!tpu.dma_semaphore, #tpu.memory_space<semaphore_mem>>
        %39 = tpu.memref_squeeze %38 : memref<1x!tpu.dma_semaphore, #tpu.memory_space<semaphore_mem>> -> memref<!tpu.dma_semaphore, #tpu.memory_space<semaphore_mem>>
        tpu.enqueue_dma source(%36 : memref<1x256xf32, #tpu.memory_space<any>>) target(%37 : memref<1x256xf32, #tpu.memory_space<vmem>>) target_semaphore(%39 : memref<!tpu.dma_semaphore, #tpu.memory_space<semaphore_mem>>)
      } else {
      }
      %c6_i32 = arith.constant 6 : i32
      %29 = arith.cmpi sgt, %10, %c6_i32 : i32
      %30 = arith.extui %29 : i1 to i32
      %c0_i32_16 = arith.constant 0 : i32
      %31 = arith.cmpi ne, %30, %c0_i32_16 : i32
      scf.if %31 {
        %c6 = arith.constant 6 : index
        %35 = memref.load %arg1[%c6] : memref<8xi32, #tpu.memory_space<smem>>
        %c6_i32_18 = arith.constant 6 : i32
        %c0_i32_19 = arith.constant 0 : i32
        %36 = tpu.memref_slice %arg5[%35, %c0_i32_19] : memref<2048x256xf32, #tpu.memory_space<any>> -> memref<1x256xf32, #tpu.memory_space<any>>
        %c6_i32_20 = arith.constant 6 : i32
        %c0_i32_21 = arith.constant 0 : i32
        %37 = tpu.memref_slice %arg8[%c6_i32_20, %c0_i32_21] : memref<8x256xf32, #tpu.memory_space<vmem>> -> memref<1x256xf32, #tpu.memory_space<vmem>>
        %38 = tpu.memref_slice %arg9[%c6_i32_18] : memref<9x!tpu.dma_semaphore, #tpu.memory_space<semaphore_mem>> -> memref<1x!tpu.dma_semaphore, #tpu.memory_space<semaphore_mem>>
        %39 = tpu.memref_squeeze %38 : memref<1x!tpu.dma_semaphore, #tpu.memory_space<semaphore_mem>> -> memref<!tpu.dma_semaphore, #tpu.memory_space<semaphore_mem>>
        tpu.enqueue_dma source(%36 : memref<1x256xf32, #tpu.memory_space<any>>) target(%37 : memref<1x256xf32, #tpu.memory_space<vmem>>) target_semaphore(%39 : memref<!tpu.dma_semaphore, #tpu.memory_space<semaphore_mem>>)
      } else {
      }
      %c7_i32 = arith.constant 7 : i32
      %32 = arith.cmpi sgt, %10, %c7_i32 : i32
      %33 = arith.extui %32 : i1 to i32
      %c0_i32_17 = arith.constant 0 : i32
      %34 = arith.cmpi ne, %33, %c0_i32_17 : i32
      scf.if %34 {
        %c7 = arith.constant 7 : index
        %35 = memref.load %arg1[%c7] : memref<8xi32, #tpu.memory_space<smem>>
        %c7_i32_18 = arith.constant 7 : i32
        %c0_i32_19 = arith.constant 0 : i32
        %36 = tpu.memref_slice %arg5[%35, %c0_i32_19] : memref<2048x256xf32, #tpu.memory_space<any>> -> memref<1x256xf32, #tpu.memory_space<any>>
        %c7_i32_20 = arith.constant 7 : i32
        %c0_i32_21 = arith.constant 0 : i32
        %37 = tpu.memref_slice %arg8[%c7_i32_20, %c0_i32_21] : memref<8x256xf32, #tpu.memory_space<vmem>> -> memref<1x256xf32, #tpu.memory_space<vmem>>
        %38 = tpu.memref_slice %arg9[%c7_i32_18] : memref<9x!tpu.dma_semaphore, #tpu.memory_space<semaphore_mem>> -> memref<1x!tpu.dma_semaphore, #tpu.memory_space<semaphore_mem>>
        %39 = tpu.memref_squeeze %38 : memref<1x!tpu.dma_semaphore, #tpu.memory_space<semaphore_mem>> -> memref<!tpu.dma_semaphore, #tpu.memory_space<semaphore_mem>>
        tpu.enqueue_dma source(%36 : memref<1x256xf32, #tpu.memory_space<any>>) target(%37 : memref<1x256xf32, #tpu.memory_space<vmem>>) target_semaphore(%39 : memref<!tpu.dma_semaphore, #tpu.memory_space<semaphore_mem>>)
      } else {
      }
    } else {
    }
    %c0 = arith.constant 0 : index
    %c0_1 = arith.constant 0 : index
    %3 = vector.load %arg3[%c0, %c0_1] : memref<8x256xf32, #tpu.memory_space<vmem>>, vector<8x256xf32>
    %c0_2 = arith.constant 0 : index
    %c0_3 = arith.constant 0 : index
    %4 = vector.load %arg4[%c0_2, %c0_3] : memref<1024x256xf32, #tpu.memory_space<vmem>>, vector<1024x256xf32>
    %cst = arith.constant dense<0.000000e+00> : vector<8x1024xf32>
    %5 = tpu.matmul %3, %4, %cst {dimension_numbers = #tpu.dot_dimension_numbers<[1], [1], [0], [0], [0, 0, 1, 0], [], []>, precision = #tpu.contract_precision<fp32>} : vector<8x256xf32>, vector<1024x256xf32>, vector<8x1024xf32> -> vector<8x1024xf32>
    %c0_4 = arith.constant 0 : index
    %c0_5 = arith.constant 0 : index
    %6 = vector.load %arg6[%c0_4, %c0_5] : memref<8x1024xf32, #tpu.memory_space<vmem>>, vector<8x1024xf32>
    tpu.vector_store %arg6[%c0_4, %c0_5], %5 {strides = array<i32>} : memref<8x1024xf32, #tpu.memory_space<vmem>>, vector<8x1024xf32>,
    %c0_i32_6 = arith.constant 0 : i32
    %7 = arith.cmpi eq, %arg0, %c0_i32_6 : i32
    %8 = arith.extui %7 : i1 to i32
    %c0_i32_7 = arith.constant 0 : i32
    %9 = arith.cmpi ne, %8, %c0_i32_7 : i32
    scf.if %9 {
      %c0_8 = arith.constant 0 : index
      %10 = memref.load %arg2[%c0_8] : memref<1xi32, #tpu.memory_space<smem>>
      %c0_i32_9 = arith.constant 0 : i32
      %11 = arith.cmpi sgt, %10, %c0_i32_9 : i32
      %12 = arith.extui %11 : i1 to i32
      %c0_i32_10 = arith.constant 0 : i32
      %13 = arith.cmpi ne, %12, %c0_i32_10 : i32
      scf.if %13 {
        %c0_19 = arith.constant 0 : index
        %39 = memref.load %arg1[%c0_19] : memref<8xi32, #tpu.memory_space<smem>>
        %c0_i32_20 = arith.constant 0 : i32
        %c0_i32_21 = arith.constant 0 : i32
        %40 = tpu.memref_slice %arg5[%39, %c0_i32_21] : memref<2048x256xf32, #tpu.memory_space<any>> -> memref<1x256xf32, #tpu.memory_space<any>>
        %c0_i32_22 = arith.constant 0 : i32
        %c0_i32_23 = arith.constant 0 : i32
        %41 = tpu.memref_slice %arg8[%c0_i32_22, %c0_i32_23] : memref<8x256xf32, #tpu.memory_space<vmem>> -> memref<1x256xf32, #tpu.memory_space<vmem>>
        %42 = tpu.memref_slice %arg9[%c0_i32_20] : memref<9x!tpu.dma_semaphore, #tpu.memory_space<semaphore_mem>> -> memref<1x!tpu.dma_semaphore, #tpu.memory_space<semaphore_mem>>
        %43 = tpu.memref_squeeze %42 : memref<1x!tpu.dma_semaphore, #tpu.memory_space<semaphore_mem>> -> memref<!tpu.dma_semaphore, #tpu.memory_space<semaphore_mem>>
        tpu.wait_dma2 semaphore(%43 : memref<!tpu.dma_semaphore, #tpu.memory_space<semaphore_mem>>) src(%40 : memref<1x256xf32, #tpu.memory_space<any>>) dst(%41 : memref<1x256xf32, #tpu.memory_space<vmem>>)
      } else {
      }
      %c1_i32 = arith.constant 1 : i32
      %14 = arith.cmpi sgt, %10, %c1_i32 : i32
      %15 = arith.extui %14 : i1 to i32
      %c0_i32_11 = arith.constant 0 : i32
      %16 = arith.cmpi ne, %15, %c0_i32_11 : i32
      scf.if %16 {
        %c1 = arith.constant 1 : index
        %39 = memref.load %arg1[%c1] : memref<8xi32, #tpu.memory_space<smem>>
        %c1_i32_19 = arith.constant 1 : i32
        %c0_i32_20 = arith.constant 0 : i32
        %40 = tpu.memref_slice %arg5[%39, %c0_i32_20] : memref<2048x256xf32, #tpu.memory_space<any>> -> memref<1x256xf32, #tpu.memory_space<any>>
        %c1_i32_21 = arith.constant 1 : i32
        %c0_i32_22 = arith.constant 0 : i32
        %41 = tpu.memref_slice %arg8[%c1_i32_21, %c0_i32_22] : memref<8x256xf32, #tpu.memory_space<vmem>> -> memref<1x256xf32, #tpu.memory_space<vmem>>
        %42 = tpu.memref_slice %arg9[%c1_i32_19] : memref<9x!tpu.dma_semaphore, #tpu.memory_space<semaphore_mem>> -> memref<1x!tpu.dma_semaphore, #tpu.memory_space<semaphore_mem>>
        %43 = tpu.memref_squeeze %42 : memref<1x!tpu.dma_semaphore, #tpu.memory_space<semaphore_mem>> -> memref<!tpu.dma_semaphore, #tpu.memory_space<semaphore_mem>>
        tpu.wait_dma2 semaphore(%43 : memref<!tpu.dma_semaphore, #tpu.memory_space<semaphore_mem>>) src(%40 : memref<1x256xf32, #tpu.memory_space<any>>) dst(%41 : memref<1x256xf32, #tpu.memory_space<vmem>>)
      } else {
      }
      %c2_i32 = arith.constant 2 : i32
      %17 = arith.cmpi sgt, %10, %c2_i32 : i32
      %18 = arith.extui %17 : i1 to i32
      %c0_i32_12 = arith.constant 0 : i32
      %19 = arith.cmpi ne, %18, %c0_i32_12 : i32
      scf.if %19 {
        %c2 = arith.constant 2 : index
        %39 = memref.load %arg1[%c2] : memref<8xi32, #tpu.memory_space<smem>>
        %c2_i32_19 = arith.constant 2 : i32
        %c0_i32_20 = arith.constant 0 : i32
        %40 = tpu.memref_slice %arg5[%39, %c0_i32_20] : memref<2048x256xf32, #tpu.memory_space<any>> -> memref<1x256xf32, #tpu.memory_space<any>>
        %c2_i32_21 = arith.constant 2 : i32
        %c0_i32_22 = arith.constant 0 : i32
        %41 = tpu.memref_slice %arg8[%c2_i32_21, %c0_i32_22] : memref<8x256xf32, #tpu.memory_space<vmem>> -> memref<1x256xf32, #tpu.memory_space<vmem>>
        %42 = tpu.memref_slice %arg9[%c2_i32_19] : memref<9x!tpu.dma_semaphore, #tpu.memory_space<semaphore_mem>> -> memref<1x!tpu.dma_semaphore, #tpu.memory_space<semaphore_mem>>
        %43 = tpu.memref_squeeze %42 : memref<1x!tpu.dma_semaphore, #tpu.memory_space<semaphore_mem>> -> memref<!tpu.dma_semaphore, #tpu.memory_space<semaphore_mem>>
        tpu.wait_dma2 semaphore(%43 : memref<!tpu.dma_semaphore, #tpu.memory_space<semaphore_mem>>) src(%40 : memref<1x256xf32, #tpu.memory_space<any>>) dst(%41 : memref<1x256xf32, #tpu.memory_space<vmem>>)
      } else {
      }
      %c3_i32 = arith.constant 3 : i32
      %20 = arith.cmpi sgt, %10, %c3_i32 : i32
      %21 = arith.extui %20 : i1 to i32
      %c0_i32_13 = arith.constant 0 : i32
      %22 = arith.cmpi ne, %21, %c0_i32_13 : i32
      scf.if %22 {
        %c3 = arith.constant 3 : index
        %39 = memref.load %arg1[%c3] : memref<8xi32, #tpu.memory_space<smem>>
        %c3_i32_19 = arith.constant 3 : i32
        %c0_i32_20 = arith.constant 0 : i32
        %40 = tpu.memref_slice %arg5[%39, %c0_i32_20] : memref<2048x256xf32, #tpu.memory_space<any>> -> memref<1x256xf32, #tpu.memory_space<any>>
        %c3_i32_21 = arith.constant 3 : i32
        %c0_i32_22 = arith.constant 0 : i32
        %41 = tpu.memref_slice %arg8[%c3_i32_21, %c0_i32_22] : memref<8x256xf32, #tpu.memory_space<vmem>> -> memref<1x256xf32, #tpu.memory_space<vmem>>
        %42 = tpu.memref_slice %arg9[%c3_i32_19] : memref<9x!tpu.dma_semaphore, #tpu.memory_space<semaphore_mem>> -> memref<1x!tpu.dma_semaphore, #tpu.memory_space<semaphore_mem>>
        %43 = tpu.memref_squeeze %42 : memref<1x!tpu.dma_semaphore, #tpu.memory_space<semaphore_mem>> -> memref<!tpu.dma_semaphore, #tpu.memory_space<semaphore_mem>>
        tpu.wait_dma2 semaphore(%43 : memref<!tpu.dma_semaphore, #tpu.memory_space<semaphore_mem>>) src(%40 : memref<1x256xf32, #tpu.memory_space<any>>) dst(%41 : memref<1x256xf32, #tpu.memory_space<vmem>>)
      } else {
      }
      %c4_i32 = arith.constant 4 : i32
      %23 = arith.cmpi sgt, %10, %c4_i32 : i32
      %24 = arith.extui %23 : i1 to i32
      %c0_i32_14 = arith.constant 0 : i32
      %25 = arith.cmpi ne, %24, %c0_i32_14 : i32
      scf.if %25 {
        %c4 = arith.constant 4 : index
        %39 = memref.load %arg1[%c4] : memref<8xi32, #tpu.memory_space<smem>>
        %c4_i32_19 = arith.constant 4 : i32
        %c0_i32_20 = arith.constant 0 : i32
        %40 = tpu.memref_slice %arg5[%39, %c0_i32_20] : memref<2048x256xf32, #tpu.memory_space<any>> -> memref<1x256xf32, #tpu.memory_space<any>>
        %c4_i32_21 = arith.constant 4 : i32
        %c0_i32_22 = arith.constant 0 : i32
        %41 = tpu.memref_slice %arg8[%c4_i32_21, %c0_i32_22] : memref<8x256xf32, #tpu.memory_space<vmem>> -> memref<1x256xf32, #tpu.memory_space<vmem>>
        %42 = tpu.memref_slice %arg9[%c4_i32_19] : memref<9x!tpu.dma_semaphore, #tpu.memory_space<semaphore_mem>> -> memref<1x!tpu.dma_semaphore, #tpu.memory_space<semaphore_mem>>
        %43 = tpu.memref_squeeze %42 : memref<1x!tpu.dma_semaphore, #tpu.memory_space<semaphore_mem>> -> memref<!tpu.dma_semaphore, #tpu.memory_space<semaphore_mem>>
        tpu.wait_dma2 semaphore(%43 : memref<!tpu.dma_semaphore, #tpu.memory_space<semaphore_mem>>) src(%40 : memref<1x256xf32, #tpu.memory_space<any>>) dst(%41 : memref<1x256xf32, #tpu.memory_space<vmem>>)
      } else {
      }
      %c5_i32 = arith.constant 5 : i32
      %26 = arith.cmpi sgt, %10, %c5_i32 : i32
      %27 = arith.extui %26 : i1 to i32
      %c0_i32_15 = arith.constant 0 : i32
      %28 = arith.cmpi ne, %27, %c0_i32_15 : i32
      scf.if %28 {
        %c5 = arith.constant 5 : index
        %39 = memref.load %arg1[%c5] : memref<8xi32, #tpu.memory_space<smem>>
        %c5_i32_19 = arith.constant 5 : i32
        %c0_i32_20 = arith.constant 0 : i32
        %40 = tpu.memref_slice %arg5[%39, %c0_i32_20] : memref<2048x256xf32, #tpu.memory_space<any>> -> memref<1x256xf32, #tpu.memory_space<any>>
        %c5_i32_21 = arith.constant 5 : i32
        %c0_i32_22 = arith.constant 0 : i32
        %41 = tpu.memref_slice %arg8[%c5_i32_21, %c0_i32_22] : memref<8x256xf32, #tpu.memory_space<vmem>> -> memref<1x256xf32, #tpu.memory_space<vmem>>
        %42 = tpu.memref_slice %arg9[%c5_i32_19] : memref<9x!tpu.dma_semaphore, #tpu.memory_space<semaphore_mem>> -> memref<1x!tpu.dma_semaphore, #tpu.memory_space<semaphore_mem>>
        %43 = tpu.memref_squeeze %42 : memref<1x!tpu.dma_semaphore, #tpu.memory_space<semaphore_mem>> -> memref<!tpu.dma_semaphore, #tpu.memory_space<semaphore_mem>>
        tpu.wait_dma2 semaphore(%43 : memref<!tpu.dma_semaphore, #tpu.memory_space<semaphore_mem>>) src(%40 : memref<1x256xf32, #tpu.memory_space<any>>) dst(%41 : memref<1x256xf32, #tpu.memory_space<vmem>>)
      } else {
      }
      %c6_i32 = arith.constant 6 : i32
      %29 = arith.cmpi sgt, %10, %c6_i32 : i32
      %30 = arith.extui %29 : i1 to i32
      %c0_i32_16 = arith.constant 0 : i32
      %31 = arith.cmpi ne, %30, %c0_i32_16 : i32
      scf.if %31 {
        %c6 = arith.constant 6 : index
        %39 = memref.load %arg1[%c6] : memref<8xi32, #tpu.memory_space<smem>>
        %c6_i32_19 = arith.constant 6 : i32
        %c0_i32_20 = arith.constant 0 : i32
        %40 = tpu.memref_slice %arg5[%39, %c0_i32_20] : memref<2048x256xf32, #tpu.memory_space<any>> -> memref<1x256xf32, #tpu.memory_space<any>>
        %c6_i32_21 = arith.constant 6 : i32
        %c0_i32_22 = arith.constant 0 : i32
        %41 = tpu.memref_slice %arg8[%c6_i32_21, %c0_i32_22] : memref<8x256xf32, #tpu.memory_space<vmem>> -> memref<1x256xf32, #tpu.memory_space<vmem>>
        %42 = tpu.memref_slice %arg9[%c6_i32_19] : memref<9x!tpu.dma_semaphore, #tpu.memory_space<semaphore_mem>> -> memref<1x!tpu.dma_semaphore, #tpu.memory_space<semaphore_mem>>
        %43 = tpu.memref_squeeze %42 : memref<1x!tpu.dma_semaphore, #tpu.memory_space<semaphore_mem>> -> memref<!tpu.dma_semaphore, #tpu.memory_space<semaphore_mem>>
        tpu.wait_dma2 semaphore(%43 : memref<!tpu.dma_semaphore, #tpu.memory_space<semaphore_mem>>) src(%40 : memref<1x256xf32, #tpu.memory_space<any>>) dst(%41 : memref<1x256xf32, #tpu.memory_space<vmem>>)
      } else {
      }
      %c7_i32 = arith.constant 7 : i32
      %32 = arith.cmpi sgt, %10, %c7_i32 : i32
      %33 = arith.extui %32 : i1 to i32
      %c0_i32_17 = arith.constant 0 : i32
      %34 = arith.cmpi ne, %33, %c0_i32_17 : i32
      scf.if %34 {
        %c7 = arith.constant 7 : index
        %39 = memref.load %arg1[%c7] : memref<8xi32, #tpu.memory_space<smem>>
        %c7_i32_19 = arith.constant 7 : i32
        %c0_i32_20 = arith.constant 0 : i32
        %40 = tpu.memref_slice %arg5[%39, %c0_i32_20] : memref<2048x256xf32, #tpu.memory_space<any>> -> memref<1x256xf32, #tpu.memory_space<any>>
        %c7_i32_21 = arith.constant 7 : i32
        %c0_i32_22 = arith.constant 0 : i32
        %41 = tpu.memref_slice %arg8[%c7_i32_21, %c0_i32_22] : memref<8x256xf32, #tpu.memory_space<vmem>> -> memref<1x256xf32, #tpu.memory_space<vmem>>
        %42 = tpu.memref_slice %arg9[%c7_i32_19] : memref<9x!tpu.dma_semaphore, #tpu.memory_space<semaphore_mem>> -> memref<1x!tpu.dma_semaphore, #tpu.memory_space<semaphore_mem>>
        %43 = tpu.memref_squeeze %42 : memref<1x!tpu.dma_semaphore, #tpu.memory_space<semaphore_mem>> -> memref<!tpu.dma_semaphore, #tpu.memory_space<semaphore_mem>>
        tpu.wait_dma2 semaphore(%43 : memref<!tpu.dma_semaphore, #tpu.memory_space<semaphore_mem>>) src(%40 : memref<1x256xf32, #tpu.memory_space<any>>) dst(%41 : memref<1x256xf32, #tpu.memory_space<vmem>>)
      } else {
      }
      %c8_i32 = arith.constant 8 : i32
      %35 = tpu.memref_slice %arg9[%c8_i32] : memref<9x!tpu.dma_semaphore, #tpu.memory_space<semaphore_mem>> -> memref<1x!tpu.dma_semaphore, #tpu.memory_space<semaphore_mem>>
      %36 = tpu.memref_squeeze %35 : memref<1x!tpu.dma_semaphore, #tpu.memory_space<semaphore_mem>> -> memref<!tpu.dma_semaphore, #tpu.memory_space<semaphore_mem>>
      tpu.enqueue_dma source(%arg8 : memref<8x256xf32, #tpu.memory_space<vmem>>) target(%arg7 : memref<8x256xf32, #tpu.memory_space<any>>) target_semaphore(%36 : memref<!tpu.dma_semaphore, #tpu.memory_space<semaphore_mem>>)
      %c8_i32_18 = arith.constant 8 : i32
      %37 = tpu.memref_slice %arg9[%c8_i32_18] : memref<9x!tpu.dma_semaphore, #tpu.memory_space<semaphore_mem>> -> memref<1x!tpu.dma_semaphore, #tpu.memory_space<semaphore_mem>>
      %38 = tpu.memref_squeeze %37 : memref<1x!tpu.dma_semaphore, #tpu.memory_space<semaphore_mem>> -> memref<!tpu.dma_semaphore, #tpu.memory_space<semaphore_mem>>
      tpu.wait_dma2 semaphore(%38 : memref<!tpu.dma_semaphore, #tpu.memory_space<semaphore_mem>>) src(%arg8 : memref<8x256xf32, #tpu.memory_space<vmem>>) dst(%arg7 : memref<8x256xf32, #tpu.memory_space<any>>)
    } else {
    }
    return
  }
  func.func @transform_0(%arg0: i32, %arg1: memref<8xi32, #tpu.memory_space<smem>>, %arg2: memref<1xi32, #tpu.memory_space<smem>>) -> (i32, i32) {
    %c0_i32 = arith.constant 0 : i32
    %c0_i32_0 = arith.constant 0 : i32
    %c0_i32_1 = arith.constant 0 : i32
    return %c0_i32, %c0_i32_0 : i32, i32
  }
  func.func @transform_1(%arg0: i32, %arg1: memref<8xi32, #tpu.memory_space<smem>>, %arg2: memref<1xi32, #tpu.memory_space<smem>>) -> (i32, i32) {
    %c0_i32 = arith.constant 0 : i32
    %c0_i32_0 = arith.constant 0 : i32
    return %arg0, %c0_i32 : i32, i32
  }
  func.func @transform_3(%arg0: i32, %arg1: memref<8xi32, #tpu.memory_space<smem>>, %arg2: memref<1xi32, #tpu.memory_space<smem>>) -> (i32, i32) {
    %c0_i32 = arith.constant 0 : i32
    %c0_i32_0 = arith.constant 0 : i32
    return %c0_i32, %arg0 : i32, i32
  }
}

</mosaic_0001>

<bundles_post_ra>
// kernel: labeled_matching_forward.1
= control target key start
LH: loop header
LB: loop body
LE: loop exit
PB: predicated region body
PF: predicated region fallthrough
CT: control target
= control target key end

     0   :  { %s13396_s0 = inlined_call_operand.vmem [shape: s32[8], index: 0, kind: input, shape index: {}]   ;;  %s13397_s1 = inlined_call_operand.<no memory space> [shape: s32[1], index: 1, kind: input, shape index: {}]   ;;  %s13398_s2 = inlined_call_operand.hbm [shape: f32[8,256], index: 2, kind: input, shape index: {}]   ;;  %s13399_s3 = inlined_call_operand.hbm [shape: f32[2048,256], index: 3, kind: input, shape index: {}, may-alias: {3,4}]   ;;  %s13400_s4 = inlined_call_operand.hbm [shape: f32[2048,256], index: 4, kind: input, shape index: {}, may-alias: {3,4}]   ;;  %s13401_s5 = inlined_call_operand.hbm [shape: f32[8,2048], index: 5, kind: output, shape index: {0}]   ;;  %s13402_s6 = inlined_call_operand.vmem [shape: f32[8,256], index: 6, kind: output, shape index: {1}]  }
   0x1   :  { %14534 = sst [smem:[#allocation269_spill]] %s13398_s2  ;;  %s12_s23 = sshll.u32 %s13396_s0, 4  ;;  %s13_s23 = int_to_ptr.vmem [resolvable:$true] %s12_s23 }
   0x2   :  { %14535 = sst [smem:[#allocation270_spill]] %s13399_s3  ;;  %s7852_s26 = scalar_lea.vmem %s13_s23, 16 }
   0x3   :  { %16 = sst [smem:[#allocation6]] %s13397_s1  ;;  %p7853_p0 = scmp.ne.s32.totalorder %s13_s23, %s7852_s26 }
   0x4   :  { %p7857_p1 = scmp.lt.s32.totalorder %s13_s23, %s13_s23  ;;  %p7858_p2 = scmp.lt.s32.totalorder %s7852_s26, %s7852_s26 }
   0x6   :  { %p7859_p3 = por %p7858_p2, %p7857_p1 }
   0x8   :  { %p7860_p4 = pnand %p7859_p3, %p7853_p0 }
   0xa   :  { %7863 = shalt.err (!%p7860_p4)  }
   0xb   :  { %s8270_s27 = smov [#allocation5]  }
   0xc   :  { %15 = dma.vmem_to_smem %s13_s23, 16, %s8270_s27, [#allocation4] }
   0xd   :  { %8206 = dma.done.wait [#allocation4], 16 }
   0xe   :  { %8207 = vsyncadd [#allocation4], 4294967280 }
   0xf   :  { %18 = sfence }
  0x10   :  { %19 = vsyncpa [#allocation8], 0 }
  0x11   :  { %20 = vsyncpa [#allocation11], 0 }
  0x12   :  { %22 = vsyncpa [#allocation11 + $0x1], 0 }
  0x13   :  { %23 = vsyncpa [#allocation9], 0 }
  0x14   :  { %25 = vsyncpa [#allocation9 + $0x1], 0  ;;  %s8327_s0 = smov 0   ;;  %s8329_s1 = smov 0  }
  0x15   :  { %s8331_s28 = smov 0   ;;  %s8333_s29 = smov 0  }
  0x16 LB: > { %14536 = sst [smem:[#allocation35_spill]] %s8260_s1  ;;  %s8348_s30 = sadd.s32 4294967295, %s8268_s29   ;;  %s8268_s29 = sphi %s8333_s29, %s16516_s29   ;;  %s8264_s28 = sphi %s8331_s28, %s16515_s28   ;;  %s8260_s1 = sphi %s8329_s1, %s16514_s1   ;;  %s8256_s0 = sphi %s8327_s0, %s16513_s0  }
  0x17   : > { %14537 = sst [smem:[#allocation36_spill]] %s8264_s28  ;;  %s6062_s7 = sadd.s32 4294967294, %s8268_s29  }
  0x18   : > { %s8352_s8 = sadd.s32 1, %s8268_s29   ;;  %s59_s9 = sadd.s32 1, %s8264_s28 }
  0x19   : > { %s56_s10 = ssub.s32 %s8268_s29, %s8352_s8  ;;  %p66_p5 = scmp.ne.s32.totalorder %s8264_s28, %s8260_s1 }
  0x1a   : > { %p57_p6 = scmp.eq.s32.totalorder %s56_s10, 0  ;;  %p67_p7 = scmp.eq.s32.totalorder %s8268_s29, 0 }
  0x1b   : > { %p72_p8 = scmp.ne.s32.totalorder %s8260_s1, %s8256_s0  ;;  %p13403_p9 = scmp.eq.s32.totalorder %s8348_s30, 0 }
  0x1c   : > { %s8364_s11 = scalar_select %p57_p6, %s8264_s28, %s59_s9  }
  0x1d   : > { %p8366_p10 = por %p67_p7, %p66_p5  ;;  %p8372_p11 = por %p13403_p9, %p72_p8 }
  0x1e   : > { %14538 = sst [smem:[#allocation37_spill]] %s8364_s11  ;;  %p96_p12 = scmp.eq.s32.totalorder %s8348_s30, 1 }
  0x1f   : > { %s14540_s13 = scalar_select %p8372_p11, 1, 0 }
  0x20   : > { %p102_p13 = scmp.eq.s32.totalorder %s6062_s7, 1  ;;  %p6063_p0 = scmp.ge.s32.totalorder %s8268_s29, 1 }
  0x21   : > { %p109_p1 = scmp.lt.s32.totalorder %s8268_s29, 3  ;;  %p8379_p2 = por %p96_p12, %p66_p5 }
  0x22   : > { %p8383_p3 = por %p102_p13, %p72_p8  ;;  %s8271_s17 = smov [#allocation7]  }
  0x23   : > { %s14541_s14 = scalar_select %p8379_p2, 1, 0 }
  0x24   : > { %s14542_s15 = scalar_select %p8383_p3, 1, 0 }
  0x25   : > { %p8387_p4 = pnand %p6063_p0, %p109_p1  ;;  %s122_s18 = sshll.u32 %s8271_s17, 4  ;;  %s123_s18 = int_to_ptr.vmem [resolvable:$true] %s122_s18 }
  0x26   : > { %p7786_p5 = scmp.lt.s32.totalorder %s8268_s29, 2  ;;  %p14544_p12 = scmp.eq.s32.totalorder %s8348_s30, 0 }
  0x27   : > { %s14543_s16 = scalar_select %p8387_p4, 1, 0 }
  0x28   : > { %p7748_p9 = pneg %p8387_p4  ;;  %s133_s20 = sand.u32 1, %s8264_s28  }
  0x29   : > { %p8405_p8 = pnand %p7786_p5, %p8366_p10  ;;  %s6066_s22 = sshll.u32 %s133_s20, 11 }
  0x2a   : > { %p8398_p11 = pnand %p7748_p9, %p14544_p12  ;;  %s14547_s2 = sld [smem:[#allocation269_spill]] }
  0x2b   : > { %s14546_s21 = scalar_select %p8405_p8, 1, 0 }
  0x2c   : > { %p7866_p9 = pneg %p8398_p11 }
  0x30   : > { %s7864_s25 = scalar_lea.hbm %s14547_s2, 256 }
  0x31   : > { %p7865_p13 = scmp.ne.s32.totalorder %s14547_s2, %s7864_s25  ;;  %p7871_p10 = scmp.lt.u32.totalorder %s7864_s25, %s14547_s2 }
  0x33   : > { %p7867_p0 = pnand %p7866_p9, %p7865_p13 }
  0x35   : > { %p7868_p1 = pneg %p7867_p0 }
  0x37   : > { %p7873_p5 = pnand %p7871_p10, %p7868_p1 }
  0x39   : > { %7876 = shalt.err (!%p7873_p5)
}
  0x3a   : > { %s7877_s10 = scalar_lea.vmem %s123_s18, 256  ;;  %p7885_p3 = scmp.lt.s32.totalorder %s123_s18, %s123_s18 }
  0x3b   : > { %p7878_p12 = scmp.ne.s32.totalorder %s123_s18, %s7877_s10  ;;  %p7886_p2 = scmp.lt.s32.totalorder %s7877_s10, %s7877_s10 }
  0x3d   : > { %p7880_p7 = pnand %p7878_p12, %p7866_p9  ;;  %p7887_p4 = por %p7886_p2, %p7885_p3 }
  0x3f   : > { %p7881_p6 = pneg %p7880_p7 }
  0x41   : > { %p7888_p8 = pnand %p7887_p4, %p7881_p6 }
  0x43   : > { %7891 = shalt.err (!%p7888_p8)
}
  0x44   : > { %7751 = dma.hbm_to_vmem [thread:$0]  (!%p8398_p11), %s14547_s2, 256, %s123_s18, [#allocation8]  }
  0x45   : > { %s6130_s23 = sshll.u32 %s8268_s29, 15  ;;  %s137_s24 = scalar_lea.vmem [#allocation10], %s6066_s22 }
  0x46   : > { %s145_s25 = sshll.u32 %s137_s24, 4  ;;  %s14548_s3 = sld [smem:[#allocation270_spill]]  ;;  %s8431_s25 = int_to_ptr.vmem [resolvable:$true] %s145_s25 }
  0x47   : > { %s8433_s19 = scalar_lea.sflag [#allocation11], %s133_s20  ;;  %p14549_p3 = scmp.ne.s32.totalorder %s14546_s21, 0 }
  0x49   : > { %p7894_p11 = pneg %p14549_p3 }
  0x4c   : > { %s8429_s7 = scalar_lea.hbm %s14548_s3, %s6130_s23  ;;  %s7897_s10 = scalar_lea.hbm %s14548_s3, 65536 }
  0x4d   : > { %s7892_s9 = scalar_lea.hbm %s8429_s7, 32768  ;;  %p7898_p7 = scmp.lt.u32.totalorder %s8429_s7, %s14548_s3 }
  0x4e   : > { %p7893_p2 = scmp.ne.s32.totalorder %s8429_s7, %s7892_s9  ;;  %p7899_p8 = scmp.lt.u32.totalorder %s7897_s10, %s7892_s9 }
  0x4f   : > { %p7901_p9 = scmp.lt.u32.totalorder %s7892_s9, %s8429_s7 }
  0x50   : > { %p7895_p4 = pnand %p7894_p11, %p7893_p2  ;;  %p7900_p13 = por %p7899_p8, %p7898_p7 }
  0x52   : > { %p7896_p6 = pneg %p7895_p4  ;;  %p7902_p0 = por %p7901_p9, %p7900_p13 }
  0x54   : > { %p7903_p1 = pnand %p7902_p0, %p7896_p6 }
  0x56   : > { %7906 = shalt.err (!%p7903_p1)
}
  0x57   : > { %s7907_s20 = scalar_lea.vmem %s8431_s25, 32768  ;;  %s8272_s23 = smov [#allocation10]  }
  0x58   : > { %p7908_p10 = scmp.ne.s32.totalorder %s8431_s25, %s7907_s20  ;;  %s7912_s24 = sshll.u32 %s8272_s23, 4  ;;  %s7913_s24 = int_to_ptr.vmem [resolvable:$false] %s7912_s24 }
  0x59   : > { %s7914_s26 = scalar_lea.vmem %s7913_s24, 65536  ;;  %p7915_p2 = scmp.lt.s32.totalorder %s8431_s25, %s7913_s24 }
  0x5a   : > { %p7910_p5 = pnand %p7908_p10, %p7894_p11  ;;  %p7916_p4 = scmp.lt.s32.totalorder %s7914_s26, %s7907_s20 }
  0x5c   : > { %p7911_p12 = pneg %p7910_p5  ;;  %p7917_p7 = por %p7916_p4, %p7915_p2 }
  0x5e   : > { %p7918_p8 = pnand %p7917_p7, %p7911_p12 }
  0x60   : > { %7921 = shalt.err (!%p7918_p8)
}
  0x61   : > { %s8273_s27 = smov 256   ;;  %s8274_s9 = smov 16  }
  0x62   : > { %7755 = dma.hbm_to_vmem [thread:$0]  (!%p14549_p3), %s8429_s7, 32768, %s8431_s25, %s8433_s19, %s8273_s27, %s8273_s27, %s8274_s9  }
  0x63   : > { %p14550_p11 = scmp.ne.s32.totalorder %s14543_s16, 0 }
  0x65   : > { %157 = sbr.rel (%p14550_p11) target bundleno = 2049 (0x801), region = 28 }
  0x6c   : > { %p14551_p6 = scmp.eq.s32.totalorder %s8348_s30, 0 }
  0x6e   : > { %8209 = dma.done.wait (%p14551_p6), [#allocation8], 256   ;;  %p14552_p13 = pmov %p14551_p6 }
  0x6f   : > { %s8468_s18 = sand.u32 1, %s8260_s1   ;;  %p14553_p3 = scmp.ne.s32.totalorder %s14540_s13, 0 }
  0x70   : > { %8211 = vsyncadd (%p14552_p13), [#allocation8], 4294967040  ;;  %s6072_s22 = sshll.u32 %s8468_s18, 11  ;;  %s164_s10 = scalar_lea.sflag [#allocation11], %s8468_s18 }
  0x71   : > { %s8472_s12 = scalar_lea.vmem [#allocation10], %s6072_s22 }
  0x72   : > { %8213 = dma.done.wait (%p14553_p3), %s164_s10, 32768  }
  0x73   : > { %8215 = vsyncadd (%p14553_p3), %s164_s10, 4294934528  ;;  %v340_v0 = vld [vmem:[%s8472_s12 + $0x8] sm:$0xff]  ;;  %v342_v1 = vld [vmem:[%s8472_s12 + $0x18] sm:$0xff]  ;;  %s6073_s13 = sshll.u32 %s8468_s18, 6  ;;  %s12991_s21 = sld [smem:[#allocation6]] }
  0x74   : > { %v404_v2 = vld [vmem:[%s8472_s12 + $0x208] sm:$0xff]  ;;  %v595_v3 = vand.u32 4294901760, %v340_v0  ;;  %v599_v4 = vand.u32 4294901760, %v342_v1  ;;  %v406_v5 = vld [vmem:[%s8472_s12 + $0x218] sm:$0xff]  ;;  %v339_v7 = vld [vmem:[%s8472_s12] sm:$0xff]  ;;  %s12414_s16 = scalar_lea.vmem [#allocation12], %s6073_s13  ;;  %p16425_p0 = pmov %p14551_p6 }
  0x75   : > { %v1879_v6 = vand.u32 4294901760, %v404_v2  ;;  %v341_v8 = vld [vmem:[%s8472_s12 + $0x10] sm:$0xff]  ;;  %v1883_v9 = vand.u32 4294901760, %v406_v5  ;;  %v597_v10 = vand.u32 4294901760, %v339_v7  ;;  %v403_v12 = vld [vmem:[%s8472_s12 + $0x200] sm:$0xff]  ;;  %v344_v14 = vld [vmem:[%s8472_s12 + $0x28] sm:$0xff] }
  0x76   : > { %v601_v11 = vand.u32 4294901760, %v341_v8  ;;  %v405_v13 = vld [vmem:[%s8472_s12 + $0x210] sm:$0xff]  ;;  %v8487_v15 = vpack.c.bf16 %v599_v4, %v595_v3  ;;  %v8489_v16 = vsub.f32 %v340_v0, %v595_v3  ;;  %v8491_v17 = vsub.f32 %v342_v1, %v599_v4  ;;  %v346_v19 = vld [vmem:[%s8472_s12 + $0x38] sm:$0xff]  ;;  %v408_v20 = vld [vmem:[%s8472_s12 + $0x228] sm:$0xff]  ;;  %s199_s25 = sld [smem:[#allocation5]]  ;;  %s8275_s7 = smov [#allocation2]  }
  0x77   : > { %v8493_v18 = vsub.f32 %v404_v2, %v1879_v6  ;;  %v410_v21 = vld [vmem:[%s8472_s12 + $0x238] sm:$0xff]  ;;  %v8498_v22 = vpack.c.bf16 %v1883_v9, %v1879_v6  ;;  %v8500_v23 = vsub.f32 %v406_v5, %v1883_v9  ;;  %v8504_v25 = vsub.f32 %v339_v7, %v597_v10  ;;  %v343_v26 = vld [vmem:[%s8472_s12 + $0x20] sm:$0xff]  ;;  %v345_v31 = vld [vmem:[%s8472_s12 + $0x30] sm:$0xff]  ;;  %s207_s19 = sshll.u32 %s8275_s7, 4  ;;  %s12998_s17 = sld [smem:[#allocation5 + $0x1]]  ;;  %s12996_s19 = int_to_ptr.vmem [resolvable:$true] %s207_s19 }
  0x78   : > { %14554 = vst [vmem:[#allocation38_spill] sm:$0xff] %v8487_v15  ;;  %14555 = vst [vmem:[#allocation39_spill] sm:$0xff] %v8489_v16  ;;  %v8502_v24 = vpack.c.bf16 %v601_v11, %v597_v10  ;;  %6133 = vmatprep.subr.bf16.mxu0 %v8487_v15  ;;  %v8508_v27 = vsub.f32 %v341_v8, %v601_v11  ;;  %v1881_v28 = vand.u32 4294901760, %v403_v12  ;;  %v1885_v29 = vand.u32 4294901760, %v405_v13  ;;  %v407_v36 = vld [vmem:[%s8472_s12 + $0x220] sm:$0xff]  ;;  %v409_v37 = vld [vmem:[%s8472_s12 + $0x230] sm:$0xff] }
  0x79   : > { %14556 = vst [vmem:[#allocation40_spill] sm:$0xff] %v8491_v17  ;;  %14557 = vst [vmem:[#allocation41_spill] sm:$0xff] %v8493_v18  ;;  %v603_v30 = vand.u32 4294901760, %v344_v14  ;;  %6517 = vmatprep.subr.bf16.mxu1 %v8498_v22  ;;  %v607_v32 = vand.u32 4294901760, %v346_v19  ;;  %v1887_v33 = vand.u32 4294901760, %v408_v20  ;;  %v1891_v34 = vand.u32 4294901760, %v410_v21 }
  0x7a   : > { %14558 = vst [vmem:[#allocation42_spill] sm:$0xff] %v8498_v22  ;;  %14559 = vst [vmem:[#allocation43_spill] sm:$0xff] %v8500_v23  ;;  %6135 = vmatpush1.bf16.xpose.msra.mxu0 %v8502_v24  ;;  %v605_v35 = vand.u32 4294901760, %v343_v26  ;;  %v8515_v38 = vpack.c.bf16 %v1885_v29, %v1881_v28  ;;  %v8517_v39 = vsub.f32 %v403_v12, %v1881_v28  ;;  %v348_v42 = vld [vmem:[%s8472_s12 + $0x48] sm:$0xff]  ;;  %v350_v43 = vld [vmem:[%s8472_s12 + $0x58] sm:$0xff]  ;;  %v609_v51 = vand.u32 4294901760, %v345_v31 }
  0x7b   : > { %14560 = vst [vmem:[#allocation44_spill] sm:$0xff] %v8502_v24  ;;  %14561 = vst [vmem:[#allocation45_spill] sm:$0xff] %v8504_v25  ;;  %v8519_v40 = vsub.f32 %v405_v13, %v1885_v29  ;;  %v8521_v41 = vsub.f32 %v344_v14, %v603_v30  ;;  %v412_v44 = vld [vmem:[%s8472_s12 + $0x248] sm:$0xff]  ;;  %v8526_v45 = vpack.c.bf16 %v607_v32, %v603_v30  ;;  %v414_v49 = vld [vmem:[%s8472_s12 + $0x258] sm:$0xff]  ;;  %v1889_v53 = vand.u32 4294901760, %v407_v36  ;;  %s13000_s20 = sld [smem:[#allocation5 + $0x2]] }
  0x7c   : > { %14562 = vst [vmem:[#allocation46_spill] sm:$0xff] %v8508_v27  ;;  %14563 = vst [vmem:[#allocation47_spill] sm:$0xff] %v8515_v38  ;;  %v8528_v46 = vsub.f32 %v346_v19, %v607_v32  ;;  %v8530_v47 = vpack.c.bf16 %v1891_v34, %v1887_v33  ;;  %v8532_v48 = vsub.f32 %v408_v20, %v1887_v33  ;;  %6519 = vmatpush1.bf16.xpose.msra.mxu1 %v8515_v38  ;;  %v347_v58 = vld [vmem:[%s8472_s12 + $0x40] sm:$0xff]  ;;  %v349_v59 = vld [vmem:[%s8472_s12 + $0x50] sm:$0xff]  ;;  %s8276_s23 = smov [#allocation2 + $0x1]   ;;  %p7789_p9 = scmp.gt.s32.totalorder %s12991_s21, 0 }
  0x7d   : > { %14564 = vst [vmem:[#allocation48_spill] sm:$0xff] %v8517_v39  ;;  %14565 = vst [vmem:[#allocation49_spill] sm:$0xff] %v8519_v40  ;;  %v8536_v50 = vsub.f32 %v410_v21, %v1891_v34  ;;  %v8538_v52 = vsub.f32 %v343_v26, %v605_v35  ;;  %6137 = vmatprep.subr.bf16.mxu0 %v8526_v45  ;;  %v1893_v54 = vand.u32 4294901760, %v409_v37  ;;  %v611_v55 = vand.u32 4294901760, %v348_v42  ;;  %v411_v0 = vld [vmem:[%s8472_s12 + $0x240] sm:$0xff]  ;;  %v413_v1 = vld [vmem:[%s8472_s12 + $0x250] sm:$0xff] }
  0x7e   : > { %14566 = vst [vmem:[#allocation50_spill] sm:$0xff] %v8521_v41  ;;  %14567 = vst [vmem:[#allocation51_spill] sm:$0xff] %v8526_v45  ;;  %6521 = vmatprep.subr.bf16.mxu1 %v8530_v47  ;;  %v615_v56 = vand.u32 4294901760, %v350_v43  ;;  %v1895_v57 = vand.u32 4294901760, %v412_v44  ;;  %v8544_v60 = vpack.c.bf16 %v609_v51, %v605_v35  ;;  %v8546_v61 = vsub.f32 %v345_v31, %v609_v51  ;;  %v352_v2 = vld [vmem:[%s8472_s12 + $0x68] sm:$0xff]  ;;  %v354_v7 = vld [vmem:[%s8472_s12 + $0x78] sm:$0xff]  ;;  %p13009_p1 = pnand %p7789_p9, %p16425_p0 }
  0x7f   : > { %14568 = vst [vmem:[#allocation52_spill] sm:$0xff] %v8528_v46  ;;  %14569 = vst [vmem:[#allocation53_spill] sm:$0xff] %v8530_v47  ;;  %v8548_v62 = vsub.f32 %v407_v36, %v1889_v53  ;;  %v1899_v63 = vand.u32 4294901760, %v414_v49  ;;  %v8553_v3 = vpack.c.bf16 %v1893_v54, %v1889_v53  ;;  %v8555_v4 = vsub.f32 %v409_v37, %v1893_v54  ;;  %v416_v8 = vld [vmem:[%s8472_s12 + $0x268] sm:$0xff]  ;;  %v418_v9 = vld [vmem:[%s8472_s12 + $0x278] sm:$0xff]  ;;  %s13002_s24 = sshll.u32 %s8276_s23, 4  ;;  %s13063_s24 = int_to_ptr.vmem [resolvable:$true] %s13002_s24 }
  0x80   : > { %14570 = vst [vmem:[#allocation54_spill] sm:$0xff] %v8532_v48  ;;  %14571 = vst [vmem:[#allocation55_spill] sm:$0xff] %v8536_v50  ;;  %v8557_v5 = vpack.c.bf16 %v615_v56, %v611_v55  ;;  %v8559_v6 = vsub.f32 %v348_v42, %v611_v55  ;;  %v8564_v10 = vsub.f32 %v350_v43, %v615_v56  ;;  %v613_v14 = vand.u32 4294901760, %v347_v58  ;;  %v351_v31 = vld [vmem:[%s8472_s12 + $0x60] sm:$0xff]  ;;  %v353_v32 = vld [vmem:[%s8472_s12 + $0x70] sm:$0xff]  ;;  %s200_s26 = sshrl.u32 %s199_s25, 3  ;;  %p7924_p5 = pneg %p13009_p1 }
  0x81   : > { %14572 = vst [vmem:[#allocation56_spill] sm:$0xff] %v8538_v52  ;;  %14573 = vst [vmem:[#allocation57_spill] sm:$0xff] %v8544_v60  ;;  %v8566_v11 = vpack.c.bf16 %v1899_v63, %v1895_v57  ;;  %v8568_v12 = vsub.f32 %v412_v44, %v1895_v57  ;;  %v8570_v13 = vsub.f32 %v414_v49, %v1899_v63  ;;  %v617_v19 = vand.u32 4294901760, %v349_v59  ;;  %v415_v37 = vld [vmem:[%s8472_s12 + $0x260] sm:$0xff]  ;;  %v417_v42 = vld [vmem:[%s8472_s12 + $0x270] sm:$0xff]  ;;  %s201_s27 = sand.u32 7, %s199_s25  }
  0x82   : > { %14574 = vst [vmem:[#allocation58_spill] sm:$0xff] %v8546_v61  ;;  %14575 = vst [vmem:[#allocation59_spill] sm:$0xff] %v8548_v62  ;;  %6139 = vmatpush1.bf16.xpose.msra.mxu0 %v8544_v60  ;;  %v1897_v20 = vand.u32 4294901760, %v411_v0  ;;  %v1901_v21 = vand.u32 4294901760, %v413_v1  ;;  %v619_v26 = vand.u32 4294901760, %v352_v2  ;;  %v623_v28 = vand.u32 4294901760, %v354_v7 }
  0x83   : > { %14576 = vst [vmem:[#allocation60_spill] sm:$0xff] %v8553_v3  ;;  %14577 = vst [vmem:[#allocation61_spill] sm:$0xff] %v8555_v4  ;;  %6141 = vmatprep.subr.bf16.mxu0 %v8557_v5  ;;  %v1903_v29 = vand.u32 4294901760, %v416_v8  ;;  %v1907_v30 = vand.u32 4294901760, %v418_v9  ;;  %v8576_v33 = vpack.c.bf16 %v617_v19, %v613_v14  ;;  %v8578_v34 = vsub.f32 %v347_v58, %v613_v14  ;;  %v356_v43 = vld [vmem:[%s8472_s12 + $0x88] sm:$0xff]  ;;  %v358_v54 = vld [vmem:[%s8472_s12 + $0x98] sm:$0xff] }
  0x84   : > { %14578 = vst [vmem:[#allocation62_spill] sm:$0xff] %v8557_v5  ;;  %14579 = vst [vmem:[#allocation63_spill] sm:$0xff] %v8559_v6  ;;  %v8580_v35 = vsub.f32 %v349_v59, %v617_v19  ;;  %v8582_v36 = vpack.c.bf16 %v1901_v21, %v1897_v20  ;;  %6523 = vmatpush1.bf16.xpose.msra.mxu1 %v8553_v3  ;;  %v8588_v44 = vsub.f32 %v411_v0, %v1897_v20  ;;  %v420_v55 = vld [vmem:[%s8472_s12 + $0x288] sm:$0xff]  ;;  %v422_v56 = vld [vmem:[%s8472_s12 + $0x298] sm:$0xff]  ;;  %s6076_s9 = sshll.u32 %s200_s26, 4 }
  0x85   : > { %14580 = vst [vmem:[#allocation64_spill] sm:$0xff] %v8564_v10  ;;  %14581 = vst [vmem:[#allocation65_spill] sm:$0xff] %v8566_v11  ;;  %v8590_v49 = vsub.f32 %v413_v1, %v1901_v21  ;;  %v8592_v51 = vpack.c.bf16 %v623_v28, %v619_v26  ;;  %v8594_v53 = vsub.f32 %v352_v2, %v619_v26  ;;  %6525 = vmatprep.subr.bf16.mxu1 %v8566_v11  ;;  %v419_v11 = vld [vmem:[%s8472_s12 + $0x280] sm:$0xff]  ;;  %v421_v3 = vld [vmem:[%s8472_s12 + $0x290] sm:$0xff]  ;;  %s203_s10 = sadd.s32 %s6076_s9, %s201_s27  ;;  %s13030_s9 = scalar_lea.hbm %s13400_s4, 65536 }
  0x86   : > { %14582 = vst [vmem:[#allocation66_spill] sm:$0xff] %v8568_v12  ;;  %14583 = vst [vmem:[#allocation67_spill] sm:$0xff] %v8570_v13  ;;  %v8600_v57 = vsub.f32 %v354_v7, %v623_v28  ;;  %v8602_v58 = vpack.c.bf16 %v1907_v30, %v1903_v29  ;;  %v8604_v59 = vsub.f32 %v416_v8, %v1903_v29  ;;  %v621_v0 = vand.u32 4294901760, %v351_v31  ;;  %v355_v7 = vld [vmem:[%s8472_s12 + $0x80] sm:$0xff]  ;;  %v357_v28 = vld [vmem:[%s8472_s12 + $0x90] sm:$0xff] }
  0x87   : > { %14584 = vst [vmem:[#allocation68_spill] sm:$0xff] %v8576_v33  ;;  %14585 = vst [vmem:[#allocation69_spill] sm:$0xff] %v8578_v34  ;;  %v8606_v63 = vsub.f32 %v418_v9, %v1907_v30  ;;  %v625_v1 = vand.u32 4294901760, %v353_v32  ;;  %v1905_v2 = vand.u32 4294901760, %v415_v37  ;;  %v1909_v14 = vand.u32 4294901760, %v417_v42  ;;  %v360_v5 = vld [vmem:[%s8472_s12 + $0xa8] sm:$0xff] }
  0x88   : > { %14586 = vst [vmem:[#allocation70_spill] sm:$0xff] %v8580_v35  ;;  %14587 = vst [vmem:[#allocation71_spill] sm:$0xff] %v8582_v36  ;;  %v627_v19 = vand.u32 4294901760, %v356_v43  ;;  %v631_v20 = vand.u32 4294901760, %v358_v54  ;;  %v1911_v21 = vand.u32 4294901760, %v420_v55  ;;  %v1915_v26 = vand.u32 4294901760, %v422_v56 }
  0x89   : > { %14588 = vst [vmem:[#allocation72_spill] sm:$0xff] %v8588_v44  ;;  %14589 = vst [vmem:[#allocation73_spill] sm:$0xff] %v8590_v49  ;;  %v8610_v8 = vpack.c.bf16 %v625_v1, %v621_v0  ;;  %v8612_v29 = vsub.f32 %v351_v31, %v621_v0  ;;  %v8614_v9 = vsub.f32 %v353_v32, %v625_v1  ;;  %v362_v24 = vld [vmem:[%s8472_s12 + $0xb8] sm:$0xff]  ;;  %v424_v31 = vld [vmem:[%s8472_s12 + $0x2a8] sm:$0xff] }
  0x8a   : > { %14590 = vst [vmem:[#allocation74_spill] sm:$0xff] %v8592_v51  ;;  %14591 = vst [vmem:[#allocation75_spill] sm:$0xff] %v8594_v53  ;;  %v8616_v30 = vpack.c.bf16 %v1909_v14, %v1905_v2  ;;  %6143 = vmatpush1.bf16.xpose.msra.mxu0 %v8576_v33  ;;  %v8622_v60 = vsub.f32 %v415_v37, %v1905_v2  ;;  %v8624_v47 = vsub.f32 %v417_v42, %v1909_v14  ;;  %v426_v32 = vld [vmem:[%s8472_s12 + $0x2b8] sm:$0xff]  ;;  %v448_v35 = vld [vmem:[%s8472_s12 + $0x368] sm:$0xff] }
  0x8b   : > { %14592 = vst [vmem:[#allocation76_spill] sm:$0xff] %v8600_v57  ;;  %14593 = vst [vmem:[#allocation77_spill] sm:$0xff] %v8602_v58  ;;  %v8626_v38 = vpack.c.bf16 %v631_v20, %v627_v19  ;;  %v8628_v45 = vsub.f32 %v356_v43, %v627_v19  ;;  %6145 = vmatprep.subr.bf16.mxu0 %v8592_v51  ;;  %v8634_v0 = vsub.f32 %v358_v54, %v631_v20  ;;  %v359_v20 = vld [vmem:[%s8472_s12 + $0xa0] sm:$0xff]  ;;  %v436_v57 = vld [vmem:[%s8472_s12 + $0x308] sm:$0xff] }
  0x8c   : > { %14594 = vst [vmem:[#allocation78_spill] sm:$0xff] %v8604_v59  ;;  %14595 = vst [vmem:[#allocation79_spill] sm:$0xff] %v8606_v63  ;;  %v8636_v1 = vpack.c.bf16 %v1915_v26, %v1911_v21  ;;  %v8638_v33 = vsub.f32 %v420_v55, %v1911_v21  ;;  %v8640_v37 = vsub.f32 %v422_v56, %v1915_v26  ;;  %v629_v42 = vand.u32 4294901760, %v355_v7  ;;  %v361_v55 = vld [vmem:[%s8472_s12 + $0xb0] sm:$0xff]  ;;  %v432_v63 = vld [vmem:[%s8472_s12 + $0x2e8] sm:$0xff] }
  0x8d   : > { %14596 = vst [vmem:[#allocation80_spill] sm:$0xff] %v8610_v8  ;;  %14597 = vst [vmem:[#allocation81_spill] sm:$0xff] %v8612_v29  ;;  %v633_v2 = vand.u32 4294901760, %v357_v28  ;;  %v1913_v43 = vand.u32 4294901760, %v419_v11  ;;  %v1917_v14 = vand.u32 4294901760, %v421_v3  ;;  %6527 = vmatpush1.bf16.xpose.msra.mxu1 %v8582_v36  ;;  %v635_v19 = vand.u32 4294901760, %v360_v5 }
  0x8e   : > { %14598 = vst [vmem:[#allocation82_spill] sm:$0xff] %v8614_v9  ;;  %14599 = vst [vmem:[#allocation83_spill] sm:$0xff] %v8616_v30  ;;  %v639_v22 = vand.u32 4294901760, %v362_v24  ;;  %v1919_v51 = vand.u32 4294901760, %v424_v31  ;;  %v1923_v54 = vand.u32 4294901760, %v426_v32  ;;  %6529 = vmatprep.subr.bf16.mxu1 %v8602_v58  ;;  %v8648_v21 = vsub.f32 %v355_v7, %v629_v42  ;;  %v423_v36 = vld [vmem:[%s8472_s12 + $0x2a0] sm:$0xff] }
  0x8f   : > { %14600 = vst [vmem:[#allocation84_spill] sm:$0xff] %v8622_v60  ;;  %14601 = vst [vmem:[#allocation85_spill] sm:$0xff] %v8624_v47  ;;  %v8646_v56 = vpack.c.bf16 %v633_v2, %v629_v42  ;;  %v8650_v26 = vsub.f32 %v357_v28, %v633_v2  ;;  %v8652_v15 = vpack.c.bf16 %v1917_v14, %v1913_v43  ;;  %v366_v58 = vld [vmem:[%s8472_s12 + $0xd8] sm:$0xff]  ;;  %v428_v9 = vld [vmem:[%s8472_s12 + $0x2c8] sm:$0xff] }
  0x90   : > { %14602 = vst [vmem:[#allocation86_spill] sm:$0xff] %v8626_v38  ;;  %14603 = vst [vmem:[#allocation87_spill] sm:$0xff] %v8628_v45  ;;  %v8659_v45 = vsub.f32 %v421_v3, %v1917_v14  ;;  %v8661_v47 = vpack.c.bf16 %v639_v22, %v635_v19  ;;  %v8663_v60 = vsub.f32 %v360_v5, %v635_v19  ;;  %v430_v7 = vld [vmem:[%s8472_s12 + $0x2d8] sm:$0xff]  ;;  %v641_v3 = vand.u32 4294901760, %v361_v55 }
  0x91   : > { %14604 = vst [vmem:[#allocation88_spill] sm:$0xff] %v8634_v0  ;;  %14605 = vst [vmem:[#allocation89_spill] sm:$0xff] %v8636_v1  ;;  %v8657_v0 = vsub.f32 %v419_v11, %v1913_v43  ;;  %v8668_v28 = vsub.f32 %v362_v24, %v639_v22  ;;  %v8670_v42 = vpack.c.bf16 %v1923_v54, %v1919_v51  ;;  %v637_v11 = vand.u32 4294901760, %v359_v20  ;;  %v363_v24 = vld [vmem:[%s8472_s12 + $0xc0] sm:$0xff]  ;;  %v374_v59 = vld [vmem:[%s8472_s12 + $0x118] sm:$0xff] }
  0x92   : > { %14606 = vst [vmem:[#allocation90_spill] sm:$0xff] %v8638_v33  ;;  %14607 = vst [vmem:[#allocation91_spill] sm:$0xff] %v8640_v37  ;;  %v425_v37 = vld [vmem:[%s8472_s12 + $0x2b0] sm:$0xff]  ;;  %v364_v33 = vld [vmem:[%s8472_s12 + $0xc8] sm:$0xff]  ;;  %v8672_v2 = vsub.f32 %v424_v31, %v1919_v51  ;;  %v1921_v43 = vand.u32 4294901760, %v423_v36  ;;  %6147 = vmatpush1.bf16.xpose.msra.mxu0 %v8610_v8  ;;  %v647_v19 = vand.u32 4294901760, %v366_v58 }
  0x93   : > { %14608 = vst [vmem:[#allocation92_spill] sm:$0xff] %v8646_v56  ;;  %14609 = vst [vmem:[#allocation93_spill] sm:$0xff] %v8648_v21  ;;  %v1925_v5 = vand.u32 4294901760, %v425_v37  ;;  %v643_v14 = vand.u32 4294901760, %v364_v33  ;;  %v1931_v22 = vand.u32 4294901760, %v430_v7  ;;  %v365_v51 = vld [vmem:[%s8472_s12 + $0xd0] sm:$0xff]  ;;  %6149 = vmatprep.subr.bf16.mxu0 %v8626_v38  ;;  %v8680_v31 = vpack.c.bf16 %v641_v3, %v637_v11 }
  0x94   : > { %14610 = vst [vmem:[#allocation94_spill] sm:$0xff] %v8650_v26  ;;  %14611 = vst [vmem:[#allocation95_spill] sm:$0xff] %v8652_v15  ;;  %v8674_v26 = vsub.f32 %v426_v32, %v1923_v54  ;;  %v8682_v32 = vsub.f32 %v359_v20, %v637_v11  ;;  %v8684_v54 = vsub.f32 %v361_v55, %v641_v3  ;;  %v427_v8 = vld [vmem:[%s8472_s12 + $0x2c0] sm:$0xff]  ;;  %v370_v38 = vld [vmem:[%s8472_s12 + $0xf8] sm:$0xff] }
  0x95   : > { %14612 = vst [vmem:[#allocation96_spill] sm:$0xff] %v8657_v0  ;;  %14613 = vst [vmem:[#allocation97_spill] sm:$0xff] %v8659_v45  ;;  %v8691_v45 = vsub.f32 %v423_v36, %v1921_v43  ;;  %v8693_v0 = vsub.f32 %v425_v37, %v1925_v5  ;;  %v8695_v21 = vpack.c.bf16 %v647_v19, %v643_v14  ;;  %v434_v20 = vld [vmem:[%s8472_s12 + $0x2f8] sm:$0xff]  ;;  %6531 = vmatpush1.bf16.xpose.msra.mxu1 %v8616_v30 }
  0x96   : > { %14614 = vst [vmem:[#allocation98_spill] sm:$0xff] %v8661_v47  ;;  %14615 = vst [vmem:[#allocation99_spill] sm:$0xff] %v8663_v60  ;;  %v1927_v60 = vand.u32 4294901760, %v428_v9  ;;  %v8697_v29 = vsub.f32 %v364_v33, %v643_v14  ;;  %v8703_v55 = vsub.f32 %v366_v58, %v647_v19  ;;  %v8709_v36 = vsub.f32 %v430_v7, %v1931_v22  ;;  %v382_v49 = vld [vmem:[%s8472_s12 + $0x158] sm:$0xff] }
  0x97   : > { %14616 = vst [vmem:[#allocation100_spill] sm:$0xff] %v8668_v28  ;;  %14617 = vst [vmem:[#allocation101_spill] sm:$0xff] %v8670_v42  ;;  %v368_v28 = vld [vmem:[%s8472_s12 + $0xe8] sm:$0xff]  ;;  %6533 = vmatprep.subr.bf16.mxu1 %v8636_v1  ;;  %v645_v33 = vand.u32 4294901760, %v363_v24  ;;  %v649_v37 = vand.u32 4294901760, %v365_v51  ;;  %v1935_v58 = vand.u32 4294901760, %v432_v63 }
  0x98   : > { %14618 = vst [vmem:[#allocation102_spill] sm:$0xff] %v8672_v2  ;;  %14619 = vst [vmem:[#allocation103_spill] sm:$0xff] %v8674_v26  ;;  %v8686_v26 = vpack.c.bf16 %v1925_v5, %v1921_v43  ;;  %v429_v2 = vld [vmem:[%s8472_s12 + $0x2d0] sm:$0xff]  ;;  %v8705_v11 = vpack.c.bf16 %v1931_v22, %v1927_v60  ;;  %v8707_v3 = vsub.f32 %v428_v9, %v1927_v60  ;;  %v1929_v43 = vand.u32 4294901760, %v427_v8  ;;  %v367_v60 = vld [vmem:[%s8472_s12 + $0xe0] sm:$0xff] }
  0x99   : > { %14620 = vst [vmem:[#allocation104_spill] sm:$0xff] %v8680_v31  ;;  %14621 = vst [vmem:[#allocation105_spill] sm:$0xff] %v8682_v32  ;;  %v1933_v5 = vand.u32 4294901760, %v429_v2  ;;  %v651_v14 = vand.u32 4294901760, %v368_v28  ;;  %v1939_v19 = vand.u32 4294901760, %v434_v20  ;;  %v369_v9 = vld [vmem:[%s8472_s12 + $0xf0] sm:$0xff]  ;;  %v8714_v7 = vpack.c.bf16 %v649_v37, %v645_v33 }
  0x9a   : > { %14622 = vst [vmem:[#allocation106_spill] sm:$0xff] %v8684_v54  ;;  %14623 = vst [vmem:[#allocation107_spill] sm:$0xff] %v8686_v26  ;;  %v8716_v22 = vsub.f32 %v363_v24, %v645_v33  ;;  %v8718_v1 = vsub.f32 %v365_v51, %v649_v37  ;;  %v438_v24 = vld [vmem:[%s8472_s12 + $0x318] sm:$0xff]  ;;  %6151 = vmatpush1.bf16.xpose.msra.mxu0 %v8646_v56  ;;  %v8741_v37 = vsub.f32 %v432_v63, %v1935_v58  ;;  %v373_v63 = vld [vmem:[%s8472_s12 + $0x110] sm:$0xff] }
  0x9b   : > { %14624 = vst [vmem:[#allocation108_spill] sm:$0xff] %v8691_v45  ;;  %14625 = vst [vmem:[#allocation109_spill] sm:$0xff] %v8693_v0  ;;  %v8720_v30 = vpack.c.bf16 %v1933_v5, %v1929_v43  ;;  %v8725_v0 = vsub.f32 %v427_v8, %v1929_v43  ;;  %v8727_v45 = vsub.f32 %v429_v2, %v1933_v5  ;;  %6153 = vmatprep.subr.bf16.mxu0 %v8661_v47  ;;  %v386_v44 = vld [vmem:[%s8472_s12 + $0x178] sm:$0xff] }
  0x9c   : > { %14626 = vst [vmem:[#allocation110_spill] sm:$0xff] %v8695_v21  ;;  %14627 = vst [vmem:[#allocation111_spill] sm:$0xff] %v8697_v29  ;;  %v655_v29 = vand.u32 4294901760, %v370_v38  ;;  %v8731_v32 = vsub.f32 %v368_v28, %v651_v14  ;;  %v8739_v33 = vpack.c.bf16 %v1939_v19, %v1935_v58  ;;  %v8743_v8 = vsub.f32 %v434_v20, %v1939_v19  ;;  %v390_v34 = vld [vmem:[%s8472_s12 + $0x198] sm:$0xff] }
  0x9d   : > { %14628 = vst [vmem:[#allocation112_spill] sm:$0xff] %v8703_v55  ;;  %14629 = vst [vmem:[#allocation113_spill] sm:$0xff] %v8705_v11  ;;  %v372_v55 = vld [vmem:[%s8472_s12 + $0x108] sm:$0xff]  ;;  %v653_v28 = vand.u32 4294901760, %v367_v60  ;;  %v657_v2 = vand.u32 4294901760, %v369_v9  ;;  %v1943_v56 = vand.u32 4294901760, %v436_v57  ;;  %6535 = vmatpush1.bf16.xpose.msra.mxu1 %v8652_v15 }
  0x9e   : > { %14630 = vst [vmem:[#allocation114_spill] sm:$0xff] %v8707_v3  ;;  %14631 = vst [vmem:[#allocation115_spill] sm:$0xff] %v8709_v36  ;;  %v431_v36 = vld [vmem:[%s8472_s12 + $0x2e0] sm:$0xff]  ;;  %v433_v3 = vld [vmem:[%s8472_s12 + $0x2f0] sm:$0xff]  ;;  %v8729_v54 = vpack.c.bf16 %v655_v29, %v651_v14  ;;  %v8737_v51 = vsub.f32 %v370_v38, %v655_v29  ;;  %v659_v14 = vand.u32 4294901760, %v372_v55  ;;  %v1947_v38 = vand.u32 4294901760, %v438_v24  ;;  %6537 = vmatprep.subr.bf16.mxu1 %v8670_v42 }
  0x9f   : > { %14632 = vst [vmem:[#allocation116_spill] sm:$0xff] %v8714_v7  ;;  %14633 = vst [vmem:[#allocation117_spill] sm:$0xff] %v8716_v22  ;;  %v1937_v43 = vand.u32 4294901760, %v431_v36  ;;  %v1941_v5 = vand.u32 4294901760, %v433_v3  ;;  %v371_v29 = vld [vmem:[%s8472_s12 + $0x100] sm:$0xff]  ;;  %v8749_v20 = vpack.c.bf16 %v657_v2, %v653_v28  ;;  %v8751_v58 = vsub.f32 %v367_v60, %v653_v28  ;;  %v378_v60 = vld [vmem:[%s8472_s12 + $0x138] sm:$0xff] }
  0xa0   : > { %14634 = vst [vmem:[#allocation118_spill] sm:$0xff] %v8718_v1  ;;  %14635 = vst [vmem:[#allocation119_spill] sm:$0xff] %v8720_v30  ;;  %v8753_v19 = vsub.f32 %v369_v9, %v657_v2  ;;  %v8767_v15 = vsub.f32 %v372_v55, %v659_v14  ;;  %v440_v9 = vld [vmem:[%s8472_s12 + $0x328] sm:$0xff]  ;;  %v442_v28 = vld [vmem:[%s8472_s12 + $0x338] sm:$0xff]  ;;  %v8778_v42 = vsub.f32 %v438_v24, %v1947_v38 }
  0xa1   : > { %14636 = vst [vmem:[#allocation120_spill] sm:$0xff] %v8725_v0  ;;  %14637 = vst [vmem:[#allocation121_spill] sm:$0xff] %v8727_v45  ;;  %v8755_v47 = vpack.c.bf16 %v1941_v5, %v1937_v43  ;;  %v8761_v45 = vsub.f32 %v431_v36, %v1937_v43  ;;  %v8763_v0 = vsub.f32 %v433_v3, %v1941_v5  ;;  %v661_v3 = vand.u32 4294901760, %v371_v29  ;;  %v394_v12 = vld [vmem:[%s8472_s12 + $0x1b8] sm:$0xff] }
  0xa2   : > { %14638 = vst [vmem:[#allocation122_spill] sm:$0xff] %v8729_v54  ;;  %14639 = vst [vmem:[#allocation123_spill] sm:$0xff] %v8731_v32  ;;  %v663_v32 = vand.u32 4294901760, %v374_v59  ;;  %v665_v36 = vand.u32 4294901760, %v373_v63  ;;  %6155 = vmatpush1.bf16.xpose.msra.mxu0 %v8680_v31 }
  0xa3   : > { %14640 = vst [vmem:[#allocation124_spill] sm:$0xff] %v8737_v51  ;;  %14641 = vst [vmem:[#allocation125_spill] sm:$0xff] %v8739_v33  ;;  %v376_v51 = vld [vmem:[%s8472_s12 + $0x128] sm:$0xff]  ;;  %6157 = vmatprep.subr.bf16.mxu0 %v8695_v21 }
  0xa4   : > { %14642 = vst [vmem:[#allocation126_spill] sm:$0xff] %v8741_v37  ;;  %14643 = vst [vmem:[#allocation127_spill] sm:$0xff] %v8743_v8  ;;  %v435_v8 = vld [vmem:[%s8472_s12 + $0x300] sm:$0xff]  ;;  %v437_v37 = vld [vmem:[%s8472_s12 + $0x310] sm:$0xff]  ;;  %v8765_v1 = vpack.c.bf16 %v663_v32, %v659_v14  ;;  %v8772_v2 = vsub.f32 %v374_v59, %v663_v32  ;;  %v667_v5 = vand.u32 4294901760, %v376_v51  ;;  %v671_v14 = vand.u32 4294901760, %v378_v60 }
  0xa5   : > { %14644 = vst [vmem:[#allocation128_spill] sm:$0xff] %v8749_v20  ;;  %14645 = vst [vmem:[#allocation129_spill] sm:$0xff] %v8751_v58  ;;  %v8776_v58 = vsub.f32 %v436_v57, %v1943_v56  ;;  %v1945_v55 = vand.u32 4294901760, %v435_v8  ;;  %v1949_v43 = vand.u32 4294901760, %v437_v37  ;;  %v375_v59 = vld [vmem:[%s8472_s12 + $0x120] sm:$0xff]  ;;  %v377_v32 = vld [vmem:[%s8472_s12 + $0x130] sm:$0xff]  ;;  %v8783_v57 = vpack.c.bf16 %v665_v36, %v661_v3  ;;  %6539 = vmatpush1.bf16.xpose.msra.mxu1 %v8686_v26 }
  0xa6   : > { %14646 = vst [vmem:[#allocation130_spill] sm:$0xff] %v8753_v19  ;;  %14647 = vst [vmem:[#allocation131_spill] sm:$0xff] %v8755_v47  ;;  %v8774_v19 = vpack.c.bf16 %v1947_v38, %v1943_v56  ;;  %v8785_v56 = vsub.f32 %v371_v29, %v661_v3  ;;  %v8787_v24 = vsub.f32 %v373_v63, %v665_v36  ;;  %v444_v29 = vld [vmem:[%s8472_s12 + $0x348] sm:$0xff]  ;;  %v446_v63 = vld [vmem:[%s8472_s12 + $0x358] sm:$0xff]  ;;  %6541 = vmatprep.subr.bf16.mxu1 %v8705_v11 }
  0xa7   : > { %14648 = vst [vmem:[#allocation132_spill] sm:$0xff] %v8761_v45  ;;  %14649 = vst [vmem:[#allocation133_spill] sm:$0xff] %v8763_v0  ;;  %v1955_v0 = vand.u32 4294901760, %v442_v28  ;;  %v8789_v38 = vpack.c.bf16 %v1949_v43, %v1945_v55  ;;  %v8795_v45 = vsub.f32 %v435_v8, %v1945_v55  ;;  %v8797_v22 = vsub.f32 %v437_v37, %v1949_v43  ;;  %v384_v11 = vld [vmem:[%s8472_s12 + $0x168] sm:$0xff] }
  0xa8   : > { %14650 = vst [vmem:[#allocation134_spill] sm:$0xff] %v8765_v1  ;;  %14651 = vst [vmem:[#allocation135_spill] sm:$0xff] %v8767_v15  ;;  %v1951_v15 = vand.u32 4294901760, %v440_v9  ;;  %v8799_v53 = vpack.c.bf16 %v671_v14, %v667_v5  ;;  %v8801_v31 = vsub.f32 %v376_v51, %v667_v5  ;;  %v8806_v3 = vsub.f32 %v378_v60, %v671_v14 }
  0xa9   : > { %14652 = vst [vmem:[#allocation136_spill] sm:$0xff] %v8772_v2  ;;  %14653 = vst [vmem:[#allocation137_spill] sm:$0xff] %v8774_v19  ;;  %v380_v2 = vld [vmem:[%s8472_s12 + $0x148] sm:$0xff]  ;;  %v8812_v21 = vsub.f32 %v442_v28, %v1955_v0  ;;  %v669_v37 = vand.u32 4294901760, %v375_v59  ;;  %v673_v51 = vand.u32 4294901760, %v377_v32  ;;  %v679_v60 = vand.u32 4294901760, %v382_v49 }
  0xaa   : > { %14654 = vst [vmem:[#allocation138_spill] sm:$0xff] %v8776_v58  ;;  %14655 = vst [vmem:[#allocation139_spill] sm:$0xff] %v8778_v42  ;;  %v439_v42 = vld [vmem:[%s8472_s12 + $0x320] sm:$0xff]  ;;  %v441_v58 = vld [vmem:[%s8472_s12 + $0x330] sm:$0xff]  ;;  %v8808_v36 = vpack.c.bf16 %v1955_v0, %v1951_v15  ;;  %v675_v43 = vand.u32 4294901760, %v380_v2  ;;  %v1959_v5 = vand.u32 4294901760, %v444_v29  ;;  %6159 = vmatpush1.bf16.xpose.msra.mxu0 %v8714_v7 }
  0xab   : > { %14656 = vst [vmem:[#allocation140_spill] sm:$0xff] %v8783_v57  ;;  %14657 = vst [vmem:[#allocation141_spill] sm:$0xff] %v8785_v56  ;;  %v1953_v8 = vand.u32 4294901760, %v439_v42  ;;  %v1957_v55 = vand.u32 4294901760, %v441_v58  ;;  %v379_v0 = vld [vmem:[%s8472_s12 + $0x140] sm:$0xff]  ;;  %v8818_v28 = vpack.c.bf16 %v673_v51, %v669_v37  ;;  %v8820_v14 = vsub.f32 %v375_v59, %v669_v37  ;;  %v450_v59 = vld [vmem:[%s8472_s12 + $0x378] sm:$0xff]  ;;  %6161 = vmatprep.subr.bf16.mxu0 %v8729_v54 }
  0xac   : > { %14658 = vst [vmem:[#allocation142_spill] sm:$0xff] %v8787_v24  ;;  %14659 = vst [vmem:[#allocation143_spill] sm:$0xff] %v8789_v38  ;;  %v8810_v24 = vsub.f32 %v440_v9, %v1951_v15  ;;  %v1963_v15 = vand.u32 4294901760, %v446_v63  ;;  %v381_v9 = vld [vmem:[%s8472_s12 + $0x150] sm:$0xff]  ;;  %v8822_v26 = vsub.f32 %v377_v32, %v673_v51  ;;  %v8835_v56 = vsub.f32 %v380_v2, %v675_v43  ;;  %v388_v54 = vld [vmem:[%s8472_s12 + $0x188] sm:$0xff] }
  0xad   : > { %14660 = vst [vmem:[#allocation144_spill] sm:$0xff] %v8795_v45  ;;  %14661 = vst [vmem:[#allocation145_spill] sm:$0xff] %v8797_v22  ;;  %v8831_v22 = vsub.f32 %v441_v58, %v1957_v55  ;;  %v8833_v45 = vpack.c.bf16 %v679_v60, %v675_v43  ;;  %v8840_v32 = vsub.f32 %v382_v49, %v679_v60  ;;  %v681_v58 = vand.u32 4294901760, %v381_v9 }
  0xae   : > { %14662 = vst [vmem:[#allocation146_spill] sm:$0xff] %v8799_v53  ;;  %14663 = vst [vmem:[#allocation147_spill] sm:$0xff] %v8801_v31  ;;  %v8829_v31 = vsub.f32 %v439_v42, %v1953_v8  ;;  %v8842_v37 = vpack.c.bf16 %v1963_v15, %v1959_v5  ;;  %v8844_v51 = vsub.f32 %v444_v29, %v1959_v5  ;;  %v677_v42 = vand.u32 4294901760, %v379_v0  ;;  %v383_v29 = vld [vmem:[%s8472_s12 + $0x160] sm:$0xff] }
  0xaf   : > { %14664 = vst [vmem:[#allocation148_spill] sm:$0xff] %v8806_v3  ;;  %14665 = vst [vmem:[#allocation149_spill] sm:$0xff] %v8808_v36  ;;  %v445_v3 = vld [vmem:[%s8472_s12 + $0x350] sm:$0xff]  ;;  %v687_v49 = vand.u32 4294901760, %v386_v44  ;;  %v1967_v43 = vand.u32 4294901760, %v448_v35  ;;  %v1971_v60 = vand.u32 4294901760, %v450_v59  ;;  %v8856_v7 = vsub.f32 %v381_v9, %v681_v58  ;;  %6543 = vmatpush1.bf16.xpose.msra.mxu1 %v8720_v30 }
  0xb0   : > { %14666 = vst [vmem:[#allocation150_spill] sm:$0xff] %v8810_v24  ;;  %14667 = vst [vmem:[#allocation151_spill] sm:$0xff] %v8812_v21  ;;  %v8824_v21 = vpack.c.bf16 %v1957_v55, %v1953_v8  ;;  %v443_v24 = vld [vmem:[%s8472_s12 + $0x340] sm:$0xff]  ;;  %v1965_v8 = vand.u32 4294901760, %v445_v3  ;;  %v683_v55 = vand.u32 4294901760, %v384_v11  ;;  %v8852_v5 = vpack.c.bf16 %v681_v58, %v677_v42  ;;  %v454_v9 = vld [vmem:[%s8472_s12 + $0x398] sm:$0xff]  ;;  %6545 = vmatprep.subr.bf16.mxu1 %v8739_v33 }
  0xb1   : > { %14668 = vst [vmem:[#allocation152_spill] sm:$0xff] %v8818_v28  ;;  %14669 = vst [vmem:[#allocation153_spill] sm:$0xff] %v8820_v14  ;;  %v1961_v2 = vand.u32 4294901760, %v443_v24  ;;  %v8878_v58 = vpack.c.bf16 %v1971_v60, %v1967_v43  ;;  %v8880_v30 = vsub.f32 %v448_v35, %v1967_v43  ;;  %v1979_v33 = vand.u32 4294901760, %v454_v9 }
  0xb2   : > { %14670 = vst [vmem:[#allocation154_spill] sm:$0xff] %v8822_v26  ;;  %14671 = vst [vmem:[#allocation155_spill] sm:$0xff] %v8824_v21  ;;  %v8846_v26 = vsub.f32 %v446_v63, %v1963_v15  ;;  %v385_v63 = vld [vmem:[%s8472_s12 + $0x170] sm:$0xff]  ;;  %v8854_v15 = vsub.f32 %v379_v0, %v677_v42  ;;  %v8870_v14 = vsub.f32 %v384_v11, %v683_v55  ;;  %v452_v0 = vld [vmem:[%s8472_s12 + $0x388] sm:$0xff]  ;;  %6163 = vmatpush1.bf16.xpose.msra.mxu0 %v8749_v20 }
  0xb3   : > { %14672 = vst [vmem:[#allocation156_spill] sm:$0xff] %v8829_v31  ;;  %14673 = vst [vmem:[#allocation157_spill] sm:$0xff] %v8831_v22  ;;  %v8866_v22 = vsub.f32 %v445_v3, %v1965_v8  ;;  %v8868_v31 = vpack.c.bf16 %v687_v49, %v683_v55  ;;  %v8876_v42 = vsub.f32 %v386_v44, %v687_v49  ;;  %v685_v3 = vand.u32 4294901760, %v383_v29  ;;  %v387_v44 = vld [vmem:[%s8472_s12 + $0x180] sm:$0xff]  ;;  %v389_v49 = vld [vmem:[%s8472_s12 + $0x190] sm:$0xff] }
  0xb4   : > { %14674 = vst [vmem:[#allocation158_spill] sm:$0xff] %v8833_v45  ;;  %14675 = vst [vmem:[#allocation159_spill] sm:$0xff] %v8835_v56  ;;  %v8864_v56 = vsub.f32 %v443_v24, %v1961_v2  ;;  %v8882_v24 = vsub.f32 %v450_v59, %v1971_v60  ;;  %v689_v11 = vand.u32 4294901760, %v385_v63  ;;  %v691_v55 = vand.u32 4294901760, %v388_v54  ;;  %6165 = vmatprep.subr.bf16.mxu0 %v8765_v1 }
  0xb5   : > { %14676 = vst [vmem:[#allocation160_spill] sm:$0xff] %v8840_v32  ;;  %14677 = vst [vmem:[#allocation161_spill] sm:$0xff] %v8842_v37  ;;  %v449_v32 = vld [vmem:[%s8472_s12 + $0x370] sm:$0xff]  ;;  %v8888_v43 = vsub.f32 %v383_v29, %v685_v3  ;;  %v456_v29 = vld [vmem:[%s8472_s12 + $0x3a8] sm:$0xff] }
  0xb6   : > { %14678 = vst [vmem:[#allocation162_spill] sm:$0xff] %v8844_v51  ;;  %14679 = vst [vmem:[#allocation163_spill] sm:$0xff] %v8846_v26  ;;  %v8858_v26 = vpack.c.bf16 %v1965_v8, %v1961_v2  ;;  %v447_v51 = vld [vmem:[%s8472_s12 + $0x360] sm:$0xff]  ;;  %v1973_v8 = vand.u32 4294901760, %v449_v32  ;;  %v8886_v35 = vpack.c.bf16 %v689_v11, %v685_v3  ;;  %v8890_v59 = vsub.f32 %v385_v63, %v689_v11  ;;  %v458_v63 = vld [vmem:[%s8472_s12 + $0x3b8] sm:$0xff] }
  0xb7   : > { %14680 = vst [vmem:[#allocation164_spill] sm:$0xff] %v8852_v5  ;;  %14681 = vst [vmem:[#allocation165_spill] sm:$0xff] %v8854_v15  ;;  %v1969_v2 = vand.u32 4294901760, %v447_v51  ;;  %v8904_v13 = vsub.f32 %v388_v54, %v691_v55  ;;  %6547 = vmatpush1.bf16.xpose.msra.mxu1 %v8755_v47  ;;  %v1983_v1 = vand.u32 4294901760, %v456_v29  ;;  %v455_v47 = vld [vmem:[%s8472_s12 + $0x3a0] sm:$0xff] }
  0xb8   : > { %14682 = vst [vmem:[#allocation166_spill] sm:$0xff] %v8856_v7  ;;  %14683 = vst [vmem:[#allocation167_spill] sm:$0xff] %v8858_v26  ;;  %v8900_v7 = vsub.f32 %v449_v32, %v1973_v8  ;;  %v693_v32 = vand.u32 4294901760, %v387_v44  ;;  %6549 = vmatprep.subr.bf16.mxu1 %v8774_v19  ;;  %v398_v19 = vld [vmem:[%s8472_s12 + $0x1d8] sm:$0xff] }
  0xb9   : > { %14684 = vst [vmem:[#allocation168_spill] sm:$0xff] %v8864_v56  ;;  %14685 = vst [vmem:[#allocation169_spill] sm:$0xff] %v8866_v22  ;;  %v1975_v22 = vand.u32 4294901760, %v452_v0  ;;  %v8892_v60 = vpack.c.bf16 %v1973_v8, %v1969_v2  ;;  %v8898_v56 = vsub.f32 %v447_v51, %v1969_v2  ;;  %v8916_v51 = vsub.f32 %v454_v9, %v1979_v33 }
  0xba   : > { %14686 = vst [vmem:[#allocation170_spill] sm:$0xff] %v8868_v31  ;;  %14687 = vst [vmem:[#allocation171_spill] sm:$0xff] %v8870_v14  ;;  %v695_v14 = vand.u32 4294901760, %v390_v34  ;;  %v697_v2 = vand.u32 4294901760, %v389_v49  ;;  %6167 = vmatpush1.bf16.xpose.msra.mxu0 %v8783_v57  ;;  %v459_v57 = vld [vmem:[%s8472_s12 + $0x3c0] sm:$0xff] }
  0xbb   : > { %14688 = vst [vmem:[#allocation172_spill] sm:$0xff] %v8876_v42  ;;  %14689 = vst [vmem:[#allocation173_spill] sm:$0xff] %v8878_v58  ;;  %v392_v42 = vld [vmem:[%s8472_s12 + $0x1a8] sm:$0xff]  ;;  %v8912_v11 = vpack.c.bf16 %v1979_v33, %v1975_v22  ;;  %v8914_v20 = vsub.f32 %v452_v0, %v1975_v22  ;;  %v393_v22 = vld [vmem:[%s8472_s12 + $0x1b0] sm:$0xff]  ;;  %v8924_v0 = vsub.f32 %v387_v44, %v693_v32  ;;  %6169 = vmatprep.subr.bf16.mxu0 %v8799_v53 }
  0xbc   : > { %14690 = vst [vmem:[#allocation174_spill] sm:$0xff] %v8880_v30  ;;  %14691 = vst [vmem:[#allocation175_spill] sm:$0xff] %v8882_v24  ;;  %v451_v24 = vld [vmem:[%s8472_s12 + $0x380] sm:$0xff]  ;;  %v453_v30 = vld [vmem:[%s8472_s12 + $0x390] sm:$0xff]  ;;  %v8902_v15 = vpack.c.bf16 %v695_v14, %v691_v55  ;;  %v8910_v3 = vsub.f32 %v390_v34, %v695_v14  ;;  %v699_v55 = vand.u32 4294901760, %v392_v42  ;;  %v1987_v34 = vand.u32 4294901760, %v458_v63 }
  0xbd   : > { %14692 = vst [vmem:[#allocation176_spill] sm:$0xff] %v8886_v35  ;;  %14693 = vst [vmem:[#allocation177_spill] sm:$0xff] %v8888_v43  ;;  %v1977_v54 = vand.u32 4294901760, %v451_v24  ;;  %v1981_v8 = vand.u32 4294901760, %v453_v30  ;;  %v391_v14 = vld [vmem:[%s8472_s12 + $0x1a0] sm:$0xff]  ;;  %v8922_v33 = vpack.c.bf16 %v697_v2, %v693_v32  ;;  %v8926_v9 = vsub.f32 %v389_v49, %v697_v2  ;;  %v462_v44 = vld [vmem:[%s8472_s12 + $0x3d8] sm:$0xff] }
  0xbe   : > { %14694 = vst [vmem:[#allocation178_spill] sm:$0xff] %v8890_v59  ;;  %14695 = vst [vmem:[#allocation179_spill] sm:$0xff] %v8892_v60  ;;  %v8939_v43 = vsub.f32 %v392_v42, %v699_v55  ;;  %v8946_v32 = vpack.c.bf16 %v1987_v34, %v1983_v1  ;;  %v8948_v2 = vsub.f32 %v456_v29, %v1983_v1  ;;  %v397_v1 = vld [vmem:[%s8472_s12 + $0x1d0] sm:$0xff]  ;;  %v402_v53 = vld [vmem:[%s8472_s12 + $0x1f8] sm:$0xff] }
  0xbf   : > { %14696 = vst [vmem:[#allocation180_spill] sm:$0xff] %v8898_v56  ;;  %14697 = vst [vmem:[#allocation181_spill] sm:$0xff] %v8900_v7  ;;  %v8933_v7 = vsub.f32 %v451_v24, %v1977_v54  ;;  %v8935_v56 = vsub.f32 %v453_v30, %v1981_v8  ;;  %v701_v24 = vand.u32 4294901760, %v391_v14  ;;  %v705_v30 = vand.u32 4294901760, %v393_v22  ;;  %6551 = vmatpush1.bf16.xpose.msra.mxu1 %v8789_v38 }
  0xc0   : > { %14698 = vst [vmem:[#allocation182_spill] sm:$0xff] %v8902_v15  ;;  %14699 = vst [vmem:[#allocation183_spill] sm:$0xff] %v8904_v13  ;;  %v703_v13 = vand.u32 4294901760, %v394_v12  ;;  %6553 = vmatprep.subr.bf16.mxu1 %v8808_v36  ;;  %v463_v36 = vld [vmem:[%s8472_s12 + $0x3e0] sm:$0xff] }
  0xc1   : > { %14700 = vst [vmem:[#allocation184_spill] sm:$0xff] %v8910_v3  ;;  %14701 = vst [vmem:[#allocation185_spill] sm:$0xff] %v8912_v11  ;;  %v396_v3 = vld [vmem:[%s8472_s12 + $0x1c8] sm:$0xff]  ;;  %v8956_v29 = vpack.c.bf16 %v705_v30, %v701_v24 }
  0xc2   : > { %14702 = vst [vmem:[#allocation186_spill] sm:$0xff] %v8914_v20  ;;  %14703 = vst [vmem:[#allocation187_spill] sm:$0xff] %v8916_v51  ;;  %v8928_v51 = vpack.c.bf16 %v1981_v8, %v1977_v54  ;;  %v457_v20 = vld [vmem:[%s8472_s12 + $0x3b0] sm:$0xff]  ;;  %v8937_v59 = vpack.c.bf16 %v703_v13, %v699_v55  ;;  %v8944_v49 = vsub.f32 %v394_v12, %v703_v13  ;;  %v1985_v54 = vand.u32 4294901760, %v455_v47  ;;  %v395_v13 = vld [vmem:[%s8472_s12 + $0x1c0] sm:$0xff] }
  0xc3   : > { %14704 = vst [vmem:[#allocation188_spill] sm:$0xff] %v8922_v33  ;;  %14705 = vst [vmem:[#allocation189_spill] sm:$0xff] %v8924_v0  ;;  %v460_v33 = vld [vmem:[%s8472_s12 + $0x3c8] sm:$0xff]  ;;  %v1989_v42 = vand.u32 4294901760, %v457_v20  ;;  %v707_v8 = vand.u32 4294901760, %v396_v3  ;;  %v711_v55 = vand.u32 4294901760, %v398_v19  ;;  %6171 = vmatpush1.bf16.xpose.msra.mxu0 %v8818_v28 }
  0xc4   : > { %14706 = vst [vmem:[#allocation190_spill] sm:$0xff] %v8926_v9  ;;  %14707 = vst [vmem:[#allocation191_spill] sm:$0xff] %v8928_v51  ;;  %v8950_v9 = vsub.f32 %v458_v63, %v1987_v34  ;;  %v1995_v12 = vand.u32 4294901760, %v462_v44  ;;  %v8958_v63 = vsub.f32 %v391_v14, %v701_v24  ;;  %v8960_v34 = vsub.f32 %v393_v22, %v705_v30  ;;  %v464_v51 = vld [vmem:[%s8472_s12 + $0x3e8] sm:$0xff]  ;;  %v466_v14 = vld [vmem:[%s8472_s12 + $0x3f8] sm:$0xff] }
  0xc5   : > { %14708 = vst [vmem:[#allocation192_spill] sm:$0xff] %v8933_v7  ;;  %14709 = vst [vmem:[#allocation193_spill] sm:$0xff] %v8935_v56  ;;  %v8967_v56 = vsub.f32 %v455_v47, %v1985_v54  ;;  %v8969_v7 = vsub.f32 %v457_v20, %v1989_v42  ;;  %v8971_v0 = vpack.c.bf16 %v711_v55, %v707_v8  ;;  %v709_v20 = vand.u32 4294901760, %v395_v13 }
  0xc6   : > { %14710 = vst [vmem:[#allocation194_spill] sm:$0xff] %v8937_v59  ;;  %14711 = vst [vmem:[#allocation195_spill] sm:$0xff] %v8939_v43  ;;  %v1991_v43 = vand.u32 4294901760, %v460_v33  ;;  %v8979_v22 = vsub.f32 %v398_v19, %v711_v55  ;;  %v8985_v47 = vsub.f32 %v462_v44, %v1995_v12  ;;  %v1999_v38 = vand.u32 4294901760, %v464_v51  ;;  %v399_v55 = vld [vmem:[%s8472_s12 + $0x1e0] sm:$0xff]  ;;  %6173 = vmatprep.subr.bf16.mxu0 %v8833_v45 }
  0xc7   : > { %14712 = vst [vmem:[#allocation196_spill] sm:$0xff] %v8944_v49  ;;  %14713 = vst [vmem:[#allocation197_spill] sm:$0xff] %v8946_v32  ;;  %v400_v49 = vld [vmem:[%s8472_s12 + $0x1e8] sm:$0xff]  ;;  %v8973_v32 = vsub.f32 %v396_v3, %v707_v8  ;;  %v713_v3 = vand.u32 4294901760, %v397_v1  ;;  %v2003_v19 = vand.u32 4294901760, %v466_v14  ;;  %6555 = vmatpush1.bf16.xpose.msra.mxu1 %v8824_v21 }
  0xc8   : > { %14714 = vst [vmem:[#allocation198_spill] sm:$0xff] %v8948_v2  ;;  %14715 = vst [vmem:[#allocation199_spill] sm:$0xff] %v8950_v9  ;;  %v8962_v9 = vpack.c.bf16 %v1989_v42, %v1985_v54  ;;  %v461_v2 = vld [vmem:[%s8472_s12 + $0x3d0] sm:$0xff]  ;;  %v8981_v24 = vpack.c.bf16 %v1995_v12, %v1991_v43  ;;  %v8983_v30 = vsub.f32 %v460_v33, %v1991_v43  ;;  %v1993_v54 = vand.u32 4294901760, %v459_v57 }
  0xc9   : > { %14716 = vst [vmem:[#allocation200_spill] sm:$0xff] %v8956_v29  ;;  %14717 = vst [vmem:[#allocation201_spill] sm:$0xff] %v8958_v63  ;;  %v1997_v42 = vand.u32 4294901760, %v461_v2  ;;  %v715_v8 = vand.u32 4294901760, %v400_v49  ;;  %v8991_v43 = vsub.f32 %v395_v13, %v709_v20  ;;  %v8993_v33 = vsub.f32 %v397_v1, %v713_v3  ;;  %v401_v12 = vld [vmem:[%s8472_s12 + $0x1f0] sm:$0xff]  ;;  %v338_v63 = vld [vmem:[#allocation7 + $0x8] sm:$0xff]  ;;  %6557 = vmatprep.subr.bf16.mxu1 %v8842_v37 }
  0xca   : > { %14718 = vst [vmem:[#allocation202_spill] sm:$0xff] %v8960_v34  ;;  %14719 = vst [vmem:[#allocation203_spill] sm:$0xff] %v8962_v9  ;;  %v9011_v1 = vpack.c.bf16 %v2003_v19, %v1999_v38 }
  0xcb   : > { %14720 = vst [vmem:[#allocation204_spill] sm:$0xff] %v8967_v56  ;;  %14721 = vst [vmem:[#allocation205_spill] sm:$0xff] %v8969_v7  ;;  %v8995_v44 = vpack.c.bf16 %v1997_v42, %v1993_v54  ;;  %v9002_v7 = vsub.f32 %v461_v2, %v1997_v42  ;;  %v9006_v34 = vsub.f32 %v400_v49, %v715_v8  ;;  %v721_v2 = vand.u32 4294901760, %v401_v12 }
  0xcc   : > { %14722 = vst [vmem:[#allocation206_spill] sm:$0xff] %v8971_v0  ;;  %14723 = vst [vmem:[#allocation207_spill] sm:$0xff] %v8973_v32  ;;  %v719_v32 = vand.u32 4294901760, %v402_v53  ;;  %6175 = vmatpush1.bf16.xpose.msra.mxu0 %v8852_v5 }
  0xcd   : > { %14724 = vst [vmem:[#allocation208_spill] sm:$0xff] %v8979_v22  ;;  %14725 = vst [vmem:[#allocation209_spill] sm:$0xff] %v8981_v24  ;;  %v8989_v22 = vpack.c.bf16 %v713_v3, %v709_v20  ;;  %v9013_v20 = vsub.f32 %v464_v51, %v1999_v38  ;;  %v9015_v3 = vsub.f32 %v466_v14, %v2003_v19  ;;  %6177 = vmatprep.subr.bf16.mxu0 %v8868_v31 }
  0xce   : > { %14726 = vst [vmem:[#allocation210_spill] sm:$0xff] %v8983_v30  ;;  %14727 = vst [vmem:[#allocation211_spill] sm:$0xff] %v8985_v47  ;;  %v465_v47 = vld [vmem:[%s8472_s12 + $0x3f0] sm:$0xff]  ;;  %v9000_v30 = vsub.f32 %v459_v57, %v1993_v54  ;;  %v9004_v56 = vpack.c.bf16 %v719_v32, %v715_v8  ;;  %v9009_v13 = vsub.f32 %v402_v53, %v719_v32  ;;  %v717_v57 = vand.u32 4294901760, %v399_v55 }
  0xcf   : > { %14728 = vst [vmem:[#allocation212_spill] sm:$0xff] %v8989_v22  ;;  %14729 = vst [vmem:[#allocation213_spill] sm:$0xff] %v8991_v43  ;;  %v2001_v54 = vand.u32 4294901760, %v463_v36  ;;  %v2005_v42 = vand.u32 4294901760, %v465_v47  ;;  %v337_v32 = vld [vmem:[#allocation7] sm:$0xff]  ;;  %v9028_v14 = vsub.f32 %v401_v12, %v721_v2  ;;  %v14748_v53 = vand.u32 4294901760, %v8489_v16  ;;  %6559 = vmatpush1.bf16.xpose.msra.mxu1 %v8858_v26 }
  0xd0   : > { %14730 = vst [vmem:[#allocation214_spill] sm:$0xff] %v8993_v33  ;;  %14731 = vst [vmem:[#allocation215_spill] sm:$0xff] %v8995_v44  ;;  %v9024_v38 = vpack.c.bf16 %v721_v2, %v717_v57  ;;  %v9026_v51 = vsub.f32 %v399_v55, %v717_v57  ;;  %v14749_v55 = vand.u32 4294901760, %v8491_v17  ;;  %v14750_v57 = vand.u32 4294901760, %v8493_v18  ;;  %6561 = vmatprep.subr.bf16.mxu1 %v8878_v58 }
  0xd1   : > { %14732 = vst [vmem:[#allocation216_spill] sm:$0xff] %v9000_v30  ;;  %14733 = vst [vmem:[#allocation217_spill] sm:$0xff] %v9002_v7  ;;  %v9018_v7 = vand.u32 4294901760, %v338_v63  ;;  %v9030_v19 = vpack.c.bf16 %v2005_v42, %v2001_v54  ;;  %v9033_v45 = vsub.f32 %v463_v36, %v2001_v54  ;;  %v9035_v49 = vsub.f32 %v465_v47, %v2005_v42 }
  0xd2   : > { %14734 = vst [vmem:[#allocation218_spill] sm:$0xff] %v9004_v56  ;;  %14735 = vst [vmem:[#allocation219_spill] sm:$0xff] %v9006_v34  ;;  %v743_v21 = vsub.f32 %v8489_v16, %v14748_v53  ;;  %v755_v12 = vsub.f32 %v8491_v17, %v14749_v55  ;;  %v2027_v2 = vsub.f32 %v8493_v18, %v14750_v57  ;;  %v13596_v36 = vand.u32 4294901760, %v8500_v23 }
  0xd3   : > { %14736 = vst [vmem:[#allocation220_spill] sm:$0xff] %v9009_v13  ;;  %14737 = vst [vmem:[#allocation221_spill] sm:$0xff] %v9011_v1  ;;  %v9038_v8 = vsub.f32 %v338_v63, %v9018_v7  ;;  %v9050_v54 = vand.u32 4294901760, %v337_v32  ;;  %v13605_v42 = vand.u32 4294901760, %v8504_v25  ;;  %v13606_v53 = vand.u32 4294901760, %v8508_v27 }
  0xd4   : > { %14738 = vst [vmem:[#allocation222_spill] sm:$0xff] %v9013_v20  ;;  %14739 = vst [vmem:[#allocation223_spill] sm:$0xff] %v9015_v3  ;;  %v744_v63 = vand.u32 4294901760, %v743_v21  ;;  %v756_v37 = vand.u32 4294901760, %v755_v12  ;;  %v2028_v28 = vand.u32 4294901760, %v2027_v2  ;;  %v2039_v55 = vsub.f32 %v8500_v23, %v13596_v36  ;;  %6179 = vmatpush1.bf16.xpose.msra.mxu0 %v8886_v35  ;;  %v14823_v23 = vld [vmem:[#allocation156_spill] sm:$0xff] }
  0xd5   : > { %14740 = vst [vmem:[#allocation224_spill] sm:$0xff] %v9018_v7  ;;  %14741 = vst [vmem:[#allocation225_spill] sm:$0xff] %v9024_v38  ;;  %v9053_v47 = vand.u32 4294901760, %v9038_v8  ;;  %v9061_v57 = vsub.f32 %v337_v32, %v9050_v54  ;;  %v749_v21 = vsub.f32 %v8504_v25, %v13605_v42  ;;  %v761_v12 = vsub.f32 %v8508_v27, %v13606_v53  ;;  %v14822_v25 = vld [vmem:[#allocation154_spill] sm:$0xff] }
  0xd6   : > { %14742 = vst [vmem:[#allocation226_spill] sm:$0xff] %v9026_v51  ;;  %14743 = vst [vmem:[#allocation227_spill] sm:$0xff] %v9028_v14  ;;  %v13609_v2 = vand.u32 4294901760, %v8517_v39  ;;  %v9074_v36 = vpack.c.bf16 %v756_v37, %v744_v63  ;;  %v2040_v32 = vand.u32 4294901760, %v2039_v55  ;;  %v13631_v58 = vand.u32 4294901760, %v8548_v62  ;;  %6181 = vmatprep.subr.bf16.mxu0 %v8902_v15 }
  0xd7   : > { %14744 = vst [vmem:[#allocation228_spill] sm:$0xff] %v9030_v19  ;;  %14745 = vst [vmem:[#allocation229_spill] sm:$0xff] %v9033_v45  ;;  %v726_v18 = vsub.f32 %v9038_v8, %v9053_v47  ;;  %v9077_v5 = vand.u32 4294901760, %v9061_v57  ;;  %v762_v42 = vand.u32 4294901760, %v761_v12  ;;  %v13618_v12 = vand.u32 4294901760, %v8528_v46  ;;  %6563 = vmatpush1.bf16.xpose.msra.mxu1 %v8892_v60 }
  0xd8   : > { %14746 = vst [vmem:[#allocation230_spill] sm:$0xff] %v9035_v49  ;;  %14747 = vst [vmem:[#allocation231_spill] sm:$0xff] %v9038_v8  ;;  %v2033_v53 = vsub.f32 %v8517_v39, %v13609_v2  ;;  %v9086_v27 = vpack.c.bf16 %v2040_v32, %v2028_v28  ;;  %v13621_v28 = vand.u32 4294901760, %v8532_v48  ;;  %6565 = vmatprep.subr.bf16.mxu1 %v8912_v11  ;;  %v13808_v17 = vand.u32 4294901760, %v14823_v23 }
  0xd9   : > { %14751 = vst [vmem:[#allocation232_spill] sm:$0xff] %v9050_v54  ;;  %14752 = vst [vmem:[#allocation233_spill] sm:$0xff] %v9053_v47  ;;  %v13610_v47 = vand.u32 4294901760, %v8519_v40  ;;  %v9080_v8 = vand.u32 4294901760, %v726_v18  ;;  %v750_v54 = vand.u32 4294901760, %v749_v21  ;;  %v732_v37 = vsub.f32 %v9061_v57, %v9077_v5 }
  0xda   : > { %14753 = vst [vmem:[#allocation234_spill] sm:$0xff] %v9061_v57  ;;  %14754 = vst [vmem:[#allocation235_spill] sm:$0xff] %v9077_v5  ;;  %v13615_v18 = vand.u32 4294901760, %v8521_v41  ;;  %v2034_v21 = vand.u32 4294901760, %v2033_v53  ;;  %v13622_v5 = vand.u32 4294901760, %v8536_v50  ;;  %v13627_v53 = vand.u32 4294901760, %v8538_v52 }
  0xdb   : > { %14755 = vst [vmem:[#allocation236_spill] sm:$0xff] %v9080_v8  ;;  %v2045_v63 = vsub.f32 %v8519_v40, %v13610_v47  ;;  %728 = vmatprep.mubr.f32.mxu0 %v9080_v8  ;;  %v9096_v55 = vpack.c.bf16 %v762_v42, %v750_v54  ;;  %2012 = vmatprep.mubr.f32.mxu1 %v9080_v8  ;;  %v9101_v32 = vand.u32 4294901760, %v732_v37  ;;  %v13628_v37 = vand.u32 4294901760, %v8546_v61  ;;  %v14759_v57 = vld [vmem:[#allocation69_spill] sm:$0xff]  ;;  %v14791_v40 = vld [vmem:[#allocation112_spill] sm:$0xff] }
  0xdc   : > { %v767_v47 = vsub.f32 %v8521_v41, %v13615_v18  ;;  %v779_v54 = vsub.f32 %v8528_v46, %v13618_v12  ;;  %v2051_v42 = vsub.f32 %v8532_v48, %v13621_v28  ;;  %v2063_v18 = vsub.f32 %v8536_v50, %v13622_v5  ;;  %v14819_v46 = vld [vmem:[#allocation150_spill] sm:$0xff] }
  0xdd   : > { %14756 = vst [vmem:[#allocation237_spill] sm:$0xff] %v9101_v32  ;;  %v2046_v2 = vand.u32 4294901760, %v2045_v63  ;;  %v773_v28 = vsub.f32 %v8538_v52, %v13627_v53  ;;  %v13636_v5 = vand.u32 4294901760, %v8555_v4  ;;  %v13643_v53 = vand.u32 4294901760, %v8564_v10  ;;  %v14767_v52 = vld [vmem:[#allocation191_spill] sm:$0xff] }
  0xde   : > { %v768_v63 = vand.u32 4294901760, %v767_v47  ;;  %v780_v12 = vand.u32 4294901760, %v779_v54  ;;  %v2052_v26 = vand.u32 4294901760, %v2051_v42  ;;  %v2064_v47 = vand.u32 4294901760, %v2063_v18 }
  0xdf   : > { %v9115_v8 = vpack.c.bf16 %v2046_v2, %v2034_v21  ;;  %v785_v2 = vsub.f32 %v8546_v61, %v13628_v37  ;;  %v2057_v21 = vsub.f32 %v8548_v62, %v13631_v58  ;;  %v13644_v54 = vand.u32 4294901760, %v8559_v6  ;;  %6567 = vmatpush1.bf16.xpose.msra.mxu1 %v14767_v52 }
  0xe0   : > { %v9134_v42 = vpack.c.bf16 %v780_v12, %v768_v63  ;;  %v774_v35 = vand.u32 4294901760, %v773_v28  ;;  %v9138_v37 = vpack.c.bf16 %v2064_v47, %v2052_v26  ;;  %v2069_v18 = vsub.f32 %v8555_v4, %v13636_v5  ;;  %v14757_v63 = vld [vmem:[#allocation66_spill] sm:$0xff] }
  0xe1   : > { %v786_v31 = vand.u32 4294901760, %v785_v2  ;;  %v2058_v15 = vand.u32 4294901760, %v2057_v21  ;;  %v791_v58 = vsub.f32 %v8559_v6, %v13644_v54  ;;  %v803_v28 = vsub.f32 %v8564_v10, %v13643_v53  ;;  %v14758_v2 = vld [vmem:[#allocation67_spill] sm:$0xff]  ;;  %v14760_v4 = vld [vmem:[#allocation70_spill] sm:$0xff]  ;;  %v14761_v53 = vld [vmem:[#allocation72_spill] sm:$0xff] }
  0xe2   : > { %v13651_v26 = vand.u32 4294901760, %v14757_v63  ;;  %v13653_v47 = vand.u32 4294901760, %v14758_v2  ;;  %v2070_v21 = vand.u32 4294901760, %v2069_v18  ;;  %v13654_v5 = vand.u32 4294901760, %v14759_v57  ;;  %v14763_v6 = vld [vmem:[#allocation188_spill] sm:$0xff] }
  0xe3   : > { %v9147_v12 = vpack.c.bf16 %v786_v31, %v774_v35  ;;  %v792_v60 = vand.u32 4294901760, %v791_v58  ;;  %v13655_v62 = vand.u32 4294901760, %v14760_v4  ;;  %v804_v61 = vand.u32 4294901760, %v803_v28  ;;  %v14762_v28 = vld [vmem:[#allocation73_spill] sm:$0xff]  ;;  %6183 = vmatpush1.bf16.xpose.msra.mxu0 %v14763_v6 }
  0xe4   : > { %v2075_v31 = vsub.f32 %v14757_v63, %v13651_v26  ;;  %v2087_v35 = vsub.f32 %v14758_v2, %v13653_v47  ;;  %v13661_v54 = vand.u32 4294901760, %v14761_v53  ;;  %v9163_v11 = vpack.c.bf16 %v2070_v21, %v2058_v15  ;;  %6185 = vmatprep.subr.bf16.mxu0 %v8937_v59 }
  0xe5   : > { %v797_v58 = vsub.f32 %v14759_v57, %v13654_v5  ;;  %v809_v18 = vsub.f32 %v14760_v4, %v13655_v62  ;;  %v13664_v10 = vand.u32 4294901760, %v14762_v28  ;;  %v9173_v26 = vpack.c.bf16 %v804_v61, %v792_v60  ;;  %v14764_v4 = vld [vmem:[#allocation75_spill] sm:$0xff]  ;;  %v14765_v60 = vld [vmem:[#allocation76_spill] sm:$0xff] }
  0xe6   : > { %v2076_v63 = vand.u32 4294901760, %v2075_v31  ;;  %v2088_v47 = vand.u32 4294901760, %v2087_v35  ;;  %v2081_v15 = vsub.f32 %v14761_v53, %v13661_v54  ;;  %v13667_v57 = vand.u32 4294901760, %v14764_v4  ;;  %v14766_v35 = vld [vmem:[#allocation78_spill] sm:$0xff] }
  0xe7   : > { %v798_v21 = vand.u32 4294901760, %v797_v58  ;;  %v810_v5 = vand.u32 4294901760, %v809_v18  ;;  %v2093_v62 = vsub.f32 %v14762_v28, %v13664_v10  ;;  %v13673_v31 = vand.u32 4294901760, %v14765_v60  ;;  %v14768_v18 = vld [vmem:[#allocation79_spill] sm:$0xff]  ;;  %v14769_v28 = vld [vmem:[#allocation197_spill] sm:$0xff] }
  0xe8   : > { %v9183_v2 = vpack.c.bf16 %v2088_v47, %v2076_v63  ;;  %v2082_v61 = vand.u32 4294901760, %v2081_v15  ;;  %v13674_v6 = vand.u32 4294901760, %v14766_v35  ;;  %v815_v58 = vsub.f32 %v14764_v4, %v13667_v57  ;;  %6569 = vmatprep.subr.bf16.mxu1 %v14769_v28  ;;  %v14770_v15 = vld [vmem:[#allocation81_spill] sm:$0xff]  ;;  %v14772_v28 = vld [vmem:[#allocation84_spill] sm:$0xff] }
  0xe9   : > { %v9188_v54 = vpack.c.bf16 %v810_v5, %v798_v21  ;;  %v2094_v59 = vand.u32 4294901760, %v2093_v62  ;;  %v13676_v10 = vand.u32 4294901760, %v14768_v18  ;;  %v827_v63 = vsub.f32 %v14765_v60, %v13673_v31  ;;  %v14771_v21 = vld [vmem:[#allocation82_spill] sm:$0xff]  ;;  %6571 = vmatpush1.bf16.xpose.msra.mxu1 %v8962_v9 }
  0xea   : > { %v2099_v47 = vsub.f32 %v14766_v35, %v13674_v6  ;;  %v13679_v5 = vand.u32 4294901760, %v14770_v15  ;;  %v13681_v62 = vand.u32 4294901760, %v14771_v21  ;;  %v816_v53 = vand.u32 4294901760, %v815_v58  ;;  %6573 = vmatprep.subr.bf16.mxu1 %v8981_v24 }
  0xeb   : > { %v9203_v52 = vpack.c.bf16 %v2094_v59, %v2082_v61  ;;  %v2111_v57 = vsub.f32 %v14768_v18, %v13676_v10  ;;  %v13682_v4 = vand.u32 4294901760, %v14772_v28  ;;  %v828_v50 = vand.u32 4294901760, %v827_v63  ;;  %v14773_v61 = vld [vmem:[#allocation85_spill] sm:$0xff]  ;;  %v14774_v10 = vld [vmem:[#allocation87_spill] sm:$0xff]  ;;  %6187 = vmatpush1.bf16.xpose.msra.mxu0 %v8956_v29 }
  0xec   : > { %v2100_v48 = vand.u32 4294901760, %v2099_v47  ;;  %v821_v31 = vsub.f32 %v14770_v15, %v13679_v5  ;;  %v833_v6 = vsub.f32 %v14771_v21, %v13681_v62  ;;  %v13688_v58 = vand.u32 4294901760, %v14773_v61  ;;  %v14775_v5 = vld [vmem:[#allocation88_spill] sm:$0xff]  ;;  %6189 = vmatprep.subr.bf16.mxu0 %v8971_v0  ;;  %v14778_v0 = vld [vmem:[#allocation93_spill] sm:$0xff] }
  0xed   : > { %v2112_v35 = vand.u32 4294901760, %v2111_v57  ;;  %v2105_v59 = vsub.f32 %v14772_v28, %v13682_v4  ;;  %v13692_v18 = vand.u32 4294901760, %v14774_v10  ;;  %v9221_v63 = vpack.c.bf16 %v828_v50, %v816_v53 }
  0xee   : > { %v822_v47 = vand.u32 4294901760, %v821_v31  ;;  %v834_v60 = vand.u32 4294901760, %v833_v6  ;;  %v13691_v15 = vand.u32 4294901760, %v14775_v5  ;;  %v2117_v4 = vsub.f32 %v14773_v61, %v13688_v58  ;;  %v14776_v6 = vld [vmem:[#allocation90_spill] sm:$0xff]  ;;  %v14777_v31 = vld [vmem:[#allocation91_spill] sm:$0xff] }
  0xef   : > { %v9225_v62 = vpack.c.bf16 %v2112_v35, %v2100_v48  ;;  %v2106_v57 = vand.u32 4294901760, %v2105_v59  ;;  %v839_v28 = vsub.f32 %v14774_v10, %v13692_v18  ;;  %v13699_v53 = vand.u32 4294901760, %v14776_v6  ;;  %v14779_v61 = vld [vmem:[#allocation94_spill] sm:$0xff]  ;;  %v14780_v18 = vld [vmem:[#allocation96_spill] sm:$0xff] }
  0xf0   : > { %v9233_v29 = vpack.c.bf16 %v834_v60, %v822_v47  ;;  %v851_v50 = vsub.f32 %v14775_v5, %v13691_v15  ;;  %v13701_v48 = vand.u32 4294901760, %v14777_v31  ;;  %v2118_v35 = vand.u32 4294901760, %v2117_v4 }
  0xf1   : > { %v840_v59 = vand.u32 4294901760, %v839_v28  ;;  %v13702_v58 = vand.u32 4294901760, %v14778_v0  ;;  %v13705_v21 = vand.u32 4294901760, %v14779_v61  ;;  %v2123_v47 = vsub.f32 %v14776_v6, %v13699_v53  ;;  %6575 = vmatpush1.bf16.xpose.msra.mxu1 %v8995_v44 }
  0xf2   : > { %v852_v60 = vand.u32 4294901760, %v851_v50  ;;  %v2135_v15 = vsub.f32 %v14777_v31, %v13701_v48  ;;  %v13707_v5 = vand.u32 4294901760, %v14780_v18  ;;  %v9251_v9 = vpack.c.bf16 %v2118_v35, %v2106_v57  ;;  %v14781_v50 = vld [vmem:[#allocation97_spill] sm:$0xff]  ;;  %6577 = vmatprep.subr.bf16.mxu1 %v9011_v1 }
  0xf3   : > { %v845_v4 = vsub.f32 %v14778_v0, %v13702_v58  ;;  %v857_v28 = vsub.f32 %v14779_v61, %v13705_v21  ;;  %v13708_v24 = vand.u32 4294901760, %v14781_v50  ;;  %v2124_v53 = vand.u32 4294901760, %v2123_v47  ;;  %v14782_v0 = vld [vmem:[#allocation99_spill] sm:$0xff]  ;;  %6191 = vmatpush1.bf16.xpose.msra.mxu0 %v8989_v22 }
  0xf4   : > { %v9260_v10 = vpack.c.bf16 %v852_v60, %v840_v59  ;;  %v2136_v6 = vand.u32 4294901760, %v2135_v15  ;;  %v2129_v48 = vsub.f32 %v14780_v18, %v13707_v5  ;;  %v13714_v31 = vand.u32 4294901760, %v14782_v0  ;;  %v14783_v60 = vld [vmem:[#allocation100_spill] sm:$0xff]  ;;  %v14784_v15 = vld [vmem:[#allocation102_spill] sm:$0xff]  ;;  %6193 = vmatprep.subr.bf16.mxu0 %v9004_v56 }
  0xf5   : > { %v846_v57 = vand.u32 4294901760, %v845_v4  ;;  %v858_v35 = vand.u32 4294901760, %v857_v28  ;;  %v2141_v58 = vsub.f32 %v14781_v50, %v13708_v24  ;;  %v13717_v47 = vand.u32 4294901760, %v14783_v60  ;;  %v14785_v24 = vld [vmem:[#allocation103_spill] sm:$0xff]  ;;  %v14787_v56 = vld [vmem:[#allocation106_spill] sm:$0xff]  ;;  %v14788_v18 = vld [vmem:[#allocation108_spill] sm:$0xff] }
  0xf6   : > { %v9270_v21 = vpack.c.bf16 %v2136_v6, %v2124_v53  ;;  %v2130_v59 = vand.u32 4294901760, %v2129_v48  ;;  %v13719_v61 = vand.u32 4294901760, %v14784_v15  ;;  %v863_v28 = vsub.f32 %v14782_v0, %v13714_v31  ;;  %v14786_v48 = vld [vmem:[#allocation105_spill] sm:$0xff] }
  0xf7   : > { %v9275_v5 = vpack.c.bf16 %v858_v35, %v846_v57  ;;  %v2142_v4 = vand.u32 4294901760, %v2141_v58  ;;  %v13720_v50 = vand.u32 4294901760, %v14785_v24  ;;  %v875_v6 = vsub.f32 %v14783_v60, %v13717_v47 }
  0xf8   : > { %v2147_v53 = vsub.f32 %v14784_v15, %v13719_v61  ;;  %v13731_v22 = vand.u32 4294901760, %v14786_v48  ;;  %v13734_v57 = vand.u32 4294901760, %v14787_v56  ;;  %v864_v35 = vand.u32 4294901760, %v863_v28 }
  0xf9   : > { %v9290_v58 = vpack.c.bf16 %v2142_v4, %v2130_v59  ;;  %v2159_v31 = vsub.f32 %v14785_v24, %v13720_v50  ;;  %v13733_v0 = vand.u32 4294901760, %v14788_v18  ;;  %v876_v47 = vand.u32 4294901760, %v875_v6  ;;  %v14789_v50 = vld [vmem:[#allocation109_spill] sm:$0xff]  ;;  %v14790_v24 = vld [vmem:[#allocation111_spill] sm:$0xff]  ;;  %6579 = vmatpush1.bf16.xpose.msra.mxu1 %v9030_v19 }
  0xfa   : > { %v2148_v60 = vand.u32 4294901760, %v2147_v53  ;;  %v869_v61 = vsub.f32 %v14786_v48, %v13731_v22  ;;  %v881_v59 = vsub.f32 %v14787_v56, %v13734_v57  ;;  %v13735_v44 = vand.u32 4294901760, %v14789_v50  ;;  %6581 = vmatprep.subr.bf16.mxu1 %v9086_v27  ;;  %v14800_v27 = vld [vmem:[#allocation124_spill] sm:$0xff]  ;;  %v14817_v56 = vld [vmem:[#allocation147_spill] sm:$0xff] }
  0xfb   : > { %v2160_v4 = vand.u32 4294901760, %v2159_v31  ;;  %v2153_v28 = vsub.f32 %v14788_v18, %v13733_v0  ;;  %v13738_v15 = vand.u32 4294901760, %v14790_v24  ;;  %v9308_v1 = vpack.c.bf16 %v876_v47, %v864_v35  ;;  %6195 = vmatpush1.bf16.xpose.msra.mxu0 %v9024_v38  ;;  %v14792_v47 = vld [vmem:[#allocation114_spill] sm:$0xff]  ;;  %v14793_v35 = vld [vmem:[#allocation115_spill] sm:$0xff] }
  0xfc   : > { %v870_v6 = vand.u32 4294901760, %v869_v61  ;;  %v882_v53 = vand.u32 4294901760, %v881_v59  ;;  %v13740_v39 = vand.u32 4294901760, %v14791_v40  ;;  %v2165_v31 = vsub.f32 %v14789_v50, %v13735_v44  ;;  %6197 = vmatprep.subr.bf16.mxu0 %v9074_v36  ;;  %v14794_v44 = vld [vmem:[#allocation117_spill] sm:$0xff]  ;;  %v14795_v18 = vld [vmem:[#allocation118_spill] sm:$0xff] }
  0xfd   : > { %v9311_v22 = vpack.c.bf16 %v2160_v4, %v2148_v60  ;;  %v2154_v48 = vand.u32 4294901760, %v2153_v28  ;;  %v887_v0 = vsub.f32 %v14790_v24, %v13738_v15  ;;  %v13743_v60 = vand.u32 4294901760, %v14792_v47 }
  0xfe   : > { %v9320_v57 = vpack.c.bf16 %v882_v53, %v870_v6  ;;  %v899_v61 = vsub.f32 %v14791_v40, %v13740_v39  ;;  %v13745_v59 = vand.u32 4294901760, %v14793_v35  ;;  %v2166_v4 = vand.u32 4294901760, %v2165_v31  ;;  %v14796_v39 = vld [vmem:[#allocation120_spill] sm:$0xff] }
  0xff   : > { %v888_v28 = vand.u32 4294901760, %v887_v0  ;;  %v13749_v50 = vand.u32 4294901760, %v14794_v44  ;;  %v13751_v15 = vand.u32 4294901760, %v14795_v18  ;;  %v2171_v6 = vsub.f32 %v14792_v47, %v13743_v60 }
 0x100   : > { %v900_v24 = vand.u32 4294901760, %v899_v61  ;;  %v2183_v53 = vsub.f32 %v14793_v35, %v13745_v59  ;;  %v9338_v36 = vpack.c.bf16 %v2166_v4, %v2154_v48  ;;  %v14797_v61 = vld [vmem:[#allocation121_spill] sm:$0xff]  ;;  %v14798_v19 = vand.u32 4294901760, %v14796_v39  ;;  %2018 = vmatmul.mubr.f32.vlgmr.msra.gmra.mrb[0].mxu1 %v9101_v32 }
 0x101   : > { %v893_v0 = vsub.f32 %v14794_v44, %v13749_v50  ;;  %v905_v31 = vsub.f32 %v14795_v18, %v13751_v15  ;;  %v13754_v60 = vand.u32 4294901760, %v14797_v61  ;;  %v2172_v59 = vand.u32 4294901760, %v2171_v6  ;;  %v14799_v44 = vld [vmem:[#allocation123_spill] sm:$0xff]  ;;  %6583 = vmatpush1.bf16.xpose.msra.mxu1 %v9115_v8  ;;  %2409 = vmatprep.mubr.f32.mxu1 %v9018_v7 }
 0x102   : > { %v9348_v47 = vpack.c.bf16 %v900_v24, %v888_v28  ;;  %v2184_v38 = vand.u32 4294901760, %v2183_v53  ;;  %v2177_v48 = vsub.f32 %v14796_v39, %v14798_v19  ;;  %v13755_v15 = vand.u32 4294901760, %v14799_v44  ;;  %v14801_v28 = vld [vmem:[#allocation126_spill] sm:$0xff]  ;;  %734 = vmatmul.mubr.f32.vlgmr.msra.gmra.mrb[0].mxu0 %v9101_v32  ;;  %v14809_v32 = vld [vmem:[#allocation135_spill] sm:$0xff]  ;;  %6585 = vmatprep.subr.bf16.mxu1 %v9138_v37 }
 0x103   : > { %v894_v4 = vand.u32 4294901760, %v893_v0  ;;  %v906_v35 = vand.u32 4294901760, %v905_v31  ;;  %v2189_v50 = vsub.f32 %v14797_v61, %v13754_v60  ;;  %v13757_v24 = vand.u32 4294901760, %v14800_v27  ;;  %v14802_v31 = vld [vmem:[#allocation127_spill] sm:$0xff]  ;;  %6199 = vmatpush1.bf16.xpose.msra.mxu0 %v9096_v55  ;;  %1125 = vmatprep.mubr.f32.mxu0 %v9018_v7 }
 0x104   : > { %v9357_v18 = vpack.c.bf16 %v2184_v38, %v2172_v59  ;;  %v2178_v40 = vand.u32 4294901760, %v2177_v48  ;;  %v13759_v6 = vand.u32 4294901760, %v14801_v28  ;;  %v911_v0 = vsub.f32 %v14799_v44, %v13755_v15  ;;  %v14803_v48 = vld [vmem:[#allocation129_spill] sm:$0xff]  ;;  %6201 = vmatprep.subr.bf16.mxu0 %v9134_v42  ;;  %v14814_v44 = vld [vmem:[#allocation142_spill] sm:$0xff] }
 0x105   : > { %v9362_v53 = vpack.c.bf16 %v906_v35, %v894_v4  ;;  %v2190_v19 = vand.u32 4294901760, %v2189_v50  ;;  %v923_v38 = vsub.f32 %v14800_v27, %v13757_v24  ;;  %v13764_v35 = vand.u32 4294901760, %v14803_v48  ;;  %v14804_v4 = vld [vmem:[#allocation130_spill] sm:$0xff]  ;;  %v14806_v24 = vld [vmem:[#allocation132_spill] sm:$0xff] }
 0x106   : > { %v2195_v59 = vsub.f32 %v14801_v28, %v13759_v6  ;;  %v912_v60 = vand.u32 4294901760, %v911_v0  ;;  %v14805_v55 = vand.u32 4294901760, %v14802_v31  ;;  %v13767_v39 = vand.u32 4294901760, %v14806_v24  ;;  %v14808_v0 = vld [vmem:[#allocation133_spill] sm:$0xff] }
 0x107   : > { %v9379_v15 = vpack.c.bf16 %v2190_v19, %v2178_v40  ;;  %v924_v6 = vand.u32 4294901760, %v923_v38  ;;  %v917_v50 = vsub.f32 %v14803_v48, %v13764_v35  ;;  %v14807_v27 = vand.u32 4294901760, %v14804_v4 }
 0x108   : > { %v2207_v61 = vsub.f32 %v14802_v31, %v14805_v55  ;;  %v2196_v28 = vand.u32 4294901760, %v2195_v59  ;;  %v2201_v19 = vsub.f32 %v14806_v24, %v13767_v39  ;;  %v13773_v55 = vand.u32 4294901760, %v14808_v0 }
 0x109   : > { %v929_v40 = vsub.f32 %v14804_v4, %v14807_v27  ;;  %v13776_v38 = vand.u32 4294901760, %v14809_v32  ;;  %v9400_v59 = vpack.c.bf16 %v924_v6, %v912_v60  ;;  %v918_v35 = vand.u32 4294901760, %v917_v50  ;;  %v14810_v27 = vld [vmem:[#allocation136_spill] sm:$0xff]  ;;  %v14811_v60 = vld [vmem:[#allocation138_spill] sm:$0xff]  ;;  %v14812_v50 = vld [vmem:[#allocation139_spill] sm:$0xff]  ;;  %6587 = vmatpush1.bf16.xpose.msra.mxu1 %v9163_v11 }
 0x10a   : > { %v2208_v42 = vand.u32 4294901760, %v2207_v61  ;;  %v13775_v4 = vand.u32 4294901760, %v14810_v27  ;;  %v2202_v61 = vand.u32 4294901760, %v2201_v19  ;;  %v2213_v39 = vsub.f32 %v14808_v0, %v13773_v55  ;;  %v14813_v19 = vld [vmem:[#allocation141_spill] sm:$0xff]  ;;  %6589 = vmatprep.subr.bf16.mxu1 %v9183_v2 }
 0x10b   : > { %v930_v48 = vand.u32 4294901760, %v929_v40  ;;  %v935_v24 = vsub.f32 %v14809_v32, %v13776_v38  ;;  %v13777_v6 = vand.u32 4294901760, %v14811_v60  ;;  %v13781_v31 = vand.u32 4294901760, %v14813_v19  ;;  %6203 = vmatpush1.bf16.xpose.msra.mxu0 %v9147_v12 }
 0x10c   : > { %v9403_v8 = vpack.c.bf16 %v2208_v42, %v2196_v28  ;;  %v947_v37 = vsub.f32 %v14810_v27, %v13775_v4  ;;  %v13780_v28 = vand.u32 4294901760, %v14812_v50  ;;  %v2214_v40 = vand.u32 4294901760, %v2213_v39  ;;  %v14815_v4 = vld [vmem:[#allocation144_spill] sm:$0xff]  ;;  %6205 = vmatprep.subr.bf16.mxu0 %v9173_v26 }
 0x10d   : > { %v9411_v7 = vpack.c.bf16 %v930_v48, %v918_v35  ;;  %v936_v42 = vand.u32 4294901760, %v935_v24  ;;  %v13783_v55 = vand.u32 4294901760, %v14814_v44  ;;  %v2219_v48 = vsub.f32 %v14811_v60, %v13777_v6 }
 0x10e   : > { %v948_v0 = vand.u32 4294901760, %v947_v37  ;;  %v2231_v35 = vsub.f32 %v14812_v50, %v13780_v28  ;;  %v13788_v38 = vand.u32 4294901760, %v14815_v4  ;;  %v9429_v39 = vpack.c.bf16 %v2214_v40, %v2202_v61  ;;  %v14816_v37 = vld [vmem:[#allocation145_spill] sm:$0xff] }
 0x10f   : > { %v941_v24 = vsub.f32 %v14813_v19, %v13781_v31  ;;  %v953_v12 = vsub.f32 %v14814_v44, %v13783_v55  ;;  %v13789_v6 = vand.u32 4294901760, %v14816_v37  ;;  %v2220_v32 = vand.u32 4294901760, %v2219_v48  ;;  %v14818_v48 = vld [vmem:[#allocation148_spill] sm:$0xff] }
 0x110   : > { %v9438_v27 = vpack.c.bf16 %v948_v0, %v936_v42  ;;  %v2232_v28 = vand.u32 4294901760, %v2231_v35  ;;  %v2225_v26 = vsub.f32 %v14815_v4, %v13788_v38  ;;  %v13792_v55 = vand.u32 4294901760, %v14817_v56 }
 0x111   : > { %v942_v61 = vand.u32 4294901760, %v941_v24  ;;  %v954_v40 = vand.u32 4294901760, %v953_v12  ;;  %v2237_v31 = vsub.f32 %v14816_v37, %v13789_v6  ;;  %v13797_v35 = vand.u32 4294901760, %v14818_v48  ;;  %v14820_v12 = vld [vmem:[#allocation151_spill] sm:$0xff]  ;;  %6591 = vmatpush1.bf16.xpose.msra.mxu1 %v9203_v52  ;;  %v14827_v52 = vld [vmem:[#allocation162_spill] sm:$0xff] }
 0x112   : > { %v9449_v0 = vpack.c.bf16 %v2232_v28, %v2220_v32  ;;  %v2226_v42 = vand.u32 4294901760, %v2225_v26  ;;  %v13800_v41 = vand.u32 4294901760, %v14819_v46  ;;  %v959_v24 = vsub.f32 %v14817_v56, %v13792_v55  ;;  %v14821_v28 = vld [vmem:[#allocation153_spill] sm:$0xff]  ;;  %6593 = vmatprep.subr.bf16.mxu1 %v9225_v62 }
 0x113   : > { %v9453_v38 = vpack.c.bf16 %v954_v40, %v942_v61  ;;  %v2238_v11 = vand.u32 4294901760, %v2237_v31  ;;  %v13801_v6 = vand.u32 4294901760, %v14820_v12  ;;  %v971_v2 = vsub.f32 %v14818_v48, %v13797_v35  ;;  %6207 = vmatpush1.bf16.xpose.msra.mxu0 %v9188_v54  ;;  %v14825_v54 = vld [vmem:[#allocation159_spill] sm:$0xff] }
 0x114   : > { %v2243_v32 = vsub.f32 %v14819_v46, %v13800_v41  ;;  %v13805_v26 = vand.u32 4294901760, %v14821_v28  ;;  %v13807_v61 = vand.u32 4294901760, %v14822_v25  ;;  %v960_v31 = vand.u32 4294901760, %v959_v24  ;;  %6209 = vmatprep.subr.bf16.mxu0 %v9221_v63 }
 0x115   : > { %v9467_v40 = vpack.c.bf16 %v2238_v11, %v2226_v42  ;;  %v2255_v55 = vsub.f32 %v14820_v12, %v13801_v6  ;;  %v972_v35 = vand.u32 4294901760, %v971_v2  ;;  %v2249_v24 = vsub.f32 %v14823_v23, %v13808_v17  ;;  %v14824_v6 = vld [vmem:[#allocation157_spill] sm:$0xff] }
 0x116   : > { %v2244_v16 = vand.u32 4294901760, %v2243_v32  ;;  %v965_v41 = vsub.f32 %v14821_v28, %v13805_v26  ;;  %v977_v42 = vsub.f32 %v14822_v25, %v13807_v61  ;;  %v13810_v12 = vand.u32 4294901760, %v14824_v6  ;;  %v14826_v26 = vld [vmem:[#allocation160_spill] sm:$0xff]  ;;  %v14829_v23 = vld [vmem:[#allocation165_spill] sm:$0xff] }
 0x117   : > { %v2256_v11 = vand.u32 4294901760, %v2255_v55  ;;  %v13815_v2 = vand.u32 4294901760, %v14825_v54  ;;  %v9486_v32 = vpack.c.bf16 %v972_v35, %v960_v31  ;;  %v13814_v28 = vand.u32 4294901760, %v14826_v26  ;;  %v14828_v31 = vld [vmem:[#allocation163_spill] sm:$0xff] }
 0x118   : > { %v966_v46 = vand.u32 4294901760, %v965_v41  ;;  %v978_v48 = vand.u32 4294901760, %v977_v42  ;;  %v2250_v63 = vand.u32 4294901760, %v2249_v24  ;;  %v2261_v55 = vsub.f32 %v14824_v6, %v13810_v12  ;;  %v14830_v6 = vld [vmem:[#allocation166_spill] sm:$0xff] }
 0x119   : > { %v9490_v61 = vpack.c.bf16 %v2256_v11, %v2244_v16  ;;  %v983_v17 = vsub.f32 %v14825_v54, %v13815_v2  ;;  %v995_v41 = vsub.f32 %v14826_v26, %v13814_v28  ;;  %v13817_v16 = vand.u32 4294901760, %v14827_v52  ;;  %6595 = vmatpush1.bf16.xpose.msra.mxu1 %v9251_v9  ;;  %v14838_v9 = vld [vmem:[#allocation177_spill] sm:$0xff] }
 0x11a   : > { %v9499_v35 = vpack.c.bf16 %v978_v48, %v966_v46  ;;  %v13819_v42 = vand.u32 4294901760, %v14828_v31  ;;  %v2262_v11 = vand.u32 4294901760, %v2261_v55  ;;  %v13820_v12 = vand.u32 4294901760, %v14829_v23  ;;  %v14831_v48 = vld [vmem:[#allocation168_spill] sm:$0xff]  ;;  %6597 = vmatprep.subr.bf16.mxu1 %v9270_v21 }
 0x11b   : > { %v984_v24 = vand.u32 4294901760, %v983_v17  ;;  %v13821_v25 = vand.u32 4294901760, %v14830_v6  ;;  %v996_v56 = vand.u32 4294901760, %v995_v41  ;;  %v2267_v46 = vsub.f32 %v14827_v52, %v13817_v16  ;;  %v14832_v41 = vld [vmem:[#allocation169_spill] sm:$0xff]  ;;  %6211 = vmatpush1.bf16.xpose.msra.mxu0 %v9233_v29  ;;  %v14834_v29 = vld [vmem:[#allocation172_spill] sm:$0xff] }
 0x11c   : > { %v2279_v62 = vsub.f32 %v14828_v31, %v13819_v42  ;;  %v13825_v28 = vand.u32 4294901760, %v14831_v48  ;;  %v9515_v2 = vpack.c.bf16 %v2262_v11, %v2250_v63  ;;  %v989_v17 = vsub.f32 %v14829_v23, %v13820_v12  ;;  %6213 = vmatprep.subr.bf16.mxu0 %v9260_v10  ;;  %v14840_v21 = vld [vmem:[#allocation180_spill] sm:$0xff] }
 0x11d   : > { %v1001_v55 = vsub.f32 %v14830_v6, %v13821_v25  ;;  %v13826_v26 = vand.u32 4294901760, %v14832_v41  ;;  %v9525_v16 = vpack.c.bf16 %v996_v56, %v984_v24  ;;  %v2268_v52 = vand.u32 4294901760, %v2267_v46  ;;  %v14833_v6 = vld [vmem:[#allocation171_spill] sm:$0xff]  ;;  %v14835_v46 = vld [vmem:[#allocation174_spill] sm:$0xff] }
 0x11e   : > { %v2280_v42 = vand.u32 4294901760, %v2279_v62  ;;  %v2273_v63 = vsub.f32 %v14831_v48, %v13825_v28  ;;  %v990_v11 = vand.u32 4294901760, %v989_v17  ;;  %v13828_v23 = vand.u32 4294901760, %v14833_v6 }
 0x11f   : > { %v1002_v12 = vand.u32 4294901760, %v1001_v55  ;;  %v2285_v25 = vsub.f32 %v14832_v41, %v13826_v26  ;;  %v13831_v24 = vand.u32 4294901760, %v14834_v29  ;;  %v13832_v62 = vand.u32 4294901760, %v14835_v46  ;;  %v14837_v55 = vld [vmem:[#allocation175_spill] sm:$0xff] }
 0x120   : > { %v9535_v31 = vpack.c.bf16 %v2280_v42, %v2268_v52  ;;  %v2274_v56 = vand.u32 4294901760, %v2273_v63  ;;  %v1007_v17 = vsub.f32 %v14833_v6, %v13828_v23  ;;  %v13834_v26 = vand.u32 4294901760, %v14837_v55  ;;  %v14839_v63 = vld [vmem:[#allocation178_spill] sm:$0xff] }
 0x121   : > { %v9540_v28 = vpack.c.bf16 %v1002_v12, %v990_v11  ;;  %v2286_v10 = vand.u32 4294901760, %v2285_v25  ;;  %v1019_v52 = vsub.f32 %v14834_v29, %v13831_v24  ;;  %v2291_v42 = vsub.f32 %v14835_v46, %v13832_v62  ;;  %6599 = vmatpush1.bf16.xpose.msra.mxu1 %v9290_v58 }
 0x122   : > { %v13837_v12 = vand.u32 4294901760, %v14838_v9  ;;  %v13839_v25 = vand.u32 4294901760, %v14839_v63  ;;  %v1008_v41 = vand.u32 4294901760, %v1007_v17  ;;  %v2303_v23 = vsub.f32 %v14837_v55, %v13834_v26  ;;  %v14842_v26 = vld [vmem:[#allocation183_spill] sm:$0xff]  ;;  %6601 = vmatprep.subr.bf16.mxu1 %v9311_v22 }
 0x123   : > { %14836 = vst [vmem:[#allocation138_spill] sm:$0xff] %v9540_v28  ;;  %v9555_v11 = vpack.c.bf16 %v2286_v10, %v2274_v56  ;;  %v13840_v6 = vand.u32 4294901760, %v14840_v21  ;;  %v1020_v48 = vand.u32 4294901760, %v1019_v52  ;;  %v2292_v28 = vand.u32 4294901760, %v2291_v42  ;;  %v14841_v10 = vld [vmem:[#allocation181_spill] sm:$0xff]  ;;  %6215 = vmatpush1.bf16.xpose.msra.mxu0 %v9275_v5 }
 0x124   : > { %v1013_v24 = vsub.f32 %v14838_v9, %v13837_v12  ;;  %v1025_v62 = vsub.f32 %v14839_v63, %v13839_v25  ;;  %v2304_v46 = vand.u32 4294901760, %v2303_v23  ;;  %v13842_v17 = vand.u32 4294901760, %v14841_v10  ;;  %v14843_v12 = vld [vmem:[#allocation184_spill] sm:$0xff]  ;;  %6217 = vmatprep.subr.bf16.mxu0 %v9308_v1  ;;  %v14845_v1 = vld [vmem:[#allocation187_spill] sm:$0xff] }
 0x125   : > { %v2297_v56 = vsub.f32 %v14840_v21, %v13840_v6  ;;  %v13846_v55 = vand.u32 4294901760, %v14842_v26  ;;  %v9573_v52 = vpack.c.bf16 %v1020_v48, %v1008_v41  ;;  %v13845_v9 = vand.u32 4294901760, %v14843_v12  ;;  %v14844_v41 = vld [vmem:[#allocation186_spill] sm:$0xff] }
 0x126   : > { %v1014_v42 = vand.u32 4294901760, %v1013_v24  ;;  %v1026_v29 = vand.u32 4294901760, %v1025_v62  ;;  %v9577_v25 = vpack.c.bf16 %v2304_v46, %v2292_v28  ;;  %v2309_v6 = vsub.f32 %v14841_v10, %v13842_v17  ;;  %v14847_v10 = vld [vmem:[#allocation190_spill] sm:$0xff] }
 0x127   : > { %v2298_v23 = vand.u32 4294901760, %v2297_v56  ;;  %v1031_v21 = vsub.f32 %v14842_v26, %v13846_v55  ;;  %v1043_v48 = vsub.f32 %v14843_v12, %v13845_v9  ;;  %v13849_v24 = vand.u32 4294901760, %v14844_v41  ;;  %v14846_v56 = vld [vmem:[#allocation189_spill] sm:$0xff]  ;;  %v14848_v55 = vld [vmem:[#allocation192_spill] sm:$0xff] }
 0x128   : > { %v9585_v5 = vpack.c.bf16 %v1026_v29, %v1014_v42  ;;  %v13851_v28 = vand.u32 4294901760, %v14845_v1  ;;  %v2310_v46 = vand.u32 4294901760, %v2309_v6  ;;  %v13852_v17 = vand.u32 4294901760, %v14846_v56 }
 0x129   : > { %v1032_v62 = vand.u32 4294901760, %v1031_v21  ;;  %v13855_v63 = vand.u32 4294901760, %v14847_v10  ;;  %v1044_v29 = vand.u32 4294901760, %v1043_v48  ;;  %v2315_v42 = vsub.f32 %v14844_v41, %v13849_v24  ;;  %v14849_v21 = vld [vmem:[#allocation193_spill] sm:$0xff]  ;;  %6603 = vmatpush1.bf16.xpose.msra.mxu1 %v9338_v36 }
 0x12a   : > { %v2327_v9 = vsub.f32 %v14845_v1, %v13851_v28  ;;  %v13857_v12 = vand.u32 4294901760, %v14848_v55  ;;  %v9603_v58 = vpack.c.bf16 %v2310_v46, %v2298_v23  ;;  %v1037_v6 = vsub.f32 %v14846_v56, %v13852_v17  ;;  %v14850_v56 = vld [vmem:[#allocation195_spill] sm:$0xff]  ;;  %6605 = vmatprep.subr.bf16.mxu1 %v9357_v18 }
 0x12b   : > { %v1049_v22 = vsub.f32 %v14847_v10, %v13855_v63  ;;  %v13858_v48 = vand.u32 4294901760, %v14849_v21  ;;  %v9612_v26 = vpack.c.bf16 %v1044_v29, %v1032_v62  ;;  %v2316_v24 = vand.u32 4294901760, %v2315_v42  ;;  %6219 = vmatpush1.bf16.xpose.msra.mxu0 %v9320_v57  ;;  %v14851_v29 = vld [vmem:[#allocation196_spill] sm:$0xff] }
 0x12c   : > { %v2328_v41 = vand.u32 4294901760, %v2327_v9  ;;  %v2321_v28 = vsub.f32 %v14848_v55, %v13857_v12  ;;  %v1038_v23 = vand.u32 4294901760, %v1037_v6  ;;  %v13860_v1 = vand.u32 4294901760, %v14850_v56  ;;  %v14852_v9 = vld [vmem:[#allocation198_spill] sm:$0xff]  ;;  %6221 = vmatprep.subr.bf16.mxu0 %v9348_v47 }
 0x12d   : > { %v1050_v46 = vand.u32 4294901760, %v1049_v22  ;;  %v2333_v17 = vsub.f32 %v14849_v21, %v13858_v48  ;;  %v13863_v42 = vand.u32 4294901760, %v14851_v29  ;;  %v13865_v10 = vand.u32 4294901760, %v14852_v9  ;;  %v14854_v48 = vld [vmem:[#allocation199_spill] sm:$0xff]  ;;  %v14856_v47 = vld [vmem:[#allocation202_spill] sm:$0xff] }
 0x12e   : > { %v9622_v63 = vpack.c.bf16 %v2328_v41, %v2316_v24  ;;  %v2322_v62 = vand.u32 4294901760, %v2321_v28  ;;  %v1055_v22 = vsub.f32 %v14850_v56, %v13860_v1  ;;  %v13866_v21 = vand.u32 4294901760, %v14854_v48  ;;  %v14855_v24 = vld [vmem:[#allocation201_spill] sm:$0xff]  ;;  %v14858_v56 = vld [vmem:[#allocation204_spill] sm:$0xff] }
 0x12f   : > { %v9627_v12 = vpack.c.bf16 %v1050_v46, %v1038_v23  ;;  %v2334_v6 = vand.u32 4294901760, %v2333_v17  ;;  %v1067_v57 = vsub.f32 %v14851_v29, %v13863_v42  ;;  %v2339_v41 = vsub.f32 %v14852_v9, %v13865_v10 }
 0x130   : > { %v13869_v28 = vand.u32 4294901760, %v14855_v24  ;;  %v13872_v23 = vand.u32 4294901760, %v14856_v47  ;;  %v1056_v46 = vand.u32 4294901760, %v1055_v22  ;;  %v2351_v1 = vsub.f32 %v14854_v48, %v13866_v21  ;;  %v14859_v22 = vld [vmem:[#allocation205_spill] sm:$0xff]  ;;  %v14860_v48 = vld [vmem:[#allocation207_spill] sm:$0xff] }
 0x131   : > { %14853 = vst [vmem:[#allocation139_spill] sm:$0xff] %v9627_v12  ;;  %v9642_v17 = vpack.c.bf16 %v2334_v6, %v2322_v62  ;;  %v13871_v55 = vand.u32 4294901760, %v14858_v56  ;;  %v1068_v42 = vand.u32 4294901760, %v1067_v57  ;;  %v2340_v29 = vand.u32 4294901760, %v2339_v41  ;;  %6607 = vmatpush1.bf16.xpose.msra.mxu1 %v9379_v15 }
 0x132   : > { %v1061_v10 = vsub.f32 %v14855_v24, %v13869_v28  ;;  %v1073_v36 = vsub.f32 %v14856_v47, %v13872_v23  ;;  %v2352_v62 = vand.u32 4294901760, %v2351_v1  ;;  %v13873_v21 = vand.u32 4294901760, %v14859_v22  ;;  %6609 = vmatprep.subr.bf16.mxu1 %v9403_v8 }
 0x133   : > { %14857 = vst [vmem:[#allocation141_spill] sm:$0xff] %v9642_v17  ;;  %v2345_v6 = vsub.f32 %v14858_v56, %v13871_v55  ;;  %v13874_v9 = vand.u32 4294901760, %v14860_v48  ;;  %v9660_v18 = vpack.c.bf16 %v1068_v42, %v1056_v46  ;;  %v14861_v17 = vld [vmem:[#allocation208_spill] sm:$0xff]  ;;  %6223 = vmatpush1.bf16.xpose.msra.mxu0 %v9362_v53  ;;  %v14862_v42 = vld [vmem:[#allocation210_spill] sm:$0xff]  ;;  %v14863_v46 = vld [vmem:[#allocation211_spill] sm:$0xff]  ;;  %v14865_v15 = vand.u32 4294901760, %v9000_v30 }
 0x134   : > { %v1062_v57 = vand.u32 4294901760, %v1061_v10  ;;  %v1074_v41 = vand.u32 4294901760, %v1073_v36  ;;  %v13877_v12 = vand.u32 4294901760, %v14861_v17  ;;  %v9663_v28 = vpack.c.bf16 %v2352_v62, %v2340_v29  ;;  %6225 = vmatprep.subr.bf16.mxu0 %v9400_v59 }
 0x135   : > { %v2346_v24 = vand.u32 4294901760, %v2345_v6  ;;  %v2357_v1 = vsub.f32 %v14859_v22, %v13873_v21  ;;  %v1079_v55 = vsub.f32 %v14860_v48, %v13874_v9  ;;  %v13876_v29 = vand.u32 4294901760, %v14862_v42 }
 0x136   : > { %v9672_v23 = vpack.c.bf16 %v1074_v41, %v1062_v57  ;;  %v1091_v10 = vsub.f32 %v14861_v17, %v13877_v12  ;;  %v13878_v36 = vand.u32 4294901760, %v14863_v46  ;;  %v13880_v21 = vand.u32 4294901760, %v8991_v43 }
 0x137   : > { %v2358_v62 = vand.u32 4294901760, %v2357_v1  ;;  %v1080_v6 = vand.u32 4294901760, %v1079_v55  ;;  %v13881_v9 = vand.u32 4294901760, %v8993_v33  ;;  %v2363_v53 = vsub.f32 %v14862_v42, %v13876_v29 }
 0x138   : > { %v1092_v48 = vand.u32 4294901760, %v1091_v10  ;;  %v2375_v57 = vsub.f32 %v14863_v46, %v13878_v36  ;;  %v1085_v55 = vsub.f32 %v8991_v43, %v13880_v21  ;;  %v14864_v10 = vld [vmem:[#allocation217_spill] sm:$0xff]  ;;  %v13888_v8 = vand.u32 4294901760, %v9009_v13 }
 0x139   : > { %v9690_v59 = vpack.c.bf16 %v2358_v62, %v2346_v24  ;;  %v1097_v1 = vsub.f32 %v8993_v33, %v13881_v9  ;;  %v13886_v29 = vand.u32 4294901760, %v14864_v10  ;;  %v2364_v36 = vand.u32 4294901760, %v2363_v53  ;;  %6611 = vmatpush1.bf16.xpose.msra.mxu1 %v9429_v39 }
 0x13a   : > { %v9700_v12 = vpack.c.bf16 %v1092_v48, %v1080_v6  ;;  %v2376_v41 = vand.u32 4294901760, %v2375_v57  ;;  %v2369_v24 = vsub.f32 %v9000_v30, %v14865_v15  ;;  %v1086_v62 = vand.u32 4294901760, %v1085_v55  ;;  %6613 = vmatprep.subr.bf16.mxu1 %v9449_v0  ;;  %v14893_v0 = vld [vmem:[#allocation187_spill] sm:$0xff] }
 0x13b   : > { %v1098_v46 = vand.u32 4294901760, %v1097_v1  ;;  %v2381_v21 = vsub.f32 %v14864_v10, %v13886_v29  ;;  %v13892_v9 = vand.u32 4294901760, %v9006_v34  ;;  %v13887_v48 = vand.u32 4294901760, %v9013_v20  ;;  %6227 = vmatpush1.bf16.xpose.msra.mxu0 %v9411_v7 }
 0x13c   : > { %v9709_v33 = vpack.c.bf16 %v2376_v41, %v2364_v36  ;;  %v2370_v43 = vand.u32 4294901760, %v2369_v24  ;;  %v13889_v55 = vand.u32 4294901760, %v9015_v3  ;;  %v1115_v36 = vsub.f32 %v9009_v13, %v13888_v8  ;;  %6229 = vmatprep.subr.bf16.mxu0 %v9438_v27 }
 0x13d   : > { %v9713_v6 = vpack.c.bf16 %v1098_v46, %v1086_v62  ;;  %v2382_v53 = vand.u32 4294901760, %v2381_v21  ;;  %v1103_v57 = vsub.f32 %v9006_v34, %v13892_v9  ;;  %v2387_v41 = vsub.f32 %v9013_v20, %v13887_v48  ;;  %v14916_v20 = vld [vmem:[#allocation52_spill] sm:$0xff] }
 0x13e   : > { %v13890_v46 = vand.u32 4294901760, %v9026_v51  ;;  %v13891_v21 = vand.u32 4294901760, %v9028_v14  ;;  %v2399_v7 = vsub.f32 %v9015_v3, %v13889_v55  ;;  %v13894_v24 = vand.u32 4294901760, %v9033_v45 }
 0x13f   : > { %v9729_v1 = vpack.c.bf16 %v2382_v53, %v2370_v43  ;;  %v1104_v15 = vand.u32 4294901760, %v1103_v57  ;;  %v1116_v62 = vand.u32 4294901760, %v1115_v36  ;;  %v2388_v29 = vand.u32 4294901760, %v2387_v41 }
 0x140   : > { %v1109_v48 = vsub.f32 %v9026_v51, %v13890_v46  ;;  %v1121_v8 = vsub.f32 %v9028_v14, %v13891_v21  ;;  %v2400_v43 = vand.u32 4294901760, %v2399_v7  ;;  %v2393_v27 = vsub.f32 %v9033_v45, %v13894_v24  ;;  %v14876_v24 = vld [vmem:[#allocation163_spill] sm:$0xff]  ;;  %v14918_v51 = vld [vmem:[#allocation48_spill] sm:$0xff] }
 0x141   : > { %v13893_v53 = vand.u32 4294901760, %v9035_v49  ;;  %v6256_v57 = vpack.c.bf16 %v1116_v62, %v1104_v15  ;;  %6615 = vmatpush1.bf16.xpose.msra.mxu1 %v9467_v40  ;;  %v14869_v62 = vld [vmem:[#allocation151_spill] sm:$0xff]  ;;  %v14878_v15 = vld [vmem:[#allocation166_spill] sm:$0xff]  ;;  %v14910_v40 = vld [vmem:[#allocation40_spill] sm:$0xff] }
 0x142   : > { %v1110_v36 = vand.u32 4294901760, %v1109_v48  ;;  %v1122_v41 = vand.u32 4294901760, %v1121_v8  ;;  %v6640_v55 = vpack.c.bf16 %v2400_v43, %v2388_v29  ;;  %v2394_v46 = vand.u32 4294901760, %v2393_v27  ;;  %6617 = vmatprep.subr.bf16.mxu1 %v9490_v61  ;;  %v14866_v48 = vld [vmem:[#allocation147_spill] sm:$0xff]  ;;  %v14871_v43 = vld [vmem:[#allocation154_spill] sm:$0xff] }
 0x143   : > { %v2405_v21 = vsub.f32 %v9035_v49, %v13893_v53  ;;  %6231 = vmatpush1.bf16.xpose.msra.mxu0 %v9453_v38  ;;  %v14868_v38 = vld [vmem:[#allocation150_spill] sm:$0xff]  ;;  %v14885_v27 = vld [vmem:[#allocation175_spill] sm:$0xff]  ;;  %v14898_v53 = vld [vmem:[#allocation193_spill] sm:$0xff] }
 0x144   : > { %v6258_v9 = vpack.c.bf16 %v1122_v41, %v1110_v36  ;;  %6233 = vmatprep.subr.bf16.mxu0 %v9486_v32  ;;  %v14874_v41 = vld [vmem:[#allocation160_spill] sm:$0xff]  ;;  %v14879_v29 = vld [vmem:[#allocation138_spill] sm:$0xff]  ;;  %v14906_v36 = vld [vmem:[#allocation211_spill] sm:$0xff] }
 0x145   : > { %v2406_v39 = vand.u32 4294901760, %v2405_v21  ;;  %v14867_v21 = vld [vmem:[#allocation148_spill] sm:$0xff]  ;;  %v14895_v61 = vld [vmem:[#allocation190_spill] sm:$0xff]  ;;  %v14909_v8 = vld [vmem:[#allocation39_spill] sm:$0xff] }
 0x146   : > { %v14902_v32 = vld [vmem:[#allocation198_spill] sm:$0xff]  ;;  %v14922_v14 = vld [vmem:[#allocation231_spill] sm:$0xff] }
 0x147   : > { %v6642_v7 = vpack.c.bf16 %v2406_v39, %v2394_v46  ;;  %v14870_v46 = vld [vmem:[#allocation153_spill] sm:$0xff]  ;;  %v14908_v39 = vld [vmem:[#allocation214_spill] sm:$0xff] }
 0x149   : > { %6619 = vmatpush1.bf16.xpose.msra.mxu1 %v9515_v2  ;;  %v14882_v2 = vld [vmem:[#allocation171_spill] sm:$0xff] }
 0x14a   : > { %6621 = vmatprep.subr.bf16.mxu1 %v9535_v31  ;;  %v14896_v31 = vld [vmem:[#allocation139_spill] sm:$0xff] }
 0x14b   : > { %6235 = vmatpush1.bf16.xpose.msra.mxu0 %v9499_v35  ;;  %v14892_v35 = vld [vmem:[#allocation186_spill] sm:$0xff] }
 0x14c   : > { %6237 = vmatprep.subr.bf16.mxu0 %v9525_v16  ;;  %v14883_v16 = vld [vmem:[#allocation172_spill] sm:$0xff] }
 0x151   : > { %6623 = vmatpush1.bf16.xpose.msra.mxu1 %v9555_v11  ;;  %v14903_v11 = vld [vmem:[#allocation199_spill] sm:$0xff] }
 0x152   : > { %6625 = vmatprep.subr.bf16.mxu1 %v9577_v25  ;;  %v14894_v25 = vld [vmem:[#allocation189_spill] sm:$0xff] }
 0x153   : > { %6239 = vmatpush1.bf16.xpose.msra.mxu0 %v14879_v29  ;;  %v14901_v29 = vld [vmem:[#allocation196_spill] sm:$0xff] }
 0x154   : > { %6241 = vmatprep.subr.bf16.mxu0 %v9573_v52  ;;  %v14891_v52 = vld [vmem:[#allocation184_spill] sm:$0xff] }
 0x159   : > { %6627 = vmatpush1.bf16.xpose.msra.mxu1 %v9603_v58  ;;  %v14900_v58 = vld [vmem:[#allocation195_spill] sm:$0xff] }
 0x15a   : > { %6629 = vmatprep.subr.bf16.mxu1 %v9622_v63  ;;  %v14904_v63 = vld [vmem:[#allocation201_spill] sm:$0xff] }
 0x15b   : > { %6243 = vmatpush1.bf16.xpose.msra.mxu0 %v9585_v5  ;;  %v14897_v5 = vld [vmem:[#allocation192_spill] sm:$0xff] }
 0x15c   : > { %6245 = vmatprep.subr.bf16.mxu0 %v9612_v26  ;;  %v14899_v26 = vld [vmem:[#allocation141_spill] sm:$0xff] }
 0x161   : > { %6631 = vmatpush1.bf16.xpose.msra.mxu1 %v14899_v26  ;;  %v14912_v26 = vld [vmem:[#allocation43_spill] sm:$0xff] }
 0x162   : > { %6633 = vmatprep.subr.bf16.mxu1 %v9663_v28  ;;  %v14907_v28 = vld [vmem:[#allocation213_spill] sm:$0xff] }
 0x163   : > { %6247 = vmatpush1.bf16.xpose.msra.mxu0 %v14896_v31  ;;  %v6260_v31 = vpack.c.bf16 %v14910_v40, %v14909_v8  ;;  %v14919_v40 = vld [vmem:[#allocation49_spill] sm:$0xff]  ;;  %v14920_v8 = vld [vmem:[#allocation54_spill] sm:$0xff] }
 0x164   : > { %6249 = vmatprep.subr.bf16.mxu0 %v9660_v18  ;;  %v14905_v18 = vld [vmem:[#allocation207_spill] sm:$0xff] }
 0x169   : > { %6635 = vmatpush1.bf16.xpose.msra.mxu1 %v9690_v59 }
 0x16a   : > { %6637 = vmatprep.subr.bf16.mxu1 %v9709_v33  ;;  %v14917_v33 = vld [vmem:[#allocation232_spill] sm:$0xff] }
 0x16b   : > { %6251 = vmatpush1.bf16.xpose.msra.mxu0 %v9672_v23 }
 0x16c   : > { %6253 = vmatprep.subr.bf16.mxu0 %v9700_v12  ;;  %v14914_v12 = vld [vmem:[#allocation46_spill] sm:$0xff] }
 0x171   : > { %6639 = vmatpush1.bf16.xpose.msra.mxu1 %v9729_v1  ;;  %v14925_v1 = vld [vmem:[#allocation63_spill] sm:$0xff] }
 0x172   : > { %6641 = vmatprep.subr.bf16.mxu1 %v6640_v55  ;;  %v14915_v55 = vld [vmem:[#allocation50_spill] sm:$0xff] }
 0x173   : > { %6255 = vmatpush1.bf16.xpose.msra.mxu0 %v9713_v6  ;;  %v14911_v6 = vld [vmem:[#allocation41_spill] sm:$0xff]  ;;  %v6264_v3 = vpack.c.bf16 %v14916_v20, %v14915_v55  ;;  %v14926_v20 = vld [vmem:[#allocation64_spill] sm:$0xff] }
 0x174   : > { %6257 = vmatprep.subr.bf16.mxu0 %v6256_v57  ;;  %v6644_v23 = vpack.c.bf16 %v14912_v26, %v14911_v6  ;;  %v14913_v57 = vld [vmem:[#allocation45_spill] sm:$0xff]  ;;  %v14921_v26 = vld [vmem:[#allocation55_spill] sm:$0xff]  ;;  %v6268_v55 = vpack.c.bf16 %v14926_v20, %v14925_v1  ;;  %v14937_v20 = vld [vmem:[#allocation78_spill] sm:$0xff] }
 0x175   : > { %v6262_v59 = vpack.c.bf16 %v14914_v12, %v14913_v57  ;;  %v6648_v6 = vpack.c.bf16 %v14921_v26, %v14920_v8  ;;  %v14929_v26 = vld [vmem:[#allocation66_spill] sm:$0xff]  ;;  %v14930_v8 = vld [vmem:[#allocation67_spill] sm:$0xff] }
 0x176   : > { %v6652_v12 = vpack.c.bf16 %v14930_v8, %v14929_v26  ;;  %v14938_v1 = vld [vmem:[#allocation79_spill] sm:$0xff]  ;;  %v14942_v8 = vld [vmem:[#allocation88_spill] sm:$0xff] }
 0x179   : > { %6643 = vmatpush1.bf16.xpose.msra.mxu1 %v6642_v7  ;;  %v14923_v7 = vld [vmem:[#allocation56_spill] sm:$0xff] }
 0x17a   : > { %6645 = vmatprep.subr.bf16.mxu1 %v6644_v23 }
 0x17b   : > { %6259 = vmatpush1.bf16.xpose.msra.mxu0 %v6258_v9  ;;  %v6646_v9 = vpack.c.bf16 %v14919_v40, %v14918_v51  ;;  %v14927_v40 = vld [vmem:[#allocation59_spill] sm:$0xff] }
 0x17c   : > { %6261 = vmatprep.subr.bf16.mxu0 %v6260_v31  ;;  %v14924_v31 = vld [vmem:[#allocation58_spill] sm:$0xff] }
 0x17d   : > { %v6266_v23 = vpack.c.bf16 %v14924_v31, %v14923_v7  ;;  %v14935_v31 = vld [vmem:[#allocation72_spill] sm:$0xff]  ;;  %v14936_v7 = vld [vmem:[#allocation73_spill] sm:$0xff] }
 0x17e   : > { %v6654_v45 = vpack.c.bf16 %v14936_v7, %v14935_v31 }
 0x180   : > { %2411 = vmatmul.mubr.f32.vlgmr.msra.gmra.mrb[0].mxu1 %v14917_v33 }
 0x181   : > { %6647 = vmatpush1.bf16.xpose.msra.mxu1 %v6646_v9  ;;  %2611 = vmatprep.mubr.f32.mxu1 %v14922_v14  ;;  %v14932_v9 = vld [vmem:[#allocation70_spill] sm:$0xff] }
 0x182   : > { %1127 = vmatmul.mubr.f32.vlgmr.msra.gmra.mrb[0].mxu0 %v14917_v33  ;;  %6649 = vmatprep.subr.bf16.mxu1 %v6648_v6  ;;  %v14933_v6 = vld [vmem:[#allocation75_spill] sm:$0xff]  ;;  %v14934_v33 = vld [vmem:[#allocation76_spill] sm:$0xff] }
 0x183   : > { %6263 = vmatpush1.bf16.xpose.msra.mxu0 %v6262_v59  ;;  %1327 = vmatprep.mubr.f32.mxu0 %v14922_v14  ;;  %v14928_v59 = vld [vmem:[#allocation61_spill] sm:$0xff]  ;;  %v6272_v57 = vpack.c.bf16 %v14934_v33, %v14933_v6  ;;  %v14945_v33 = vld [vmem:[#allocation90_spill] sm:$0xff]  ;;  %v14946_v6 = vld [vmem:[#allocation91_spill] sm:$0xff] }
 0x184   : > { %6265 = vmatprep.subr.bf16.mxu0 %v6264_v3  ;;  %v6650_v51 = vpack.c.bf16 %v14928_v59, %v14927_v40  ;;  %v14931_v3 = vld [vmem:[#allocation69_spill] sm:$0xff]  ;;  %v6656_v59 = vpack.c.bf16 %v14938_v1, %v14937_v20  ;;  %v6660_v7 = vpack.c.bf16 %v14946_v6, %v14945_v33  ;;  %v14950_v1 = vld [vmem:[#allocation100_spill] sm:$0xff] }
 0x185   : > { %v6270_v14 = vpack.c.bf16 %v14932_v9, %v14931_v3  ;;  %v14943_v9 = vld [vmem:[#allocation84_spill] sm:$0xff]  ;;  %v14944_v3 = vld [vmem:[#allocation85_spill] sm:$0xff] }
 0x186   : > { %v6658_v40 = vpack.c.bf16 %v14944_v3, %v14943_v9  ;;  %v14958_v6 = vld [vmem:[#allocation112_spill] sm:$0xff] }
 0x189   : > { %6651 = vmatpush1.bf16.xpose.msra.mxu1 %v6650_v51 }
 0x18a   : > { %6653 = vmatprep.subr.bf16.mxu1 %v6652_v12  ;;  %v14941_v12 = vld [vmem:[#allocation87_spill] sm:$0xff] }
 0x18b   : > { %6267 = vmatpush1.bf16.xpose.msra.mxu0 %v6266_v23  ;;  %v14939_v23 = vld [vmem:[#allocation81_spill] sm:$0xff]  ;;  %v6276_v26 = vpack.c.bf16 %v14942_v8, %v14941_v12  ;;  %v14953_v8 = vld [vmem:[#allocation102_spill] sm:$0xff]  ;;  %v14954_v12 = vld [vmem:[#allocation103_spill] sm:$0xff] }
 0x18c   : > { %6269 = vmatprep.subr.bf16.mxu0 %v6268_v55  ;;  %v14940_v55 = vld [vmem:[#allocation82_spill] sm:$0xff]  ;;  %v6664_v3 = vpack.c.bf16 %v14954_v12, %v14953_v8  ;;  %v14966_v12 = vld [vmem:[#allocation124_spill] sm:$0xff] }
 0x18d   : > { %v6274_v51 = vpack.c.bf16 %v14940_v55, %v14939_v23  ;;  %v14951_v55 = vld [vmem:[#allocation96_spill] sm:$0xff]  ;;  %v14952_v23 = vld [vmem:[#allocation97_spill] sm:$0xff] }
 0x18e   : > { %v6662_v31 = vpack.c.bf16 %v14952_v23, %v14951_v55 }
 0x191   : > { %6655 = vmatpush1.bf16.xpose.msra.mxu1 %v6654_v45 }
 0x192   : > { %6657 = vmatprep.subr.bf16.mxu1 %v6656_v59  ;;  %v14949_v59 = vld [vmem:[#allocation99_spill] sm:$0xff] }
 0x193   : > { %6271 = vmatpush1.bf16.xpose.msra.mxu0 %v6270_v14  ;;  %v14947_v14 = vld [vmem:[#allocation93_spill] sm:$0xff]  ;;  %v6280_v20 = vpack.c.bf16 %v14950_v1, %v14949_v59  ;;  %v14961_v1 = vld [vmem:[#allocation114_spill] sm:$0xff]  ;;  %v14962_v59 = vld [vmem:[#allocation115_spill] sm:$0xff] }
 0x194   : > { %6273 = vmatprep.subr.bf16.mxu0 %v6272_v57  ;;  %v14948_v57 = vld [vmem:[#allocation94_spill] sm:$0xff]  ;;  %v6668_v23 = vpack.c.bf16 %v14962_v59, %v14961_v1  ;;  %v14974_v59 = vld [vmem:[#allocation136_spill] sm:$0xff] }
 0x195   : > { %v6278_v45 = vpack.c.bf16 %v14948_v57, %v14947_v14  ;;  %v14959_v57 = vld [vmem:[#allocation108_spill] sm:$0xff]  ;;  %v14960_v14 = vld [vmem:[#allocation109_spill] sm:$0xff] }
 0x196   : > { %v6666_v9 = vpack.c.bf16 %v14960_v14, %v14959_v57 }
 0x199   : > { %6659 = vmatpush1.bf16.xpose.msra.mxu1 %v6658_v40 }
 0x19a   : > { %6661 = vmatprep.subr.bf16.mxu1 %v6660_v7  ;;  %v14957_v7 = vld [vmem:[#allocation111_spill] sm:$0xff] }
 0x19b   : > { %6275 = vmatpush1.bf16.xpose.msra.mxu0 %v6274_v51  ;;  %v14955_v51 = vld [vmem:[#allocation105_spill] sm:$0xff]  ;;  %v6284_v33 = vpack.c.bf16 %v14958_v6, %v14957_v7  ;;  %v14969_v6 = vld [vmem:[#allocation126_spill] sm:$0xff]  ;;  %v14970_v7 = vld [vmem:[#allocation127_spill] sm:$0xff] }
 0x19c   : > { %6277 = vmatprep.subr.bf16.mxu0 %v6276_v26  ;;  %v14956_v26 = vld [vmem:[#allocation106_spill] sm:$0xff]  ;;  %v6672_v14 = vpack.c.bf16 %v14970_v7, %v14969_v6 }
 0x19d   : > { %v6282_v40 = vpack.c.bf16 %v14956_v26, %v14955_v51  ;;  %v14967_v26 = vld [vmem:[#allocation120_spill] sm:$0xff]  ;;  %v14968_v51 = vld [vmem:[#allocation121_spill] sm:$0xff] }
 0x19e   : > { %v6670_v55 = vpack.c.bf16 %v14968_v51, %v14967_v26 }
 0x1a1   : > { %6663 = vmatpush1.bf16.xpose.msra.mxu1 %v6662_v31 }
 0x1a2   : > { %6665 = vmatprep.subr.bf16.mxu1 %v6664_v3  ;;  %v14965_v3 = vld [vmem:[#allocation123_spill] sm:$0xff] }
 0x1a3   : > { %6279 = vmatpush1.bf16.xpose.msra.mxu0 %v6278_v45  ;;  %v14963_v45 = vld [vmem:[#allocation117_spill] sm:$0xff]  ;;  %v6288_v8 = vpack.c.bf16 %v14966_v12, %v14965_v3 }
 0x1a4   : > { %6281 = vmatprep.subr.bf16.mxu0 %v6280_v20  ;;  %v14964_v20 = vld [vmem:[#allocation118_spill] sm:$0xff] }
 0x1a5   : > { %v6286_v31 = vpack.c.bf16 %v14964_v20, %v14963_v45  ;;  %v14975_v20 = vld [vmem:[#allocation132_spill] sm:$0xff]  ;;  %v14976_v45 = vld [vmem:[#allocation133_spill] sm:$0xff] }
 0x1a6   : > { %v6674_v57 = vpack.c.bf16 %v14976_v45, %v14975_v20 }
 0x1a9   : > { %6667 = vmatpush1.bf16.xpose.msra.mxu1 %v6666_v9 }
 0x1aa   : > { %6669 = vmatprep.subr.bf16.mxu1 %v6668_v23  ;;  %v14973_v23 = vld [vmem:[#allocation135_spill] sm:$0xff] }
 0x1ab   : > { %6283 = vmatpush1.bf16.xpose.msra.mxu0 %v6282_v40  ;;  %v14971_v40 = vld [vmem:[#allocation129_spill] sm:$0xff]  ;;  %v6292_v1 = vpack.c.bf16 %v14974_v59, %v14973_v23 }
 0x1ac   : > { %6285 = vmatprep.subr.bf16.mxu0 %v6284_v33  ;;  %v14972_v33 = vld [vmem:[#allocation130_spill] sm:$0xff] }
 0x1ad   : > { %v6290_v9 = vpack.c.bf16 %v14972_v33, %v14971_v40 }
 0x1b1   : > { %6671 = vmatpush1.bf16.xpose.msra.mxu1 %v6670_v55  ;;  %v14979_v55 = vpack.c.bf16 %v14867_v21, %v14866_v48 }
 0x1b2   : > { %6673 = vmatprep.subr.bf16.mxu1 %v6672_v14  ;;  %v14980_v14 = vpack.c.bf16 %v14816_v37, %v14815_v4 }
 0x1b3   : > { %6287 = vmatpush1.bf16.xpose.msra.mxu0 %v6286_v31  ;;  %v14977_v31 = vpack.c.bf16 %v14812_v50, %v14811_v60 }
 0x1b4   : > { %6289 = vmatprep.subr.bf16.mxu0 %v6288_v8  ;;  %v14978_v8 = vpack.c.bf16 %v14814_v44, %v14813_v19 }
 0x1b9   : > { %6675 = vmatpush1.bf16.xpose.msra.mxu1 %v6674_v57  ;;  %v14982_v57 = vpack.c.bf16 %v14871_v43, %v14870_v46  ;;  %v14993_v43 = vld [vmem:[#allocation168_spill] sm:$0xff] }
 0x1ba   : > { %6677 = vmatprep.subr.bf16.mxu1 %v14977_v31  ;;  %v14984_v31 = vld [vmem:[#allocation157_spill] sm:$0xff] }
 0x1bb   : > { %6291 = vmatpush1.bf16.xpose.msra.mxu0 %v6290_v9  ;;  %v14983_v9 = vpack.c.bf16 %v14874_v41, %v14825_v54 }
 0x1bc   : > { %6293 = vmatprep.subr.bf16.mxu0 %v6292_v1  ;;  %v14981_v1 = vpack.c.bf16 %v14869_v62, %v14868_v38 }
 0x1c1   : > { %6679 = vmatpush1.bf16.xpose.msra.mxu1 %v14980_v14  ;;  %v14989_v14 = vld [vmem:[#allocation165_spill] sm:$0xff] }
 0x1c2   : > { %6681 = vmatprep.subr.bf16.mxu1 %v14981_v1  ;;  %v14990_v62 = vpack.c.bf16 %v14878_v15, %v14989_v14  ;;  %v14991_v1 = vpack.c.bf16 %v14883_v16, %v14882_v2  ;;  %v15003_v14 = vld [vmem:[#allocation180_spill] sm:$0xff] }
 0x1c3   : > { %6295 = vmatpush1.bf16.xpose.msra.mxu0 %v14978_v8  ;;  %v14985_v8 = vld [vmem:[#allocation156_spill] sm:$0xff] }
 0x1c4   : > { %6297 = vmatprep.subr.bf16.mxu0 %v14979_v55  ;;  %v14986_v21 = vpack.c.bf16 %v14984_v31, %v14985_v8  ;;  %v14987_v55 = vld [vmem:[#allocation162_spill] sm:$0xff]  ;;  %v14998_v8 = vld [vmem:[#allocation177_spill] sm:$0xff] }
 0x1c5   : > { %v14988_v37 = vpack.c.bf16 %v14876_v24, %v14987_v55 }
 0x1c9   : > { %6683 = vmatpush1.bf16.xpose.msra.mxu1 %v14986_v21  ;;  %v14997_v21 = vld [vmem:[#allocation178_spill] sm:$0xff] }
 0x1ca   : > { %6685 = vmatprep.subr.bf16.mxu1 %v14988_v37  ;;  %v14999_v24 = vpack.c.bf16 %v14997_v21, %v14998_v8  ;;  %v15000_v37 = vld [vmem:[#allocation183_spill] sm:$0xff] }
 0x1cb   : > { %6299 = vmatpush1.bf16.xpose.msra.mxu0 %v14982_v57  ;;  %v14992_v57 = vld [vmem:[#allocation169_spill] sm:$0xff]  ;;  %v15001_v15 = vpack.c.bf16 %v14891_v52, %v15000_v37 }
 0x1cc   : > { %6301 = vmatprep.subr.bf16.mxu0 %v14983_v9  ;;  %v14994_v41 = vpack.c.bf16 %v14992_v57, %v14993_v43  ;;  %v14995_v9 = vld [vmem:[#allocation174_spill] sm:$0xff] }
 0x1cd   : > { %v14996_v31 = vpack.c.bf16 %v14885_v27, %v14995_v9 }
 0x1d1   : > { %6687 = vmatpush1.bf16.xpose.msra.mxu1 %v14994_v41  ;;  %v15006_v41 = vpack.c.bf16 %v14895_v61, %v14894_v25 }
 0x1d2   : > { %6689 = vmatprep.subr.bf16.mxu1 %v14996_v31  ;;  %v15007_v31 = vpack.c.bf16 %v14901_v29, %v14900_v58 }
 0x1d3   : > { %6303 = vmatpush1.bf16.xpose.msra.mxu0 %v14990_v62  ;;  %v15002_v62 = vld [vmem:[#allocation181_spill] sm:$0xff] }
 0x1d4   : > { %6305 = vmatprep.subr.bf16.mxu0 %v14991_v1  ;;  %v15004_v16 = vpack.c.bf16 %v15002_v62, %v15003_v14  ;;  %v15005_v1 = vpack.c.bf16 %v14893_v0, %v14892_v35 }
 0x1d9   : > { %6691 = vmatpush1.bf16.xpose.msra.mxu1 %v15004_v16  ;;  %v15010_v16 = vpack.c.bf16 %v14856_v47, %v14904_v63 }
 0x1da   : > { %6693 = vmatprep.subr.bf16.mxu1 %v15005_v1  ;;  %v15011_v1 = vpack.c.bf16 %v14861_v17, %v14905_v18  ;;  %v15018_v17 = vld [vmem:[#allocation222_spill] sm:$0xff] }
 0x1db   : > { %6307 = vmatpush1.bf16.xpose.msra.mxu0 %v14999_v24  ;;  %v15008_v24 = vpack.c.bf16 %v14898_v53, %v14897_v5 }
 0x1dc   : > { %6309 = vmatprep.subr.bf16.mxu0 %v15001_v15  ;;  %v15009_v15 = vpack.c.bf16 %v14903_v11, %v14902_v32 }
 0x1e1   : > { %6695 = vmatpush1.bf16.xpose.msra.mxu1 %v15008_v24  ;;  %v15014_v24 = vpack.c.bf16 %v14908_v39, %v14907_v28 }
 0x1e2   : > { %6697 = vmatprep.subr.bf16.mxu1 %v15009_v15  ;;  %v15015_v15 = vpack.c.bf16 %v9009_v13, %v9006_v34  ;;  %v15026_v13 = vld [vmem:[#allocation42_spill] sm:$0xff] }
 0x1e3   : > { %6311 = vmatpush1.bf16.xpose.msra.mxu0 %v15006_v41  ;;  %v15012_v41 = vpack.c.bf16 %v14859_v22, %v14858_v56  ;;  %v15021_v56 = vld [vmem:[#allocation226_spill] sm:$0xff] }
 0x1e4   : > { %6313 = vmatprep.subr.bf16.mxu0 %v15007_v31  ;;  %v15013_v31 = vpack.c.bf16 %v14906_v36, %v14862_v42  ;;  %v15101_v34 = vld [vmem:[#allocation46_spill] sm:$0xff] }
 0x1e9   : > { %6699 = vmatpush1.bf16.xpose.msra.mxu1 %v15012_v41  ;;  %v15020_v41 = vld [vmem:[#allocation227_spill] sm:$0xff] }
 0x1ea   : > { %6701 = vmatprep.subr.bf16.mxu1 %v15013_v31  ;;  %v15022_v36 = vpack.c.bf16 %v15020_v41, %v15021_v56  ;;  %v15023_v31 = vld [vmem:[#allocation38_spill] sm:$0xff]  ;;  %v15091_v41 = vld [vmem:[#allocation40_spill] sm:$0xff] }
 0x1eb   : > { %6315 = vmatpush1.bf16.xpose.msra.mxu0 %v15010_v16  ;;  %v15016_v16 = vpack.c.bf16 %v14864_v10, %v9000_v30  ;;  %v15028_v10 = vld [vmem:[#allocation44_spill] sm:$0xff] }
 0x1ec   : > { %6317 = vmatprep.subr.bf16.mxu0 %v15011_v1  ;;  %v15017_v1 = vld [vmem:[#allocation223_spill] sm:$0xff] }
 0x1ed   : > { %v15019_v22 = vpack.c.bf16 %v15017_v1, %v15018_v17  ;;  %v15030_v1 = vld [vmem:[#allocation51_spill] sm:$0xff] }
 0x1f1   : > { %6703 = vmatpush1.bf16.xpose.msra.mxu1 %v15016_v16  ;;  %v15029_v16 = vld [vmem:[#allocation233_spill] sm:$0xff] }
 0x1f2   : > { %6705 = vmatprep.subr.bf16.mxu1 %v15019_v22  ;;  %v15031_v22 = vld [vmem:[#allocation47_spill] sm:$0xff] }
 0x1f3   : > { %6319 = vmatpush1.bf16.xpose.msra.mxu0 %v15014_v24  ;;  %v15024_v24 = vld [vmem:[#allocation229_spill] sm:$0xff] }
 0x1f4   : > { %6321 = vmatprep.subr.bf16.mxu0 %v15015_v15  ;;  %v15025_v39 = vpack.c.bf16 %v9035_v49, %v15024_v24  ;;  %v15027_v15 = vld [vmem:[#allocation234_spill] sm:$0xff]  ;;  %v15036_v49 = vld [vmem:[#allocation65_spill] sm:$0xff] }
 0x1f5   : > { %v15038_v24 = vld [vmem:[#allocation74_spill] sm:$0xff] }
 0x1f9   : > { %6707 = vmatpush1.bf16.xpose.msra.mxu1 %v15025_v39  ;;  %v15034_v39 = vld [vmem:[#allocation62_spill] sm:$0xff] }
 0x1fa   : > { %6709 = vmatprep.subr.bf16.mxu1 %v15026_v13  ;;  %v15035_v13 = vld [vmem:[#allocation60_spill] sm:$0xff] }
 0x1fb   : > { %6323 = vmatpush1.bf16.xpose.msra.mxu0 %v15022_v36  ;;  %v15032_v36 = vld [vmem:[#allocation53_spill] sm:$0xff] }
 0x1fc   : > { %6325 = vmatprep.subr.bf16.mxu0 %v15023_v31  ;;  %v15033_v31 = vld [vmem:[#allocation57_spill] sm:$0xff] }
 0x200   : > { %2614 = vmatmul.mubr.f32.vlgmr.msra.gmra.mrb[0].mxu1 %v15027_v15 }
 0x201   : > { %6711 = vmatpush1.bf16.xpose.msra.mxu1 %v15031_v22  ;;  %2751 = vmatprep.mubr.f32.mxu1 %v15029_v16  ;;  %v15041_v22 = vld [vmem:[#allocation80_spill] sm:$0xff] }
 0x202   : > { %1330 = vmatmul.mubr.f32.vlgmr.msra.gmra.mrb[0].mxu0 %v15027_v15  ;;  %6713 = vmatprep.subr.bf16.mxu1 %v15032_v36  ;;  %v15040_v15 = vld [vmem:[#allocation77_spill] sm:$0xff]  ;;  %v15043_v36 = vld [vmem:[#allocation83_spill] sm:$0xff] }
 0x203   : > { %6327 = vmatpush1.bf16.xpose.msra.mxu0 %v15028_v10  ;;  %1467 = vmatprep.mubr.f32.mxu0 %v15029_v16  ;;  %v15037_v10 = vld [vmem:[#allocation68_spill] sm:$0xff]  ;;  %v15042_v16 = vld [vmem:[#allocation86_spill] sm:$0xff] }
 0x204   : > { %6329 = vmatprep.subr.bf16.mxu0 %v15030_v1  ;;  %v15039_v1 = vld [vmem:[#allocation71_spill] sm:$0xff] }
 0x209   : > { %6715 = vmatpush1.bf16.xpose.msra.mxu1 %v15035_v13  ;;  %v15046_v13 = vld [vmem:[#allocation98_spill] sm:$0xff] }
 0x20a   : > { %6717 = vmatprep.subr.bf16.mxu1 %v15036_v49  ;;  %v15047_v49 = vld [vmem:[#allocation95_spill] sm:$0xff] }
 0x20b   : > { %6331 = vmatpush1.bf16.xpose.msra.mxu0 %v15033_v31  ;;  %v15044_v31 = vld [vmem:[#allocation89_spill] sm:$0xff] }
 0x20c   : > { %6333 = vmatprep.subr.bf16.mxu0 %v15034_v39  ;;  %v15045_v39 = vld [vmem:[#allocation92_spill] sm:$0xff] }
 0x211   : > { %6719 = vmatpush1.bf16.xpose.msra.mxu1 %v15039_v1  ;;  %v15050_v1 = vld [vmem:[#allocation110_spill] sm:$0xff] }
 0x212   : > { %6721 = vmatprep.subr.bf16.mxu1 %v15040_v15  ;;  %v15051_v15 = vld [vmem:[#allocation107_spill] sm:$0xff] }
 0x213   : > { %6335 = vmatpush1.bf16.xpose.msra.mxu0 %v15037_v10  ;;  %v15048_v10 = vld [vmem:[#allocation101_spill] sm:$0xff] }
 0x214   : > { %6337 = vmatprep.subr.bf16.mxu0 %v15038_v24  ;;  %v15049_v24 = vld [vmem:[#allocation104_spill] sm:$0xff] }
 0x219   : > { %6723 = vmatpush1.bf16.xpose.msra.mxu1 %v15043_v36  ;;  %v15054_v36 = vld [vmem:[#allocation122_spill] sm:$0xff] }
 0x21a   : > { %6725 = vmatprep.subr.bf16.mxu1 %v15044_v31  ;;  %v15055_v31 = vld [vmem:[#allocation119_spill] sm:$0xff] }
 0x21b   : > { %6339 = vmatpush1.bf16.xpose.msra.mxu0 %v15041_v22  ;;  %v15052_v22 = vld [vmem:[#allocation113_spill] sm:$0xff] }
 0x21c   : > { %6341 = vmatprep.subr.bf16.mxu0 %v15042_v16  ;;  %v15053_v16 = vld [vmem:[#allocation116_spill] sm:$0xff] }
 0x221   : > { %6727 = vmatpush1.bf16.xpose.msra.mxu1 %v15047_v49  ;;  %v15058_v49 = vld [vmem:[#allocation134_spill] sm:$0xff] }
 0x222   : > { %6729 = vmatprep.subr.bf16.mxu1 %v15048_v10  ;;  %v15059_v10 = vld [vmem:[#allocation131_spill] sm:$0xff] }
 0x223   : > { %6343 = vmatpush1.bf16.xpose.msra.mxu0 %v15045_v39  ;;  %v15056_v39 = vld [vmem:[#allocation125_spill] sm:$0xff] }
 0x224   : > { %6345 = vmatprep.subr.bf16.mxu0 %v15046_v13  ;;  %v15057_v13 = vld [vmem:[#allocation128_spill] sm:$0xff] }
 0x229   : > { %6731 = vmatpush1.bf16.xpose.msra.mxu1 %v15051_v15  ;;  %v15062_v15 = vld [vmem:[#allocation146_spill] sm:$0xff] }
 0x22a   : > { %6733 = vmatprep.subr.bf16.mxu1 %v15052_v22  ;;  %v15063_v22 = vld [vmem:[#allocation143_spill] sm:$0xff] }
 0x22b   : > { %6347 = vmatpush1.bf16.xpose.msra.mxu0 %v15049_v24  ;;  %v15060_v24 = vld [vmem:[#allocation137_spill] sm:$0xff] }
 0x22c   : > { %6349 = vmatprep.subr.bf16.mxu0 %v15050_v1  ;;  %v15061_v1 = vld [vmem:[#allocation140_spill] sm:$0xff] }
 0x231   : > { %6735 = vmatpush1.bf16.xpose.msra.mxu1 %v15055_v31  ;;  %v15066_v31 = vld [vmem:[#allocation158_spill] sm:$0xff] }
 0x232   : > { %6737 = vmatprep.subr.bf16.mxu1 %v15056_v39  ;;  %v15067_v39 = vld [vmem:[#allocation155_spill] sm:$0xff] }
 0x233   : > { %6351 = vmatpush1.bf16.xpose.msra.mxu0 %v15053_v16  ;;  %v15064_v16 = vld [vmem:[#allocation149_spill] sm:$0xff] }
 0x234   : > { %6353 = vmatprep.subr.bf16.mxu0 %v15054_v36  ;;  %v15065_v36 = vld [vmem:[#allocation152_spill] sm:$0xff] }
 0x239   : > { %6739 = vmatpush1.bf16.xpose.msra.mxu1 %v15059_v10  ;;  %v15070_v10 = vld [vmem:[#allocation170_spill] sm:$0xff] }
 0x23a   : > { %6741 = vmatprep.subr.bf16.mxu1 %v15060_v24  ;;  %v15071_v24 = vld [vmem:[#allocation167_spill] sm:$0xff] }
 0x23b   : > { %6355 = vmatpush1.bf16.xpose.msra.mxu0 %v15057_v13  ;;  %v15068_v13 = vld [vmem:[#allocation161_spill] sm:$0xff] }
 0x23c   : > { %6357 = vmatprep.subr.bf16.mxu0 %v15058_v49  ;;  %v15069_v49 = vld [vmem:[#allocation164_spill] sm:$0xff] }
 0x241   : > { %6743 = vmatpush1.bf16.xpose.msra.mxu1 %v15063_v22  ;;  %v15074_v22 = vld [vmem:[#allocation182_spill] sm:$0xff] }
 0x242   : > { %6745 = vmatprep.subr.bf16.mxu1 %v15064_v16  ;;  %v15075_v16 = vld [vmem:[#allocation179_spill] sm:$0xff] }
 0x243   : > { %6359 = vmatpush1.bf16.xpose.msra.mxu0 %v15061_v1  ;;  %v15072_v1 = vld [vmem:[#allocation173_spill] sm:$0xff] }
 0x244   : > { %6361 = vmatprep.subr.bf16.mxu0 %v15062_v15  ;;  %v15073_v15 = vld [vmem:[#allocation176_spill] sm:$0xff] }
 0x249   : > { %6747 = vmatpush1.bf16.xpose.msra.mxu1 %v15067_v39  ;;  %v15078_v39 = vld [vmem:[#allocation194_spill] sm:$0xff] }
 0x24a   : > { %6749 = vmatprep.subr.bf16.mxu1 %v15068_v13  ;;  %v15079_v13 = vld [vmem:[#allocation191_spill] sm:$0xff] }
 0x24b   : > { %6363 = vmatpush1.bf16.xpose.msra.mxu0 %v15065_v36  ;;  %v15076_v36 = vld [vmem:[#allocation185_spill] sm:$0xff] }
 0x24c   : > { %6365 = vmatprep.subr.bf16.mxu0 %v15066_v31  ;;  %v15077_v31 = vld [vmem:[#allocation188_spill] sm:$0xff] }
 0x251   : > { %6751 = vmatpush1.bf16.xpose.msra.mxu1 %v15071_v24  ;;  %v15082_v24 = vld [vmem:[#allocation206_spill] sm:$0xff] }
 0x252   : > { %6753 = vmatprep.subr.bf16.mxu1 %v15072_v1  ;;  %v15083_v1 = vld [vmem:[#allocation203_spill] sm:$0xff] }
 0x253   : > { %6367 = vmatpush1.bf16.xpose.msra.mxu0 %v15069_v49  ;;  %v15080_v49 = vld [vmem:[#allocation197_spill] sm:$0xff] }
 0x254   : > { %6369 = vmatprep.subr.bf16.mxu0 %v15070_v10  ;;  %v15081_v10 = vld [vmem:[#allocation200_spill] sm:$0xff] }
 0x259   : > { %6755 = vmatpush1.bf16.xpose.msra.mxu1 %v15075_v16  ;;  %v15086_v16 = vld [vmem:[#allocation218_spill] sm:$0xff] }
 0x25a   : > { %6757 = vmatprep.subr.bf16.mxu1 %v15076_v36  ;;  %v15087_v36 = vld [vmem:[#allocation215_spill] sm:$0xff] }
 0x25b   : > { %6371 = vmatpush1.bf16.xpose.msra.mxu0 %v15073_v15  ;;  %v15084_v15 = vld [vmem:[#allocation209_spill] sm:$0xff] }
 0x25c   : > { %6373 = vmatprep.subr.bf16.mxu0 %v15074_v22  ;;  %v15085_v22 = vld [vmem:[#allocation212_spill] sm:$0xff] }
 0x261   : > { %6759 = vmatpush1.bf16.xpose.msra.mxu1 %v15079_v13 }
 0x262   : > { %6761 = vmatprep.subr.bf16.mxu1 %v15080_v49  ;;  %v15092_v49 = vand.u32 4294901760, %v15091_v41  ;;  %v15105_v41 = vld [vmem:[#allocation52_spill] sm:$0xff] }
 0x263   : > { %6375 = vmatpush1.bf16.xpose.msra.mxu0 %v15077_v31  ;;  %v15088_v31 = vld [vmem:[#allocation221_spill] sm:$0xff] }
 0x264   : > { %6377 = vmatprep.subr.bf16.mxu0 %v15078_v39  ;;  %v15089_v39 = vld [vmem:[#allocation39_spill] sm:$0xff] }
 0x265   : > { %v15090_v13 = vand.u32 4294901760, %v15089_v39  ;;  %v15103_v39 = vld [vmem:[#allocation50_spill] sm:$0xff] }
 0x266   : > { %v15104_v42 = vand.u32 4294901760, %v15103_v39 }
 0x267   : > { %v6388_v56 = vpack.c.bf16 %v15092_v49, %v15090_v13  ;;  %v15106_v13 = vand.u32 4294901760, %v15105_v41 }
 0x269   : > { %6763 = vmatpush1.bf16.xpose.msra.mxu1 %v15083_v1  ;;  %v15096_v1 = vld [vmem:[#allocation43_spill] sm:$0xff]  ;;  %v6392_v49 = vpack.c.bf16 %v15106_v13, %v15104_v42  ;;  %v15117_v42 = vld [vmem:[#allocation56_spill] sm:$0xff] }
 0x26a   : > { %6765 = vmatprep.subr.bf16.mxu1 %v15084_v15  ;;  %v15097_v30 = vand.u32 4294901760, %v15096_v1  ;;  %v15110_v1 = vld [vmem:[#allocation49_spill] sm:$0xff]  ;;  %v15123_v13 = vld [vmem:[#allocation64_spill] sm:$0xff] }
 0x26b   : > { %6379 = vmatpush1.bf16.xpose.msra.mxu0 %v15081_v10  ;;  %v15093_v10 = vld [vmem:[#allocation225_spill] sm:$0xff] }
 0x26c   : > { %6381 = vmatprep.subr.bf16.mxu0 %v15082_v24  ;;  %v15094_v24 = vld [vmem:[#allocation41_spill] sm:$0xff] }
 0x26d   : > { %v15095_v17 = vand.u32 4294901760, %v15094_v24  ;;  %v15108_v24 = vld [vmem:[#allocation48_spill] sm:$0xff] }
 0x26e   : > { %v15109_v18 = vand.u32 4294901760, %v15108_v24  ;;  %v15124_v24 = vand.u32 4294901760, %v15123_v13 }
 0x26f   : > { %v6772_v15 = vpack.c.bf16 %v15097_v30, %v15095_v17  ;;  %v15111_v30 = vand.u32 4294901760, %v15110_v1  ;;  %v15112_v17 = vld [vmem:[#allocation54_spill] sm:$0xff]  ;;  %v15125_v1 = vld [vmem:[#allocation59_spill] sm:$0xff] }
 0x271   : > { %6767 = vmatpush1.bf16.xpose.msra.mxu1 %v15087_v36 }
 0x272   : > { %6769 = vmatprep.subr.bf16.mxu1 %v15088_v31  ;;  %v15102_v31 = vand.u32 4294901760, %v15101_v34  ;;  %v15116_v34 = vld [vmem:[#allocation224_spill] sm:$0xff] }
 0x273   : > { %6383 = vmatpush1.bf16.xpose.msra.mxu0 %v15085_v22  ;;  %v15098_v22 = vld [vmem:[#allocation228_spill] sm:$0xff] }
 0x274   : > { %6385 = vmatprep.subr.bf16.mxu0 %v15086_v16  ;;  %v15099_v16 = vld [vmem:[#allocation45_spill] sm:$0xff] }
 0x275   : > { %v15100_v36 = vand.u32 4294901760, %v15099_v16 }
 0x277   : > { %v6390_v28 = vpack.c.bf16 %v15102_v31, %v15100_v36  ;;  %v15118_v31 = vand.u32 4294901760, %v15117_v42  ;;  %v15119_v36 = vld [vmem:[#allocation58_spill] sm:$0xff]  ;;  %v15133_v42 = vld [vmem:[#allocation69_spill] sm:$0xff] }
 0x278   : > { %v15120_v39 = vand.u32 4294901760, %v15119_v36  ;;  %v15135_v36 = vld [vmem:[#allocation70_spill] sm:$0xff] }
 0x279   : > { %6771 = vmatpush1.bf16.xpose.msra.mxu1 %v15098_v22  ;;  %v15114_v22 = vld [vmem:[#allocation55_spill] sm:$0xff] }
 0x27a   : > { %6773 = vmatprep.subr.bf16.mxu1 %v6772_v15  ;;  %v15113_v15 = vand.u32 4294901760, %v15112_v17  ;;  %v15115_v16 = vand.u32 4294901760, %v15114_v22  ;;  %v15127_v17 = vld [vmem:[#allocation61_spill] sm:$0xff] }
 0x27b   : > { %6387 = vmatpush1.bf16.xpose.msra.mxu0 %v15093_v10  ;;  %v15107_v10 = vld [vmem:[#allocation235_spill] sm:$0xff] }
 0x27c   : > { %6389 = vmatprep.subr.bf16.mxu0 %v6388_v56  ;;  %v6774_v56 = vpack.c.bf16 %v15111_v30, %v15109_v18  ;;  %v6776_v47 = vpack.c.bf16 %v15115_v16, %v15113_v15  ;;  %v6394_v18 = vpack.c.bf16 %v15120_v39, %v15118_v31  ;;  %v15126_v30 = vand.u32 4294901760, %v15125_v1 }
 0x27d   : > { %v15134_v31 = vand.u32 4294901760, %v15133_v42  ;;  %v15136_v39 = vand.u32 4294901760, %v15135_v36 }
 0x280   : > { %2755 = vmatmul.mubr.f32.vlgmr.msra.gmra.mrb[0].mxu1 %v15107_v10 }
 0x281   : > { %6775 = vmatpush1.bf16.xpose.msra.mxu1 %v6774_v56  ;;  %3018 = vmatprep.mubr.f32.mxu1 %v15116_v34  ;;  %v15129_v56 = vld [vmem:[#allocation66_spill] sm:$0xff] }
 0x282   : > { %1471 = vmatmul.mubr.f32.vlgmr.msra.gmra.mrb[0].mxu0 %v15107_v10  ;;  %6777 = vmatprep.subr.bf16.mxu1 %v6776_v47  ;;  %v15130_v16 = vand.u32 4294901760, %v15129_v56  ;;  %v15131_v10 = vld [vmem:[#allocation67_spill] sm:$0xff] }
 0x283   : > { %6391 = vmatpush1.bf16.xpose.msra.mxu0 %v6390_v28  ;;  %1734 = vmatprep.mubr.f32.mxu0 %v15116_v34  ;;  %v15121_v28 = vld [vmem:[#allocation63_spill] sm:$0xff]  ;;  %v15132_v47 = vand.u32 4294901760, %v15131_v10  ;;  %v15145_v10 = vld [vmem:[#allocation78_spill] sm:$0xff] }
 0x284   : > { %6393 = vmatprep.subr.bf16.mxu0 %v6392_v49  ;;  %v15122_v41 = vand.u32 4294901760, %v15121_v28  ;;  %v15128_v49 = vand.u32 4294901760, %v15127_v17  ;;  %v6398_v28 = vpack.c.bf16 %v15136_v39, %v15134_v31  ;;  %v15151_v31 = vld [vmem:[#allocation82_spill] sm:$0xff] }
 0x285   : > { %v6780_v34 = vpack.c.bf16 %v15132_v47, %v15130_v16  ;;  %v15149_v47 = vld [vmem:[#allocation81_spill] sm:$0xff]  ;;  %v15152_v36 = vand.u32 4294901760, %v15151_v31 }
 0x286   : > { %v6396_v22 = vpack.c.bf16 %v15124_v24, %v15122_v41  ;;  %v6778_v15 = vpack.c.bf16 %v15128_v49, %v15126_v30  ;;  %v15137_v41 = vld [vmem:[#allocation75_spill] sm:$0xff]  ;;  %v15139_v24 = vld [vmem:[#allocation76_spill] sm:$0xff]  ;;  %v15143_v49 = vld [vmem:[#allocation73_spill] sm:$0xff]  ;;  %v15150_v42 = vand.u32 4294901760, %v15149_v47 }
 0x287   : > { %v15138_v13 = vand.u32 4294901760, %v15137_v41  ;;  %v15140_v1 = vand.u32 4294901760, %v15139_v24  ;;  %v15141_v30 = vld [vmem:[#allocation72_spill] sm:$0xff]  ;;  %v15144_v56 = vand.u32 4294901760, %v15143_v49  ;;  %v15153_v41 = vld [vmem:[#allocation87_spill] sm:$0xff]  ;;  %v15159_v49 = vld [vmem:[#allocation85_spill] sm:$0xff] }
 0x288   : > { %v6402_v39 = vpack.c.bf16 %v15152_v36, %v15150_v42  ;;  %v15155_v24 = vld [vmem:[#allocation88_spill] sm:$0xff]  ;;  %v15167_v42 = vld [vmem:[#allocation94_spill] sm:$0xff] }
 0x289   : > { %6779 = vmatpush1.bf16.xpose.msra.mxu1 %v6778_v15  ;;  %v6400_v17 = vpack.c.bf16 %v15140_v1, %v15138_v13  ;;  %v15147_v15 = vld [vmem:[#allocation79_spill] sm:$0xff]  ;;  %v15154_v13 = vand.u32 4294901760, %v15153_v41  ;;  %v15156_v1 = vand.u32 4294901760, %v15155_v24  ;;  %v15168_v31 = vand.u32 4294901760, %v15167_v42  ;;  %v15171_v24 = vld [vmem:[#allocation100_spill] sm:$0xff] }
 0x28a   : > { %6781 = vmatprep.subr.bf16.mxu1 %v6780_v34  ;;  %v15148_v34 = vand.u32 4294901760, %v15147_v15  ;;  %v15169_v41 = vld [vmem:[#allocation99_spill] sm:$0xff] }
 0x28b   : > { %6395 = vmatpush1.bf16.xpose.msra.mxu0 %v6394_v18  ;;  %v15142_v18 = vand.u32 4294901760, %v15141_v30  ;;  %v6404_v30 = vpack.c.bf16 %v15156_v1, %v15154_v13  ;;  %v15170_v13 = vand.u32 4294901760, %v15169_v41  ;;  %v15172_v1 = vand.u32 4294901760, %v15171_v24  ;;  %v15185_v41 = vld [vmem:[#allocation111_spill] sm:$0xff]  ;;  %v15187_v24 = vld [vmem:[#allocation112_spill] sm:$0xff] }
 0x28c   : > { %6397 = vmatprep.subr.bf16.mxu0 %v6396_v22  ;;  %v15146_v22 = vand.u32 4294901760, %v15145_v10 }
 0x28d   : > { %v6782_v63 = vpack.c.bf16 %v15144_v56, %v15142_v18  ;;  %v15157_v18 = vld [vmem:[#allocation84_spill] sm:$0xff]  ;;  %v15160_v56 = vand.u32 4294901760, %v15159_v49  ;;  %v15175_v49 = vld [vmem:[#allocation97_spill] sm:$0xff] }
 0x28e   : > { %v6784_v16 = vpack.c.bf16 %v15148_v34, %v15146_v22  ;;  %v15161_v22 = vld [vmem:[#allocation90_spill] sm:$0xff] }
 0x291   : > { %6783 = vmatpush1.bf16.xpose.msra.mxu1 %v6782_v63  ;;  %v15163_v63 = vld [vmem:[#allocation91_spill] sm:$0xff] }
 0x292   : > { %6785 = vmatprep.subr.bf16.mxu1 %v6784_v16  ;;  %v15164_v15 = vand.u32 4294901760, %v15163_v63  ;;  %v15165_v16 = vld [vmem:[#allocation93_spill] sm:$0xff] }
 0x293   : > { %6399 = vmatpush1.bf16.xpose.msra.mxu0 %v6398_v28  ;;  %v15158_v28 = vand.u32 4294901760, %v15157_v18  ;;  %v15166_v47 = vand.u32 4294901760, %v15165_v16  ;;  %v6408_v18 = vpack.c.bf16 %v15172_v1, %v15170_v13  ;;  %v15186_v13 = vand.u32 4294901760, %v15185_v41 }
 0x294   : > { %6401 = vmatprep.subr.bf16.mxu0 %v6400_v17  ;;  %v15162_v17 = vand.u32 4294901760, %v15161_v22  ;;  %v15188_v1 = vand.u32 4294901760, %v15187_v24  ;;  %v15201_v41 = vand.u32 4294901760, %v14965_v3  ;;  %v15208_v3 = vand.u32 4294901760, %v14972_v33 }
 0x295   : > { %v6786_v10 = vpack.c.bf16 %v15160_v56, %v15158_v28  ;;  %v6406_v36 = vpack.c.bf16 %v15168_v31, %v15166_v47  ;;  %v15173_v28 = vld [vmem:[#allocation96_spill] sm:$0xff]  ;;  %v15176_v56 = vand.u32 4294901760, %v15175_v49  ;;  %v15183_v47 = vld [vmem:[#allocation106_spill] sm:$0xff]  ;;  %v15191_v49 = vld [vmem:[#allocation109_spill] sm:$0xff]  ;;  %v15216_v33 = vand.u32 4294901760, %v14814_v44 }
 0x296   : > { %v6788_v34 = vpack.c.bf16 %v15164_v15, %v15162_v17  ;;  %v15177_v17 = vld [vmem:[#allocation102_spill] sm:$0xff]  ;;  %v15184_v42 = vand.u32 4294901760, %v15183_v47  ;;  %v15226_v44 = vand.u32 4294901760, %v14870_v46  ;;  %v15239_v46 = vld [vmem:[#allocation165_spill] sm:$0xff] }
 0x299   : > { %6787 = vmatpush1.bf16.xpose.msra.mxu1 %v6786_v10  ;;  %v15179_v10 = vld [vmem:[#allocation103_spill] sm:$0xff] }
 0x29a   : > { %6789 = vmatprep.subr.bf16.mxu1 %v6788_v34  ;;  %v15180_v63 = vand.u32 4294901760, %v15179_v10  ;;  %v15181_v34 = vld [vmem:[#allocation105_spill] sm:$0xff] }
 0x29b   : > { %6403 = vmatpush1.bf16.xpose.msra.mxu0 %v6402_v39  ;;  %v15174_v39 = vand.u32 4294901760, %v15173_v28  ;;  %v15182_v16 = vand.u32 4294901760, %v15181_v34  ;;  %v6412_v28 = vpack.c.bf16 %v15188_v1, %v15186_v13  ;;  %v15202_v13 = vand.u32 4294901760, %v14966_v12 }
 0x29c   : > { %6405 = vmatprep.subr.bf16.mxu0 %v6404_v30  ;;  %v15178_v30 = vand.u32 4294901760, %v15177_v17  ;;  %v15204_v1 = vand.u32 4294901760, %v14968_v51 }
 0x29d   : > { %v6790_v22 = vpack.c.bf16 %v15176_v56, %v15174_v39  ;;  %v6410_v31 = vpack.c.bf16 %v15184_v42, %v15182_v16  ;;  %v15189_v39 = vld [vmem:[#allocation108_spill] sm:$0xff]  ;;  %v15192_v56 = vand.u32 4294901760, %v15191_v49  ;;  %v15199_v16 = vld [vmem:[#allocation118_spill] sm:$0xff]  ;;  %v6416_v24 = vpack.c.bf16 %v15202_v13, %v15201_v41 }
 0x29e   : > { %v6792_v15 = vpack.c.bf16 %v15180_v63, %v15178_v30  ;;  %v15193_v30 = vld [vmem:[#allocation114_spill] sm:$0xff]  ;;  %v15200_v47 = vand.u32 4294901760, %v15199_v16 }
 0x2a1   : > { %6791 = vmatpush1.bf16.xpose.msra.mxu1 %v6790_v22  ;;  %v15195_v22 = vld [vmem:[#allocation115_spill] sm:$0xff] }
 0x2a2   : > { %6793 = vmatprep.subr.bf16.mxu1 %v6792_v15  ;;  %v15196_v10 = vand.u32 4294901760, %v15195_v22  ;;  %v15197_v15 = vld [vmem:[#allocation117_spill] sm:$0xff]  ;;  %v15214_v22 = vand.u32 4294901760, %v14812_v50  ;;  %v15223_v50 = vand.u32 4294901760, %v14868_v38 }
 0x2a3   : > { %6407 = vmatpush1.bf16.xpose.msra.mxu0 %v6406_v36  ;;  %v15190_v36 = vand.u32 4294901760, %v15189_v39  ;;  %v15198_v34 = vand.u32 4294901760, %v15197_v15  ;;  %v15220_v15 = vand.u32 4294901760, %v14815_v4  ;;  %v15230_v4 = vld [vmem:[#allocation160_spill] sm:$0xff] }
 0x2a4   : > { %6409 = vmatprep.subr.bf16.mxu0 %v6408_v18  ;;  %v15194_v18 = vand.u32 4294901760, %v15193_v30  ;;  %v15211_v30 = vand.u32 4294901760, %v14975_v20  ;;  %v15218_v20 = vld [vmem:[#allocation148_spill] sm:$0xff] }
 0x2a5   : > { %v6794_v17 = vpack.c.bf16 %v15192_v56, %v15190_v36  ;;  %v6414_v42 = vpack.c.bf16 %v15200_v47, %v15198_v34  ;;  %v15206_v36 = vand.u32 4294901760, %v14970_v7  ;;  %v15207_v56 = vand.u32 4294901760, %v14971_v40  ;;  %v15221_v34 = vld [vmem:[#allocation145_spill] sm:$0xff]  ;;  %v15224_v47 = vld [vmem:[#allocation151_spill] sm:$0xff] }
 0x2a6   : > { %v6796_v63 = vpack.c.bf16 %v15196_v10, %v15194_v18  ;;  %v15213_v7 = vand.u32 4294901760, %v14811_v60  ;;  %v15215_v40 = vand.u32 4294901760, %v14813_v19  ;;  %v15222_v60 = vand.u32 4294901760, %v15221_v34  ;;  %v15227_v19 = vld [vmem:[#allocation154_spill] sm:$0xff] }
 0x2a7   : > { %v6418_v12 = vpack.c.bf16 %v15208_v3, %v15207_v56  ;;  %v15236_v56 = vand.u32 4294901760, %v14987_v55  ;;  %v15237_v3 = vld [vmem:[#allocation163_spill] sm:$0xff]  ;;  %v15247_v55 = vand.u32 4294901760, %v14992_v57 }
 0x2a8   : > { %v6804_v10 = vpack.c.bf16 %v15214_v22, %v15213_v7  ;;  %v6806_v16 = vpack.c.bf16 %v15222_v60, %v15220_v15  ;;  %v15254_v15 = vand.u32 4294901760, %v15003_v14  ;;  %v15257_v60 = vand.u32 4294901760, %v14893_v0 }
 0x2a9   : > { %6795 = vmatpush1.bf16.xpose.msra.mxu1 %v6794_v17  ;;  %v15209_v17 = vand.u32 4294901760, %v14973_v23  ;;  %v15217_v23 = vand.u32 4294901760, %v14866_v48  ;;  %v15228_v48 = vand.u32 4294901760, %v15227_v19  ;;  %v15261_v14 = vand.u32 4294901760, %v14901_v29  ;;  %v15270_v19 = vld [vmem:[#allocation207_spill] sm:$0xff] }
 0x2aa   : > { %6797 = vmatprep.subr.bf16.mxu1 %v6796_v63  ;;  %v15219_v63 = vand.u32 4294901760, %v15218_v20  ;;  %v15250_v20 = vand.u32 4294901760, %v14998_v8  ;;  %v15258_v8 = vand.u32 4294901760, %v14894_v25  ;;  %v15264_v0 = vand.u32 4294901760, %v14902_v32 }
 0x2ab   : > { %6411 = vmatpush1.bf16.xpose.msra.mxu0 %v6410_v31  ;;  %v15203_v31 = vand.u32 4294901760, %v14967_v26  ;;  %v15210_v26 = vand.u32 4294901760, %v14974_v59  ;;  %v6422_v59 = vpack.c.bf16 %v15216_v33, %v15215_v40  ;;  %v6426_v13 = vpack.c.bf16 %v15228_v48, %v15226_v44 }
 0x2ac   : > { %6413 = vmatprep.subr.bf16.mxu0 %v6412_v28  ;;  %v15205_v28 = vand.u32 4294901760, %v14969_v6  ;;  %v15212_v6 = vand.u32 4294901760, %v14976_v45  ;;  %v6424_v45 = vpack.c.bf16 %v15219_v63, %v15217_v23  ;;  %v15248_v33 = vand.u32 4294901760, %v14995_v9 }
 0x2ad   : > { %v6798_v39 = vpack.c.bf16 %v15204_v1, %v15203_v31  ;;  %v6420_v51 = vpack.c.bf16 %v15210_v26, %v15209_v17  ;;  %v15231_v31 = vand.u32 4294901760, %v15230_v4  ;;  %v15240_v26 = vand.u32 4294901760, %v15239_v46  ;;  %v15286_v46 = vld [vmem:[#allocation219_spill] sm:$0xff] }
 0x2ae   : > { %v6800_v49 = vpack.c.bf16 %v15206_v36, %v15205_v28  ;;  %v6802_v18 = vpack.c.bf16 %v15212_v6, %v15211_v30  ;;  %v15234_v36 = vld [vmem:[#allocation157_spill] sm:$0xff]  ;;  %v15243_v6 = vand.u32 4294901760, %v14882_v2  ;;  %v15251_v2 = vand.u32 4294901760, %v14997_v21 }
 0x2af   : > { %v15235_v38 = vand.u32 4294901760, %v15234_v36  ;;  %v15255_v9 = vand.u32 4294901760, %v15002_v62  ;;  %v15259_v21 = vand.u32 4294901760, %v14895_v61  ;;  %v15266_v61 = vld [vmem:[#allocation201_spill] sm:$0xff]  ;;  %v15271_v48 = vand.u32 4294901760, %v15270_v19 }
 0x2b0   : > { %v6434_v63 = vpack.c.bf16 %v15251_v2, %v15250_v20  ;;  %v15267_v25 = vand.u32 4294901760, %v15266_v61  ;;  %v15298_v20 = vld [vmem:[#allocation226_spill] sm:$0xff] }
 0x2b1   : > { %6799 = vmatpush1.bf16.xpose.msra.mxu1 %v6798_v39  ;;  %v15232_v39 = vld [vmem:[#allocation156_spill] sm:$0xff]  ;;  %v6818_v34 = vpack.c.bf16 %v15255_v9, %v15254_v15  ;;  %v15299_v2 = vand.u32 4294901760, %v15298_v20  ;;  %v15304_v9 = vld [vmem:[#allocation230_spill] sm:$0xff] }
 0x2b2   : > { %6801 = vmatprep.subr.bf16.mxu1 %v6800_v49  ;;  %v15233_v28 = vand.u32 4294901760, %v15232_v39 }
 0x2b3   : > { %6415 = vmatpush1.bf16.xpose.msra.mxu0 %v6414_v42  ;;  %v15225_v42 = vand.u32 4294901760, %v15224_v47 }
 0x2b4   : > { %6417 = vmatprep.subr.bf16.mxu0 %v6416_v24  ;;  %v15229_v24 = vand.u32 4294901760, %v14825_v54  ;;  %v6810_v49 = vpack.c.bf16 %v15235_v38, %v15233_v28  ;;  %v15241_v54 = vld [vmem:[#allocation166_spill] sm:$0xff]  ;;  %v15280_v28 = vld [vmem:[#allocation211_spill] sm:$0xff] }
 0x2b5   : > { %v6808_v41 = vpack.c.bf16 %v15225_v42, %v15223_v50  ;;  %v15262_v50 = vand.u32 4294901760, %v14897_v5  ;;  %v15265_v42 = vand.u32 4294901760, %v14903_v11  ;;  %v15272_v5 = vld [vmem:[#allocation208_spill] sm:$0xff]  ;;  %v15278_v11 = vld [vmem:[#allocation210_spill] sm:$0xff]  ;;  %v15281_v36 = vand.u32 4294901760, %v15280_v28  ;;  %v10407_v28 = vld [vmem:[%s8472_s12 + $0x628] sm:$0xff] }
 0x2b6   : > { %v6428_v1 = vpack.c.bf16 %v15231_v31, %v15229_v24  ;;  %v15274_v24 = vld [vmem:[#allocation204_spill] sm:$0xff]  ;;  %v15276_v31 = vld [vmem:[#allocation205_spill] sm:$0xff]  ;;  %v15279_v39 = vand.u32 4294901760, %v15278_v11  ;;  %v10401_v11 = vld [vmem:[%s8472_s12 + $0x428] sm:$0xff] }
 0x2b7   : > { %v15275_v4 = vand.u32 4294901760, %v15274_v24  ;;  %v15277_v32 = vand.u32 4294901760, %v15276_v31  ;;  %v15316_v31 = vld [vmem:[#allocation47_spill] sm:$0xff] }
 0x2b8   : > { %v6828_v38 = vpack.c.bf16 %v15281_v36, %v15279_v39  ;;  %v10404_v39 = vld [vmem:[%s8472_s12 + $0x438] sm:$0xff] }
 0x2b9   : > { %6803 = vmatpush1.bf16.xpose.msra.mxu1 %v6802_v18  ;;  %v15244_v18 = vld [vmem:[#allocation172_spill] sm:$0xff]  ;;  %v15319_v36 = vld [vmem:[#allocation53_spill] sm:$0xff] }
 0x2ba   : > { %6805 = vmatprep.subr.bf16.mxu1 %v6804_v10  ;;  %v15245_v7 = vand.u32 4294901760, %v15244_v18  ;;  %v15246_v10 = vand.u32 4294901760, %v14993_v43  ;;  %v15253_v43 = vand.u32 4294901760, %v14891_v52  ;;  %v6438_v52 = vpack.c.bf16 %v15259_v21, %v15258_v8  ;;  %v10332_v8 = vld [vmem:[%s8472_s12 + $0x408] sm:$0xff]  ;;  %v10335_v21 = vld [vmem:[%s8472_s12 + $0x418] sm:$0xff] }
 0x2bb   : > { %6419 = vmatpush1.bf16.xpose.msra.mxu0 %v6418_v12  ;;  %v15238_v12 = vand.u32 4294901760, %v15237_v3  ;;  %v15284_v3 = vld [vmem:[#allocation214_spill] sm:$0xff]  ;;  %v13956_v61 = vand.u32 4294901760, %v10335_v21 }
 0x2bc   : > { %6421 = vmatprep.subr.bf16.mxu0 %v6420_v51  ;;  %v15242_v51 = vand.u32 4294901760, %v15241_v54  ;;  %v6432_v22 = vpack.c.bf16 %v15245_v7, %v15243_v6  ;;  %v6814_v40 = vpack.c.bf16 %v15247_v55, %v15246_v10  ;;  %v15288_v54 = vld [vmem:[#allocation220_spill] sm:$0xff]  ;;  %v15292_v7 = vld [vmem:[#allocation217_spill] sm:$0xff]  ;;  %v15294_v55 = vld [vmem:[#allocation222_spill] sm:$0xff] }
 0x2bd   : > { %v6812_v17 = vpack.c.bf16 %v15238_v12, %v15236_v56  ;;  %v15285_v12 = vand.u32 4294901760, %v15284_v3  ;;  %v15290_v6 = vld [vmem:[#allocation216_spill] sm:$0xff]  ;;  %v13948_v3 = vand.u32 4294901760, %v10404_v39 }
 0x2be   : > { %v6430_v30 = vpack.c.bf16 %v15242_v51, %v15240_v26  ;;  %v15287_v26 = vand.u32 4294901760, %v15286_v46  ;;  %v15289_v51 = vand.u32 4294901760, %v15288_v54  ;;  %v15291_v18 = vand.u32 4294901760, %v15290_v6  ;;  %v10429_v46 = vld [vmem:[%s8472_s12 + $0x430] sm:$0xff] }
 0x2c1   : > { %6807 = vmatpush1.bf16.xpose.msra.mxu1 %v6806_v16 }
 0x2c2   : > { %6809 = vmatprep.subr.bf16.mxu1 %v6808_v41  ;;  %v6824_v41 = vpack.c.bf16 %v15265_v42, %v15264_v0  ;;  %v15309_v0 = vld [vmem:[#allocation44_spill] sm:$0xff] }
 0x2c3   : > { %6423 = vmatpush1.bf16.xpose.msra.mxu0 %v6422_v59  ;;  %v15249_v59 = vand.u32 4294901760, %v14885_v27  ;;  %v15256_v27 = vand.u32 4294901760, %v14892_v35  ;;  %v15263_v35 = vand.u32 4294901760, %v14898_v53  ;;  %v15310_v42 = vld [vmem:[#allocation224_spill] sm:$0xff] }
 0x2c4   : > { %6425 = vmatprep.subr.bf16.mxu0 %v6424_v45  ;;  %v15252_v45 = vand.u32 4294901760, %v15000_v37  ;;  %v15260_v37 = vand.u32 4294901760, %v14900_v58  ;;  %v15268_v58 = vld [vmem:[#allocation202_spill] sm:$0xff] }
 0x2c5   : > { %v6816_v23 = vpack.c.bf16 %v15249_v59, %v15248_v33  ;;  %v6820_v16 = vpack.c.bf16 %v15257_v60, %v15256_v27  ;;  %v6822_v47 = vpack.c.bf16 %v15263_v35, %v15262_v50  ;;  %v15269_v44 = vand.u32 4294901760, %v15268_v58  ;;  %v15296_v33 = vld [vmem:[#allocation223_spill] sm:$0xff]  ;;  %v15306_v60 = vld [vmem:[#allocation38_spill] sm:$0xff]  ;;  %v15308_v50 = vld [vmem:[#allocation232_spill] sm:$0xff] }
 0x2c6   : > { %v6436_v57 = vpack.c.bf16 %v15253_v43, %v15252_v45  ;;  %v6440_v62 = vpack.c.bf16 %v15261_v14, %v15260_v37  ;;  %v15297_v59 = vand.u32 4294901760, %v15296_v33  ;;  %v10341_v37 = vld [vmem:[%s8472_s12 + $0x618] sm:$0xff]  ;;  %v10344_v14 = vld [vmem:[%s8472_s12 + $0x400] sm:$0xff] }
 0x2c7   : > { %v6442_v29 = vpack.c.bf16 %v15269_v44, %v15267_v25  ;;  %v10351_v35 = vld [vmem:[%s8472_s12 + $0x600] sm:$0xff]  ;;  %v13954_v58 = vand.u32 4294901760, %v10341_v37  ;;  %v15311_v44 = vld [vmem:[#allocation51_spill] sm:$0xff] }
 0x2c9   : > { %6811 = vmatpush1.bf16.xpose.msra.mxu1 %v6810_v49  ;;  %v15282_v49 = vld [vmem:[#allocation213_spill] sm:$0xff] }
 0x2ca   : > { %6813 = vmatprep.subr.bf16.mxu1 %v6812_v17  ;;  %v15283_v56 = vand.u32 4294901760, %v15282_v49 }
 0x2cb   : > { %6427 = vmatpush1.bf16.xpose.msra.mxu0 %v6426_v13  ;;  %v15273_v13 = vand.u32 4294901760, %v15272_v5 }
 0x2cc   : > { %6429 = vmatprep.subr.bf16.mxu0 %v6428_v1  ;;  %v6826_v1 = vpack.c.bf16 %v15277_v32, %v15275_v4  ;;  %v6446_v17 = vpack.c.bf16 %v15285_v12, %v15283_v56  ;;  %v10386_v4 = vsub.f32 %v10341_v37, %v13954_v58  ;;  %v13950_v56 = vand.u32 4294901760, %v10401_v11  ;;  %v10423_v12 = vld [vmem:[%s8472_s12 + $0x638] sm:$0xff]  ;;  %v10603_v58 = vld [vmem:[%s8472_s12 + $0x660] sm:$0xff] }
 0x2cd   : > { %v6444_v53 = vpack.c.bf16 %v15273_v13, %v15271_v48  ;;  %v13947_v48 = vand.u32 4294901760, %v10351_v35  ;;  %v13941_v54 = vand.u32 4294901760, %v10423_v12 }
 0x2ce   : > { %15315 = vst [vmem:[#allocation147_spill] sm:$0xff] %v10386_v4 }
 0x2d1   : > { %6815 = vmatpush1.bf16.xpose.msra.mxu1 %v6814_v40  ;;  %v15295_v40 = vand.u32 4294901760, %v15294_v55  ;;  %v10459_v55 = vsub.f32 %v10423_v12, %v13941_v54  ;;  %v15341_v54 = vld [vmem:[#allocation74_spill] sm:$0xff] }
 0x2d2   : > { %6817 = vmatprep.subr.bf16.mxu1 %v6816_v23 }
 0x2d3   : > { %6431 = vmatpush1.bf16.xpose.msra.mxu0 %v6430_v30  ;;  %v6448_v30 = vpack.c.bf16 %v15289_v51, %v15287_v26  ;;  %v6832_v23 = vpack.c.bf16 %v15297_v59, %v15295_v40  ;;  %v13943_v26 = vand.u32 4294901760, %v10407_v28  ;;  %v10436_v51 = vsub.f32 %v10401_v11, %v13950_v56  ;;  %15325 = vst [vmem:[#allocation187_spill] sm:$0xff] %v10459_v55  ;;  %v15326_v40 = vld [vmem:[#allocation57_spill] sm:$0xff] }
 0x2d4   : > { %6433 = vmatprep.subr.bf16.mxu0 %v6432_v22  ;;  %v15293_v22 = vand.u32 4294901760, %v15292_v7  ;;  %v10446_v7 = vld [vmem:[%s8472_s12 + $0x620] sm:$0xff]  ;;  %v10575_v56 = vld [vmem:[%s8472_s12 + $0x678] sm:$0xff] }
 0x2d5   : > { %15322 = vst [vmem:[#allocation175_spill] sm:$0xff] %v10436_v51  ;;  %v13935_v20 = vand.u32 4294901760, %v10446_v7  ;;  %v15386_v51 = vld [vmem:[#allocation107_spill] sm:$0xff] }
 0x2d6   : > { %v6830_v10 = vpack.c.bf16 %v15293_v22, %v15291_v18  ;;  %v13936_v18 = vand.u32 4294901760, %v10429_v46  ;;  %v10449_v22 = vld [vmem:[%s8472_s12 + $0x630] sm:$0xff] }
 0x2d8   : > { %v10470_v59 = vsub.f32 %v10429_v46, %v13936_v18  ;;  %v10530_v18 = vld [vmem:[%s8472_s12 + $0x650] sm:$0xff] }
 0x2d9   : > { %6819 = vmatpush1.bf16.xpose.msra.mxu1 %v6818_v34  ;;  %v15305_v34 = vand.u32 4294901760, %v15304_v9  ;;  %v10493_v9 = vld [vmem:[%s8472_s12 + $0x648] sm:$0xff] }
 0x2da   : > { %6821 = vmatprep.subr.bf16.mxu1 %v6820_v16  ;;  %v15307_v16 = vld [vmem:[#allocation42_spill] sm:$0xff]  ;;  %15328 = vst [vmem:[#allocation190_spill] sm:$0xff] %v10470_v59 }
 0x2db   : > { %6435 = vmatpush1.bf16.xpose.msra.mxu0 %v6434_v63  ;;  %v15300_v63 = vld [vmem:[#allocation227_spill] sm:$0xff] }
 0x2dc   : > { %6437 = vmatprep.subr.bf16.mxu0 %v6436_v57  ;;  %v15301_v45 = vand.u32 4294901760, %v15300_v63  ;;  %v15302_v57 = vld [vmem:[#allocation229_spill] sm:$0xff]  ;;  %v15330_v63 = vld [vmem:[#allocation60_spill] sm:$0xff] }
 0x2dd   : > { %v15303_v15 = vand.u32 4294901760, %v15302_v57  ;;  %v10487_v57 = vld [vmem:[%s8472_s12 + $0x448] sm:$0xff] }
 0x2de   : > { %v6450_v43 = vpack.c.bf16 %v15301_v45, %v15299_v2  ;;  %v13934_v2 = vand.u32 4294901760, %v10449_v22  ;;  %v10479_v45 = vsub.f32 %v10446_v7, %v13935_v20  ;;  %v10527_v20 = vld [vmem:[%s8472_s12 + $0x640] sm:$0xff] }
 0x2df   : > { %v6834_v27 = vpack.c.bf16 %v15305_v34, %v15303_v15  ;;  %v10490_v15 = vld [vmem:[%s8472_s12 + $0x458] sm:$0xff] }
 0x2e0   : > { %15331 = vst [vmem:[#allocation139_spill] sm:$0xff] %v10479_v45  ;;  %v15333_v34 = vld [vmem:[#allocation65_spill] sm:$0xff]  ;;  %v10682_v45 = vld [vmem:[%s8472_s12 + $0x690] sm:$0xff] }
 0x2e1   : > { %6823 = vmatpush1.bf16.xpose.msra.mxu1 %v6822_v47  ;;  %v10354_v47 = vld [vmem:[%s8472_s12 + $0x610] sm:$0xff] }
 0x2e2   : > { %6825 = vmatprep.subr.bf16.mxu1 %v6824_v41  ;;  %v13957_v41 = vand.u32 4294901760, %v10332_v8  ;;  %v13944_v5 = vand.u32 4294901760, %v10354_v47 }
 0x2e3   : > { %6439 = vmatpush1.bf16.xpose.msra.mxu0 %v6438_v52  ;;  %v10338_v52 = vld [vmem:[%s8472_s12 + $0x608] sm:$0xff] }
 0x2e4   : > { %6441 = vmatprep.subr.bf16.mxu0 %v6440_v62  ;;  %v10347_v62 = vld [vmem:[%s8472_s12 + $0x410] sm:$0xff]  ;;  %v13955_v25 = vand.u32 4294901760, %v10338_v52  ;;  %v10371_v13 = vsub.f32 %v10332_v8, %v13957_v41  ;;  %v10418_v49 = vsub.f32 %v10354_v47, %v13944_v5  ;;  %v15342_v5 = vld [vmem:[#allocation71_spill] sm:$0xff] }
 0x2e5   : > { %v13951_v19 = vand.u32 4294901760, %v10347_v62 }
 0x2e6   : > { %15312 = vst [vmem:[#allocation142_spill] sm:$0xff] %v10371_v13  ;;  %v10381_v24 = vsub.f32 %v10338_v52, %v13955_v25  ;;  %15321 = vst [vmem:[#allocation171_spill] sm:$0xff] %v10418_v49  ;;  %v10834_v13 = vld [vmem:[%s8472_s12 + $0x6d0] sm:$0xff] }
 0x2e7   : > { %15398 = vst [vmem:[#allocation64_spill] sm:$0xff] %v10834_v13 }
 0x2e8   : > { %15314 = vst [vmem:[#allocation159_spill] sm:$0xff] %v10381_v24 }
 0x2e9   : > { %6827 = vmatpush1.bf16.xpose.msra.mxu1 %v6826_v1  ;;  %v10398_v1 = vsub.f32 %v10347_v62, %v13951_v19 }
 0x2ea   : > { %6829 = vmatprep.subr.bf16.mxu1 %v6828_v38  ;;  %v10413_v38 = vsub.f32 %v10351_v35, %v13947_v48  ;;  %v10569_v48 = vld [vmem:[%s8472_s12 + $0x668] sm:$0xff] }
 0x2eb   : > { %6443 = vmatpush1.bf16.xpose.msra.mxu0 %v6442_v29  ;;  %v13953_v29 = vand.u32 4294901760, %v10344_v14  ;;  %15318 = vst [vmem:[#allocation153_spill] sm:$0xff] %v10398_v1  ;;  %v13963_v19 = vand.u32 4294901760, %v10569_v48 }
 0x2ec   : > { %6445 = vmatprep.subr.bf16.mxu0 %v6444_v53  ;;  %v10376_v53 = vsub.f32 %v10335_v21, %v13956_v61  ;;  %15320 = vst [vmem:[#allocation138_spill] sm:$0xff] %v10413_v38  ;;  %v10758_v38 = vld [vmem:[%s8472_s12 + $0x6b0] sm:$0xff] }
 0x2ed   : > { %v10393_v32 = vsub.f32 %v10344_v14, %v13953_v29  ;;  %v10582_v29 = vld [vmem:[%s8472_s12 + $0x470] sm:$0xff]  ;;  %v10599_v41 = vsub.f32 %v10569_v48, %v13963_v19  ;;  %15378 = vst [vmem:[#allocation40_spill] sm:$0xff] %v10758_v38 }
 0x2ee   : > { %15313 = vst [vmem:[#allocation144_spill] sm:$0xff] %v10376_v53  ;;  %v13968_v25 = vand.u32 4294901760, %v10582_v29 }
 0x2ef   : > { %15317 = vst [vmem:[#allocation150_spill] sm:$0xff] %v10393_v32  ;;  %15348 = vst [vmem:[#allocation126_spill] sm:$0xff] %v10599_v41  ;;  %v10831_v32 = vld [vmem:[%s8472_s12 + $0x6c0] sm:$0xff] }
 0x2f0   : > { %v10622_v41 = vsub.f32 %v10582_v29, %v13968_v25  ;;  %v10639_v25 = vld [vmem:[%s8472_s12 + $0x488] sm:$0xff]  ;;  %15397 = vst [vmem:[#allocation63_spill] sm:$0xff] %v10831_v32 }
 0x2f1   : > { %6831 = vmatpush1.bf16.xpose.msra.mxu1 %v6830_v10  ;;  %v10454_v10 = vsub.f32 %v10407_v28, %v13943_v26  ;;  %v13952_v26 = vand.u32 4294901760, %v10530_v18 }
 0x2f2   : > { %6833 = vmatprep.subr.bf16.mxu1 %v6832_v23  ;;  %v15329_v23 = vld [vmem:[#allocation62_spill] sm:$0xff]  ;;  %15354 = vst [vmem:[#allocation130_spill] sm:$0xff] %v10622_v41  ;;  %v10645_v41 = vld [vmem:[%s8472_s12 + $0x688] sm:$0xff] }
 0x2f3   : > { %6447 = vmatpush1.bf16.xpose.msra.mxu0 %v6446_v17  ;;  %v10426_v17 = vld [vmem:[%s8472_s12 + $0x420] sm:$0xff]  ;;  %15324 = vst [vmem:[#allocation186_spill] sm:$0xff] %v10454_v10 }
 0x2f4   : > { %6449 = vmatprep.subr.bf16.mxu0 %v6448_v30  ;;  %v10441_v30 = vsub.f32 %v10404_v39, %v13948_v3  ;;  %v13940_v6 = vand.u32 4294901760, %v10426_v17  ;;  %v15345_v3 = vld [vmem:[#allocation77_spill] sm:$0xff] }
 0x2f6   : > { %15323 = vst [vmem:[#allocation184_spill] sm:$0xff] %v10441_v30  ;;  %v10465_v33 = vsub.f32 %v10426_v17, %v13940_v6  ;;  %v15385_v30 = vld [vmem:[#allocation110_spill] sm:$0xff] }
 0x2f8   : > { %15327 = vst [vmem:[#allocation189_spill] sm:$0xff] %v10465_v33  ;;  %v10755_v33 = vld [vmem:[%s8472_s12 + $0x6a0] sm:$0xff] }
 0x2f9   : > { %6835 = vmatpush1.bf16.xpose.msra.mxu1 %v6834_v27  ;;  %v13937_v27 = vand.u32 4294901760, %v10487_v57  ;;  %15377 = vst [vmem:[#allocation39_spill] sm:$0xff] %v10755_v33 }
 0x2fa   : > { %6837 = vmatprep.subr.bf16.mxu1 %v15307_v16  ;;  %v10499_v16 = vld [vmem:[%s8472_s12 + $0x658] sm:$0xff] }
 0x2fb   : > { %6451 = vmatpush1.bf16.xpose.msra.mxu0 %v6450_v43  ;;  %v10484_v43 = vsub.f32 %v10449_v22, %v13934_v2 }
 0x2fc   : > { %6453 = vmatprep.subr.bf16.mxu0 %v15306_v60  ;;  %v13938_v60 = vand.u32 4294901760, %v10490_v15 }
 0x2fd   : > { %15332 = vst [vmem:[#allocation192_spill] sm:$0xff] %v10484_v43 }
 0x300   : > { %3020 = vmatmul.mubr.f32.vlgmr.msra.gmra.mrb[0].mxu1 %v15308_v50 }
 0x301   : > { %6839 = vmatpush1.bf16.xpose.msra.mxu1 %v15316_v31  ;;  %3155 = vmatprep.mubr.f32.mxu1 %v15310_v42  ;;  %v10506_v31 = vld [vmem:[%s8472_s12 + $0x450] sm:$0xff] }
 0x302   : > { %1736 = vmatmul.mubr.f32.vlgmr.msra.gmra.mrb[0].mxu0 %v15308_v50  ;;  %6841 = vmatprep.subr.bf16.mxu1 %v15319_v36  ;;  %v13942_v36 = vand.u32 4294901760, %v10499_v16  ;;  %v13946_v2 = vand.u32 4294901760, %v10506_v31 }
 0x303   : > { %6455 = vmatpush1.bf16.xpose.msra.mxu0 %v15309_v0  ;;  %1871 = vmatprep.mubr.f32.mxu0 %v15310_v42  ;;  %v13939_v0 = vand.u32 4294901760, %v10493_v9  ;;  %v15356_v42 = vld [vmem:[#allocation83_spill] sm:$0xff] }
 0x304   : > { %6457 = vmatprep.subr.bf16.mxu0 %v15311_v44  ;;  %v10503_v44 = vld [vmem:[%s8472_s12 + $0x440] sm:$0xff]  ;;  %v10546_v6 = vsub.f32 %v10506_v31, %v13946_v2  ;;  %v10563_v2 = vld [vmem:[%s8472_s12 + $0x468] sm:$0xff] }
 0x306   : > { %15340 = vst [vmem:[#allocation199_spill] sm:$0xff] %v10546_v6  ;;  %v13985_v6 = vand.u32 4294901760, %v10645_v41 }
 0x308   : > { %v10675_v43 = vsub.f32 %v10645_v41, %v13985_v6 }
 0x309   : > { %6843 = vmatpush1.bf16.xpose.msra.mxu1 %v15330_v63  ;;  %v10518_v63 = vsub.f32 %v10490_v15, %v13938_v60  ;;  %v15338_v60 = vld [vmem:[#allocation68_spill] sm:$0xff] }
 0x30a   : > { %6845 = vmatprep.subr.bf16.mxu1 %v15333_v34  ;;  %v10523_v34 = vsub.f32 %v10493_v9, %v13939_v0  ;;  %15362 = vst [vmem:[#allocation162_spill] sm:$0xff] %v10675_v43 }
 0x30b   : > { %6459 = vmatpush1.bf16.xpose.msra.mxu0 %v15326_v40  ;;  %v13945_v40 = vand.u32 4294901760, %v10503_v44  ;;  %15335 = vst [vmem:[#allocation141_spill] sm:$0xff] %v10518_v63  ;;  %v15369_v63 = vld [vmem:[#allocation98_spill] sm:$0xff] }
 0x30c   : > { %6461 = vmatprep.subr.bf16.mxu0 %v15329_v23  ;;  %v10513_v23 = vsub.f32 %v10487_v57, %v13937_v27  ;;  %15336 = vst [vmem:[#allocation195_spill] sm:$0xff] %v10523_v34  ;;  %v10535_v27 = vsub.f32 %v10499_v16, %v13942_v36  ;;  %v13949_v36 = vand.u32 4294901760, %v10527_v20 }
 0x30d   : > { %v10541_v0 = vsub.f32 %v10503_v44, %v13945_v40  ;;  %v10560_v40 = vsub.f32 %v10530_v18, %v13952_v26  ;;  %v10579_v26 = vld [vmem:[%s8472_s12 + $0x460] sm:$0xff] }
 0x30e   : > { %15334 = vst [vmem:[#allocation193_spill] sm:$0xff] %v10513_v23  ;;  %15337 = vst [vmem:[#allocation196_spill] sm:$0xff] %v10535_v27  ;;  %v15370_v23 = vld [vmem:[#allocation95_spill] sm:$0xff] }
 0x30f   : > { %15339 = vst [vmem:[#allocation198_spill] sm:$0xff] %v10541_v0  ;;  %15344 = vst [vmem:[#allocation124_spill] sm:$0xff] %v10560_v40  ;;  %v10606_v40 = vld [vmem:[%s8472_s12 + $0x670] sm:$0xff]  ;;  %v10679_v0 = vld [vmem:[%s8472_s12 + $0x680] sm:$0xff] }
 0x311   : > { %6847 = vmatpush1.bf16.xpose.msra.mxu1 %v15342_v5  ;;  %v13959_v5 = vand.u32 4294901760, %v10563_v2 }
 0x312   : > { %6849 = vmatprep.subr.bf16.mxu1 %v15345_v3 }
 0x313   : > { %6463 = vmatpush1.bf16.xpose.msra.mxu0 %v15338_v60  ;;  %v10555_v60 = vsub.f32 %v10527_v20, %v13949_v36  ;;  %v10589_v3 = vsub.f32 %v10563_v2, %v13959_v5  ;;  %v15349_v5 = vand.u32 4294901760, %v10575_v56 }
 0x314   : > { %6465 = vmatprep.subr.bf16.mxu0 %v15341_v54  ;;  %v10566_v54 = vld [vmem:[%s8472_s12 + $0x478] sm:$0xff] }
 0x315   : > { %15343 = vst [vmem:[#allocation123_spill] sm:$0xff] %v10555_v60  ;;  %v13961_v36 = vand.u32 4294901760, %v10566_v54  ;;  %15346 = vst [vmem:[#allocation120_spill] sm:$0xff] %v10589_v3  ;;  %v10611_v60 = vsub.f32 %v10575_v56, %v15349_v5  ;;  %v15355_v3 = vld [vmem:[#allocation86_spill] sm:$0xff]  ;;  %v13971_v5 = vand.u32 4294901760, %v10603_v58 }
 0x317   : > { %v10594_v61 = vsub.f32 %v10566_v54, %v13961_v36  ;;  %15350 = vst [vmem:[#allocation127_spill] sm:$0xff] %v10611_v60  ;;  %v15351_v36 = vld [vmem:[#allocation80_spill] sm:$0xff]  ;;  %v13974_v60 = vand.u32 4294901760, %v10606_v40 }
 0x319   : > { %15347 = vst [vmem:[#allocation121_spill] sm:$0xff] %v10594_v61  ;;  %v15352_v61 = vand.u32 4294901760, %v10579_v26  ;;  %6851 = vmatpush1.bf16.xpose.msra.mxu1 %v15356_v42  ;;  %v13981_v42 = vand.u32 4294901760, %v10639_v25 }
 0x31b   : > { %6467 = vmatpush1.bf16.xpose.msra.mxu0 %v15351_v36  ;;  %v10617_v19 = vsub.f32 %v10579_v26, %v15352_v61  ;;  %v10631_v61 = vsub.f32 %v10603_v58, %v13971_v5  ;;  %v10636_v36 = vsub.f32 %v10606_v40, %v13974_v60  ;;  %v10655_v60 = vld [vmem:[%s8472_s12 + $0x480] sm:$0xff] }
 0x31c   : > { %6469 = vmatprep.subr.bf16.mxu0 %v15355_v3  ;;  %v10642_v3 = vld [vmem:[%s8472_s12 + $0x498] sm:$0xff] }
 0x31d   : > { %15353 = vst [vmem:[#allocation129_spill] sm:$0xff] %v10617_v19  ;;  %15357 = vst [vmem:[#allocation135_spill] sm:$0xff] %v10631_v61  ;;  %v15359_v19 = vld [vmem:[#allocation89_spill] sm:$0xff]  ;;  %v13983_v5 = vand.u32 4294901760, %v10642_v3 }
 0x31e   : > { %15358 = vst [vmem:[#allocation136_spill] sm:$0xff] %v10636_v36  ;;  %6853 = vmatprep.subr.bf16.mxu1 %v15359_v19  ;;  %v10651_v61 = vld [vmem:[%s8472_s12 + $0x698] sm:$0xff]  ;;  %v10658_v36 = vld [vmem:[%s8472_s12 + $0x490] sm:$0xff]  ;;  %v10665_v19 = vsub.f32 %v10639_v25, %v13981_v42 }
 0x31f   : > { %v10670_v34 = vsub.f32 %v10642_v3, %v13983_v5  ;;  %v13990_v27 = vand.u32 4294901760, %v10658_v36  ;;  %v15363_v42 = vand.u32 4294901760, %v10651_v61  ;;  %v15365_v5 = vld [vmem:[#allocation92_spill] sm:$0xff] }
 0x320   : > { %15360 = vst [vmem:[#allocation132_spill] sm:$0xff] %v10665_v19 }
 0x321   : > { %15361 = vst [vmem:[#allocation133_spill] sm:$0xff] %v10670_v34  ;;  %v10687_v19 = vsub.f32 %v10651_v61, %v15363_v42  ;;  %v15366_v34 = vand.u32 4294901760, %v10655_v60  ;;  %v10698_v43 = vsub.f32 %v10658_v36, %v13990_v27  ;;  %v13993_v42 = vand.u32 4294901760, %v10679_v0  ;;  %6855 = vmatpush1.bf16.xpose.msra.mxu1 %v15370_v23  ;;  %v10715_v27 = vld [vmem:[%s8472_s12 + $0x4a8] sm:$0xff] }
 0x322   : > { %v14003_v23 = vand.u32 4294901760, %v10715_v27 }
 0x323   : > { %15364 = vst [vmem:[#allocation169_spill] sm:$0xff] %v10687_v19  ;;  %6471 = vmatpush1.bf16.xpose.msra.mxu0 %v15365_v5  ;;  %v10693_v6 = vsub.f32 %v10655_v60, %v15366_v34  ;;  %15368 = vst [vmem:[#allocation174_spill] sm:$0xff] %v10698_v43  ;;  %v13996_v19 = vand.u32 4294901760, %v10682_v45  ;;  %v10707_v34 = vsub.f32 %v10679_v0, %v13993_v42  ;;  %v10721_v43 = vld [vmem:[%s8472_s12 + $0x6a8] sm:$0xff] }
 0x324   : > { %6473 = vmatprep.subr.bf16.mxu0 %v15369_v63  ;;  %v10718_v63 = vld [vmem:[%s8472_s12 + $0x4b8] sm:$0xff]  ;;  %v14007_v59 = vand.u32 4294901760, %v10721_v43 }
 0x325   : > { %15367 = vst [vmem:[#allocation168_spill] sm:$0xff] %v10693_v6  ;;  %15371 = vst [vmem:[#allocation178_spill] sm:$0xff] %v10707_v34  ;;  %v10712_v5 = vsub.f32 %v10682_v45, %v13996_v19  ;;  %v15373_v6 = vld [vmem:[#allocation101_spill] sm:$0xff]  ;;  %v14005_v42 = vand.u32 4294901760, %v10718_v63  ;;  %v10731_v19 = vld [vmem:[%s8472_s12 + $0x4a0] sm:$0xff] }
 0x326   : > { %6857 = vmatprep.subr.bf16.mxu1 %v15373_v6  ;;  %v10727_v34 = vld [vmem:[%s8472_s12 + $0x6b8] sm:$0xff]  ;;  %v10741_v6 = vsub.f32 %v10715_v27, %v14003_v23  ;;  %v10751_v49 = vsub.f32 %v10721_v43, %v14007_v59 }
 0x327   : > { %15372 = vst [vmem:[#allocation177_spill] sm:$0xff] %v10712_v5  ;;  %v10734_v5 = vld [vmem:[%s8472_s12 + $0x4b0] sm:$0xff]  ;;  %v10746_v10 = vsub.f32 %v10718_v63, %v14005_v42  ;;  %v15379_v23 = vand.u32 4294901760, %v10727_v34 }
 0x328   : > { %15374 = vst [vmem:[#allocation183_spill] sm:$0xff] %v10741_v6  ;;  %15376 = vst [vmem:[#allocation180_spill] sm:$0xff] %v10751_v49  ;;  %v14012_v55 = vand.u32 4294901760, %v10734_v5  ;;  %v15381_v42 = vld [vmem:[#allocation104_spill] sm:$0xff] }
 0x329   : > { %15375 = vst [vmem:[#allocation181_spill] sm:$0xff] %v10746_v10  ;;  %v10763_v6 = vsub.f32 %v10727_v34, %v15379_v23  ;;  %v15382_v10 = vand.u32 4294901760, %v10731_v19  ;;  %v14015_v23 = vand.u32 4294901760, %v10755_v33  ;;  %6859 = vmatpush1.bf16.xpose.msra.mxu1 %v15386_v51 }
 0x32a   : > { %v10774_v49 = vsub.f32 %v10734_v5, %v14012_v55  ;;  %v10791_v55 = vld [vmem:[%s8472_s12 + $0x4c8] sm:$0xff] }
 0x32b   : > { %15380 = vst [vmem:[#allocation41_spill] sm:$0xff] %v10763_v6  ;;  %6475 = vmatpush1.bf16.xpose.msra.mxu0 %v15381_v42  ;;  %v10769_v59 = vsub.f32 %v10731_v19, %v15382_v10  ;;  %v14018_v6 = vand.u32 4294901760, %v10758_v38  ;;  %v10783_v10 = vsub.f32 %v10755_v33, %v14015_v23  ;;  %v14025_v51 = vand.u32 4294901760, %v10791_v55  ;;  %v10910_v33 = vld [vmem:[%s8472_s12 + $0x6f0] sm:$0xff] }
 0x32c   : > { %15384 = vst [vmem:[#allocation45_spill] sm:$0xff] %v10774_v49  ;;  %6477 = vmatprep.subr.bf16.mxu0 %v15385_v30  ;;  %v10794_v30 = vld [vmem:[%s8472_s12 + $0x4d8] sm:$0xff]  ;;  %v10797_v49 = vld [vmem:[%s8472_s12 + $0x6c8] sm:$0xff]  ;;  %15420 = vst [vmem:[#allocation88_spill] sm:$0xff] %v10910_v33 }
 0x32d   : > { %15383 = vst [vmem:[#allocation43_spill] sm:$0xff] %v10769_v59  ;;  %15387 = vst [vmem:[#allocation46_spill] sm:$0xff] %v10783_v10  ;;  %v10788_v42 = vsub.f32 %v10758_v38, %v14018_v6  ;;  %v15390_v59 = vld [vmem:[#allocation113_spill] sm:$0xff]  ;;  %v14027_v23 = vand.u32 4294901760, %v10794_v30  ;;  %v14029_v1 = vand.u32 4294901760, %v10797_v49  ;;  %v10807_v6 = vld [vmem:[%s8472_s12 + $0x4c0] sm:$0xff] }
 0x32e   : > { %15389 = vst [vmem:[#allocation52_spill] sm:$0xff] %v10797_v49  ;;  %6861 = vmatprep.subr.bf16.mxu1 %v15390_v59  ;;  %v10803_v10 = vld [vmem:[%s8472_s12 + $0x6d8] sm:$0xff]  ;;  %15392 = vst [vmem:[#allocation49_spill] sm:$0xff] %v10807_v6  ;;  %v10817_v59 = vsub.f32 %v10791_v55, %v14025_v51 }
 0x32f   : > { %15388 = vst [vmem:[#allocation50_spill] sm:$0xff] %v10788_v42  ;;  %15391 = vst [vmem:[#allocation48_spill] sm:$0xff] %v10803_v10  ;;  %v10810_v42 = vld [vmem:[%s8472_s12 + $0x4d0] sm:$0xff]  ;;  %v10822_v24 = vsub.f32 %v10794_v30, %v14027_v23  ;;  %v10827_v53 = vsub.f32 %v10797_v49, %v14029_v1  ;;  %v15399_v51 = vand.u32 4294901760, %v10803_v10  ;;  %v15405_v49 = vld [vmem:[#allocation122_spill] sm:$0xff] }
 0x330   : > { %15393 = vst [vmem:[#allocation54_spill] sm:$0xff] %v10810_v42  ;;  %15394 = vst [vmem:[#allocation55_spill] sm:$0xff] %v10817_v59  ;;  %v14034_v4 = vand.u32 4294901760, %v10810_v42  ;;  %v15401_v23 = vld [vmem:[#allocation116_spill] sm:$0xff] }
 0x331   : > { %15395 = vst [vmem:[#allocation56_spill] sm:$0xff] %v10822_v24  ;;  %15396 = vst [vmem:[#allocation58_spill] sm:$0xff] %v10827_v53  ;;  %v10839_v59 = vsub.f32 %v10803_v10, %v15399_v51  ;;  %v15402_v24 = vand.u32 4294901760, %v10807_v6  ;;  %v14037_v51 = vand.u32 4294901760, %v10831_v32  ;;  %v15406_v10 = vld [vmem:[#allocation119_spill] sm:$0xff] }
 0x332   : > { %v10850_v53 = vsub.f32 %v10810_v42, %v14034_v4  ;;  %6863 = vmatpush1.bf16.xpose.msra.mxu1 %v15406_v10  ;;  %v10867_v4 = vld [vmem:[%s8472_s12 + $0x4e8] sm:$0xff] }
 0x333   : > { %15400 = vst [vmem:[#allocation59_spill] sm:$0xff] %v10839_v59  ;;  %6479 = vmatpush1.bf16.xpose.msra.mxu0 %v15401_v23  ;;  %v10845_v1 = vsub.f32 %v10807_v6, %v15402_v24  ;;  %v14040_v59 = vand.u32 4294901760, %v10834_v13  ;;  %v10859_v24 = vsub.f32 %v10831_v32, %v14037_v51  ;;  %15409 = vst [vmem:[#allocation70_spill] sm:$0xff] %v10867_v4  ;;  %v14047_v10 = vand.u32 4294901760, %v10867_v4 }
 0x334   : > { %15404 = vst [vmem:[#allocation66_spill] sm:$0xff] %v10850_v53  ;;  %6481 = vmatprep.subr.bf16.mxu0 %v15405_v49  ;;  %v10870_v49 = vld [vmem:[%s8472_s12 + $0x4f8] sm:$0xff]  ;;  %v10873_v53 = vld [vmem:[%s8472_s12 + $0x6e8] sm:$0xff] }
 0x335   : > { %15403 = vst [vmem:[#allocation61_spill] sm:$0xff] %v10845_v1  ;;  %15407 = vst [vmem:[#allocation67_spill] sm:$0xff] %v10859_v24  ;;  %v10864_v23 = vsub.f32 %v10834_v13, %v14040_v59  ;;  %v15412_v1 = vld [vmem:[#allocation125_spill] sm:$0xff]  ;;  %v14049_v51 = vand.u32 4294901760, %v10870_v49  ;;  %v14051_v32 = vand.u32 4294901760, %v10873_v53  ;;  %v10883_v59 = vld [vmem:[%s8472_s12 + $0x4e0] sm:$0xff] }
 0x336   : > { %15410 = vst [vmem:[#allocation75_spill] sm:$0xff] %v10870_v49  ;;  %15411 = vst [vmem:[#allocation76_spill] sm:$0xff] %v10873_v53  ;;  %6865 = vmatprep.subr.bf16.mxu1 %v15412_v1  ;;  %v10879_v24 = vld [vmem:[%s8472_s12 + $0x6f8] sm:$0xff]  ;;  %v10893_v1 = vsub.f32 %v10867_v4, %v14047_v10  ;;  %v10907_v13 = vld [vmem:[%s8472_s12 + $0x6e0] sm:$0xff] }
 0x337   : > { %15408 = vst [vmem:[#allocation69_spill] sm:$0xff] %v10864_v23  ;;  %15413 = vst [vmem:[#allocation72_spill] sm:$0xff] %v10879_v24  ;;  %v10886_v23 = vld [vmem:[%s8472_s12 + $0x4f0] sm:$0xff]  ;;  %v10898_v6 = vsub.f32 %v10870_v49, %v14049_v51  ;;  %v10903_v38 = vsub.f32 %v10873_v53, %v14051_v32  ;;  %v15421_v10 = vand.u32 4294901760, %v10879_v24  ;;  %v15427_v53 = vld [vmem:[#allocation134_spill] sm:$0xff] }
 0x338   : > { %15414 = vst [vmem:[#allocation73_spill] sm:$0xff] %v10883_v59  ;;  %15415 = vst [vmem:[#allocation78_spill] sm:$0xff] %v10886_v23  ;;  %v14056_v42 = vand.u32 4294901760, %v10886_v23  ;;  %v15423_v51 = vld [vmem:[#allocation128_spill] sm:$0xff] }
 0x339   : > { %15416 = vst [vmem:[#allocation79_spill] sm:$0xff] %v10893_v1  ;;  %15417 = vst [vmem:[#allocation81_spill] sm:$0xff] %v10898_v6  ;;  %v10915_v1 = vsub.f32 %v10879_v24, %v15421_v10  ;;  %v15424_v6 = vand.u32 4294901760, %v10883_v59  ;;  %v14059_v10 = vand.u32 4294901760, %v10907_v13  ;;  %v15428_v24 = vld [vmem:[#allocation131_spill] sm:$0xff]  ;;  %v10986_v4 = vld [vmem:[%s8472_s12 + $0x710] sm:$0xff] }
 0x33a   : > { %15418 = vst [vmem:[#allocation82_spill] sm:$0xff] %v10903_v38  ;;  %15419 = vst [vmem:[#allocation87_spill] sm:$0xff] %v10907_v13  ;;  %v10926_v38 = vsub.f32 %v10886_v23, %v14056_v42  ;;  %6867 = vmatpush1.bf16.xpose.msra.mxu1 %v15428_v24  ;;  %v10943_v42 = vld [vmem:[%s8472_s12 + $0x508] sm:$0xff] }
 0x33b   : > { %15422 = vst [vmem:[#allocation84_spill] sm:$0xff] %v10915_v1  ;;  %6483 = vmatpush1.bf16.xpose.msra.mxu0 %v15423_v51  ;;  %v10921_v32 = vsub.f32 %v10883_v59, %v15424_v6  ;;  %v14062_v1 = vand.u32 4294901760, %v10910_v33  ;;  %v10935_v6 = vsub.f32 %v10907_v13, %v14059_v10  ;;  %15431 = vst [vmem:[#allocation94_spill] sm:$0xff] %v10943_v42  ;;  %v14069_v24 = vand.u32 4294901760, %v10943_v42 }
 0x33c   : > { %15426 = vst [vmem:[#allocation90_spill] sm:$0xff] %v10926_v38  ;;  %6485 = vmatprep.subr.bf16.mxu0 %v15427_v53  ;;  %v10946_v53 = vld [vmem:[%s8472_s12 + $0x518] sm:$0xff]  ;;  %v10949_v38 = vld [vmem:[%s8472_s12 + $0x708] sm:$0xff]  ;;  %15442 = vst [vmem:[#allocation112_spill] sm:$0xff] %v10986_v4 }
 0x33d   : > { %15425 = vst [vmem:[#allocation85_spill] sm:$0xff] %v10921_v32  ;;  %15429 = vst [vmem:[#allocation91_spill] sm:$0xff] %v10935_v6  ;;  %v10940_v51 = vsub.f32 %v10910_v33, %v14062_v1  ;;  %v15434_v32 = vld [vmem:[#allocation137_spill] sm:$0xff]  ;;  %v14071_v10 = vand.u32 4294901760, %v10946_v53  ;;  %v14073_v13 = vand.u32 4294901760, %v10949_v38  ;;  %v10959_v1 = vld [vmem:[%s8472_s12 + $0x500] sm:$0xff] }
 0x33e   : > { %15432 = vst [vmem:[#allocation99_spill] sm:$0xff] %v10946_v53  ;;  %15433 = vst [vmem:[#allocation100_spill] sm:$0xff] %v10949_v38  ;;  %6869 = vmatprep.subr.bf16.mxu1 %v15434_v32  ;;  %v10955_v6 = vld [vmem:[%s8472_s12 + $0x718] sm:$0xff]  ;;  %v10969_v32 = vsub.f32 %v10943_v42, %v14069_v24  ;;  %v10983_v33 = vld [vmem:[%s8472_s12 + $0x700] sm:$0xff] }
 0x33f   : > { %15430 = vst [vmem:[#allocation93_spill] sm:$0xff] %v10940_v51  ;;  %15435 = vst [vmem:[#allocation96_spill] sm:$0xff] %v10955_v6  ;;  %v10962_v51 = vld [vmem:[%s8472_s12 + $0x510] sm:$0xff]  ;;  %v10974_v59 = vsub.f32 %v10946_v53, %v14071_v10  ;;  %v10979_v49 = vsub.f32 %v10949_v38, %v14073_v13  ;;  %v15443_v24 = vand.u32 4294901760, %v10955_v6  ;;  %v15449_v38 = vld [vmem:[#allocation146_spill] sm:$0xff] }
 0x340   : > { %15436 = vst [vmem:[#allocation97_spill] sm:$0xff] %v10959_v1  ;;  %15437 = vst [vmem:[#allocation102_spill] sm:$0xff] %v10962_v51  ;;  %v14078_v23 = vand.u32 4294901760, %v10962_v51  ;;  %v15445_v10 = vld [vmem:[#allocation140_spill] sm:$0xff] }
 0x341   : > { %15438 = vst [vmem:[#allocation103_spill] sm:$0xff] %v10969_v32  ;;  %15439 = vst [vmem:[#allocation105_spill] sm:$0xff] %v10974_v59  ;;  %v10991_v32 = vsub.f32 %v10955_v6, %v15443_v24  ;;  %v15446_v59 = vand.u32 4294901760, %v10959_v1  ;;  %v14081_v24 = vand.u32 4294901760, %v10983_v33  ;;  %v15450_v6 = vld [vmem:[#allocation143_spill] sm:$0xff]  ;;  %v11062_v42 = vld [vmem:[%s8472_s12 + $0x730] sm:$0xff] }
 0x342   : > { %15440 = vst [vmem:[#allocation106_spill] sm:$0xff] %v10979_v49  ;;  %15441 = vst [vmem:[#allocation111_spill] sm:$0xff] %v10983_v33  ;;  %v11002_v49 = vsub.f32 %v10962_v51, %v14078_v23  ;;  %6871 = vmatpush1.bf16.xpose.msra.mxu1 %v15450_v6  ;;  %v11019_v23 = vld [vmem:[%s8472_s12 + $0x528] sm:$0xff] }
 0x343   : > { %15444 = vst [vmem:[#allocation108_spill] sm:$0xff] %v10991_v32  ;;  %6487 = vmatpush1.bf16.xpose.msra.mxu0 %v15445_v10  ;;  %v10997_v13 = vsub.f32 %v10959_v1, %v15446_v59  ;;  %v14084_v32 = vand.u32 4294901760, %v10986_v4  ;;  %v11011_v59 = vsub.f32 %v10983_v33, %v14081_v24  ;;  %15453 = vst [vmem:[#allocation118_spill] sm:$0xff] %v11019_v23  ;;  %v14091_v6 = vand.u32 4294901760, %v11019_v23 }
 0x344   : > { %15448 = vst [vmem:[#allocation114_spill] sm:$0xff] %v11002_v49  ;;  %6489 = vmatprep.subr.bf16.mxu0 %v15449_v38  ;;  %v11022_v38 = vld [vmem:[%s8472_s12 + $0x538] sm:$0xff]  ;;  %v11025_v49 = vld [vmem:[%s8472_s12 + $0x728] sm:$0xff]  ;;  %15464 = vst [vmem:[#allocation166_spill] sm:$0xff] %v11062_v42 }
 0x345   : > { %15447 = vst [vmem:[#allocation109_spill] sm:$0xff] %v10997_v13  ;;  %15451 = vst [vmem:[#allocation115_spill] sm:$0xff] %v11011_v59  ;;  %v11016_v10 = vsub.f32 %v10986_v4, %v14084_v32  ;;  %v15456_v13 = vld [vmem:[#allocation149_spill] sm:$0xff]  ;;  %v14093_v24 = vand.u32 4294901760, %v11022_v38  ;;  %v14095_v33 = vand.u32 4294901760, %v11025_v49  ;;  %v11035_v32 = vld [vmem:[%s8472_s12 + $0x520] sm:$0xff] }
 0x346   : > { %15454 = vst [vmem:[#allocation148_spill] sm:$0xff] %v11022_v38  ;;  %15455 = vst [vmem:[#allocation145_spill] sm:$0xff] %v11025_v49  ;;  %6873 = vmatprep.subr.bf16.mxu1 %v15456_v13  ;;  %v11031_v59 = vld [vmem:[%s8472_s12 + $0x738] sm:$0xff]  ;;  %v11045_v13 = vsub.f32 %v11019_v23, %v14091_v6  ;;  %v11059_v4 = vld [vmem:[%s8472_s12 + $0x720] sm:$0xff] }
 0x347   : > { %15452 = vst [vmem:[#allocation117_spill] sm:$0xff] %v11016_v10  ;;  %15457 = vst [vmem:[#allocation151_spill] sm:$0xff] %v11031_v59  ;;  %v11038_v10 = vld [vmem:[%s8472_s12 + $0x530] sm:$0xff]  ;;  %v11050_v1 = vsub.f32 %v11022_v38, %v14093_v24  ;;  %v11055_v53 = vsub.f32 %v11025_v49, %v14095_v33  ;;  %v15465_v6 = vand.u32 4294901760, %v11031_v59  ;;  %v15471_v49 = vld [vmem:[#allocation158_spill] sm:$0xff] }
 0x348   : > { %15458 = vst [vmem:[#allocation154_spill] sm:$0xff] %v11035_v32  ;;  %15459 = vst [vmem:[#allocation160_spill] sm:$0xff] %v11038_v10  ;;  %v14100_v51 = vand.u32 4294901760, %v11038_v10  ;;  %v15467_v24 = vld [vmem:[#allocation152_spill] sm:$0xff] }
 0x349   : > { %15460 = vst [vmem:[#allocation156_spill] sm:$0xff] %v11045_v13  ;;  %15461 = vst [vmem:[#allocation157_spill] sm:$0xff] %v11050_v1  ;;  %v11067_v13 = vsub.f32 %v11031_v59, %v15465_v6  ;;  %v15468_v1 = vand.u32 4294901760, %v11035_v32  ;;  %v14103_v6 = vand.u32 4294901760, %v11059_v4  ;;  %v15472_v59 = vld [vmem:[#allocation155_spill] sm:$0xff]  ;;  %v11138_v23 = vld [vmem:[%s8472_s12 + $0x750] sm:$0xff] }
 0x34a   : > { %15462 = vst [vmem:[#allocation163_spill] sm:$0xff] %v11055_v53  ;;  %15463 = vst [vmem:[#allocation165_spill] sm:$0xff] %v11059_v4  ;;  %v11078_v53 = vsub.f32 %v11038_v10, %v14100_v51  ;;  %6875 = vmatpush1.bf16.xpose.msra.mxu1 %v15472_v59  ;;  %v11095_v51 = vld [vmem:[%s8472_s12 + $0x548] sm:$0xff] }
 0x34b   : > { %15466 = vst [vmem:[#allocation172_spill] sm:$0xff] %v11067_v13  ;;  %6491 = vmatpush1.bf16.xpose.msra.mxu0 %v15467_v24  ;;  %v11073_v33 = vsub.f32 %v11035_v32, %v15468_v1  ;;  %v14106_v13 = vand.u32 4294901760, %v11062_v42  ;;  %v11087_v1 = vsub.f32 %v11059_v4, %v14103_v6  ;;  %15475 = vst [vmem:[#allocation204_spill] sm:$0xff] %v11095_v51  ;;  %v14113_v59 = vand.u32 4294901760, %v11095_v51 }
 0x34c   : > { %15470 = vst [vmem:[#allocation202_spill] sm:$0xff] %v11078_v53  ;;  %6493 = vmatprep.subr.bf16.mxu0 %v15471_v49  ;;  %v11098_v49 = vld [vmem:[%s8472_s12 + $0x558] sm:$0xff]  ;;  %v11101_v53 = vld [vmem:[%s8472_s12 + $0x748] sm:$0xff]  ;;  %15486 = vst [vmem:[#allocation222_spill] sm:$0xff] %v11138_v23 }
 0x34d   : > { %15469 = vst [vmem:[#allocation201_spill] sm:$0xff] %v11073_v33  ;;  %15473 = vst [vmem:[#allocation207_spill] sm:$0xff] %v11087_v1  ;;  %v11092_v24 = vsub.f32 %v11062_v42, %v14106_v13  ;;  %v15478_v33 = vld [vmem:[#allocation161_spill] sm:$0xff]  ;;  %v14115_v6 = vand.u32 4294901760, %v11098_v49  ;;  %v14117_v4 = vand.u32 4294901760, %v11101_v53  ;;  %v11111_v13 = vld [vmem:[%s8472_s12 + $0x540] sm:$0xff] }
 0x34e   : > { %15476 = vst [vmem:[#allocation205_spill] sm:$0xff] %v11098_v49  ;;  %15477 = vst [vmem:[#allocation210_spill] sm:$0xff] %v11101_v53  ;;  %6877 = vmatprep.subr.bf16.mxu1 %v15478_v33  ;;  %v11107_v1 = vld [vmem:[%s8472_s12 + $0x758] sm:$0xff]  ;;  %v11121_v33 = vsub.f32 %v11095_v51, %v14113_v59  ;;  %v11135_v42 = vld [vmem:[%s8472_s12 + $0x740] sm:$0xff] }
 0x34f   : > { %15474 = vst [vmem:[#allocation208_spill] sm:$0xff] %v11092_v24  ;;  %15479 = vst [vmem:[#allocation211_spill] sm:$0xff] %v11107_v1  ;;  %v11114_v24 = vld [vmem:[%s8472_s12 + $0x550] sm:$0xff]  ;;  %v11126_v32 = vsub.f32 %v11098_v49, %v14115_v6  ;;  %v11131_v38 = vsub.f32 %v11101_v53, %v14117_v4  ;;  %v15487_v59 = vand.u32 4294901760, %v11107_v1  ;;  %v15493_v53 = vld [vmem:[#allocation170_spill] sm:$0xff] }
 0x350   : > { %15480 = vst [vmem:[#allocation213_spill] sm:$0xff] %v11111_v13  ;;  %15481 = vst [vmem:[#allocation214_spill] sm:$0xff] %v11114_v24  ;;  %v14122_v10 = vand.u32 4294901760, %v11114_v24  ;;  %v15489_v6 = vld [vmem:[#allocation164_spill] sm:$0xff] }
 0x351   : > { %15482 = vst [vmem:[#allocation219_spill] sm:$0xff] %v11121_v33  ;;  %15483 = vst [vmem:[#allocation220_spill] sm:$0xff] %v11126_v32  ;;  %v11143_v33 = vsub.f32 %v11107_v1, %v15487_v59  ;;  %v15490_v32 = vand.u32 4294901760, %v11111_v13  ;;  %v14125_v59 = vand.u32 4294901760, %v11135_v42  ;;  %v15494_v1 = vld [vmem:[#allocation167_spill] sm:$0xff]  ;;  %v11214_v51 = vld [vmem:[%s8472_s12 + $0x770] sm:$0xff] }
 0x352   : > { %15484 = vst [vmem:[#allocation216_spill] sm:$0xff] %v11131_v38  ;;  %15485 = vst [vmem:[#allocation217_spill] sm:$0xff] %v11135_v42  ;;  %v11154_v38 = vsub.f32 %v11114_v24, %v14122_v10  ;;  %6879 = vmatpush1.bf16.xpose.msra.mxu1 %v15494_v1  ;;  %v11171_v10 = vld [vmem:[%s8472_s12 + $0x568] sm:$0xff] }
 0x353   : > { %15488 = vst [vmem:[#allocation223_spill] sm:$0xff] %v11143_v33  ;;  %6495 = vmatpush1.bf16.xpose.msra.mxu0 %v15489_v6  ;;  %v11149_v4 = vsub.f32 %v11111_v13, %v15490_v32  ;;  %v14128_v33 = vand.u32 4294901760, %v11138_v23  ;;  %v11163_v32 = vsub.f32 %v11135_v42, %v14125_v59  ;;  %15497 = vst [vmem:[#allocation38_spill] sm:$0xff] %v11171_v10  ;;  %v14135_v1 = vand.u32 4294901760, %v11171_v10 }
 0x354   : > { %15492 = vst [vmem:[#allocation227_spill] sm:$0xff] %v11154_v38  ;;  %6497 = vmatprep.subr.bf16.mxu0 %v15493_v53  ;;  %v11174_v53 = vld [vmem:[%s8472_s12 + $0x578] sm:$0xff]  ;;  %v11177_v38 = vld [vmem:[%s8472_s12 + $0x768] sm:$0xff]  ;;  %15508 = vst [vmem:[#allocation68_spill] sm:$0xff] %v11214_v51 }
 0x355   : > { %15491 = vst [vmem:[#allocation226_spill] sm:$0xff] %v11149_v4  ;;  %15495 = vst [vmem:[#allocation229_spill] sm:$0xff] %v11163_v32  ;;  %v11168_v6 = vsub.f32 %v11138_v23, %v14128_v33  ;;  %v15500_v4 = vld [vmem:[#allocation173_spill] sm:$0xff]  ;;  %v14137_v59 = vand.u32 4294901760, %v11174_v53  ;;  %v14139_v42 = vand.u32 4294901760, %v11177_v38  ;;  %v11187_v33 = vld [vmem:[%s8472_s12 + $0x560] sm:$0xff] }
 0x356   : > { %15498 = vst [vmem:[#allocation42_spill] sm:$0xff] %v11174_v53  ;;  %15499 = vst [vmem:[#allocation44_spill] sm:$0xff] %v11177_v38  ;;  %6881 = vmatprep.subr.bf16.mxu1 %v15500_v4  ;;  %v11183_v32 = vld [vmem:[%s8472_s12 + $0x778] sm:$0xff]  ;;  %v11197_v4 = vsub.f32 %v11171_v10, %v14135_v1  ;;  %v11211_v23 = vld [vmem:[%s8472_s12 + $0x760] sm:$0xff] }
 0x357   : > { %15496 = vst [vmem:[#allocation230_spill] sm:$0xff] %v11168_v6  ;;  %15501 = vst [vmem:[#allocation51_spill] sm:$0xff] %v11183_v32  ;;  %v11190_v6 = vld [vmem:[%s8472_s12 + $0x570] sm:$0xff]  ;;  %v11202_v13 = vsub.f32 %v11174_v53, %v14137_v59  ;;  %v11207_v49 = vsub.f32 %v11177_v38, %v14139_v42  ;;  %v15509_v1 = vand.u32 4294901760, %v11183_v32  ;;  %v15515_v38 = vld [vmem:[#allocation182_spill] sm:$0xff] }
 0x358   : > { %15502 = vst [vmem:[#allocation47_spill] sm:$0xff] %v11187_v33  ;;  %15503 = vst [vmem:[#allocation53_spill] sm:$0xff] %v11190_v6  ;;  %v14144_v24 = vand.u32 4294901760, %v11190_v6  ;;  %v15511_v59 = vld [vmem:[#allocation176_spill] sm:$0xff] }
 0x359   : > { %15504 = vst [vmem:[#allocation57_spill] sm:$0xff] %v11197_v4  ;;  %15505 = vst [vmem:[#allocation62_spill] sm:$0xff] %v11202_v13  ;;  %v11219_v4 = vsub.f32 %v11183_v32, %v15509_v1  ;;  %v15512_v13 = vand.u32 4294901760, %v11187_v33  ;;  %v14147_v1 = vand.u32 4294901760, %v11211_v23  ;;  %v15516_v32 = vld [vmem:[#allocation179_spill] sm:$0xff]  ;;  %v11290_v10 = vld [vmem:[%s8472_s12 + $0x790] sm:$0xff] }
 0x35a   : > { %15506 = vst [vmem:[#allocation60_spill] sm:$0xff] %v11207_v49  ;;  %15507 = vst [vmem:[#allocation65_spill] sm:$0xff] %v11211_v23  ;;  %v11230_v49 = vsub.f32 %v11190_v6, %v14144_v24  ;;  %6883 = vmatpush1.bf16.xpose.msra.mxu1 %v15516_v32  ;;  %v11247_v24 = vld [vmem:[%s8472_s12 + $0x588] sm:$0xff] }
 0x35b   : > { %15510 = vst [vmem:[#allocation74_spill] sm:$0xff] %v11219_v4  ;;  %6499 = vmatpush1.bf16.xpose.msra.mxu0 %v15511_v59  ;;  %v11225_v42 = vsub.f32 %v11187_v33, %v15512_v13  ;;  %v14150_v4 = vand.u32 4294901760, %v11214_v51  ;;  %v11239_v13 = vsub.f32 %v11211_v23, %v14147_v1  ;;  %15519 = vst [vmem:[#allocation83_spill] sm:$0xff] %v11247_v24  ;;  %v14157_v32 = vand.u32 4294901760, %v11247_v24 }
 0x35c   : > { %15514 = vst [vmem:[#allocation77_spill] sm:$0xff] %v11230_v49  ;;  %6501 = vmatprep.subr.bf16.mxu0 %v15515_v38  ;;  %v11250_v38 = vld [vmem:[%s8472_s12 + $0x598] sm:$0xff]  ;;  %v11253_v49 = vld [vmem:[%s8472_s12 + $0x788] sm:$0xff]  ;;  %15530 = vst [vmem:[#allocation116_spill] sm:$0xff] %v11290_v10 }
 0x35d   : > { %15513 = vst [vmem:[#allocation71_spill] sm:$0xff] %v11225_v42  ;;  %15517 = vst [vmem:[#allocation80_spill] sm:$0xff] %v11239_v13  ;;  %v11244_v59 = vsub.f32 %v11214_v51, %v14150_v4  ;;  %v15522_v42 = vld [vmem:[#allocation185_spill] sm:$0xff]  ;;  %v14159_v1 = vand.u32 4294901760, %v11250_v38  ;;  %v14161_v23 = vand.u32 4294901760, %v11253_v49  ;;  %v11263_v4 = vld [vmem:[%s8472_s12 + $0x580] sm:$0xff] }
 0x35e   : > { %15520 = vst [vmem:[#allocation89_spill] sm:$0xff] %v11250_v38  ;;  %15521 = vst [vmem:[#allocation92_spill] sm:$0xff] %v11253_v49  ;;  %6885 = vmatprep.subr.bf16.mxu1 %v15522_v42  ;;  %v11259_v13 = vld [vmem:[%s8472_s12 + $0x798] sm:$0xff]  ;;  %v11273_v42 = vsub.f32 %v11247_v24, %v14157_v32  ;;  %v11287_v51 = vld [vmem:[%s8472_s12 + $0x780] sm:$0xff] }
 0x35f   : > { %15518 = vst [vmem:[#allocation86_spill] sm:$0xff] %v11244_v59  ;;  %15523 = vst [vmem:[#allocation98_spill] sm:$0xff] %v11259_v13  ;;  %v11266_v59 = vld [vmem:[%s8472_s12 + $0x590] sm:$0xff]  ;;  %v11278_v33 = vsub.f32 %v11250_v38, %v14159_v1  ;;  %v11283_v53 = vsub.f32 %v11253_v49, %v14161_v23  ;;  %v15531_v32 = vand.u32 4294901760, %v11259_v13  ;;  %v15537_v49 = vld [vmem:[#allocation194_spill] sm:$0xff] }
 0x360   : > { %15524 = vst [vmem:[#allocation95_spill] sm:$0xff] %v11263_v4  ;;  %15525 = vst [vmem:[#allocation101_spill] sm:$0xff] %v11266_v59  ;;  %v14166_v6 = vand.u32 4294901760, %v11266_v59  ;;  %v15533_v1 = vld [vmem:[#allocation188_spill] sm:$0xff] }
 0x361   : > { %15526 = vst [vmem:[#allocation104_spill] sm:$0xff] %v11273_v42  ;;  %15527 = vst [vmem:[#allocation110_spill] sm:$0xff] %v11278_v33  ;;  %v11295_v42 = vsub.f32 %v11259_v13, %v15531_v32  ;;  %v15534_v33 = vand.u32 4294901760, %v11263_v4  ;;  %v14169_v32 = vand.u32 4294901760, %v11287_v51  ;;  %v15538_v13 = vld [vmem:[#allocation191_spill] sm:$0xff]  ;;  %v11366_v24 = vld [vmem:[%s8472_s12 + $0x7b0] sm:$0xff] }
 0x362   : > { %15528 = vst [vmem:[#allocation107_spill] sm:$0xff] %v11283_v53  ;;  %15529 = vst [vmem:[#allocation113_spill] sm:$0xff] %v11287_v51  ;;  %v11306_v53 = vsub.f32 %v11266_v59, %v14166_v6  ;;  %6887 = vmatpush1.bf16.xpose.msra.mxu1 %v15538_v13  ;;  %v11323_v6 = vld [vmem:[%s8472_s12 + $0x5a8] sm:$0xff] }
 0x363   : > { %15532 = vst [vmem:[#allocation122_spill] sm:$0xff] %v11295_v42  ;;  %6503 = vmatpush1.bf16.xpose.msra.mxu0 %v15533_v1  ;;  %v11301_v23 = vsub.f32 %v11263_v4, %v15534_v33  ;;  %v14172_v42 = vand.u32 4294901760, %v11290_v10  ;;  %v11315_v33 = vsub.f32 %v11287_v51, %v14169_v32  ;;  %15541 = vst [vmem:[#allocation131_spill] sm:$0xff] %v11323_v6  ;;  %v14179_v13 = vand.u32 4294901760, %v11323_v6 }
 0x364   : > { %15536 = vst [vmem:[#allocation125_spill] sm:$0xff] %v11306_v53  ;;  %6505 = vmatprep.subr.bf16.mxu0 %v15537_v49  ;;  %v11326_v49 = vld [vmem:[%s8472_s12 + $0x5b8] sm:$0xff]  ;;  %v11329_v53 = vld [vmem:[%s8472_s12 + $0x7a8] sm:$0xff]  ;;  %15552 = vst [vmem:[#allocation164_spill] sm:$0xff] %v11366_v24 }
 0x365   : > { %15535 = vst [vmem:[#allocation119_spill] sm:$0xff] %v11301_v23  ;;  %15539 = vst [vmem:[#allocation128_spill] sm:$0xff] %v11315_v33  ;;  %v11320_v1 = vsub.f32 %v11290_v10, %v14172_v42  ;;  %v15544_v23 = vld [vmem:[#allocation197_spill] sm:$0xff]  ;;  %v14181_v32 = vand.u32 4294901760, %v11326_v49  ;;  %v14183_v51 = vand.u32 4294901760, %v11329_v53  ;;  %v11339_v42 = vld [vmem:[%s8472_s12 + $0x5a0] sm:$0xff] }
 0x366   : > { %15542 = vst [vmem:[#allocation137_spill] sm:$0xff] %v11326_v49  ;;  %15543 = vst [vmem:[#allocation140_spill] sm:$0xff] %v11329_v53  ;;  %6889 = vmatprep.subr.bf16.mxu1 %v15544_v23  ;;  %v11335_v33 = vld [vmem:[%s8472_s12 + $0x7b8] sm:$0xff]  ;;  %v11349_v23 = vsub.f32 %v11323_v6, %v14179_v13  ;;  %v11363_v10 = vld [vmem:[%s8472_s12 + $0x7a0] sm:$0xff] }
 0x367   : > { %15540 = vst [vmem:[#allocation134_spill] sm:$0xff] %v11320_v1  ;;  %15545 = vst [vmem:[#allocation146_spill] sm:$0xff] %v11335_v33  ;;  %v11342_v1 = vld [vmem:[%s8472_s12 + $0x5b0] sm:$0xff]  ;;  %v11354_v4 = vsub.f32 %v11326_v49, %v14181_v32  ;;  %v11359_v38 = vsub.f32 %v11329_v53, %v14183_v51  ;;  %v15553_v13 = vand.u32 4294901760, %v11335_v33  ;;  %v15559_v53 = vld [vmem:[#allocation206_spill] sm:$0xff] }
 0x368   : > { %15546 = vst [vmem:[#allocation143_spill] sm:$0xff] %v11339_v42  ;;  %15547 = vst [vmem:[#allocation149_spill] sm:$0xff] %v11342_v1  ;;  %v14188_v59 = vand.u32 4294901760, %v11342_v1  ;;  %v15555_v32 = vld [vmem:[#allocation200_spill] sm:$0xff] }
 0x369   : > { %15548 = vst [vmem:[#allocation152_spill] sm:$0xff] %v11349_v23  ;;  %15549 = vst [vmem:[#allocation158_spill] sm:$0xff] %v11354_v4  ;;  %v11371_v23 = vsub.f32 %v11335_v33, %v15553_v13  ;;  %v15556_v4 = vand.u32 4294901760, %v11339_v42  ;;  %v14191_v13 = vand.u32 4294901760, %v11363_v10  ;;  %v15560_v33 = vld [vmem:[#allocation203_spill] sm:$0xff]  ;;  %v11442_v6 = vld [vmem:[%s8472_s12 + $0x7d0] sm:$0xff] }
 0x36a   : > { %15550 = vst [vmem:[#allocation155_spill] sm:$0xff] %v11359_v38  ;;  %15551 = vst [vmem:[#allocation161_spill] sm:$0xff] %v11363_v10  ;;  %v11382_v38 = vsub.f32 %v11342_v1, %v14188_v59  ;;  %6891 = vmatpush1.bf16.xpose.msra.mxu1 %v15560_v33  ;;  %v11399_v59 = vld [vmem:[%s8472_s12 + $0x5c8] sm:$0xff] }
 0x36b   : > { %15554 = vst [vmem:[#allocation170_spill] sm:$0xff] %v11371_v23  ;;  %6507 = vmatpush1.bf16.xpose.msra.mxu0 %v15555_v32  ;;  %v11377_v51 = vsub.f32 %v11339_v42, %v15556_v4  ;;  %v14194_v23 = vand.u32 4294901760, %v11366_v24  ;;  %v11391_v4 = vsub.f32 %v11363_v10, %v14191_v13  ;;  %15563 = vst [vmem:[#allocation179_spill] sm:$0xff] %v11399_v59  ;;  %v14201_v33 = vand.u32 4294901760, %v11399_v59 }
 0x36c   : > { %15558 = vst [vmem:[#allocation173_spill] sm:$0xff] %v11382_v38  ;;  %6509 = vmatprep.subr.bf16.mxu0 %v15559_v53  ;;  %v11402_v53 = vld [vmem:[%s8472_s12 + $0x5d8] sm:$0xff]  ;;  %v11405_v38 = vld [vmem:[%s8472_s12 + $0x7c8] sm:$0xff]  ;;  %15574 = vst [vmem:[#allocation238_spill] sm:$0xff] %v11442_v6 }
 0x36d   : > { %15557 = vst [vmem:[#allocation167_spill] sm:$0xff] %v11377_v51  ;;  %15561 = vst [vmem:[#allocation176_spill] sm:$0xff] %v11391_v4  ;;  %v11396_v32 = vsub.f32 %v11366_v24, %v14194_v23  ;;  %v15566_v51 = vld [vmem:[#allocation209_spill] sm:$0xff]  ;;  %v14203_v13 = vand.u32 4294901760, %v11402_v53  ;;  %v14205_v10 = vand.u32 4294901760, %v11405_v38  ;;  %v11415_v23 = vld [vmem:[%s8472_s12 + $0x5c0] sm:$0xff] }
 0x36e   : > { %15564 = vst [vmem:[#allocation185_spill] sm:$0xff] %v11402_v53  ;;  %15565 = vst [vmem:[#allocation188_spill] sm:$0xff] %v11405_v38  ;;  %6893 = vmatprep.subr.bf16.mxu1 %v15566_v51  ;;  %v11411_v4 = vld [vmem:[%s8472_s12 + $0x7d8] sm:$0xff]  ;;  %v11425_v51 = vsub.f32 %v11399_v59, %v14201_v33  ;;  %v11439_v24 = vld [vmem:[%s8472_s12 + $0x7c0] sm:$0xff] }
 0x36f   : > { %15562 = vst [vmem:[#allocation182_spill] sm:$0xff] %v11396_v32  ;;  %15567 = vst [vmem:[#allocation194_spill] sm:$0xff] %v11411_v4  ;;  %v11418_v32 = vld [vmem:[%s8472_s12 + $0x5d0] sm:$0xff]  ;;  %v11430_v42 = vsub.f32 %v11402_v53, %v14203_v13  ;;  %v11435_v49 = vsub.f32 %v11405_v38, %v14205_v10  ;;  %v15575_v33 = vand.u32 4294901760, %v11411_v4  ;;  %v15581_v38 = vld [vmem:[#allocation218_spill] sm:$0xff] }
 0x370   : > { %15568 = vst [vmem:[#allocation191_spill] sm:$0xff] %v11415_v23  ;;  %15569 = vst [vmem:[#allocation197_spill] sm:$0xff] %v11418_v32  ;;  %v14210_v1 = vand.u32 4294901760, %v11418_v32  ;;  %v15577_v13 = vld [vmem:[#allocation212_spill] sm:$0xff] }
 0x371   : > { %15570 = vst [vmem:[#allocation200_spill] sm:$0xff] %v11425_v51  ;;  %15571 = vst [vmem:[#allocation206_spill] sm:$0xff] %v11430_v42  ;;  %v11447_v51 = vsub.f32 %v11411_v4, %v15575_v33  ;;  %v15578_v42 = vand.u32 4294901760, %v11415_v23  ;;  %v14213_v33 = vand.u32 4294901760, %v11439_v24  ;;  %v15582_v4 = vld [vmem:[#allocation215_spill] sm:$0xff] }
 0x372   : > { %15572 = vst [vmem:[#allocation203_spill] sm:$0xff] %v11435_v49  ;;  %15573 = vst [vmem:[#allocation209_spill] sm:$0xff] %v11439_v24  ;;  %v11458_v49 = vsub.f32 %v11418_v32, %v14210_v1  ;;  %6895 = vmatpush1.bf16.xpose.msra.mxu1 %v15582_v4  ;;  %v11475_v1 = vld [vmem:[%s8472_s12 + $0x5e8] sm:$0xff]  ;;  %v15589_v32 = vand.u32 4294901760, %v10335_v21  ;;  %v11524_v4 = vld [vmem:[%s8472_s12 + $0x7f0] sm:$0xff] }
 0x373   : > { %15576 = vst [vmem:[#allocation239_spill] sm:$0xff] %v11447_v51  ;;  %6511 = vmatpush1.bf16.xpose.msra.mxu0 %v15577_v13  ;;  %v11453_v10 = vsub.f32 %v11415_v23, %v15578_v42  ;;  %v14216_v51 = vand.u32 4294901760, %v11442_v6  ;;  %v11467_v42 = vsub.f32 %v11439_v24, %v14213_v33  ;;  %v15591_v33 = vand.u32 4294901760, %v11475_v1 }
 0x374   : > { %15580 = vst [vmem:[#allocation240_spill] sm:$0xff] %v11458_v49  ;;  %6513 = vmatprep.subr.bf16.mxu0 %v15581_v38  ;;  %v11478_v49 = vld [vmem:[%s8472_s12 + $0x5f8] sm:$0xff]  ;;  %v11481_v38 = vld [vmem:[%s8472_s12 + $0x7e8] sm:$0xff] }
 0x375   : > { %15579 = vst [vmem:[#allocation212_spill] sm:$0xff] %v11453_v10  ;;  %15583 = vst [vmem:[#allocation218_spill] sm:$0xff] %v11467_v42  ;;  %v11472_v13 = vsub.f32 %v11442_v6, %v14216_v51  ;;  %v15587_v10 = vld [vmem:[#allocation221_spill] sm:$0xff]  ;;  %v11491_v51 = vld [vmem:[%s8472_s12 + $0x5e0] sm:$0xff]  ;;  %v15588_v6 = vand.u32 4294901760, %v10332_v8  ;;  %v11507_v53 = vsub.f32 %v11475_v1, %v15591_v33  ;;  %v15593_v24 = vand.u32 4294901760, %v11478_v49 }
 0x376   : > { %15585 = vst [vmem:[#allocation241_spill] sm:$0xff] %v11478_v49  ;;  %15586 = vst [vmem:[#allocation242_spill] sm:$0xff] %v11481_v38  ;;  %6897 = vmatprep.subr.bf16.mxu1 %v15587_v10  ;;  %v11487_v42 = vld [vmem:[%s8472_s12 + $0x7f8] sm:$0xff]  ;;  %v15595_v8 = vand.u32 4294901760, %v11481_v38 }
 0x377   : > { %15584 = vst [vmem:[#allocation215_spill] sm:$0xff] %v11472_v13  ;;  %v11494_v13 = vld [vmem:[%s8472_s12 + $0x5f0] sm:$0xff]  ;;  %v11500_v23 = vpack.c.bf16 %v15589_v32, %v15588_v6  ;;  %v14228_v10 = vand.u32 4294901760, %v11487_v42  ;;  %15592 = vst [vmem:[#allocation243_spill] sm:$0xff] %v11507_v53  ;;  %v11512_v59 = vsub.f32 %v11478_v49, %v15593_v24  ;;  %v11521_v32 = vld [vmem:[%s8472_s12 + $0x7e0] sm:$0xff]  ;;  %v15599_v24 = vand.u32 4294901760, %v10338_v52 }
 0x378   : > { %v11517_v21 = vsub.f32 %v11481_v38, %v15595_v8  ;;  %v15598_v53 = vld [vmem:[#allocation225_spill] sm:$0xff]  ;;  %v15602_v8 = vand.u32 4294901760, %v11491_v51  ;;  %v14233_v52 = vand.u32 4294901760, %v11524_v4  ;;  %s6077_s12 = sshll.u32 %s203_s10, 4 }
 0x379   : > { %15590 = vst [vmem:[#allocation221_spill] sm:$0xff] %v11500_v23  ;;  %15594 = vst [vmem:[#allocation244_spill] sm:$0xff] %v11512_v59  ;;  %v11529_v33 = vsub.f32 %v11487_v42, %v14228_v10  ;;  %v15600_v59 = vand.u32 4294901760, %v10341_v37  ;;  %v15605_v10 = vld [vmem:[#allocation228_spill] sm:$0xff]  ;;  %s13018_s23 = scalar_lea.hbm %s13400_s4, %s6077_s12 }
 0x37a   : > { %15596 = vst [vmem:[#allocation245_spill] sm:$0xff] %v11517_v21  ;;  %v11541_v6 = vsub.f32 %v11491_v51, %v15602_v8  ;;  %v15603_v21 = vand.u32 4294901760, %v11494_v13  ;;  %6899 = vmatpush1.bf16.xpose.msra.mxu1 %v15605_v10  ;;  %v15610_v10 = vand.u32 4294901760, %v10401_v11  ;;  %v15619_v11 = vld [vmem:[#allocation236_spill] sm:$0xff]  ;;  %s7922_s25 = scalar_lea.hbm %s13018_s23, 32  ;;  %p7928_p4 = scmp.lt.u32.totalorder %s13018_s23, %s13400_s4 }
 0x37b   : > { %15597 = vst [vmem:[#allocation246_spill] sm:$0xff] %v11529_v33  ;;  %6515 = vmatpush1.bf16.xpose.msra.mxu0 %v15598_v53  ;;  %v11536_v49 = vpack.c.bf16 %v15600_v59, %v15599_v24  ;;  %v14232_v53 = vand.u32 4294901760, %v11521_v32  ;;  %v11560_v59 = vsub.f32 %v11524_v4, %v14233_v52  ;;  %v15608_v24 = vand.u32 4294901760, %v10347_v62  ;;  %p7923_p10 = scmp.ne.s32.totalorder %s13018_s23, %s7922_s25  ;;  %p7929_p7 = scmp.lt.u32.totalorder %s13030_s9, %s7922_s25 }
 0x37c   : > { %v11546_v38 = vsub.f32 %v11494_v13, %v15603_v21  ;;  %6901 = vmatprep.subr.bf16.mxu0 %v11500_v23  ;;  %v15607_v21 = vand.u32 4294901760, %v10344_v14  ;;  %v15611_v23 = vand.u32 4294901760, %v10404_v39  ;;  %v15614_v52 = vand.u32 4294901760, %v10354_v47  ;;  %p7931_p11 = scmp.lt.u32.totalorder %s7922_s25, %s13018_s23 }
 0x37d   : > { %15601 = vst [vmem:[#allocation225_spill] sm:$0xff] %v11536_v49  ;;  %v11555_v37 = vsub.f32 %v11521_v32, %v14232_v53  ;;  %15606 = vst [vmem:[#allocation228_spill] sm:$0xff] %v11560_v59  ;;  %7285 = vmatprep.subr.bf16.mxu1 %v11536_v49  ;;  %v15613_v53 = vand.u32 4294901760, %v10351_v35  ;;  %v15616_v14 = vand.u32 4294901760, %v10407_v28  ;;  %v15617_v62 = vand.u32 4294901760, %v10423_v12  ;;  %p7925_p12 = pnand %p7924_p5, %p7923_p10  ;;  %p7930_p8 = por %p7929_p7, %p7928_p4 }
 0x37e   : > { %15604 = vst [vmem:[#allocation247_spill] sm:$0xff] %v11546_v38  ;;  %v11567_v8 = vpack.c.bf16 %v15608_v24, %v15607_v21  ;;  %v11573_v38 = vpack.c.bf16 %v15611_v23, %v15610_v10  ;;  %v15620_v35 = vand.u32 4294901760, %v10426_v17  ;;  %v15621_v47 = vand.u32 4294901760, %v10429_v46 }
 0x37f   : > { %v11580_v59 = vpack.c.bf16 %v15614_v52, %v15613_v53  ;;  %v11587_v21 = vpack.c.bf16 %v15617_v62, %v15616_v14  ;;  %v15623_v28 = vand.u32 4294901760, %v10487_v57  ;;  %v15624_v12 = vand.u32 4294901760, %v10490_v15  ;;  %p7926_p2 = pneg %p7925_p12  ;;  %p7932_p6 = por %p7931_p11, %p7930_p8 }
 0x380   : > { %15609 = vst [vmem:[#allocation248_spill] sm:$0xff] %v11567_v8  ;;  %15612 = vst [vmem:[#allocation249_spill] sm:$0xff] %v11573_v38  ;;  %v11599_v39 = vpack.c.bf16 %v15621_v47, %v15620_v35  ;;  %v15626_v53 = vand.u32 4294901760, %v10446_v7  ;;  %v15627_v52 = vand.u32 4294901760, %v10449_v22  ;;  %v15629_v17 = vand.u32 4294901760, %v10493_v9 }
 0x381   : > { %15615 = vst [vmem:[#allocation250_spill] sm:$0xff] %v11580_v59  ;;  %15618 = vst [vmem:[#allocation251_spill] sm:$0xff] %v11587_v21  ;;  %3157 = vmatmul.mubr.f32.vlgmr.msra.gmra.mrb[0].mxu1 %v15308_v50  ;;  %v11605_v23 = vpack.c.bf16 %v15624_v12, %v15623_v28  ;;  %v15630_v46 = vand.u32 4294901760, %v10499_v16  ;;  %v15632_v7 = vand.u32 4294901760, %v10503_v44  ;;  %v15633_v22 = vand.u32 4294901760, %v10506_v31  ;;  %p7933_p13 = pnand %p7932_p6, %p7926_p2 }
 0x382   : > { %1873 = vmatmul.mubr.f32.vlgmr.msra.gmra.mrb[0].mxu0 %v15308_v50  ;;  %7287 = vmatpush1.bf16.xpose.msra.mxu1 %v11580_v59  ;;  %15622 = vst [vmem:[#allocation236_spill] sm:$0xff] %v11599_v39  ;;  %v11611_v24 = vpack.c.bf16 %v15627_v52, %v15626_v53  ;;  %v15635_v15 = vand.u32 4294901760, %v10563_v2  ;;  %v15636_v9 = vand.u32 4294901760, %v10566_v54  ;;  %v15638_v16 = vand.u32 4294901760, %v10527_v20 }
 0x383   : > { %6903 = vmatpush1.bf16.xpose.msra.mxu0 %v11567_v8  ;;  %3296 = vmatprep.mubr.f32.mxu0 %v15619_v11  ;;  %15625 = vst [vmem:[#allocation252_spill] sm:$0xff] %v11605_v23  ;;  %v11618_v10 = vpack.c.bf16 %v15630_v46, %v15629_v17  ;;  %v11627_v57 = vpack.c.bf16 %v15633_v22, %v15632_v7  ;;  %v15639_v62 = vand.u32 4294901760, %v10530_v18  ;;  %v15641_v44 = vand.u32 4294901760, %v10569_v48 }
 0x384   : > { %6905 = vmatprep.subr.bf16.mxu0 %v11573_v38  ;;  %4580 = vmatprep.mubr.f32.mxu1 %v15619_v11  ;;  %15628 = vst [vmem:[#allocation253_spill] sm:$0xff] %v11611_v24  ;;  %v11633_v14 = vpack.c.bf16 %v15636_v9, %v15635_v15  ;;  %v15642_v31 = vand.u32 4294901760, %v10575_v56  ;;  %v15644_v20 = vand.u32 4294901760, %v10579_v26  ;;  %v15645_v18 = vand.u32 4294901760, %v10582_v29  ;;  %v15676_v9 = vld [vmem:[#allocation40_spill] sm:$0xff] }
 0x385   : > { %7289 = vmatprep.subr.bf16.mxu1 %v11587_v21  ;;  %15631 = vst [vmem:[#allocation254_spill] sm:$0xff] %v11618_v10  ;;  %15634 = vst [vmem:[#allocation255_spill] sm:$0xff] %v11627_v57  ;;  %v11639_v11 = vpack.c.bf16 %v15639_v62, %v15638_v16  ;;  %v15647_v54 = vand.u32 4294901760, %v10639_v25  ;;  %v15648_v48 = vand.u32 4294901760, %v10642_v3  ;;  %v15650_v56 = vand.u32 4294901760, %v10603_v58 }
 0x386   : > { %15637 = vst [vmem:[#allocation256_spill] sm:$0xff] %v11633_v14  ;;  %v11646_v35 = vpack.c.bf16 %v15642_v31, %v15641_v44  ;;  %v11655_v2 = vpack.c.bf16 %v15645_v18, %v15644_v20  ;;  %v15651_v28 = vand.u32 4294901760, %v10606_v40  ;;  %v15653_v26 = vand.u32 4294901760, %v10645_v41  ;;  %v15679_v44 = vld [vmem:[#allocation52_spill] sm:$0xff]  ;;  %v15686_v18 = vld [vmem:[#allocation54_spill] sm:$0xff] }
 0x387   : > { %15640 = vst [vmem:[#allocation257_spill] sm:$0xff] %v11639_v11  ;;  %v11661_v47 = vpack.c.bf16 %v15648_v48, %v15647_v54  ;;  %v15654_v29 = vand.u32 4294901760, %v10651_v61  ;;  %v15656_v25 = vand.u32 4294901760, %v10655_v60  ;;  %v15657_v58 = vand.u32 4294901760, %v10658_v36  ;;  %v15681_v31 = vld [vmem:[#allocation48_spill] sm:$0xff] }
 0x388   : > { %15643 = vst [vmem:[#allocation258_spill] sm:$0xff] %v11646_v35  ;;  %15646 = vst [vmem:[#allocation259_spill] sm:$0xff] %v11655_v2  ;;  %v11667_v12 = vpack.c.bf16 %v15651_v28, %v15650_v56  ;;  %v15659_v3 = vand.u32 4294901760, %v10715_v27  ;;  %v15660_v41 = vand.u32 4294901760, %v10718_v63  ;;  %v15662_v61 = vand.u32 4294901760, %v10679_v0  ;;  %v15689_v56 = vld [vmem:[#allocation70_spill] sm:$0xff] }
 0x389   : > { %15649 = vst [vmem:[#allocation260_spill] sm:$0xff] %v11661_v47  ;;  %v11674_v53 = vpack.c.bf16 %v15654_v29, %v15653_v26  ;;  %v11683_v40 = vpack.c.bf16 %v15657_v58, %v15656_v25  ;;  %v15663_v17 = vand.u32 4294901760, %v10682_v45  ;;  %v15665_v60 = vand.u32 4294901760, %v10721_v43  ;;  %v15691_v26 = vld [vmem:[#allocation75_spill] sm:$0xff] }
 0x38a   : > { %7291 = vmatpush1.bf16.xpose.msra.mxu1 %v11611_v24  ;;  %15652 = vst [vmem:[#allocation261_spill] sm:$0xff] %v11667_v12  ;;  %v11689_v52 = vpack.c.bf16 %v15660_v41, %v15659_v3  ;;  %v15666_v36 = vand.u32 4294901760, %v10727_v34  ;;  %v15668_v27 = vand.u32 4294901760, %v10731_v19  ;;  %v15669_v45 = vand.u32 4294901760, %v10734_v5  ;;  %v15674_v34 = vld [vmem:[#allocation39_spill] sm:$0xff]  ;;  %v15696_v41 = vld [vmem:[#allocation64_spill] sm:$0xff] }
 0x38b   : > { %6907 = vmatpush1.bf16.xpose.msra.mxu0 %v11599_v39  ;;  %7293 = vmatprep.subr.bf16.mxu1 %v11618_v10  ;;  %15655 = vst [vmem:[#allocation262_spill] sm:$0xff] %v11674_v53  ;;  %15658 = vst [vmem:[#allocation263_spill] sm:$0xff] %v11683_v40  ;;  %v11695_v46 = vpack.c.bf16 %v15663_v17, %v15662_v61  ;;  %v15671_v63 = vand.u32 4294901760, %v10791_v55  ;;  %v15672_v43 = vand.u32 4294901760, %v10794_v30  ;;  %v15675_v15 = vand.u32 4294901760, %v15674_v34  ;;  %v15684_v55 = vld [vmem:[#allocation49_spill] sm:$0xff] }
 0x38c   : > { %6909 = vmatprep.subr.bf16.mxu0 %v11605_v23  ;;  %15661 = vst [vmem:[#allocation264_spill] sm:$0xff] %v11689_v52  ;;  %v11702_v7 = vpack.c.bf16 %v15666_v36, %v15665_v60  ;;  %v11711_v0 = vpack.c.bf16 %v15669_v45, %v15668_v27  ;;  %v15677_v16 = vand.u32 4294901760, %v15676_v9  ;;  %v15680_v19 = vand.u32 4294901760, %v15679_v44  ;;  %v15694_v58 = vld [vmem:[#allocation63_spill] sm:$0xff]  ;;  %v15699_v60 = vld [vmem:[#allocation76_spill] sm:$0xff]  ;;  %v15709_v44 = vld [vmem:[#allocation94_spill] sm:$0xff] }
 0x38d   : > { %15664 = vst [vmem:[#allocation265_spill] sm:$0xff] %v11695_v46  ;;  %v11717_v22 = vpack.c.bf16 %v15672_v43, %v15671_v63  ;;  %v15682_v5 = vand.u32 4294901760, %v15681_v31  ;;  %v15685_v30 = vand.u32 4294901760, %v15684_v55  ;;  %v15687_v54 = vand.u32 4294901760, %v15686_v18  ;;  %v15701_v27 = vld [vmem:[#allocation72_spill] sm:$0xff]  ;;  %v15704_v43 = vld [vmem:[#allocation73_spill] sm:$0xff] }
 0x38e   : > { %15667 = vst [vmem:[#allocation266_spill] sm:$0xff] %v11702_v7  ;;  %15670 = vst [vmem:[#allocation267_spill] sm:$0xff] %v11711_v0  ;;  %v11723_v62 = vpack.c.bf16 %v15677_v16, %v15675_v15  ;;  %v15690_v28 = vand.u32 4294901760, %v15689_v56  ;;  %v15692_v29 = vand.u32 4294901760, %v15691_v26  ;;  %v15695_v3 = vand.u32 4294901760, %v15694_v58  ;;  %v15706_v15 = vld [vmem:[#allocation78_spill] sm:$0xff] }
 0x38f   : > { %15673 = vst [vmem:[#allocation268_spill] sm:$0xff] %v11717_v22  ;;  %v11730_v20 = vpack.c.bf16 %v15682_v5, %v15680_v19  ;;  %v11739_v48 = vpack.c.bf16 %v15687_v54, %v15685_v30  ;;  %v15697_v61 = vand.u32 4294901760, %v15696_v41  ;;  %v15700_v36 = vand.u32 4294901760, %v15699_v60  ;;  %v15711_v31 = vld [vmem:[#allocation99_spill] sm:$0xff]  ;;  %v15716_v54 = vld [vmem:[#allocation88_spill] sm:$0xff]  ;;  %v15926_v10 = vld [vmem:[#allocation133_spill] sm:$0xff] }
 0x390   : > { %15678 = vst [vmem:[#allocation39_spill] sm:$0xff] %v11723_v62  ;;  %v11745_v25 = vpack.c.bf16 %v15692_v29, %v15690_v28  ;;  %v15702_v45 = vand.u32 4294901760, %v15701_v27  ;;  %v15705_v34 = vand.u32 4294901760, %v15704_v43  ;;  %v15707_v9 = vand.u32 4294901760, %v15706_v15  ;;  %v15714_v30 = vld [vmem:[#allocation87_spill] sm:$0xff]  ;;  %v15719_v26 = vld [vmem:[#allocation100_spill] sm:$0xff] }
 0x391   : > { %15683 = vst [vmem:[#allocation40_spill] sm:$0xff] %v11730_v20  ;;  %15688 = vst [vmem:[#allocation52_spill] sm:$0xff] %v11739_v48  ;;  %v11751_v17 = vpack.c.bf16 %v15697_v61, %v15695_v3  ;;  %v15710_v19 = vand.u32 4294901760, %v15709_v44  ;;  %v15712_v5 = vand.u32 4294901760, %v15711_v31  ;;  %v15715_v18 = vand.u32 4294901760, %v15714_v30  ;;  %v15721_v58 = vld [vmem:[#allocation96_spill] sm:$0xff] }
 0x392   : > { %7295 = vmatpush1.bf16.xpose.msra.mxu1 %v11639_v11  ;;  %15693 = vst [vmem:[#allocation48_spill] sm:$0xff] %v11745_v25  ;;  %v11758_v63 = vpack.c.bf16 %v15702_v45, %v15700_v36  ;;  %v11767_v16 = vpack.c.bf16 %v15707_v9, %v15705_v34  ;;  %v15717_v56 = vand.u32 4294901760, %v15716_v54  ;;  %v15720_v29 = vand.u32 4294901760, %v15719_v26  ;;  %v15724_v61 = vld [vmem:[#allocation97_spill] sm:$0xff]  ;;  %v15726_v36 = vld [vmem:[#allocation102_spill] sm:$0xff]  ;;  %v15731_v15 = vld [vmem:[#allocation148_spill] sm:$0xff] }
 0x393   : > { %6911 = vmatpush1.bf16.xpose.msra.mxu0 %v11627_v57  ;;  %7297 = vmatprep.subr.bf16.mxu1 %v11646_v35  ;;  %15698 = vst [vmem:[#allocation49_spill] sm:$0xff] %v11751_v17  ;;  %v11773_v55 = vpack.c.bf16 %v15712_v5, %v15710_v19  ;;  %v15722_v3 = vand.u32 4294901760, %v15721_v58  ;;  %v15725_v60 = vand.u32 4294901760, %v15724_v61  ;;  %v15727_v27 = vand.u32 4294901760, %v15726_v36  ;;  %v15729_v43 = vld [vmem:[#allocation118_spill] sm:$0xff]  ;;  %v15734_v19 = vld [vmem:[#allocation111_spill] sm:$0xff] }
 0x394   : > { %6913 = vmatprep.subr.bf16.mxu0 %v11633_v14  ;;  %15703 = vst [vmem:[#allocation54_spill] sm:$0xff] %v11758_v63  ;;  %15708 = vst [vmem:[#allocation70_spill] sm:$0xff] %v11767_v16  ;;  %v11779_v28 = vpack.c.bf16 %v15717_v56, %v15715_v18  ;;  %v15730_v34 = vand.u32 4294901760, %v15729_v43  ;;  %v15732_v9 = vand.u32 4294901760, %v15731_v15  ;;  %v15735_v31 = vand.u32 4294901760, %v15734_v19  ;;  %v15736_v5 = vld [vmem:[#allocation112_spill] sm:$0xff] }
 0x395   : > { %15713 = vst [vmem:[#allocation75_spill] sm:$0xff] %v11773_v55  ;;  %v11786_v41 = vpack.c.bf16 %v15722_v3, %v15720_v29  ;;  %v11795_v45 = vpack.c.bf16 %v15727_v27, %v15725_v60  ;;  %v15737_v30 = vand.u32 4294901760, %v15736_v5  ;;  %v15739_v54 = vld [vmem:[#allocation145_spill] sm:$0xff]  ;;  %v15741_v26 = vld [vmem:[#allocation151_spill] sm:$0xff]  ;;  %v15744_v3 = vld [vmem:[#allocation154_spill] sm:$0xff] }
 0x396   : > { %15718 = vst [vmem:[#allocation63_spill] sm:$0xff] %v11779_v28  ;;  %v11801_v44 = vpack.c.bf16 %v15732_v9, %v15730_v34  ;;  %v15740_v56 = vand.u32 4294901760, %v15739_v54  ;;  %v15742_v29 = vand.u32 4294901760, %v15741_v26  ;;  %v15745_v61 = vand.u32 4294901760, %v15744_v3  ;;  %v15746_v60 = vld [vmem:[#allocation160_spill] sm:$0xff]  ;;  %v15751_v15 = vld [vmem:[#allocation205_spill] sm:$0xff] }
 0x397   : > { %15723 = vst [vmem:[#allocation64_spill] sm:$0xff] %v11786_v41  ;;  %15728 = vst [vmem:[#allocation76_spill] sm:$0xff] %v11795_v45  ;;  %v11807_v18 = vpack.c.bf16 %v15737_v30, %v15735_v31  ;;  %v15747_v36 = vand.u32 4294901760, %v15746_v60  ;;  %v15749_v43 = vld [vmem:[#allocation204_spill] sm:$0xff]  ;;  %v15752_v9 = vand.u32 4294901760, %v15751_v15  ;;  %v15754_v31 = vld [vmem:[#allocation165_spill] sm:$0xff] }
 0x398   : > { %15733 = vst [vmem:[#allocation72_spill] sm:$0xff] %v11801_v44  ;;  %v11814_v58 = vpack.c.bf16 %v15742_v29, %v15740_v56  ;;  %v15750_v34 = vand.u32 4294901760, %v15749_v43  ;;  %v15755_v5 = vand.u32 4294901760, %v15754_v31  ;;  %v15756_v30 = vld [vmem:[#allocation166_spill] sm:$0xff]  ;;  %v15761_v3 = vld [vmem:[#allocation211_spill] sm:$0xff]  ;;  %v15912_v35 = vld [vmem:[#allocation121_spill] sm:$0xff] }
 0x399   : > { %15738 = vst [vmem:[#allocation73_spill] sm:$0xff] %v11807_v18  ;;  %v11823_v27 = vpack.c.bf16 %v15747_v36, %v15745_v61  ;;  %v15757_v54 = vand.u32 4294901760, %v15756_v30  ;;  %v15759_v26 = vld [vmem:[#allocation210_spill] sm:$0xff]  ;;  %v15762_v60 = vand.u32 4294901760, %v15761_v3  ;;  %v15764_v36 = vld [vmem:[#allocation213_spill] sm:$0xff]  ;;  %v15917_v11 = vld [vmem:[#allocation127_spill] sm:$0xff] }
 0x39a   : > { %7299 = vmatpush1.bf16.xpose.msra.mxu1 %v11667_v12  ;;  %15743 = vst [vmem:[#allocation78_spill] sm:$0xff] %v11814_v58  ;;  %v11829_v19 = vpack.c.bf16 %v15752_v9, %v15750_v34  ;;  %v15760_v29 = vand.u32 4294901760, %v15759_v26  ;;  %v15765_v43 = vand.u32 4294901760, %v15764_v36  ;;  %v15766_v34 = vld [vmem:[#allocation214_spill] sm:$0xff]  ;;  %v15927_v24 = vld [vmem:[#allocation135_spill] sm:$0xff]  ;;  %v15928_v39 = vld [vmem:[#allocation136_spill] sm:$0xff] }
 0x39b   : > { %6915 = vmatpush1.bf16.xpose.msra.mxu0 %v11655_v2  ;;  %7301 = vmatprep.subr.bf16.mxu1 %v11674_v53  ;;  %15748 = vst [vmem:[#allocation94_spill] sm:$0xff] %v11823_v27  ;;  %v11835_v56 = vpack.c.bf16 %v15757_v54, %v15755_v5  ;;  %v15767_v15 = vand.u32 4294901760, %v15766_v34  ;;  %v15769_v31 = vld [vmem:[#allocation38_spill] sm:$0xff] }
 0x39c   : > { %6917 = vmatprep.subr.bf16.mxu0 %v11661_v47  ;;  %15753 = vst [vmem:[#allocation99_spill] sm:$0xff] %v11829_v19  ;;  %v11842_v61 = vpack.c.bf16 %v15762_v60, %v15760_v29  ;;  %v15770_v5 = vand.u32 4294901760, %v15769_v31  ;;  %v15771_v30 = vld [vmem:[#allocation42_spill] sm:$0xff]  ;;  %v15774_v29 = vld [vmem:[#allocation217_spill] sm:$0xff] }
 0x39d   : > { %15758 = vst [vmem:[#allocation87_spill] sm:$0xff] %v11835_v56  ;;  %v11851_v9 = vpack.c.bf16 %v15767_v15, %v15765_v43  ;;  %v15772_v54 = vand.u32 4294901760, %v15771_v30  ;;  %v15775_v3 = vand.u32 4294901760, %v15774_v29  ;;  %v15776_v60 = vld [vmem:[#allocation222_spill] sm:$0xff]  ;;  %v15784_v15 = vld [vmem:[#allocation47_spill] sm:$0xff] }
 0x39e   : > { %15763 = vst [vmem:[#allocation88_spill] sm:$0xff] %v11842_v61  ;;  %v15785_v31 = vand.u32 4294901760, %v15784_v15  ;;  %v15924_v57 = vld [vmem:[#allocation130_spill] sm:$0xff] }
 0x39f   : > { %15768 = vst [vmem:[#allocation100_spill] sm:$0xff] %v11851_v9  ;;  %v11857_v26 = vpack.c.bf16 %v15772_v54, %v15770_v5  ;;  %v15786_v5 = vld [vmem:[#allocation53_spill] sm:$0xff]  ;;  %v15789_v54 = vld [vmem:[#allocation83_spill] sm:$0xff] }
 0x3a0   : > { %v15787_v30 = vand.u32 4294901760, %v15786_v5  ;;  %v15790_v29 = vand.u32 4294901760, %v15789_v54 }
 0x3a1   : > { %15773 = vst [vmem:[#allocation96_spill] sm:$0xff] %v11857_v26 }
 0x3a2   : > { %7303 = vmatpush1.bf16.xpose.msra.mxu1 %v11695_v46  ;;  %v15898_v46 = vld [vmem:[#allocation195_spill] sm:$0xff] }
 0x3a3   : > { %6919 = vmatpush1.bf16.xpose.msra.mxu0 %v11683_v40  ;;  %7305 = vmatprep.subr.bf16.mxu1 %v11702_v7  ;;  %v15909_v40 = vld [vmem:[#allocation199_spill] sm:$0xff] }
 0x3a4   : > { %6921 = vmatprep.subr.bf16.mxu0 %v11689_v52  ;;  %v15899_v52 = vld [vmem:[#allocation196_spill] sm:$0xff]  ;;  %v14342_v53 = vand.u32 4294901760, %v15909_v40 }
 0x3aa   : > { %7307 = vmatpush1.bf16.xpose.msra.mxu1 %v11723_v62  ;;  %v15896_v62 = vld [vmem:[#allocation139_spill] sm:$0xff] }
 0x3ab   : > { %6923 = vmatpush1.bf16.xpose.msra.mxu0 %v11711_v0  ;;  %7309 = vmatprep.subr.bf16.mxu1 %v11730_v20  ;;  %v15897_v0 = vld [vmem:[#allocation192_spill] sm:$0xff] }
 0x3ac   : > { %6925 = vmatprep.subr.bf16.mxu0 %v11717_v22 }
 0x3b2   : > { %7311 = vmatpush1.bf16.xpose.msra.mxu1 %v11751_v17 }
 0x3b3   : > { %6927 = vmatpush1.bf16.xpose.msra.mxu0 %v11739_v48  ;;  %7313 = vmatprep.subr.bf16.mxu1 %v11758_v63  ;;  %v15882_v63 = vld [vmem:[#allocation187_spill] sm:$0xff] }
 0x3b4   : > { %6929 = vmatprep.subr.bf16.mxu0 %v11745_v25 }
 0x3ba   : > { %7315 = vmatpush1.bf16.xpose.msra.mxu1 %v11779_v28  ;;  %v15873_v28 = vld [vmem:[#allocation184_spill] sm:$0xff] }
 0x3bb   : > { %6931 = vmatpush1.bf16.xpose.msra.mxu0 %v11767_v16  ;;  %7317 = vmatprep.subr.bf16.mxu1 %v11786_v41  ;;  %v15875_v16 = vld [vmem:[#allocation138_spill] sm:$0xff] }
 0x3bc   : > { %6933 = vmatprep.subr.bf16.mxu0 %v11773_v55  ;;  %v15878_v55 = vand.u32 4294901760, %v11491_v51  ;;  %v15886_v51 = vand.u32 4294901760, %v11524_v4  ;;  %v15891_v4 = vand.u32 4294901760, %v15882_v63 }
 0x3c2   : > { %7319 = vmatpush1.bf16.xpose.msra.mxu1 %v11807_v18  ;;  %v15860_v18 = vld [vmem:[#allocation209_spill] sm:$0xff] }
 0x3c3   : > { %6935 = vmatpush1.bf16.xpose.msra.mxu0 %v11795_v45  ;;  %7321 = vmatprep.subr.bf16.mxu1 %v11814_v58 }
 0x3c4   : > { %6937 = vmatprep.subr.bf16.mxu0 %v11801_v44 }
 0x3ca   : > { %7323 = vmatpush1.bf16.xpose.msra.mxu1 %v11835_v56  ;;  %v15781_v56 = vld [vmem:[#allocation51_spill] sm:$0xff] }
 0x3cb   : > { %6939 = vmatpush1.bf16.xpose.msra.mxu0 %v11823_v27  ;;  %7325 = vmatprep.subr.bf16.mxu1 %v11842_v61  ;;  %v15779_v61 = vld [vmem:[#allocation44_spill] sm:$0xff]  ;;  %v15782_v34 = vand.u32 4294901760, %v15781_v56  ;;  %v15794_v56 = vld [vmem:[#allocation65_spill] sm:$0xff] }
 0x3cc   : > { %6941 = vmatprep.subr.bf16.mxu0 %v11829_v19  ;;  %v15777_v19 = vand.u32 4294901760, %v15776_v60  ;;  %v15780_v36 = vand.u32 4294901760, %v15779_v61 }
 0x3ce   : > { %v11863_v27 = vpack.c.bf16 %v15777_v19, %v15775_v3  ;;  %v11870_v43 = vpack.c.bf16 %v15782_v34, %v15780_v36  ;;  %v11879_v19 = vpack.c.bf16 %v15787_v30, %v15785_v31  ;;  %v15791_v3 = vld [vmem:[#allocation89_spill] sm:$0xff]  ;;  %v15795_v36 = vand.u32 4294901760, %v15794_v56  ;;  %v15796_v34 = vld [vmem:[#allocation68_spill] sm:$0xff]  ;;  %v15804_v30 = vld [vmem:[#allocation95_spill] sm:$0xff] }
 0x3cf   : > { %v15792_v61 = vand.u32 4294901760, %v15791_v3  ;;  %v15805_v54 = vand.u32 4294901760, %v15804_v30 }
 0x3d0   : > { %15778 = vst [vmem:[#allocation97_spill] sm:$0xff] %v11863_v27  ;;  %15783 = vst [vmem:[#allocation102_spill] sm:$0xff] %v11870_v43 }
 0x3d1   : > { %15788 = vst [vmem:[#allocation118_spill] sm:$0xff] %v11879_v19  ;;  %v11885_v60 = vpack.c.bf16 %v15792_v61, %v15790_v29  ;;  %v15806_v29 = vld [vmem:[#allocation101_spill] sm:$0xff]  ;;  %v15809_v61 = vld [vmem:[#allocation131_spill] sm:$0xff] }
 0x3d2   : > { %7327 = vmatpush1.bf16.xpose.msra.mxu1 %v11863_v27  ;;  %v15801_v27 = vld [vmem:[#allocation98_spill] sm:$0xff]  ;;  %v15807_v3 = vand.u32 4294901760, %v15806_v29  ;;  %v15810_v56 = vand.u32 4294901760, %v15809_v61 }
 0x3d3   : > { %6943 = vmatpush1.bf16.xpose.msra.mxu0 %v11851_v9  ;;  %7329 = vmatprep.subr.bf16.mxu1 %v11870_v43  ;;  %15793 = vst [vmem:[#allocation148_spill] sm:$0xff] %v11885_v60  ;;  %v15799_v43 = vld [vmem:[#allocation92_spill] sm:$0xff]  ;;  %v15802_v5 = vand.u32 4294901760, %v15801_v27  ;;  %v15814_v27 = vld [vmem:[#allocation113_spill] sm:$0xff] }
 0x3d4   : > { %6945 = vmatprep.subr.bf16.mxu0 %v11857_v26  ;;  %v15797_v26 = vand.u32 4294901760, %v15796_v34  ;;  %v15800_v15 = vand.u32 4294901760, %v15799_v43 }
 0x3d6   : > { %v11891_v9 = vpack.c.bf16 %v15797_v26, %v15795_v36  ;;  %v11898_v31 = vpack.c.bf16 %v15802_v5, %v15800_v15  ;;  %v11907_v26 = vpack.c.bf16 %v15807_v3, %v15805_v54  ;;  %v15811_v36 = vld [vmem:[#allocation137_spill] sm:$0xff]  ;;  %v15815_v15 = vand.u32 4294901760, %v15814_v27  ;;  %v15816_v5 = vld [vmem:[#allocation116_spill] sm:$0xff]  ;;  %v15824_v3 = vld [vmem:[#allocation143_spill] sm:$0xff] }
 0x3d7   : > { %v15812_v43 = vand.u32 4294901760, %v15811_v36  ;;  %v15825_v61 = vand.u32 4294901760, %v15824_v3 }
 0x3d8   : > { %15798 = vst [vmem:[#allocation111_spill] sm:$0xff] %v11891_v9  ;;  %15803 = vst [vmem:[#allocation112_spill] sm:$0xff] %v11898_v31 }
 0x3d9   : > { %15808 = vst [vmem:[#allocation145_spill] sm:$0xff] %v11907_v26  ;;  %v11913_v34 = vpack.c.bf16 %v15812_v43, %v15810_v56  ;;  %v15826_v56 = vld [vmem:[#allocation149_spill] sm:$0xff]  ;;  %v15829_v43 = vld [vmem:[#allocation179_spill] sm:$0xff] }
 0x3da   : > { %7331 = vmatpush1.bf16.xpose.msra.mxu1 %v11891_v9  ;;  %v15821_v9 = vld [vmem:[#allocation146_spill] sm:$0xff]  ;;  %v15827_v36 = vand.u32 4294901760, %v15826_v56  ;;  %v15830_v27 = vand.u32 4294901760, %v15829_v43 }
 0x3db   : > { %6947 = vmatpush1.bf16.xpose.msra.mxu0 %v11879_v19  ;;  %7333 = vmatprep.subr.bf16.mxu1 %v11898_v31  ;;  %15813 = vst [vmem:[#allocation151_spill] sm:$0xff] %v11913_v34  ;;  %v15819_v31 = vld [vmem:[#allocation140_spill] sm:$0xff]  ;;  %v15822_v29 = vand.u32 4294901760, %v15821_v9  ;;  %v15834_v9 = vld [vmem:[#allocation161_spill] sm:$0xff] }
 0x3dc   : > { %6949 = vmatprep.subr.bf16.mxu0 %v11885_v60  ;;  %v15817_v60 = vand.u32 4294901760, %v15816_v5  ;;  %v15820_v30 = vand.u32 4294901760, %v15819_v31 }
 0x3de   : > { %v11919_v19 = vpack.c.bf16 %v15817_v60, %v15815_v15  ;;  %v11926_v54 = vpack.c.bf16 %v15822_v29, %v15820_v30  ;;  %v11935_v60 = vpack.c.bf16 %v15827_v36, %v15825_v61  ;;  %v15831_v15 = vld [vmem:[#allocation185_spill] sm:$0xff]  ;;  %v15835_v30 = vand.u32 4294901760, %v15834_v9  ;;  %v15836_v29 = vld [vmem:[#allocation164_spill] sm:$0xff]  ;;  %v15844_v36 = vld [vmem:[#allocation142_spill] sm:$0xff] }
 0x3df   : > { %v15832_v31 = vand.u32 4294901760, %v15831_v15  ;;  %v15857_v15 = vand.u32 4294901760, %v15844_v36 }
 0x3e0   : > { %15818 = vst [vmem:[#allocation154_spill] sm:$0xff] %v11919_v19  ;;  %15823 = vst [vmem:[#allocation160_spill] sm:$0xff] %v11926_v54 }
 0x3e1   : > { %15828 = vst [vmem:[#allocation204_spill] sm:$0xff] %v11935_v60  ;;  %v11941_v5 = vpack.c.bf16 %v15832_v31, %v15830_v27  ;;  %v15845_v27 = vld [vmem:[#allocation144_spill] sm:$0xff]  ;;  %v15846_v31 = vld [vmem:[#allocation159_spill] sm:$0xff]  ;;  %v3311_v9 = vsub.f32 %v15844_v36, %v15857_v15 }
 0x3e2   : > { %7335 = vmatpush1.bf16.xpose.msra.mxu1 %v11919_v19  ;;  %v15841_v19 = vld [vmem:[#allocation194_spill] sm:$0xff] }
 0x3e3   : > { %6951 = vmatpush1.bf16.xpose.msra.mxu0 %v11907_v26  ;;  %7337 = vmatprep.subr.bf16.mxu1 %v11926_v54  ;;  %15833 = vst [vmem:[#allocation205_spill] sm:$0xff] %v11941_v5  ;;  %v15839_v54 = vld [vmem:[#allocation188_spill] sm:$0xff]  ;;  %v15842_v56 = vand.u32 4294901760, %v15841_v19 }
 0x3e4   : > { %6953 = vmatprep.subr.bf16.mxu0 %v11913_v34  ;;  %v15837_v34 = vand.u32 4294901760, %v15836_v29  ;;  %v15840_v3 = vand.u32 4294901760, %v15839_v54  ;;  %v15848_v29 = vld [vmem:[#allocation191_spill] sm:$0xff] }
 0x3e5   : > { %v15849_v54 = vand.u32 4294901760, %v15848_v29 }
 0x3e6   : > { %v11947_v26 = vpack.c.bf16 %v15837_v34, %v15835_v30  ;;  %v11954_v61 = vpack.c.bf16 %v15842_v56, %v15840_v3  ;;  %v15847_v34 = vld [vmem:[#allocation147_spill] sm:$0xff]  ;;  %v15853_v56 = vand.u32 4294901760, %v11475_v1  ;;  %v15858_v30 = vand.u32 4294901760, %v15845_v27 }
 0x3e7   : > { %v15865_v1 = vand.u32 4294901760, %v15846_v31 }
 0x3e8   : > { %15838 = vst [vmem:[#allocation165_spill] sm:$0xff] %v11947_v26  ;;  %15843 = vst [vmem:[#allocation166_spill] sm:$0xff] %v11954_v61 }
 0x3ea   : > { %7339 = vmatpush1.bf16.xpose.msra.mxu1 %v11947_v26  ;;  %v15859_v26 = vld [vmem:[#allocation150_spill] sm:$0xff] }
 0x3eb   : > { %6955 = vmatpush1.bf16.xpose.msra.mxu0 %v11935_v60  ;;  %7341 = vmatprep.subr.bf16.mxu1 %v11954_v61  ;;  %v15850_v60 = vld [vmem:[#allocation197_spill] sm:$0xff]  ;;  %v3323_v61 = vsub.f32 %v15845_v27, %v15858_v30  ;;  %v15868_v30 = vld [vmem:[#allocation242_spill] sm:$0xff] }
 0x3ec   : > { %6957 = vmatprep.subr.bf16.mxu0 %v11941_v5  ;;  %v15851_v19 = vand.u32 4294901760, %v15850_v60  ;;  %v15854_v5 = vld [vmem:[#allocation241_spill] sm:$0xff]  ;;  %v15861_v60 = vand.u32 4294901760, %v15860_v18  ;;  %v15869_v29 = vand.u32 4294901760, %v15868_v30  ;;  %v15870_v18 = vand.u32 4294901760, %v11487_v42 }
 0x3ed   : > { %v15855_v43 = vand.u32 4294901760, %v15854_v5  ;;  %v4595_v5 = vsub.f32 %v15846_v31, %v15865_v1  ;;  %v15879_v1 = vand.u32 4294901760, %v11494_v13 }
 0x3ee   : > { %v11967_v3 = vpack.c.bf16 %v15851_v19, %v15849_v54  ;;  %v15862_v54 = vld [vmem:[#allocation238_spill] sm:$0xff]  ;;  %v12000_v41 = vpack.c.bf16 %v15870_v18, %v15869_v29 }
 0x3ef   : > { %v11973_v58 = vpack.c.bf16 %v15855_v43, %v15853_v56  ;;  %v15863_v19 = vand.u32 4294901760, %v15862_v54  ;;  %v15866_v43 = vand.u32 4294901760, %v15847_v34  ;;  %v15867_v56 = vld [vmem:[#allocation153_spill] sm:$0xff]  ;;  %v3324_v54 = vand.u32 4294901760, %v3323_v61 }
 0x3f0   : > { %15852 = vst [vmem:[#allocation210_spill] sm:$0xff] %v11967_v3  ;;  %15871 = vst [vmem:[#allocation214_spill] sm:$0xff] %v12000_v41  ;;  %v4596_v30 = vand.u32 4294901760, %v4595_v5  ;;  %v15876_v29 = vand.u32 4294901760, %v15867_v56 }
 0x3f1   : > { %15856 = vst [vmem:[#allocation211_spill] sm:$0xff] %v11973_v58  ;;  %v11986_v44 = vpack.c.bf16 %v15863_v19, %v15861_v60  ;;  %v4607_v15 = vsub.f32 %v15847_v34, %v15866_v43  ;;  %v3312_v60 = vand.u32 4294901760, %v3311_v9  ;;  %v15872_v19 = vld [vmem:[#allocation175_spill] sm:$0xff]  ;;  %v15874_v43 = vand.u32 4294901760, %v15859_v26 }
 0x3f2   : > { %v3329_v18 = vsub.f32 %v15867_v56, %v15876_v29  ;;  %v15877_v9 = vld [vmem:[#allocation171_spill] sm:$0xff]  ;;  %v15884_v29 = vand.u32 4294901760, %v15873_v28 }
 0x3f3   : > { %15864 = vst [vmem:[#allocation213_spill] sm:$0xff] %v11986_v44  ;;  %6959 = vmatpush1.bf16.xpose.msra.mxu0 %v11967_v3  ;;  %v3317_v45 = vsub.f32 %v15859_v26, %v15874_v43  ;;  %7343 = vmatpush1.bf16.xpose.msra.mxu1 %v11986_v44  ;;  %v4608_v42 = vand.u32 4294901760, %v4607_v15  ;;  %v15881_v43 = vld [vmem:[#allocation186_spill] sm:$0xff]  ;;  %v6964_v5 = vpack.c.bf16 %v3324_v54, %v3312_v60  ;;  %v15883_v15 = vand.u32 4294901760, %v15872_v19 }
 0x3f4   : > { %6961 = vmatprep.subr.bf16.mxu0 %v11973_v58  ;;  %7345 = vmatprep.subr.bf16.mxu1 %v12000_v41  ;;  %v12019_v58 = vpack.c.bf16 %v15879_v1, %v15878_v55  ;;  %v3347_v61 = vsub.f32 %v15873_v28, %v15884_v29  ;;  %v15885_v41 = vand.u32 4294901760, %v11521_v32  ;;  %v15888_v55 = vand.u32 4294901760, %v15875_v16 }
 0x3f5   : > { %v3335_v17 = vsub.f32 %v15872_v19, %v15883_v15  ;;  %v7348_v44 = vpack.c.bf16 %v4608_v42, %v4596_v30  ;;  %v3318_v60 = vand.u32 4294901760, %v3317_v45  ;;  %v3330_v54 = vand.u32 4294901760, %v3329_v18  ;;  %v15894_v18 = vld [vmem:[#allocation193_spill] sm:$0xff]  ;;  %v15905_v30 = vld [vmem:[#allocation198_spill] sm:$0xff] }
 0x3f6   : > { %15880 = vst [vmem:[#allocation38_spill] sm:$0xff] %v12019_v58  ;;  %v12033_v13 = vpack.c.bf16 %v15886_v51, %v15885_v41  ;;  %v4601_v1 = vsub.f32 %v15875_v16, %v15888_v55  ;;  %v15889_v3 = vand.u32 4294901760, %v15877_v9  ;;  %v15890_v29 = vand.u32 4294901760, %v15881_v43  ;;  %v15892_v51 = vld [vmem:[#allocation189_spill] sm:$0xff]  ;;  %v15893_v55 = vld [vmem:[#allocation190_spill] sm:$0xff] }
 0x3f7   : > { %v4631_v41 = vsub.f32 %v15882_v63, %v15891_v4  ;;  %v3336_v45 = vand.u32 4294901760, %v3335_v17  ;;  %v3348_v42 = vand.u32 4294901760, %v3347_v61  ;;  %v14323_v48 = vand.u32 4294901760, %v15894_v18 }
 0x3f8   : > { %15887 = vst [vmem:[#allocation42_spill] sm:$0xff] %v12033_v13  ;;  %v4613_v15 = vsub.f32 %v15877_v9, %v15889_v3  ;;  %v4619_v32 = vsub.f32 %v15881_v43, %v15890_v29  ;;  %v15895_v3 = vld [vmem:[#allocation141_spill] sm:$0xff]  ;;  %v6966_v7 = vpack.c.bf16 %v3330_v54, %v3318_v60 }
 0x3f9   : > { %v4632_v61 = vand.u32 4294901760, %v4631_v41  ;;  %v6968_v29 = vpack.c.bf16 %v3348_v42, %v3336_v45  ;;  %v3359_v60 = vsub.f32 %v15894_v18, %v14323_v48  ;;  %v15902_v54 = vand.u32 4294901760, %v15895_v3 }
 0x3fa   : > { %v4614_v4 = vand.u32 4294901760, %v4613_v15  ;;  %v4620_v17 = vand.u32 4294901760, %v4619_v32  ;;  %v15904_v41 = vand.u32 4294901760, %v15897_v0  ;;  %v15907_v42 = vand.u32 4294901760, %v15898_v46 }
 0x3fb   : > { %6963 = vmatpush1.bf16.xpose.msra.mxu0 %v12019_v58  ;;  %v4602_v58 = vand.u32 4294901760, %v4601_v1  ;;  %7347 = vmatpush1.bf16.xpose.msra.mxu1 %v12033_v13  ;;  %v15901_v1 = vand.u32 4294901760, %v15893_v55  ;;  %v3371_v15 = vsub.f32 %v15895_v3, %v15902_v54  ;;  %v15908_v13 = vand.u32 4294901760, %v15899_v52 }
 0x3fc   : > { %6965 = vmatprep.subr.bf16.mxu0 %v6964_v5  ;;  %7349 = vmatprep.subr.bf16.mxu1 %v7348_v44  ;;  %v15900_v5 = vand.u32 4294901760, %v15892_v51  ;;  %v15903_v44 = vand.u32 4294901760, %v15896_v62  ;;  %v4643_v48 = vsub.f32 %v15898_v46, %v15907_v42  ;;  %v3360_v25 = vand.u32 4294901760, %v3359_v60  ;;  %v15915_v60 = vld [vmem:[#allocation124_spill] sm:$0xff] }
 0x3fd   : > { %v3353_v22 = vsub.f32 %v15893_v55, %v15901_v1  ;;  %v15906_v1 = vld [vmem:[#allocation237_spill] sm:$0xff]  ;;  %v7350_v45 = vpack.c.bf16 %v4614_v4, %v4602_v58  ;;  %v4655_v54 = vsub.f32 %v15899_v52, %v15908_v13  ;;  %v3372_v2 = vand.u32 4294901760, %v3371_v15  ;;  %v15911_v58 = vld [vmem:[#allocation120_spill] sm:$0xff] }
 0x3fe   : > { %v3341_v20 = vsub.f32 %v15892_v51, %v15900_v5  ;;  %v4625_v32 = vsub.f32 %v15896_v62, %v15903_v44  ;;  %v4637_v5 = vsub.f32 %v15897_v0, %v15904_v41  ;;  %v7352_v44 = vpack.c.bf16 %v4632_v61, %v4620_v17  ;;  %v15910_v41 = vld [vmem:[#allocation224_spill] sm:$0xff]  ;;  %v15914_v17 = vld [vmem:[#allocation123_spill] sm:$0xff] }
 0x3ff   : > { %v3354_v47 = vand.u32 4294901760, %v3353_v22  ;;  %v15913_v13 = vand.u32 4294901760, %v15905_v30  ;;  %v4644_v22 = vand.u32 4294901760, %v4643_v48  ;;  %v4656_v61 = vand.u32 4294901760, %v4655_v54 }
 0x400   : > { %v3342_v12 = vand.u32 4294901760, %v3341_v20  ;;  %v4626_v42 = vand.u32 4294901760, %v4625_v32  ;;  %v4638_v14 = vand.u32 4294901760, %v4637_v5  ;;  %v15916_v5 = vld [vmem:[#allocation126_spill] sm:$0xff]  ;;  %v14358_v4 = vand.u32 4294901760, %v15917_v11 }
 0x401   : > { %v15918_v20 = vand.u32 4294901760, %v15911_v58  ;;  %v15920_v15 = vand.u32 4294901760, %v15914_v17 }
 0x402   : > { %3302 = vmatmul.mubr.f32.vlgmr.msra.gmra.mrb[2].mxu0 %v15906_v1  ;;  %4586 = vmatmul.mubr.f32.vlgmr.msra.gmra.mrb[2].mxu1 %v15906_v1  ;;  %v6970_v32 = vpack.c.bf16 %v3354_v47, %v3342_v12  ;;  %v15921_v1 = vand.u32 4294901760, %v15915_v60 }
 0x403   : > { %6967 = vmatpush1.bf16.xpose.msra.mxu0 %v6966_v7  ;;  %3693 = vmatprep.mubr.f32.mxu0 %v15910_v41  ;;  %v3365_v7 = vsub.f32 %v15905_v30, %v15913_v13  ;;  %v6972_v13 = vpack.c.bf16 %v3372_v2, %v3360_v25  ;;  %v3383_v48 = vsub.f32 %v15911_v58, %v15918_v20  ;;  %v15922_v25 = vand.u32 4294901760, %v15916_v5 }
 0x404   : > { %6969 = vmatprep.subr.bf16.mxu0 %v6968_v29  ;;  %7351 = vmatpush1.bf16.xpose.msra.mxu1 %v7350_v45  ;;  %v3377_v29 = vsub.f32 %v15909_v40, %v14342_v53  ;;  %v15919_v45 = vand.u32 4294901760, %v15912_v35  ;;  %v7354_v53 = vpack.c.bf16 %v4638_v14, %v4626_v42  ;;  %v4661_v2 = vsub.f32 %v15915_v60, %v15921_v1  ;;  %v15923_v42 = vld [vmem:[#allocation129_spill] sm:$0xff] }
 0x405   : > { %4977 = vmatprep.mubr.f32.mxu1 %v15910_v41  ;;  %7353 = vmatprep.subr.bf16.mxu1 %v7352_v44  ;;  %v4649_v41 = vsub.f32 %v15914_v17, %v15920_v15  ;;  %v7356_v44 = vpack.c.bf16 %v4656_v61, %v4644_v22  ;;  %v3366_v47 = vand.u32 4294901760, %v3365_v7  ;;  %v4667_v20 = vsub.f32 %v15916_v5, %v15922_v25  ;;  %v15925_v61 = vld [vmem:[#allocation132_spill] sm:$0xff] }
 0x406   : > { %v3395_v54 = vsub.f32 %v15912_v35, %v15919_v45  ;;  %v3378_v12 = vand.u32 4294901760, %v3377_v29  ;;  %v4679_v14 = vsub.f32 %v15917_v11, %v14358_v4  ;;  %v14363_v15 = vand.u32 4294901760, %v15924_v57  ;;  %v15929_v4 = vld [vmem:[#allocation162_spill] sm:$0xff]  ;;  %v15930_v45 = vld [vmem:[#allocation169_spill] sm:$0xff] }
 0x407   : > { %v3384_v7 = vand.u32 4294901760, %v3383_v48  ;;  %v14364_v1 = vand.u32 4294901760, %v15926_v10  ;;  %v14369_v25 = vand.u32 4294901760, %v15928_v39  ;;  %v4662_v59 = vand.u32 4294901760, %v4661_v2 }
 0x408   : > { %v3396_v22 = vand.u32 4294901760, %v3395_v54  ;;  %v6974_v21 = vpack.c.bf16 %v3378_v12, %v3366_v47  ;;  %v14373_v38 = vand.u32 4294901760, %v15929_v4  ;;  %v14375_v8 = vand.u32 4294901760, %v15930_v45 }
 0x409   : > { %v4680_v48 = vand.u32 4294901760, %v4679_v14  ;;  %v15931_v54 = vand.u32 4294901760, %v15923_v42  ;;  %v3419_v12 = vsub.f32 %v15926_v10, %v14364_v1  ;;  %v15934_v14 = vld [vmem:[#allocation168_spill] sm:$0xff] }
 0x40a   : > { %v6976_v23 = vpack.c.bf16 %v3396_v22, %v3384_v7  ;;  %v4691_v7 = vsub.f32 %v15929_v4, %v14373_v38  ;;  %v4703_v22 = vsub.f32 %v15930_v45, %v14375_v8  ;;  %v15938_v38 = vand.u32 4294901760, %v15934_v14  ;;  %v15939_v8 = vld [vmem:[#allocation178_spill] sm:$0xff] }
 0x40b   : > { %6971 = vmatpush1.bf16.xpose.msra.mxu0 %v6970_v32  ;;  %v4650_v32 = vand.u32 4294901760, %v4649_v41  ;;  %v3389_v29 = vsub.f32 %v15923_v42, %v15931_v54  ;;  %v3401_v41 = vsub.f32 %v15924_v57, %v14363_v15  ;;  %v14379_v45 = vand.u32 4294901760, %v15939_v8 }
 0x40c   : > { %6973 = vmatprep.subr.bf16.mxu0 %v6972_v13  ;;  %7355 = vmatpush1.bf16.xpose.msra.mxu1 %v7354_v53  ;;  %v4668_v13 = vand.u32 4294901760, %v4667_v20  ;;  %v15932_v53 = vand.u32 4294901760, %v15925_v61  ;;  %v4685_v20 = vsub.f32 %v15928_v39, %v14369_v25  ;;  %v3420_v25 = vand.u32 4294901760, %v3419_v12  ;;  %v15936_v39 = vld [vmem:[#allocation183_spill] sm:$0xff] }
 0x40d   : > { %7357 = vmatprep.subr.bf16.mxu1 %v7356_v44  ;;  %v15933_v44 = vand.u32 4294901760, %v15927_v24  ;;  %v7358_v15 = vpack.c.bf16 %v4662_v59, %v4650_v32  ;;  %v14378_v54 = vand.u32 4294901760, %v15936_v39  ;;  %v15937_v59 = vld [vmem:[#allocation181_spill] sm:$0xff]  ;;  %v3413_v4 = vsub.f32 %v15934_v14, %v15938_v38 }
 0x40e   : > { %v3407_v47 = vsub.f32 %v15925_v61, %v15932_v53  ;;  %v15935_v53 = vld [vmem:[#allocation174_spill] sm:$0xff]  ;;  %v7360_v49 = vpack.c.bf16 %v4680_v48, %v4668_v13  ;;  %v4686_v57 = vand.u32 4294901760, %v4685_v20  ;;  %v4704_v13 = vand.u32 4294901760, %v4703_v22 }
 0x40f   : > { %v4673_v2 = vsub.f32 %v15927_v24, %v15933_v44  ;;  %v14377_v1 = vand.u32 4294901760, %v15935_v53  ;;  %v3390_v44 = vand.u32 4294901760, %v3389_v29  ;;  %v3402_v24 = vand.u32 4294901760, %v3401_v41  ;;  %v15940_v29 = vld [vmem:[#allocation177_spill] sm:$0xff] }
 0x410   : > { %v3408_v10 = vand.u32 4294901760, %v3407_v47  ;;  %v14381_v48 = vand.u32 4294901760, %v15940_v29  ;;  %v15941_v47 = vld [vmem:[#allocation180_spill] sm:$0xff]  ;;  %v3431_v38 = vsub.f32 %v15936_v39, %v14378_v54  ;;  %v15945_v54 = vld [vmem:[#allocation45_spill] sm:$0xff]  ;;  %v15949_v39 = vld [vmem:[#allocation50_spill] sm:$0xff] }
 0x411   : > { %v4674_v61 = vand.u32 4294901760, %v4673_v2  ;;  %v6978_v41 = vpack.c.bf16 %v3402_v24, %v3390_v44  ;;  %v14385_v12 = vand.u32 4294901760, %v15941_v47  ;;  %v15942_v2 = vld [vmem:[#allocation41_spill] sm:$0xff]  ;;  %v3414_v24 = vand.u32 4294901760, %v3413_v4 }
 0x412   : > { %v14388_v20 = vand.u32 4294901760, %v15942_v2  ;;  %v6980_v32 = vpack.c.bf16 %v3420_v25, %v3408_v10  ;;  %v4709_v10 = vsub.f32 %v15940_v29, %v14381_v48  ;;  %v3432_v4 = vand.u32 4294901760, %v3431_v38  ;;  %v15948_v29 = vld [vmem:[#allocation46_spill] sm:$0xff] }
 0x413   : > { %6975 = vmatpush1.bf16.xpose.msra.mxu0 %v6974_v21  ;;  %v4692_v21 = vand.u32 4294901760, %v4691_v7  ;;  %v7362_v22 = vpack.c.bf16 %v4686_v57, %v4674_v61  ;;  %v4715_v25 = vsub.f32 %v15941_v47, %v14385_v12  ;;  %v15944_v61 = vld [vmem:[#allocation43_spill] sm:$0xff]  ;;  %v14396_v12 = vand.u32 4294901760, %v15949_v39 }
 0x414   : > { %6977 = vmatprep.subr.bf16.mxu0 %v6976_v23  ;;  %7359 = vmatpush1.bf16.xpose.msra.mxu1 %v7358_v15  ;;  %v3425_v23 = vsub.f32 %v15935_v53, %v14377_v1  ;;  %v15943_v15 = vand.u32 4294901760, %v15937_v59  ;;  %v4697_v1 = vsub.f32 %v15939_v8, %v14379_v45  ;;  %v4727_v57 = vsub.f32 %v15942_v2, %v14388_v20  ;;  %v15947_v8 = vld [vmem:[#allocation56_spill] sm:$0xff]  ;;  %v15950_v20 = vld [vmem:[#allocation58_spill] sm:$0xff] }
 0x415   : > { %7361 = vmatprep.subr.bf16.mxu1 %v7360_v49  ;;  %v7364_v49 = vpack.c.bf16 %v4704_v13, %v4692_v21  ;;  %v14391_v45 = vand.u32 4294901760, %v15945_v54  ;;  %v15946_v13 = vld [vmem:[#allocation55_spill] sm:$0xff]  ;;  %v14392_v48 = vand.u32 4294901760, %v15947_v8  ;;  %v4710_v53 = vand.u32 4294901760, %v4709_v10 }
 0x416   : > { %v3443_v7 = vsub.f32 %v15937_v59, %v15943_v15  ;;  %v3426_v44 = vand.u32 4294901760, %v3425_v23  ;;  %v14400_v2 = vand.u32 4294901760, %v15950_v20  ;;  %v15951_v15 = vld [vmem:[#allocation59_spill] sm:$0xff]  ;;  %v4728_v38 = vand.u32 4294901760, %v4727_v57  ;;  %v15955_v57 = vld [vmem:[#allocation61_spill] sm:$0xff] }
 0x417   : > { %v14402_v14 = vand.u32 4294901760, %v15951_v15 }
 0x418   : > { %v3444_v21 = vand.u32 4294901760, %v3443_v7  ;;  %v6982_v47 = vpack.c.bf16 %v3426_v44, %v3414_v24  ;;  %v15952_v7 = vand.u32 4294901760, %v15944_v61  ;;  %v3467_v44 = vsub.f32 %v15947_v8, %v14392_v48 }
 0x41a   : > { %v3437_v23 = vsub.f32 %v15944_v61, %v15952_v7  ;;  %v6984_v59 = vpack.c.bf16 %v3444_v21, %v3432_v4  ;;  %v4739_v4 = vsub.f32 %v15950_v20, %v14400_v2  ;;  %v4751_v21 = vsub.f32 %v15951_v15, %v14402_v14  ;;  %v15960_v14 = vld [vmem:[#allocation67_spill] sm:$0xff] }
 0x41b   : > { %6979 = vmatpush1.bf16.xpose.msra.mxu0 %v6978_v41  ;;  %v4698_v41 = vand.u32 4294901760, %v4697_v1  ;;  %v3449_v1 = vsub.f32 %v15945_v54, %v14391_v45  ;;  %v15959_v2 = vand.u32 4294901760, %v15955_v57  ;;  %v14406_v15 = vand.u32 4294901760, %v15960_v14 }
 0x41c   : > { %6981 = vmatprep.subr.bf16.mxu0 %v6980_v32  ;;  %7363 = vmatpush1.bf16.xpose.msra.mxu1 %v7362_v22  ;;  %v4716_v32 = vand.u32 4294901760, %v4715_v25  ;;  %v15953_v22 = vand.u32 4294901760, %v15946_v13  ;;  %v4733_v25 = vsub.f32 %v15949_v39, %v14396_v12  ;;  %v3468_v12 = vand.u32 4294901760, %v3467_v44  ;;  %v15957_v39 = vld [vmem:[#allocation79_spill] sm:$0xff] }
 0x41d   : > { %7365 = vmatprep.subr.bf16.mxu1 %v7364_v49  ;;  %v15954_v49 = vand.u32 4294901760, %v15948_v29  ;;  %v7366_v45 = vpack.c.bf16 %v4710_v53, %v4698_v41  ;;  %v14405_v7 = vand.u32 4294901760, %v15957_v39  ;;  %v15958_v53 = vld [vmem:[#allocation81_spill] sm:$0xff]  ;;  %v3461_v20 = vsub.f32 %v15955_v57, %v15959_v2 }
 0x41e   : > { %v3455_v24 = vsub.f32 %v15946_v13, %v15953_v22  ;;  %v15956_v22 = vld [vmem:[#allocation66_spill] sm:$0xff]  ;;  %v7368_v8 = vpack.c.bf16 %v4728_v38, %v4716_v32  ;;  %v4734_v61 = vand.u32 4294901760, %v4733_v25  ;;  %v4752_v32 = vand.u32 4294901760, %v4751_v21 }
 0x41f   : > { %v4721_v10 = vsub.f32 %v15948_v29, %v15954_v49  ;;  %v14404_v48 = vand.u32 4294901760, %v15956_v22  ;;  %v3438_v49 = vand.u32 4294901760, %v3437_v23  ;;  %v3450_v29 = vand.u32 4294901760, %v3449_v1  ;;  %v15961_v23 = vld [vmem:[#allocation69_spill] sm:$0xff] }
 0x420   : > { %v3456_v13 = vand.u32 4294901760, %v3455_v24  ;;  %v14408_v38 = vand.u32 4294901760, %v15961_v23  ;;  %v15962_v24 = vld [vmem:[#allocation82_spill] sm:$0xff]  ;;  %v3479_v2 = vsub.f32 %v15957_v39, %v14405_v7  ;;  %v15970_v39 = vld [vmem:[#allocation93_spill] sm:$0xff] }
 0x421   : > { %v4722_v54 = vand.u32 4294901760, %v4721_v10  ;;  %v6986_v1 = vpack.c.bf16 %v3450_v29, %v3438_v49  ;;  %v14412_v44 = vand.u32 4294901760, %v15962_v24  ;;  %v15963_v10 = vld [vmem:[#allocation84_spill] sm:$0xff]  ;;  %v3462_v29 = vand.u32 4294901760, %v3461_v20  ;;  %v15966_v7 = vld [vmem:[#allocation90_spill] sm:$0xff] }
 0x422   : > { %v14415_v25 = vand.u32 4294901760, %v15963_v10  ;;  %v6988_v41 = vpack.c.bf16 %v3468_v12, %v3456_v13  ;;  %v4757_v12 = vsub.f32 %v15961_v23, %v14408_v38  ;;  %v3480_v20 = vand.u32 4294901760, %v3479_v2  ;;  %v15969_v23 = vld [vmem:[#allocation91_spill] sm:$0xff] }
 0x423   : > { %6983 = vmatpush1.bf16.xpose.msra.mxu0 %v6982_v47  ;;  %v4740_v47 = vand.u32 4294901760, %v4739_v4  ;;  %v7370_v21 = vpack.c.bf16 %v4734_v61, %v4722_v54  ;;  %v4763_v13 = vsub.f32 %v15962_v24, %v14412_v44  ;;  %v15965_v61 = vld [vmem:[#allocation85_spill] sm:$0xff]  ;;  %v14423_v44 = vand.u32 4294901760, %v15970_v39 }
 0x424   : > { %6985 = vmatprep.subr.bf16.mxu0 %v6984_v59  ;;  %7367 = vmatpush1.bf16.xpose.msra.mxu1 %v7366_v45  ;;  %v3473_v59 = vsub.f32 %v15956_v22, %v14404_v48  ;;  %v15964_v45 = vand.u32 4294901760, %v15958_v53  ;;  %v4745_v48 = vsub.f32 %v15960_v14, %v14406_v15  ;;  %v4775_v54 = vsub.f32 %v15963_v10, %v14415_v25  ;;  %v15968_v14 = vld [vmem:[#allocation105_spill] sm:$0xff]  ;;  %v15971_v25 = vld [vmem:[#allocation106_spill] sm:$0xff] }
 0x425   : > { %7369 = vmatprep.subr.bf16.mxu1 %v7368_v8  ;;  %v7372_v8 = vpack.c.bf16 %v4752_v32, %v4740_v47  ;;  %v14418_v15 = vand.u32 4294901760, %v15966_v7  ;;  %v15967_v32 = vld [vmem:[#allocation103_spill] sm:$0xff]  ;;  %v14419_v38 = vand.u32 4294901760, %v15968_v14  ;;  %v4758_v22 = vand.u32 4294901760, %v4757_v12 }
 0x426   : > { %v3491_v4 = vsub.f32 %v15958_v53, %v15964_v45  ;;  %v3474_v49 = vand.u32 4294901760, %v3473_v59  ;;  %v14427_v10 = vand.u32 4294901760, %v15971_v25  ;;  %v15972_v45 = vld [vmem:[#allocation108_spill] sm:$0xff]  ;;  %v4776_v2 = vand.u32 4294901760, %v4775_v54  ;;  %v15976_v54 = vld [vmem:[#allocation109_spill] sm:$0xff] }
 0x427   : > { %v14429_v57 = vand.u32 4294901760, %v15972_v45 }
 0x428   : > { %v3492_v47 = vand.u32 4294901760, %v3491_v4  ;;  %v6990_v24 = vpack.c.bf16 %v3474_v49, %v3462_v29  ;;  %v15973_v4 = vand.u32 4294901760, %v15965_v61  ;;  %v3515_v49 = vsub.f32 %v15968_v14, %v14419_v38 }
 0x42a   : > { %v3485_v59 = vsub.f32 %v15965_v61, %v15973_v4  ;;  %v6992_v53 = vpack.c.bf16 %v3492_v47, %v3480_v20  ;;  %v4787_v20 = vsub.f32 %v15971_v25, %v14427_v10  ;;  %v4799_v47 = vsub.f32 %v15972_v45, %v14429_v57  ;;  %v15981_v57 = vld [vmem:[#allocation115_spill] sm:$0xff] }
 0x42b   : > { %6987 = vmatpush1.bf16.xpose.msra.mxu0 %v6986_v1  ;;  %v4746_v1 = vand.u32 4294901760, %v4745_v48  ;;  %v3497_v48 = vsub.f32 %v15966_v7, %v14418_v15  ;;  %v15980_v10 = vand.u32 4294901760, %v15976_v54  ;;  %v14433_v45 = vand.u32 4294901760, %v15981_v57 }
 0x42c   : > { %6989 = vmatprep.subr.bf16.mxu0 %v6988_v41  ;;  %7371 = vmatpush1.bf16.xpose.msra.mxu1 %v7370_v21  ;;  %v4764_v41 = vand.u32 4294901760, %v4763_v13  ;;  %v15974_v21 = vand.u32 4294901760, %v15967_v32  ;;  %v4781_v13 = vsub.f32 %v15970_v39, %v14423_v44  ;;  %v3516_v44 = vand.u32 4294901760, %v3515_v49  ;;  %v15978_v39 = vld [vmem:[#allocation156_spill] sm:$0xff] }
 0x42d   : > { %7373 = vmatprep.subr.bf16.mxu1 %v7372_v8  ;;  %v15975_v8 = vand.u32 4294901760, %v15969_v23  ;;  %v7374_v15 = vpack.c.bf16 %v4758_v22, %v4746_v1  ;;  %v14432_v4 = vand.u32 4294901760, %v15978_v39  ;;  %v15979_v22 = vld [vmem:[#allocation157_spill] sm:$0xff]  ;;  %v3509_v25 = vsub.f32 %v15976_v54, %v15980_v10 }
 0x42e   : > { %v3503_v29 = vsub.f32 %v15967_v32, %v15974_v21  ;;  %v15977_v21 = vld [vmem:[#allocation114_spill] sm:$0xff]  ;;  %v7376_v14 = vpack.c.bf16 %v4776_v2, %v4764_v41  ;;  %v4782_v61 = vand.u32 4294901760, %v4781_v13  ;;  %v4800_v41 = vand.u32 4294901760, %v4799_v47 }
 0x42f   : > { %v4769_v12 = vsub.f32 %v15969_v23, %v15975_v8  ;;  %v14431_v38 = vand.u32 4294901760, %v15977_v21  ;;  %v3486_v8 = vand.u32 4294901760, %v3485_v59  ;;  %v3498_v23 = vand.u32 4294901760, %v3497_v48  ;;  %v15982_v59 = vld [vmem:[#allocation117_spill] sm:$0xff] }
 0x430   : > { %v3504_v32 = vand.u32 4294901760, %v3503_v29  ;;  %v14435_v2 = vand.u32 4294901760, %v15982_v59  ;;  %v15983_v29 = vld [vmem:[#allocation163_spill] sm:$0xff]  ;;  %v3527_v10 = vsub.f32 %v15978_v39, %v14432_v4  ;;  %v15987_v4 = vld [vmem:[#allocation202_spill] sm:$0xff]  ;;  %v15991_v39 = vld [vmem:[#allocation208_spill] sm:$0xff] }
 0x431   : > { %v4770_v7 = vand.u32 4294901760, %v4769_v12  ;;  %v6994_v48 = vpack.c.bf16 %v3498_v23, %v3486_v8  ;;  %v14439_v49 = vand.u32 4294901760, %v15983_v29  ;;  %v15984_v12 = vld [vmem:[#allocation172_spill] sm:$0xff]  ;;  %v3510_v23 = vand.u32 4294901760, %v3509_v25 }
 0x432   : > { %v14442_v13 = vand.u32 4294901760, %v15984_v12  ;;  %v6996_v1 = vpack.c.bf16 %v3516_v44, %v3504_v32  ;;  %v4805_v44 = vsub.f32 %v15982_v59, %v14435_v2  ;;  %v3528_v25 = vand.u32 4294901760, %v3527_v10  ;;  %v15990_v59 = vld [vmem:[#allocation207_spill] sm:$0xff] }
 0x433   : > { %6991 = vmatpush1.bf16.xpose.msra.mxu0 %v6990_v24  ;;  %v4788_v24 = vand.u32 4294901760, %v4787_v20  ;;  %v7378_v47 = vpack.c.bf16 %v4782_v61, %v4770_v7  ;;  %v4811_v32 = vsub.f32 %v15983_v29, %v14439_v49  ;;  %v15986_v61 = vld [vmem:[#allocation201_spill] sm:$0xff]  ;;  %v14450_v49 = vand.u32 4294901760, %v15991_v39 }
 0x434   : > { %6993 = vmatprep.subr.bf16.mxu0 %v6992_v53  ;;  %7375 = vmatpush1.bf16.xpose.msra.mxu1 %v7374_v15  ;;  %v3521_v53 = vsub.f32 %v15977_v21, %v14431_v38  ;;  %v15985_v15 = vand.u32 4294901760, %v15979_v22  ;;  %v4793_v38 = vsub.f32 %v15981_v57, %v14433_v45  ;;  %v4823_v7 = vsub.f32 %v15984_v12, %v14442_v13  ;;  %v15989_v57 = vld [vmem:[#allocation220_spill] sm:$0xff] }
 0x435   : > { %7377 = vmatprep.subr.bf16.mxu1 %v7376_v14  ;;  %v7380_v14 = vpack.c.bf16 %v4800_v41, %v4788_v24  ;;  %v14445_v45 = vand.u32 4294901760, %v15987_v4  ;;  %v15988_v41 = vld [vmem:[#allocation219_spill] sm:$0xff]  ;;  %v14446_v2 = vand.u32 4294901760, %v15989_v57  ;;  %v4806_v21 = vand.u32 4294901760, %v4805_v44  ;;  %v15992_v13 = vld [vmem:[#allocation216_spill] sm:$0xff] }
 0x436   : > { %v3539_v20 = vsub.f32 %v15979_v22, %v15985_v15  ;;  %v3522_v8 = vand.u32 4294901760, %v3521_v53  ;;  %v14454_v12 = vand.u32 4294901760, %v15992_v13  ;;  %v15993_v15 = vld [vmem:[#allocation223_spill] sm:$0xff]  ;;  %v4824_v10 = vand.u32 4294901760, %v4823_v7  ;;  %v15997_v7 = vld [vmem:[#allocation226_spill] sm:$0xff] }
 0x437   : > { %v14456_v54 = vand.u32 4294901760, %v15993_v15 }
 0x438   : > { %v3540_v24 = vand.u32 4294901760, %v3539_v20  ;;  %v6998_v29 = vpack.c.bf16 %v3522_v8, %v3510_v23  ;;  %v15994_v20 = vand.u32 4294901760, %v15986_v61  ;;  %v3563_v8 = vsub.f32 %v15989_v57, %v14446_v2 }
 0x43a   : > { %v3533_v53 = vsub.f32 %v15986_v61, %v15994_v20  ;;  %v7000_v22 = vpack.c.bf16 %v3540_v24, %v3528_v25  ;;  %v4835_v25 = vsub.f32 %v15992_v13, %v14454_v12  ;;  %v4847_v24 = vsub.f32 %v15993_v15, %v14456_v54  ;;  %v16002_v54 = vld [vmem:[#allocation229_spill] sm:$0xff] }
 0x43b   : > { %6995 = vmatpush1.bf16.xpose.msra.mxu0 %v6994_v48  ;;  %v4794_v48 = vand.u32 4294901760, %v4793_v38  ;;  %v3545_v38 = vsub.f32 %v15987_v4, %v14445_v45  ;;  %v16001_v12 = vand.u32 4294901760, %v15997_v7  ;;  %v14460_v15 = vand.u32 4294901760, %v16002_v54 }
 0x43c   : > { %6997 = vmatprep.subr.bf16.mxu0 %v6996_v1  ;;  %7379 = vmatpush1.bf16.xpose.msra.mxu1 %v7378_v47  ;;  %v4812_v1 = vand.u32 4294901760, %v4811_v32  ;;  %v15995_v47 = vand.u32 4294901760, %v15988_v41  ;;  %v4829_v32 = vsub.f32 %v15991_v39, %v14450_v49  ;;  %v3564_v49 = vand.u32 4294901760, %v3563_v8  ;;  %v15999_v39 = vld [vmem:[#allocation57_spill] sm:$0xff] }
 0x43d   : > { %7381 = vmatprep.subr.bf16.mxu1 %v7380_v14  ;;  %v15996_v14 = vand.u32 4294901760, %v15990_v59  ;;  %v7382_v45 = vpack.c.bf16 %v4806_v21, %v4794_v48  ;;  %v14459_v20 = vand.u32 4294901760, %v15999_v39  ;;  %v16000_v21 = vld [vmem:[#allocation62_spill] sm:$0xff]  ;;  %v3557_v13 = vsub.f32 %v15997_v7, %v16001_v12 }
 0x43e   : > { %v3551_v23 = vsub.f32 %v15988_v41, %v15995_v47  ;;  %v15998_v47 = vld [vmem:[#allocation227_spill] sm:$0xff]  ;;  %v7384_v57 = vpack.c.bf16 %v4824_v10, %v4812_v1  ;;  %v4830_v61 = vand.u32 4294901760, %v4829_v32  ;;  %v4848_v1 = vand.u32 4294901760, %v4847_v24 }
 0x43f   : > { %v4817_v44 = vsub.f32 %v15990_v59, %v15996_v14  ;;  %v14458_v2 = vand.u32 4294901760, %v15998_v47  ;;  %v3534_v14 = vand.u32 4294901760, %v3533_v53  ;;  %v3546_v59 = vand.u32 4294901760, %v3545_v38  ;;  %v16003_v53 = vld [vmem:[#allocation230_spill] sm:$0xff] }
 0x440   : > { %v3552_v41 = vand.u32 4294901760, %v3551_v23  ;;  %v14461_v10 = vand.u32 4294901760, %v16003_v53  ;;  %v16004_v23 = vld [vmem:[#allocation60_spill] sm:$0xff]  ;;  %v3575_v12 = vsub.f32 %v15999_v39, %v14459_v20  ;;  %v16008_v20 = vld [vmem:[#allocation77_spill] sm:$0xff] }
 0x441   : > { %v4818_v4 = vand.u32 4294901760, %v4817_v44  ;;  %v7002_v38 = vpack.c.bf16 %v3546_v59, %v3534_v14  ;;  %v14465_v8 = vand.u32 4294901760, %v16004_v23  ;;  %v16005_v44 = vld [vmem:[#allocation74_spill] sm:$0xff]  ;;  %v3558_v59 = vand.u32 4294901760, %v3557_v13 }
 0x442   : > { %v14468_v32 = vand.u32 4294901760, %v16005_v44  ;;  %v7004_v48 = vpack.c.bf16 %v3564_v49, %v3552_v41  ;;  %v4853_v49 = vsub.f32 %v16003_v53, %v14461_v10  ;;  %v3576_v13 = vand.u32 4294901760, %v3575_v12  ;;  %v16010_v10 = vld [vmem:[#allocation110_spill] sm:$0xff] }
 0x443   : > { %6999 = vmatpush1.bf16.xpose.msra.mxu0 %v6998_v29  ;;  %v4836_v29 = vand.u32 4294901760, %v4835_v25  ;;  %v7386_v24 = vpack.c.bf16 %v4830_v61, %v4818_v4  ;;  %v4859_v41 = vsub.f32 %v16004_v23, %v14465_v8  ;;  %v16007_v61 = vld [vmem:[#allocation71_spill] sm:$0xff]  ;;  %v16012_v8 = vld [vmem:[#allocation86_spill] sm:$0xff] }
 0x444   : > { %7001 = vmatprep.subr.bf16.mxu0 %v7000_v22  ;;  %7383 = vmatpush1.bf16.xpose.msra.mxu1 %v7382_v45  ;;  %v3569_v22 = vsub.f32 %v15998_v47, %v14458_v2  ;;  %v16006_v45 = vand.u32 4294901760, %v16000_v21  ;;  %v4841_v2 = vsub.f32 %v16002_v54, %v14460_v15  ;;  %v4871_v4 = vsub.f32 %v16005_v44, %v14468_v32  ;;  %v16011_v54 = vld [vmem:[#allocation80_spill] sm:$0xff]  ;;  %v16013_v44 = vld [vmem:[#allocation107_spill] sm:$0xff]  ;;  %v16014_v47 = vld [vmem:[#allocation122_spill] sm:$0xff] }
 0x445   : > { %7385 = vmatprep.subr.bf16.mxu1 %v7384_v57  ;;  %v7388_v57 = vpack.c.bf16 %v4848_v1, %v4836_v29  ;;  %v16009_v1 = vld [vmem:[#allocation104_spill] sm:$0xff]  ;;  %v4854_v32 = vand.u32 4294901760, %v4853_v49 }
 0x446   : > { %v3587_v25 = vsub.f32 %v16000_v21, %v16006_v45  ;;  %v3570_v14 = vand.u32 4294901760, %v3569_v22  ;;  %v4842_v53 = vand.u32 4294901760, %v4841_v2  ;;  %v14479_v45 = vand.u32 4294901760, %v16013_v44 }
 0x447   : > { %v4872_v12 = vand.u32 4294901760, %v4871_v4  ;;  %v16016_v2 = vand.u32 4294901760, %v16008_v20 }
 0x448   : > { %v3588_v29 = vand.u32 4294901760, %v3587_v25  ;;  %v7006_v39 = vpack.c.bf16 %v3570_v14, %v3558_v59  ;;  %v16015_v25 = vand.u32 4294901760, %v16007_v61  ;;  %v16018_v14 = vand.u32 4294901760, %v16011_v54 }
 0x449   : > { %v3593_v21 = vsub.f32 %v16008_v20, %v16016_v2  ;;  %v7390_v15 = vpack.c.bf16 %v4854_v32, %v4842_v53  ;;  %v16024_v53 = vld [vmem:[#allocation158_spill] sm:$0xff] }
 0x44a   : > { %v3581_v22 = vsub.f32 %v16007_v61, %v16015_v25  ;;  %v7008_v23 = vpack.c.bf16 %v3588_v29, %v3576_v13  ;;  %v4865_v49 = vsub.f32 %v16011_v54, %v16018_v14  ;;  %v16020_v25 = vld [vmem:[#allocation119_spill] sm:$0xff]  ;;  %v4883_v13 = vsub.f32 %v16013_v44, %v14479_v45 }
 0x44b   : > { %7003 = vmatpush1.bf16.xpose.msra.mxu0 %v7002_v38  ;;  %v14471_v38 = vand.u32 4294901760, %v16010_v10  ;;  %v16021_v29 = vand.u32 4294901760, %v16014_v47  ;;  %v3594_v54 = vand.u32 4294901760, %v3593_v21  ;;  %v16025_v44 = vand.u32 4294901760, %v16020_v25 }
 0x44c   : > { %7005 = vmatprep.subr.bf16.mxu0 %v7004_v48  ;;  %7387 = vmatpush1.bf16.xpose.msra.mxu1 %v7386_v24  ;;  %v4860_v48 = vand.u32 4294901760, %v4859_v41  ;;  %v16017_v24 = vand.u32 4294901760, %v16009_v1  ;;  %v16019_v41 = vand.u32 4294901760, %v16012_v8  ;;  %v3582_v14 = vand.u32 4294901760, %v3581_v22 }
 0x44d   : > { %7389 = vmatprep.subr.bf16.mxu1 %v7388_v57  ;;  %v3611_v57 = vsub.f32 %v16010_v10, %v14471_v38  ;;  %v16022_v38 = vld [vmem:[#allocation125_spill] sm:$0xff]  ;;  %v4866_v7 = vand.u32 4294901760, %v4865_v49  ;;  %v4884_v21 = vand.u32 4294901760, %v4883_v13  ;;  %v16030_v49 = vld [vmem:[#allocation170_spill] sm:$0xff]  ;;  %v16031_v13 = vand.u32 4294901760, %v16024_v53 }
 0x44e   : > { %v3599_v59 = vsub.f32 %v16009_v1, %v16017_v24  ;;  %v4877_v4 = vsub.f32 %v16012_v8, %v16019_v41  ;;  %v4895_v24 = vsub.f32 %v16014_v47, %v16021_v29  ;;  %v7392_v1 = vpack.c.bf16 %v4872_v12, %v4860_v48  ;;  %v16023_v8 = vld [vmem:[#allocation152_spill] sm:$0xff]  ;;  %v16028_v12 = vld [vmem:[#allocation134_spill] sm:$0xff] }
 0x44f   : > { %v3612_v41 = vand.u32 4294901760, %v3611_v57  ;;  %v14482_v2 = vand.u32 4294901760, %v16023_v8  ;;  %v3605_v29 = vsub.f32 %v16020_v25, %v16025_v44  ;;  %v16026_v47 = vld [vmem:[#allocation128_spill] sm:$0xff]  ;;  %v16027_v22 = vand.u32 4294901760, %v16022_v38 }
 0x450   : > { %v3600_v20 = vand.u32 4294901760, %v3599_v59  ;;  %v4878_v45 = vand.u32 4294901760, %v4877_v4  ;;  %v7010_v44 = vpack.c.bf16 %v3594_v54, %v3582_v14 }
 0x451   : > { %v3617_v48 = vsub.f32 %v16022_v38, %v16027_v22 }
 0x452   : > { %v7012_v32 = vpack.c.bf16 %v3612_v41, %v3600_v20  ;;  %v7394_v59 = vpack.c.bf16 %v4878_v45, %v4866_v7  ;;  %v16033_v20 = vand.u32 4294901760, %v16028_v12  ;;  %v16035_v45 = vld [vmem:[#allocation167_spill] sm:$0xff] }
 0x453   : > { %7007 = vmatpush1.bf16.xpose.msra.mxu0 %v7006_v39  ;;  %v3618_v4 = vand.u32 4294901760, %v3617_v48 }
 0x454   : > { %7009 = vmatprep.subr.bf16.mxu0 %v7008_v23  ;;  %7391 = vmatpush1.bf16.xpose.msra.mxu1 %v7390_v15  ;;  %v4896_v23 = vand.u32 4294901760, %v4895_v24  ;;  %v16029_v15 = vld [vmem:[#allocation155_spill] sm:$0xff]  ;;  %v3158_v10 = vpop.f32.mrb[0].mxu1  ;;  %v3635_v24 = vsub.f32 %v16024_v53, %v16031_v13  ;;  %v4901_v41 = vsub.f32 %v16028_v12, %v16033_v20  ;;  %v16039_v12 = vld [vmem:[#allocation176_spill] sm:$0xff] }
 0x455   : > { %v1874_v61 = vpop.f32.mrb[0].mxu0  ;;  %7393 = vmatprep.subr.bf16.mxu1 %v7392_v1  ;;  %v14487_v57 = vand.u32 4294901760, %v16029_v15  ;;  %5733 = vst [vmem:[%s12414_s16 + $0x10] sm:$0xff] %v3158_v10  ;;  %v3160_v22 = vpop.f32.mrb[1].mxu1  ;;  %v16032_v1 = vand.u32 4294901760, %v16026_v47  ;;  %v16034_v10 = vand.u32 4294901760, %v16030_v49 }
 0x456   : > { %5731 = vst [vmem:[%s12414_s16] sm:$0xff] %v1874_v61  ;;  %v1876_v39 = vpop.f32.mrb[1].mxu0  ;;  %v3623_v61 = vsub.f32 %v16023_v8, %v14482_v2  ;;  %5734 = vst [vmem:[%s12414_s16 + $0x18] sm:$0xff] %v3160_v22  ;;  %v7396_v14 = vpack.c.bf16 %v4896_v23, %v4884_v21  ;;  %v3636_v21 = vand.u32 4294901760, %v3635_v24  ;;  %v16037_v23 = vld [vmem:[#allocation200_spill] sm:$0xff]  ;;  %v16040_v8 = vld [vmem:[#allocation182_spill] sm:$0xff]  ;;  %v4902_v38 = vand.u32 4294901760, %v4901_v41 }
 0x457   : > { %5732 = vst [vmem:[%s12414_s16 + $0x8] sm:$0xff] %v1876_v39  ;;  %v4889_v54 = vsub.f32 %v16026_v47, %v16032_v1  ;;  %v3606_v39 = vand.u32 4294901760, %v3605_v29  ;;  %v4907_v13 = vsub.f32 %v16029_v15, %v14487_v57  ;;  %v4919_v7 = vsub.f32 %v16030_v49, %v16034_v10  ;;  %v16036_v1 = vld [vmem:[#allocation173_spill] sm:$0xff]  ;;  %v16038_v47 = vld [vmem:[#allocation206_spill] sm:$0xff]  ;;  %v16041_v10 = vld [vmem:[#allocation203_spill] sm:$0xff] }
 0x458   : > { %v14492_v22 = vand.u32 4294901760, %v16036_v1  ;;  %v3624_v29 = vand.u32 4294901760, %v3623_v61  ;;  %v14493_v20 = vand.u32 4294901760, %v16038_v47  ;;  %v14497_v57 = vand.u32 4294901760, %v16040_v8  ;;  %v16042_v2 = vld [vmem:[#allocation239_spill] sm:$0xff] }
 0x459   : > { %v7014_v15 = vpack.c.bf16 %v3618_v4, %v3606_v39  ;;  %v14501_v49 = vand.u32 4294901760, %v16041_v10  ;;  %v14503_v25 = vand.u32 4294901760, %v16042_v2  ;;  %v4920_v61 = vand.u32 4294901760, %v4919_v7  ;;  %v16046_v7 = vld [vmem:[#allocation212_spill] sm:$0xff] }
 0x45a   : > { %v16043_v24 = vand.u32 4294901760, %v16035_v45  ;;  %v7016_v53 = vpack.c.bf16 %v3636_v21, %v3624_v29  ;;  %v3659_v39 = vsub.f32 %v16038_v47, %v14493_v20 }
 0x45b   : > { %7011 = vmatpush1.bf16.xpose.msra.mxu0 %v7010_v44  ;;  %v4890_v44 = vand.u32 4294901760, %v4889_v54  ;;  %v3641_v54 = vsub.f32 %v16036_v1, %v14492_v22  ;;  %v4931_v29 = vsub.f32 %v16041_v10, %v14501_v49  ;;  %v4943_v21 = vsub.f32 %v16042_v2, %v14503_v25  ;;  %v16051_v25 = vld [vmem:[#allocation218_spill] sm:$0xff] }
 0x45c   : > { %7013 = vmatprep.subr.bf16.mxu0 %v7012_v32  ;;  %7395 = vmatpush1.bf16.xpose.msra.mxu1 %v7394_v59  ;;  %v4908_v32 = vand.u32 4294901760, %v4907_v13  ;;  %v3629_v48 = vsub.f32 %v16035_v45, %v16043_v24  ;;  %v16044_v59 = vand.u32 4294901760, %v16037_v23  ;;  %v4925_v13 = vsub.f32 %v16040_v8, %v14497_v57  ;;  %v16048_v8 = vld [vmem:[#allocation243_spill] sm:$0xff] }
 0x45d   : > { %7397 = vmatprep.subr.bf16.mxu1 %v7396_v14  ;;  %v16045_v14 = vand.u32 4294901760, %v16039_v12  ;;  %v7398_v22 = vpack.c.bf16 %v4902_v38, %v4890_v44  ;;  %v3660_v57 = vand.u32 4294901760, %v3659_v39  ;;  %v14508_v24 = vand.u32 4294901760, %v16048_v8  ;;  %v16049_v38 = vld [vmem:[#allocation244_spill] sm:$0xff] }
 0x45e   : > { %v3647_v4 = vsub.f32 %v16037_v23, %v16044_v59  ;;  %v16047_v59 = vld [vmem:[#allocation240_spill] sm:$0xff]  ;;  %v7400_v47 = vpack.c.bf16 %v4920_v61, %v4908_v32  ;;  %v14505_v44 = vand.u32 4294901760, %v16049_v38  ;;  %v4926_v45 = vand.u32 4294901760, %v4925_v13 }
 0x45f   : > { %v4913_v41 = vsub.f32 %v16039_v12, %v16045_v14  ;;  %v14509_v20 = vand.u32 4294901760, %v16047_v59  ;;  %v3630_v14 = vand.u32 4294901760, %v3629_v48  ;;  %v3642_v12 = vand.u32 4294901760, %v3641_v54  ;;  %v16052_v48 = vld [vmem:[#allocation215_spill] sm:$0xff] }
 0x460   : > { %v3648_v23 = vand.u32 4294901760, %v3647_v4  ;;  %v16050_v49 = vand.u32 4294901760, %v16046_v7  ;;  %v14506_v2 = vand.u32 4294901760, %v16051_v25  ;;  %v4944_v32 = vand.u32 4294901760, %v4943_v21  ;;  %v16053_v4 = vld [vmem:[#allocation245_spill] sm:$0xff] }
 0x461   : > { %v4914_v1 = vand.u32 4294901760, %v4913_v41  ;;  %v14507_v61 = vand.u32 4294901760, %v16052_v48  ;;  %v7018_v54 = vpack.c.bf16 %v3642_v12, %v3630_v14  ;;  %v14510_v39 = vand.u32 4294901760, %v16053_v4 }
 0x462   : > { %v3653_v10 = vsub.f32 %v16046_v7, %v16050_v49  ;;  %v14512_v41 = vand.u32 4294901760, %v11529_v33  ;;  %v7020_v13 = vpack.c.bf16 %v3660_v57, %v3648_v23  ;;  %v3671_v49 = vsub.f32 %v16048_v8, %v14508_v24  ;;  %v16055_v24 = vld [vmem:[#allocation228_spill] sm:$0xff] }
 0x463   : > { %7015 = vmatpush1.bf16.xpose.msra.mxu0 %v7014_v15  ;;  %v4932_v15 = vand.u32 4294901760, %v4931_v29  ;;  %v7402_v29 = vpack.c.bf16 %v4926_v45, %v4914_v1  ;;  %v4937_v21 = vsub.f32 %v16051_v25, %v14506_v2  ;;  %v4949_v57 = vsub.f32 %v16052_v48, %v14507_v61 }
 0x464   : > { %7017 = vmatprep.subr.bf16.mxu0 %v7016_v53  ;;  %7399 = vmatpush1.bf16.xpose.msra.mxu1 %v7398_v22  ;;  %v3665_v53 = vsub.f32 %v16047_v59, %v14509_v20  ;;  %v3683_v22 = vsub.f32 %v16049_v38, %v14505_v44  ;;  %v3654_v12 = vand.u32 4294901760, %v3653_v10  ;;  %v4955_v23 = vsub.f32 %v16053_v4, %v14510_v39  ;;  %v16054_v44 = vld [vmem:[#allocation247_spill] sm:$0xff] }
 0x465   : > { %7401 = vmatprep.subr.bf16.mxu1 %v7400_v47  ;;  %v7404_v47 = vpack.c.bf16 %v4944_v32, %v4932_v15  ;;  %v4967_v45 = vsub.f32 %v11529_v33, %v14512_v41  ;;  %v14516_v1 = vand.u32 4294901760, %v11541_v6  ;;  %v14515_v2 = vand.u32 4294901760, %v16054_v44 }
 0x466   : > { %v3666_v14 = vand.u32 4294901760, %v3665_v53  ;;  %v3672_v10 = vand.u32 4294901760, %v3671_v49  ;;  %v3684_v15 = vand.u32 4294901760, %v3683_v22  ;;  %v4938_v32 = vand.u32 4294901760, %v4937_v21 }
 0x467   : > { %v4950_v61 = vand.u32 4294901760, %v4949_v57  ;;  %v14513_v20 = vand.u32 4294901760, %v16055_v24  ;;  %v4956_v39 = vand.u32 4294901760, %v4955_v23  ;;  %v4968_v4 = vand.u32 4294901760, %v4967_v45 }
 0x468   : > { %v7022_v53 = vpack.c.bf16 %v3666_v14, %v3654_v12  ;;  %v3677_v41 = vsub.f32 %v11541_v6, %v14516_v1  ;;  %v7024_v49 = vpack.c.bf16 %v3684_v15, %v3672_v10  ;;  %v7412_v15 = vpack.c.bf16 %v15847_v34, %v15846_v31 }
 0x469   : > { %v7406_v22 = vpack.c.bf16 %v4950_v61, %v4938_v32  ;;  %v4973_v21 = vsub.f32 %v16055_v24, %v14513_v20  ;;  %v7028_v61 = vpack.c.bf16 %v15845_v27, %v15844_v36  ;;  %v7416_v32 = vpack.c.bf16 %v15882_v63, %v15881_v43 }
 0x46a   : > { %v3678_v12 = vand.u32 4294901760, %v3677_v41  ;;  %v7414_v41 = vpack.c.bf16 %v15877_v9, %v15875_v16 }
 0x46b   : > { %7019 = vmatpush1.bf16.xpose.msra.mxu0 %v7018_v54  ;;  %v14514_v54 = vand.u32 4294901760, %v11555_v37  ;;  %v4974_v23 = vand.u32 4294901760, %v4973_v21  ;;  %v7038_v21 = vpack.c.bf16 %v15909_v40, %v15905_v30 }
 0x46c   : > { %7021 = vmatprep.subr.bf16.mxu0 %v7020_v13  ;;  %7403 = vmatpush1.bf16.xpose.msra.mxu1 %v7402_v29  ;;  %v3689_v13 = vsub.f32 %v16054_v44, %v14515_v2  ;;  %v16071_v2 = vld [vmem:[#allocation41_spill] sm:$0xff] }
 0x46d   : > { %7405 = vmatprep.subr.bf16.mxu1 %v7404_v47  ;;  %v4961_v29 = vsub.f32 %v11555_v37, %v14514_v54  ;;  %v7408_v47 = vpack.c.bf16 %v4968_v4, %v4956_v39  ;;  %v7030_v4 = vpack.c.bf16 %v15867_v56, %v15859_v26  ;;  %v7032_v39 = vpack.c.bf16 %v15873_v28, %v15872_v19  ;;  %v16070_v54 = vld [vmem:[#allocation180_spill] sm:$0xff] }
 0x46e   : > { %v3690_v14 = vand.u32 4294901760, %v3689_v13  ;;  %v7034_v13 = vpack.c.bf16 %v15893_v55, %v15892_v51  ;;  %v7432_v1 = vpack.c.bf16 %v16071_v2, %v16070_v54  ;;  %v16083_v2 = vld [vmem:[#allocation81_spill] sm:$0xff] }
 0x46f   : > { %v4962_v57 = vand.u32 4294901760, %v4961_v29  ;;  %v7420_v29 = vpack.c.bf16 %v15899_v52, %v15898_v46 }
 0x470   : > { %v7026_v45 = vpack.c.bf16 %v3690_v14, %v3678_v12  ;;  %v7422_v12 = vpack.c.bf16 %v15915_v60, %v15914_v17  ;;  %v7424_v14 = vpack.c.bf16 %v15917_v11, %v15916_v5 }
 0x471   : > { %v7410_v10 = vpack.c.bf16 %v4974_v23, %v4962_v57  ;;  %v16057_v57 = vld [vmem:[#allocation130_spill] sm:$0xff] }
 0x472   : > { %v7042_v23 = vpack.c.bf16 %v16057_v57, %v15923_v42 }
 0x473   : > { %7023 = vmatpush1.bf16.xpose.msra.mxu0 %v7022_v53  ;;  %v16056_v53 = vld [vmem:[#allocation231_spill] sm:$0xff] }
 0x474   : > { %7025 = vmatprep.subr.bf16.mxu0 %v7024_v49  ;;  %7407 = vmatpush1.bf16.xpose.msra.mxu1 %v7406_v22  ;;  %v7036_v49 = vpack.c.bf16 %v15895_v3, %v15894_v18  ;;  %v7418_v22 = vpack.c.bf16 %v15897_v0, %v15896_v62 }
 0x475   : > { %7409 = vmatprep.subr.bf16.mxu1 %v7408_v47  ;;  %v7040_v47 = vpack.c.bf16 %v15912_v35, %v15911_v58 }
 0x47b   : > { %7027 = vmatpush1.bf16.xpose.msra.mxu0 %v7026_v45  ;;  %v16058_v45 = vld [vmem:[#allocation132_spill] sm:$0xff] }
 0x47c   : > { %7029 = vmatprep.subr.bf16.mxu0 %v7028_v61  ;;  %7411 = vmatpush1.bf16.xpose.msra.mxu1 %v7410_v10  ;;  %v16059_v61 = vld [vmem:[#allocation133_spill] sm:$0xff] }
 0x47d   : > { %7413 = vmatprep.subr.bf16.mxu1 %v7412_v15  ;;  %v7044_v10 = vpack.c.bf16 %v16059_v61, %v16058_v45  ;;  %v16060_v15 = vld [vmem:[#allocation135_spill] sm:$0xff] }
 0x482   : > { %3695 = vmatmul.mubr.f32.vlgmr.msra.gmra.mrb[2].mxu0 %v15308_v50 }
 0x483   : > { %7031 = vmatpush1.bf16.xpose.msra.mxu0 %v7030_v4  ;;  %3895 = vmatprep.mubr.f32.mxu0 %v16056_v53  ;;  %v16061_v4 = vld [vmem:[#allocation136_spill] sm:$0xff] }
 0x484   : > { %7033 = vmatprep.subr.bf16.mxu0 %v7032_v39  ;;  %4979 = vmatmul.mubr.f32.vlgmr.msra.gmra.mrb[2].mxu1 %v15308_v50  ;;  %v7426_v39 = vpack.c.bf16 %v16061_v4, %v16060_v15  ;;  %v16075_v50 = vld [vmem:[#allocation56_spill] sm:$0xff] }
 0x485   : > { %7415 = vmatpush1.bf16.xpose.msra.mxu1 %v7414_v41  ;;  %5179 = vmatprep.mubr.f32.mxu1 %v16056_v53  ;;  %v16062_v41 = vld [vmem:[#allocation162_spill] sm:$0xff] }
 0x486   : > { %7417 = vmatprep.subr.bf16.mxu1 %v7416_v32  ;;  %v16063_v32 = vld [vmem:[#allocation169_spill] sm:$0xff] }
 0x487   : > { %v7428_v53 = vpack.c.bf16 %v16063_v32, %v16062_v41 }
 0x48b   : > { %7035 = vmatpush1.bf16.xpose.msra.mxu0 %v7034_v13  ;;  %v16064_v13 = vld [vmem:[#allocation168_spill] sm:$0xff] }
 0x48c   : > { %7037 = vmatprep.subr.bf16.mxu0 %v7036_v49  ;;  %v16065_v49 = vld [vmem:[#allocation174_spill] sm:$0xff] }
 0x48d   : > { %7419 = vmatpush1.bf16.xpose.msra.mxu1 %v7418_v22  ;;  %v7046_v22 = vpack.c.bf16 %v16065_v49, %v16064_v13  ;;  %v16076_v49 = vld [vmem:[#allocation46_spill] sm:$0xff] }
 0x48e   : > { %7421 = vmatprep.subr.bf16.mxu1 %v7420_v29  ;;  %v16066_v29 = vld [vmem:[#allocation183_spill] sm:$0xff]  ;;  %v16077_v13 = vld [vmem:[#allocation50_spill] sm:$0xff] }
 0x48f   : > { %v7434_v41 = vpack.c.bf16 %v16077_v13, %v16076_v49 }
 0x493   : > { %7039 = vmatpush1.bf16.xpose.msra.mxu0 %v7038_v21  ;;  %v16067_v21 = vld [vmem:[#allocation181_spill] sm:$0xff] }
 0x494   : > { %7041 = vmatprep.subr.bf16.mxu0 %v7040_v47  ;;  %v7048_v47 = vpack.c.bf16 %v16067_v21, %v16066_v29  ;;  %v16078_v21 = vld [vmem:[#allocation58_spill] sm:$0xff]  ;;  %v16079_v29 = vld [vmem:[#allocation59_spill] sm:$0xff] }
 0x495   : > { %7423 = vmatpush1.bf16.xpose.msra.mxu1 %v7422_v12  ;;  %v16068_v12 = vld [vmem:[#allocation178_spill] sm:$0xff] }
 0x496   : > { %7425 = vmatprep.subr.bf16.mxu1 %v7424_v14  ;;  %v16069_v14 = vld [vmem:[#allocation177_spill] sm:$0xff] }
 0x497   : > { %v7430_v20 = vpack.c.bf16 %v16069_v14, %v16068_v12  ;;  %v7436_v14 = vpack.c.bf16 %v16079_v29, %v16078_v21  ;;  %v16091_v29 = vld [vmem:[#allocation105_spill] sm:$0xff] }
 0x49b   : > { %7043 = vmatpush1.bf16.xpose.msra.mxu0 %v7042_v23  ;;  %v16072_v23 = vld [vmem:[#allocation43_spill] sm:$0xff] }
 0x49c   : > { %7045 = vmatprep.subr.bf16.mxu0 %v7044_v10  ;;  %v16073_v10 = vld [vmem:[#allocation45_spill] sm:$0xff] }
 0x49d   : > { %7427 = vmatpush1.bf16.xpose.msra.mxu1 %v7426_v39  ;;  %v7050_v39 = vpack.c.bf16 %v16073_v10, %v16072_v23  ;;  %v16084_v10 = vld [vmem:[#allocation67_spill] sm:$0xff]  ;;  %v16085_v23 = vld [vmem:[#allocation69_spill] sm:$0xff] }
 0x49e   : > { %7429 = vmatprep.subr.bf16.mxu1 %v7428_v53  ;;  %v16074_v53 = vld [vmem:[#allocation55_spill] sm:$0xff]  ;;  %v7438_v12 = vpack.c.bf16 %v16085_v23, %v16084_v10 }
 0x49f   : > { %v7052_v32 = vpack.c.bf16 %v16075_v50, %v16074_v53  ;;  %v16086_v50 = vld [vmem:[#allocation82_spill] sm:$0xff]  ;;  %v16087_v53 = vld [vmem:[#allocation84_spill] sm:$0xff] }
 0x4a0   : > { %v7440_v13 = vpack.c.bf16 %v16087_v53, %v16086_v50  ;;  %v16099_v53 = vld [vmem:[#allocation157_spill] sm:$0xff] }
 0x4a3   : > { %7047 = vmatpush1.bf16.xpose.msra.mxu0 %v7046_v22  ;;  %v16080_v22 = vld [vmem:[#allocation61_spill] sm:$0xff] }
 0x4a4   : > { %7049 = vmatprep.subr.bf16.mxu0 %v7048_v47  ;;  %v16081_v47 = vld [vmem:[#allocation66_spill] sm:$0xff] }
 0x4a5   : > { %7431 = vmatpush1.bf16.xpose.msra.mxu1 %v7430_v20  ;;  %v7054_v20 = vpack.c.bf16 %v16081_v47, %v16080_v22  ;;  %v16092_v47 = vld [vmem:[#allocation91_spill] sm:$0xff]  ;;  %v16093_v22 = vld [vmem:[#allocation93_spill] sm:$0xff] }
 0x4a6   : > { %7433 = vmatprep.subr.bf16.mxu1 %v7432_v1  ;;  %v16082_v1 = vld [vmem:[#allocation79_spill] sm:$0xff]  ;;  %v7442_v49 = vpack.c.bf16 %v16093_v22, %v16092_v47 }
 0x4a7   : > { %v7056_v54 = vpack.c.bf16 %v16083_v2, %v16082_v1  ;;  %v16094_v2 = vld [vmem:[#allocation106_spill] sm:$0xff]  ;;  %v16095_v1 = vld [vmem:[#allocation108_spill] sm:$0xff] }
 0x4a8   : > { %v7444_v23 = vpack.c.bf16 %v16095_v1, %v16094_v2  ;;  %v16107_v1 = vld [vmem:[#allocation220_spill] sm:$0xff] }
 0x4ab   : > { %7051 = vmatpush1.bf16.xpose.msra.mxu0 %v7050_v39  ;;  %v16088_v39 = vld [vmem:[#allocation85_spill] sm:$0xff] }
 0x4ac   : > { %7053 = vmatprep.subr.bf16.mxu0 %v7052_v32  ;;  %v16089_v32 = vld [vmem:[#allocation90_spill] sm:$0xff] }
 0x4ad   : > { %7435 = vmatpush1.bf16.xpose.msra.mxu1 %v7434_v41  ;;  %v7058_v41 = vpack.c.bf16 %v16089_v32, %v16088_v39  ;;  %v16100_v32 = vld [vmem:[#allocation115_spill] sm:$0xff]  ;;  %v16101_v39 = vld [vmem:[#allocation117_spill] sm:$0xff] }
 0x4ae   : > { %7437 = vmatprep.subr.bf16.mxu1 %v7436_v14  ;;  %v16090_v14 = vld [vmem:[#allocation103_spill] sm:$0xff]  ;;  %v7446_v10 = vpack.c.bf16 %v16101_v39, %v16100_v32 }
 0x4af   : > { %v7060_v21 = vpack.c.bf16 %v16091_v29, %v16090_v14  ;;  %v16102_v29 = vld [vmem:[#allocation163_spill] sm:$0xff]  ;;  %v16103_v14 = vld [vmem:[#allocation172_spill] sm:$0xff] }
 0x4b0   : > { %v7448_v22 = vpack.c.bf16 %v16103_v14, %v16102_v29  ;;  %v16115_v14 = vld [vmem:[#allocation62_spill] sm:$0xff] }
 0x4b3   : > { %7055 = vmatpush1.bf16.xpose.msra.mxu0 %v7054_v20  ;;  %v16096_v20 = vld [vmem:[#allocation109_spill] sm:$0xff] }
 0x4b4   : > { %7057 = vmatprep.subr.bf16.mxu0 %v7056_v54  ;;  %v16097_v54 = vld [vmem:[#allocation114_spill] sm:$0xff] }
 0x4b5   : > { %7439 = vmatpush1.bf16.xpose.msra.mxu1 %v7438_v12  ;;  %v7062_v12 = vpack.c.bf16 %v16097_v54, %v16096_v20  ;;  %v16108_v54 = vld [vmem:[#allocation207_spill] sm:$0xff]  ;;  %v16109_v20 = vld [vmem:[#allocation208_spill] sm:$0xff] }
 0x4b6   : > { %7441 = vmatprep.subr.bf16.mxu1 %v7440_v13  ;;  %v16098_v13 = vld [vmem:[#allocation156_spill] sm:$0xff]  ;;  %v7450_v47 = vpack.c.bf16 %v16109_v20, %v16108_v54 }
 0x4b7   : > { %v7064_v50 = vpack.c.bf16 %v16099_v53, %v16098_v13  ;;  %v16110_v53 = vld [vmem:[#allocation216_spill] sm:$0xff]  ;;  %v16111_v13 = vld [vmem:[#allocation223_spill] sm:$0xff] }
 0x4b8   : > { %v7452_v39 = vpack.c.bf16 %v16111_v13, %v16110_v53  ;;  %v16123_v13 = vld [vmem:[#allocation110_spill] sm:$0xff] }
 0x4bb   : > { %7059 = vmatpush1.bf16.xpose.msra.mxu0 %v7058_v41  ;;  %v16104_v41 = vld [vmem:[#allocation201_spill] sm:$0xff] }
 0x4bc   : > { %7061 = vmatprep.subr.bf16.mxu0 %v7060_v21  ;;  %v16105_v21 = vld [vmem:[#allocation202_spill] sm:$0xff] }
 0x4bd   : > { %7443 = vmatpush1.bf16.xpose.msra.mxu1 %v7442_v49  ;;  %v7066_v49 = vpack.c.bf16 %v16105_v21, %v16104_v41  ;;  %v16116_v21 = vld [vmem:[#allocation229_spill] sm:$0xff]  ;;  %v16117_v41 = vld [vmem:[#allocation230_spill] sm:$0xff] }
 0x4be   : > { %7445 = vmatprep.subr.bf16.mxu1 %v7444_v23  ;;  %v16106_v23 = vld [vmem:[#allocation219_spill] sm:$0xff]  ;;  %v7454_v32 = vpack.c.bf16 %v16117_v41, %v16116_v21 }
 0x4bf   : > { %v7068_v2 = vpack.c.bf16 %v16107_v1, %v16106_v23  ;;  %v16118_v1 = vld [vmem:[#allocation60_spill] sm:$0xff]  ;;  %v16119_v23 = vld [vmem:[#allocation74_spill] sm:$0xff] }
 0x4c0   : > { %v7456_v20 = vpack.c.bf16 %v16119_v23, %v16118_v1  ;;  %v16131_v23 = vld [vmem:[#allocation158_spill] sm:$0xff] }
 0x4c3   : > { %7063 = vmatpush1.bf16.xpose.msra.mxu0 %v7062_v12  ;;  %v16112_v12 = vld [vmem:[#allocation226_spill] sm:$0xff] }
 0x4c4   : > { %7065 = vmatprep.subr.bf16.mxu0 %v7064_v50  ;;  %v16113_v50 = vld [vmem:[#allocation227_spill] sm:$0xff] }
 0x4c5   : > { %7447 = vmatpush1.bf16.xpose.msra.mxu1 %v7446_v10  ;;  %v7070_v10 = vpack.c.bf16 %v16113_v50, %v16112_v12  ;;  %v16124_v50 = vld [vmem:[#allocation80_spill] sm:$0xff]  ;;  %v16125_v12 = vld [vmem:[#allocation86_spill] sm:$0xff] }
 0x4c6   : > { %7449 = vmatprep.subr.bf16.mxu1 %v7448_v22  ;;  %v16114_v22 = vld [vmem:[#allocation57_spill] sm:$0xff]  ;;  %v7458_v54 = vpack.c.bf16 %v16125_v12, %v16124_v50 }
 0x4c7   : > { %v7072_v29 = vpack.c.bf16 %v16115_v14, %v16114_v22  ;;  %v16126_v14 = vld [vmem:[#allocation107_spill] sm:$0xff]  ;;  %v16127_v22 = vld [vmem:[#allocation122_spill] sm:$0xff] }
 0x4c8   : > { %v7460_v41 = vpack.c.bf16 %v16127_v22, %v16126_v14  ;;  %v16139_v22 = vld [vmem:[#allocation206_spill] sm:$0xff] }
 0x4cb   : > { %7067 = vmatpush1.bf16.xpose.msra.mxu0 %v7066_v49  ;;  %v16120_v49 = vld [vmem:[#allocation71_spill] sm:$0xff] }
 0x4cc   : > { %7069 = vmatprep.subr.bf16.mxu0 %v7068_v2  ;;  %v16121_v2 = vld [vmem:[#allocation77_spill] sm:$0xff] }
 0x4cd   : > { %7451 = vmatpush1.bf16.xpose.msra.mxu1 %v7450_v47  ;;  %v7074_v47 = vpack.c.bf16 %v16121_v2, %v16120_v49  ;;  %v16132_v2 = vld [vmem:[#allocation128_spill] sm:$0xff]  ;;  %v16133_v49 = vld [vmem:[#allocation134_spill] sm:$0xff] }
 0x4ce   : > { %7453 = vmatprep.subr.bf16.mxu1 %v7452_v39  ;;  %v16122_v39 = vld [vmem:[#allocation104_spill] sm:$0xff]  ;;  %v7462_v21 = vpack.c.bf16 %v16133_v49, %v16132_v2 }
 0x4cf   : > { %v7076_v53 = vpack.c.bf16 %v16123_v13, %v16122_v39  ;;  %v16134_v13 = vld [vmem:[#allocation155_spill] sm:$0xff]  ;;  %v16135_v39 = vld [vmem:[#allocation170_spill] sm:$0xff] }
 0x4d0   : > { %v7464_v12 = vpack.c.bf16 %v16135_v39, %v16134_v13 }
 0x4d3   : > { %7071 = vmatpush1.bf16.xpose.msra.mxu0 %v7070_v10  ;;  %v16128_v10 = vld [vmem:[#allocation119_spill] sm:$0xff] }
 0x4d4   : > { %7073 = vmatprep.subr.bf16.mxu0 %v7072_v29  ;;  %v16129_v29 = vld [vmem:[#allocation125_spill] sm:$0xff] }
 0x4d5   : > { %7455 = vmatpush1.bf16.xpose.msra.mxu1 %v7454_v32  ;;  %v7078_v32 = vpack.c.bf16 %v16129_v29, %v16128_v10  ;;  %v16140_v29 = vld [vmem:[#allocation176_spill] sm:$0xff]  ;;  %v16141_v10 = vld [vmem:[#allocation182_spill] sm:$0xff] }
 0x4d6   : > { %7457 = vmatprep.subr.bf16.mxu1 %v7456_v20  ;;  %v16130_v20 = vld [vmem:[#allocation152_spill] sm:$0xff]  ;;  %v7466_v50 = vpack.c.bf16 %v16141_v10, %v16140_v29 }
 0x4d7   : > { %v7080_v1 = vpack.c.bf16 %v16131_v23, %v16130_v20  ;;  %v16142_v23 = vld [vmem:[#allocation203_spill] sm:$0xff] }
 0x4d8   : > { %v16143_v20 = vld [vmem:[#allocation239_spill] sm:$0xff] }
 0x4d9   : > { %v7468_v49 = vpack.c.bf16 %v16143_v20, %v16142_v23 }
 0x4db   : > { %7075 = vmatpush1.bf16.xpose.msra.mxu0 %v7074_v47  ;;  %v16136_v47 = vld [vmem:[#allocation167_spill] sm:$0xff] }
 0x4dc   : > { %7077 = vmatprep.subr.bf16.mxu0 %v7076_v53  ;;  %v16137_v53 = vld [vmem:[#allocation173_spill] sm:$0xff] }
 0x4dd   : > { %7459 = vmatpush1.bf16.xpose.msra.mxu1 %v7458_v54  ;;  %v7082_v54 = vpack.c.bf16 %v16137_v53, %v16136_v47 }
 0x4de   : > { %7461 = vmatprep.subr.bf16.mxu1 %v7460_v41  ;;  %v16138_v41 = vld [vmem:[#allocation200_spill] sm:$0xff] }
 0x4df   : > { %v7084_v14 = vpack.c.bf16 %v16139_v22, %v16138_v41 }
 0x4e3   : > { %7079 = vmatpush1.bf16.xpose.msra.mxu0 %v7078_v32  ;;  %v16144_v32 = vld [vmem:[#allocation245_spill] sm:$0xff] }
 0x4e4   : > { %7081 = vmatprep.subr.bf16.mxu0 %v7080_v1  ;;  %v7086_v1 = vpack.c.bf16 %v16047_v59, %v16046_v7  ;;  %v7472_v10 = vpack.c.bf16 %v11529_v33, %v16144_v32  ;;  %v16149_v33 = vld [vmem:[#allocation233_spill] sm:$0xff] }
 0x4e5   : > { %7463 = vmatpush1.bf16.xpose.msra.mxu1 %v7462_v21  ;;  %v7088_v21 = vpack.c.bf16 %v16049_v38, %v16048_v8 }
 0x4e6   : > { %7465 = vmatprep.subr.bf16.mxu1 %v7464_v12  ;;  %v7470_v12 = vpack.c.bf16 %v16052_v48, %v16051_v25  ;;  %v16147_v48 = vld [vmem:[#allocation234_spill] sm:$0xff] }
 0x4eb   : > { %7083 = vmatpush1.bf16.xpose.msra.mxu0 %v7082_v54  ;;  %v16146_v54 = vld [vmem:[#allocation225_spill] sm:$0xff] }
 0x4ec   : > { %7085 = vmatprep.subr.bf16.mxu0 %v7084_v14  ;;  %v7090_v14 = vpack.c.bf16 %v16054_v44, %v11541_v6 }
 0x4ed   : > { %7467 = vmatpush1.bf16.xpose.msra.mxu1 %v7466_v50  ;;  %v7474_v50 = vpack.c.bf16 %v16055_v24, %v11555_v37  ;;  %v16158_v24 = vld [vmem:[#allocation256_spill] sm:$0xff] }
 0x4ee   : > { %7469 = vmatprep.subr.bf16.mxu1 %v7468_v49  ;;  %v16145_v49 = vld [vmem:[#allocation221_spill] sm:$0xff] }
 0x4f3   : > { %7087 = vmatpush1.bf16.xpose.msra.mxu0 %v7086_v1  ;;  %v16148_v1 = vld [vmem:[#allocation248_spill] sm:$0xff] }
 0x4f4   : > { %7089 = vmatprep.subr.bf16.mxu0 %v7088_v21  ;;  %v16150_v21 = vld [vmem:[#allocation249_spill] sm:$0xff] }
 0x4f5   : > { %7471 = vmatpush1.bf16.xpose.msra.mxu1 %v7470_v12  ;;  %v16152_v12 = vld [vmem:[#allocation251_spill] sm:$0xff] }
 0x4f6   : > { %7473 = vmatprep.subr.bf16.mxu1 %v7472_v10  ;;  %v16151_v10 = vld [vmem:[#allocation250_spill] sm:$0xff] }
 0x4fb   : > { %7091 = vmatpush1.bf16.xpose.msra.mxu0 %v7090_v14  ;;  %v16153_v14 = vld [vmem:[#allocation236_spill] sm:$0xff] }
 0x4fc   : > { %7093 = vmatprep.subr.bf16.mxu0 %v16145_v49  ;;  %v16156_v49 = vld [vmem:[#allocation254_spill] sm:$0xff] }
 0x4fd   : > { %7475 = vmatpush1.bf16.xpose.msra.mxu1 %v7474_v50  ;;  %v16154_v50 = vld [vmem:[#allocation252_spill] sm:$0xff] }
 0x4fe   : > { %7477 = vmatprep.subr.bf16.mxu1 %v16146_v54  ;;  %v16155_v54 = vld [vmem:[#allocation253_spill] sm:$0xff] }
 0x502   : > { %3898 = vmatmul.mubr.f32.vlgmr.msra.gmra.mrb[2].mxu0 %v16147_v48 }
 0x503   : > { %7095 = vmatpush1.bf16.xpose.msra.mxu0 %v16148_v1  ;;  %4035 = vmatprep.mubr.f32.mxu0 %v16149_v33  ;;  %v16157_v1 = vld [vmem:[#allocation255_spill] sm:$0xff] }
 0x504   : > { %7097 = vmatprep.subr.bf16.mxu0 %v16150_v21  ;;  %5182 = vmatmul.mubr.f32.vlgmr.msra.gmra.mrb[2].mxu1 %v16147_v48  ;;  %v16159_v21 = vld [vmem:[#allocation257_spill] sm:$0xff]  ;;  %v16160_v48 = vld [vmem:[#allocation258_spill] sm:$0xff] }
 0x505   : > { %7479 = vmatpush1.bf16.xpose.msra.mxu1 %v16151_v10  ;;  %5319 = vmatprep.mubr.f32.mxu1 %v16149_v33  ;;  %v16161_v10 = vld [vmem:[#allocation259_spill] sm:$0xff]  ;;  %v16162_v33 = vld [vmem:[#allocation260_spill] sm:$0xff] }
 0x506   : > { %7481 = vmatprep.subr.bf16.mxu1 %v16152_v12  ;;  %v16163_v12 = vld [vmem:[#allocation261_spill] sm:$0xff] }
 0x50b   : > { %7099 = vmatpush1.bf16.xpose.msra.mxu0 %v16153_v14  ;;  %v16164_v14 = vld [vmem:[#allocation262_spill] sm:$0xff] }
 0x50c   : > { %7101 = vmatprep.subr.bf16.mxu0 %v16154_v50  ;;  %v16165_v50 = vld [vmem:[#allocation263_spill] sm:$0xff] }
 0x50d   : > { %7483 = vmatpush1.bf16.xpose.msra.mxu1 %v16155_v54  ;;  %v16166_v54 = vld [vmem:[#allocation264_spill] sm:$0xff] }
 0x50e   : > { %7485 = vmatprep.subr.bf16.mxu1 %v16156_v49  ;;  %v16167_v49 = vld [vmem:[#allocation265_spill] sm:$0xff] }
 0x513   : > { %7103 = vmatpush1.bf16.xpose.msra.mxu0 %v16157_v1  ;;  %v16168_v1 = vld [vmem:[#allocation266_spill] sm:$0xff] }
 0x514   : > { %7105 = vmatprep.subr.bf16.mxu0 %v16158_v24  ;;  %v16169_v24 = vld [vmem:[#allocation267_spill] sm:$0xff] }
 0x515   : > { %7487 = vmatpush1.bf16.xpose.msra.mxu1 %v16159_v21  ;;  %v16170_v21 = vld [vmem:[#allocation268_spill] sm:$0xff] }
 0x516   : > { %7489 = vmatprep.subr.bf16.mxu1 %v16160_v48  ;;  %v16171_v48 = vld [vmem:[#allocation39_spill] sm:$0xff] }
 0x51b   : > { %7107 = vmatpush1.bf16.xpose.msra.mxu0 %v16161_v10  ;;  %v16172_v10 = vld [vmem:[#allocation40_spill] sm:$0xff] }
 0x51c   : > { %7109 = vmatprep.subr.bf16.mxu0 %v16162_v33  ;;  %v16173_v33 = vld [vmem:[#allocation52_spill] sm:$0xff] }
 0x51d   : > { %7491 = vmatpush1.bf16.xpose.msra.mxu1 %v16163_v12  ;;  %v16174_v12 = vld [vmem:[#allocation48_spill] sm:$0xff] }
 0x51e   : > { %7493 = vmatprep.subr.bf16.mxu1 %v16164_v14  ;;  %v16175_v14 = vld [vmem:[#allocation49_spill] sm:$0xff] }
 0x523   : > { %7111 = vmatpush1.bf16.xpose.msra.mxu0 %v16165_v50  ;;  %v16176_v50 = vld [vmem:[#allocation54_spill] sm:$0xff] }
 0x524   : > { %7113 = vmatprep.subr.bf16.mxu0 %v16166_v54  ;;  %v16177_v54 = vld [vmem:[#allocation70_spill] sm:$0xff] }
 0x525   : > { %7495 = vmatpush1.bf16.xpose.msra.mxu1 %v16167_v49  ;;  %v16178_v49 = vld [vmem:[#allocation75_spill] sm:$0xff] }
 0x526   : > { %7497 = vmatprep.subr.bf16.mxu1 %v16168_v1  ;;  %v16179_v1 = vld [vmem:[#allocation63_spill] sm:$0xff] }
 0x52b   : > { %7115 = vmatpush1.bf16.xpose.msra.mxu0 %v16169_v24  ;;  %v16180_v24 = vld [vmem:[#allocation64_spill] sm:$0xff] }
 0x52c   : > { %7117 = vmatprep.subr.bf16.mxu0 %v16170_v21  ;;  %v16181_v21 = vld [vmem:[#allocation76_spill] sm:$0xff] }
 0x52d   : > { %7499 = vmatpush1.bf16.xpose.msra.mxu1 %v16171_v48  ;;  %v16182_v48 = vld [vmem:[#allocation72_spill] sm:$0xff] }
 0x52e   : > { %7501 = vmatprep.subr.bf16.mxu1 %v16172_v10  ;;  %v16183_v10 = vld [vmem:[#allocation73_spill] sm:$0xff] }
 0x533   : > { %7119 = vmatpush1.bf16.xpose.msra.mxu0 %v16173_v33  ;;  %v16184_v33 = vld [vmem:[#allocation78_spill] sm:$0xff] }
 0x534   : > { %7121 = vmatprep.subr.bf16.mxu0 %v16174_v12  ;;  %v16185_v12 = vld [vmem:[#allocation94_spill] sm:$0xff] }
 0x535   : > { %7503 = vmatpush1.bf16.xpose.msra.mxu1 %v16175_v14  ;;  %v16186_v14 = vld [vmem:[#allocation99_spill] sm:$0xff] }
 0x536   : > { %7505 = vmatprep.subr.bf16.mxu1 %v16176_v50  ;;  %v16187_v50 = vld [vmem:[#allocation87_spill] sm:$0xff] }
 0x53b   : > { %7123 = vmatpush1.bf16.xpose.msra.mxu0 %v16177_v54  ;;  %v16188_v54 = vld [vmem:[#allocation88_spill] sm:$0xff] }
 0x53c   : > { %7125 = vmatprep.subr.bf16.mxu0 %v16178_v49  ;;  %v16189_v49 = vld [vmem:[#allocation100_spill] sm:$0xff] }
 0x53d   : > { %7507 = vmatpush1.bf16.xpose.msra.mxu1 %v16179_v1  ;;  %v16190_v1 = vld [vmem:[#allocation96_spill] sm:$0xff] }
 0x53e   : > { %7509 = vmatprep.subr.bf16.mxu1 %v16180_v24  ;;  %v16191_v24 = vld [vmem:[#allocation97_spill] sm:$0xff] }
 0x543   : > { %7127 = vmatpush1.bf16.xpose.msra.mxu0 %v16181_v21  ;;  %v16192_v21 = vld [vmem:[#allocation102_spill] sm:$0xff] }
 0x544   : > { %7129 = vmatprep.subr.bf16.mxu0 %v16182_v48  ;;  %v16193_v48 = vld [vmem:[#allocation118_spill] sm:$0xff] }
 0x545   : > { %7511 = vmatpush1.bf16.xpose.msra.mxu1 %v16183_v10  ;;  %v16194_v10 = vld [vmem:[#allocation148_spill] sm:$0xff] }
 0x546   : > { %7513 = vmatprep.subr.bf16.mxu1 %v16184_v33  ;;  %v16195_v33 = vld [vmem:[#allocation111_spill] sm:$0xff] }
 0x54b   : > { %7131 = vmatpush1.bf16.xpose.msra.mxu0 %v16185_v12  ;;  %v16196_v12 = vld [vmem:[#allocation112_spill] sm:$0xff] }
 0x54c   : > { %7133 = vmatprep.subr.bf16.mxu0 %v16186_v14  ;;  %v16197_v14 = vld [vmem:[#allocation145_spill] sm:$0xff] }
 0x54d   : > { %7515 = vmatpush1.bf16.xpose.msra.mxu1 %v16187_v50  ;;  %v16198_v50 = vld [vmem:[#allocation151_spill] sm:$0xff] }
 0x54e   : > { %7517 = vmatprep.subr.bf16.mxu1 %v16188_v54  ;;  %v16199_v54 = vld [vmem:[#allocation154_spill] sm:$0xff] }
 0x553   : > { %7135 = vmatpush1.bf16.xpose.msra.mxu0 %v16189_v49  ;;  %v16200_v49 = vld [vmem:[#allocation160_spill] sm:$0xff] }
 0x554   : > { %7137 = vmatprep.subr.bf16.mxu0 %v16190_v1  ;;  %v16201_v1 = vld [vmem:[#allocation204_spill] sm:$0xff] }
 0x555   : > { %7519 = vmatpush1.bf16.xpose.msra.mxu1 %v16191_v24  ;;  %v16202_v24 = vld [vmem:[#allocation205_spill] sm:$0xff] }
 0x556   : > { %7521 = vmatprep.subr.bf16.mxu1 %v16192_v21  ;;  %v16203_v21 = vld [vmem:[#allocation165_spill] sm:$0xff] }
 0x55b   : > { %7139 = vmatpush1.bf16.xpose.msra.mxu0 %v16193_v48  ;;  %v16204_v48 = vld [vmem:[#allocation166_spill] sm:$0xff] }
 0x55c   : > { %7141 = vmatprep.subr.bf16.mxu0 %v16194_v10  ;;  %v16205_v10 = vld [vmem:[#allocation210_spill] sm:$0xff] }
 0x55d   : > { %7523 = vmatpush1.bf16.xpose.msra.mxu1 %v16195_v33  ;;  %v16206_v33 = vld [vmem:[#allocation211_spill] sm:$0xff] }
 0x55e   : > { %7525 = vmatprep.subr.bf16.mxu1 %v16196_v12  ;;  %v16207_v12 = vld [vmem:[#allocation213_spill] sm:$0xff] }
 0x563   : > { %7143 = vmatpush1.bf16.xpose.msra.mxu0 %v16197_v14  ;;  %v16208_v14 = vld [vmem:[#allocation214_spill] sm:$0xff] }
 0x564   : > { %7145 = vmatprep.subr.bf16.mxu0 %v16198_v50 }
 0x565   : > { %7527 = vmatpush1.bf16.xpose.msra.mxu1 %v16199_v54  ;;  %v16209_v54 = vand.u32 4294901760, %v15844_v36  ;;  %v16217_v36 = vand.u32 4294901760, %v15872_v19 }
 0x566   : > { %7529 = vmatprep.subr.bf16.mxu1 %v16200_v49  ;;  %v16210_v49 = vand.u32 4294901760, %v15845_v27  ;;  %v16218_v27 = vand.u32 4294901760, %v15873_v28  ;;  %v16226_v28 = vand.u32 4294901760, %v15893_v55  ;;  %v16234_v55 = vand.u32 4294901760, %v15909_v40 }
 0x567   : > { %v16241_v40 = vand.u32 4294901760, %v15923_v42  ;;  %v16251_v42 = vld [vmem:[#allocation168_spill] sm:$0xff] }
 0x568   : > { %v7156_v50 = vpack.c.bf16 %v16210_v49, %v16209_v54  ;;  %v7160_v49 = vpack.c.bf16 %v16218_v27, %v16217_v36  ;;  %v16219_v54 = vld [vmem:[#allocation235_spill] sm:$0xff]  ;;  %v16232_v36 = vand.u32 4294901760, %v15899_v52  ;;  %v16239_v52 = vand.u32 4294901760, %v15916_v5 }
 0x569   : > { %v16246_v5 = vand.u32 4294901760, %v16061_v4 }
 0x56b   : > { %7147 = vmatpush1.bf16.xpose.msra.mxu0 %v16201_v1  ;;  %v16211_v1 = vld [vmem:[#allocation38_spill] sm:$0xff] }
 0x56c   : > { %7149 = vmatprep.subr.bf16.mxu0 %v16202_v24  ;;  %v16212_v24 = vand.u32 4294901760, %v15846_v31  ;;  %v16220_v31 = vand.u32 4294901760, %v15875_v16  ;;  %v16225_v16 = vand.u32 4294901760, %v15892_v51  ;;  %v16233_v51 = vand.u32 4294901760, %v15905_v30 }
 0x56d   : > { %7531 = vmatpush1.bf16.xpose.msra.mxu1 %v16203_v21  ;;  %v16213_v21 = vand.u32 4294901760, %v15847_v34  ;;  %v16221_v34 = vand.u32 4294901760, %v15877_v9  ;;  %v16227_v9 = vand.u32 4294901760, %v15894_v18  ;;  %v16242_v30 = vand.u32 4294901760, %v16057_v57 }
 0x56e   : > { %7533 = vmatprep.subr.bf16.mxu1 %v16204_v48  ;;  %v7162_v19 = vpack.c.bf16 %v16226_v28, %v16225_v16  ;;  %v7166_v18 = vpack.c.bf16 %v16234_v55, %v16233_v51  ;;  %v16252_v57 = vand.u32 4294901760, %v16251_v42  ;;  %v16265_v55 = vld [vmem:[#allocation41_spill] sm:$0xff]  ;;  %v16285_v42 = vld [vmem:[#allocation66_spill] sm:$0xff] }
 0x56f   : > { %v7540_v48 = vpack.c.bf16 %v16213_v21, %v16212_v24  ;;  %v7542_v24 = vpack.c.bf16 %v16221_v34, %v16220_v31  ;;  %v16222_v21 = vand.u32 4294901760, %v15881_v43  ;;  %v16228_v43 = vand.u32 4294901760, %v15895_v3 }
 0x570   : > { %v16235_v3 = vand.u32 4294901760, %v15911_v58  ;;  %v16240_v31 = vand.u32 4294901760, %v15917_v11  ;;  %v16243_v58 = vand.u32 4294901760, %v16058_v45  ;;  %v16247_v11 = vld [vmem:[#allocation162_spill] sm:$0xff] }
 0x571   : > { %v16253_v45 = vld [vmem:[#allocation174_spill] sm:$0xff] }
 0x572   : > { %v7552_v34 = vpack.c.bf16 %v16240_v31, %v16239_v52  ;;  %v16271_v52 = vld [vmem:[#allocation55_spill] sm:$0xff] }
 0x573   : > { %7151 = vmatpush1.bf16.xpose.msra.mxu0 %v16205_v10  ;;  %v16214_v10 = vld [vmem:[#allocation42_spill] sm:$0xff]  ;;  %v16272_v31 = vand.u32 4294901760, %v16271_v52  ;;  %v16305_v52 = vld [vmem:[#allocation105_spill] sm:$0xff] }
 0x574   : > { %7153 = vmatprep.subr.bf16.mxu0 %v16206_v33 }
 0x575   : > { %7535 = vmatpush1.bf16.xpose.msra.mxu1 %v16207_v12  ;;  %v16215_v12 = vand.u32 4294901760, %v15859_v26  ;;  %v16223_v26 = vand.u32 4294901760, %v15882_v63  ;;  %v7164_v63 = vpack.c.bf16 %v16228_v43, %v16227_v9  ;;  %v16255_v9 = vld [vmem:[#allocation183_spill] sm:$0xff] }
 0x576   : > { %7537 = vmatprep.subr.bf16.mxu1 %v16208_v14  ;;  %v16216_v14 = vand.u32 4294901760, %v15867_v56  ;;  %v16224_v56 = vld [vmem:[#allocation224_spill] sm:$0xff]  ;;  %v16256_v43 = vand.u32 4294901760, %v16255_v9  ;;  %v16289_v9 = vld [vmem:[#allocation81_spill] sm:$0xff] }
 0x578   : > { %v7158_v33 = vpack.c.bf16 %v16216_v14, %v16215_v12  ;;  %v16229_v12 = vand.u32 4294901760, %v15896_v62  ;;  %v16230_v14 = vand.u32 4294901760, %v15897_v0  ;;  %v16236_v62 = vand.u32 4294901760, %v15912_v35 }
 0x579   : > { %v7170_v35 = vpack.c.bf16 %v16242_v30, %v16241_v40 }
 0x57a   : > { %v7168_v0 = vpack.c.bf16 %v16236_v62, %v16235_v3  ;;  %v16267_v62 = vld [vmem:[#allocation43_spill] sm:$0xff] }
 0x57b   : > { %7155 = vmatpush1.bf16.xpose.msra.mxu0 %v16211_v1 }
 0x57c   : > { %7157 = vmatprep.subr.bf16.mxu0 %v7156_v50  ;;  %v7544_v50 = vpack.c.bf16 %v16223_v26, %v16222_v21  ;;  %v16248_v26 = vand.u32 4294901760, %v16247_v11  ;;  %v16281_v11 = vld [vmem:[#allocation59_spill] sm:$0xff] }
 0x57d   : > { %7539 = vmatpush1.bf16.xpose.msra.mxu1 %v16214_v10 }
 0x57e   : > { %7541 = vmatprep.subr.bf16.mxu1 %v7540_v48  ;;  %v7546_v48 = vpack.c.bf16 %v16230_v14, %v16229_v12  ;;  %v16259_v12 = vld [vmem:[#allocation178_spill] sm:$0xff] }
 0x57f   : > { %v16260_v14 = vand.u32 4294901760, %v16259_v12  ;;  %v16293_v12 = vld [vmem:[#allocation69_spill] sm:$0xff] }
 0x582   : > { %4039 = vmatmul.mubr.f32.vlgmr.msra.gmra.mrb[2].mxu0 %v16219_v54 }
 0x583   : > { %7159 = vmatpush1.bf16.xpose.msra.mxu0 %v7158_v33  ;;  %4302 = vmatprep.mubr.f32.mxu0 %v16224_v56  ;;  %v16231_v33 = vand.u32 4294901760, %v15898_v46  ;;  %v16238_v46 = vand.u32 4294901760, %v15915_v60 }
 0x584   : > { %7161 = vmatprep.subr.bf16.mxu0 %v7160_v49  ;;  %5323 = vmatmul.mubr.f32.vlgmr.msra.gmra.mrb[2].mxu1 %v16219_v54  ;;  %v16237_v49 = vand.u32 4294901760, %v15914_v17  ;;  %v16244_v17 = vand.u32 4294901760, %v16059_v61 }
 0x585   : > { %7543 = vmatpush1.bf16.xpose.msra.mxu1 %v7542_v24  ;;  %5586 = vmatprep.mubr.f32.mxu1 %v16224_v56  ;;  %v7548_v27 = vpack.c.bf16 %v16232_v36, %v16231_v33  ;;  %v16245_v24 = vand.u32 4294901760, %v16060_v15  ;;  %v16257_v15 = vld [vmem:[#allocation181_spill] sm:$0xff] }
 0x586   : > { %7545 = vmatprep.subr.bf16.mxu1 %v7544_v50  ;;  %v7550_v54 = vpack.c.bf16 %v16238_v46, %v16237_v49  ;;  %v7172_v60 = vpack.c.bf16 %v16244_v17, %v16243_v58  ;;  %v16249_v50 = vld [vmem:[#allocation169_spill] sm:$0xff]  ;;  %v16277_v17 = vld [vmem:[#allocation50_spill] sm:$0xff] }
 0x587   : > { %v7554_v21 = vpack.c.bf16 %v16246_v5, %v16245_v24  ;;  %v16250_v16 = vand.u32 4294901760, %v16249_v50  ;;  %v16269_v49 = vld [vmem:[#allocation45_spill] sm:$0xff]  ;;  %v16279_v5 = vld [vmem:[#allocation58_spill] sm:$0xff] }
 0x588   : > { %v16270_v46 = vand.u32 4294901760, %v16269_v49 }
 0x589   : > { %v7556_v28 = vpack.c.bf16 %v16250_v16, %v16248_v26  ;;  %v16282_v26 = vand.u32 4294901760, %v16281_v11  ;;  %v16283_v16 = vld [vmem:[#allocation61_spill] sm:$0xff] }
 0x58b   : > { %7163 = vmatpush1.bf16.xpose.msra.mxu0 %v7162_v19  ;;  %v16254_v19 = vand.u32 4294901760, %v16253_v45 }
 0x58c   : > { %7165 = vmatprep.subr.bf16.mxu0 %v7164_v63  ;;  %v16258_v63 = vand.u32 4294901760, %v16257_v15 }
 0x58d   : > { %7547 = vmatpush1.bf16.xpose.msra.mxu1 %v7546_v48  ;;  %v7174_v61 = vpack.c.bf16 %v16254_v19, %v16252_v57  ;;  %v16261_v48 = vld [vmem:[#allocation177_spill] sm:$0xff]  ;;  %v16286_v57 = vand.u32 4294901760, %v16285_v42  ;;  %v16287_v19 = vld [vmem:[#allocation79_spill] sm:$0xff] }
 0x58e   : > { %7549 = vmatprep.subr.bf16.mxu1 %v7548_v27  ;;  %v7176_v4 = vpack.c.bf16 %v16258_v63, %v16256_v43  ;;  %v16262_v33 = vand.u32 4294901760, %v16261_v48  ;;  %v16263_v27 = vld [vmem:[#allocation180_spill] sm:$0xff]  ;;  %v16290_v43 = vand.u32 4294901760, %v16289_v9  ;;  %v16291_v63 = vld [vmem:[#allocation67_spill] sm:$0xff] }
 0x58f   : > { %v16264_v51 = vand.u32 4294901760, %v16263_v27  ;;  %v16297_v27 = vld [vmem:[#allocation84_spill] sm:$0xff] }
 0x590   : > { %v7558_v36 = vpack.c.bf16 %v16262_v33, %v16260_v14  ;;  %v16294_v14 = vand.u32 4294901760, %v16293_v12  ;;  %v16295_v33 = vld [vmem:[#allocation82_spill] sm:$0xff] }
 0x593   : > { %7167 = vmatpush1.bf16.xpose.msra.mxu0 %v7166_v18  ;;  %v16266_v18 = vand.u32 4294901760, %v16265_v55 }
 0x594   : > { %7169 = vmatprep.subr.bf16.mxu0 %v7168_v0  ;;  %v16268_v0 = vand.u32 4294901760, %v16267_v62  ;;  %v16301_v62 = vld [vmem:[#allocation90_spill] sm:$0xff] }
 0x595   : > { %7551 = vmatpush1.bf16.xpose.msra.mxu1 %v7550_v54  ;;  %v7560_v3 = vpack.c.bf16 %v16266_v18, %v16264_v51  ;;  %v16298_v51 = vand.u32 4294901760, %v16297_v27  ;;  %v16299_v18 = vld [vmem:[#allocation85_spill] sm:$0xff] }
 0x596   : > { %7553 = vmatprep.subr.bf16.mxu1 %v7552_v34  ;;  %v7178_v54 = vpack.c.bf16 %v16270_v46, %v16268_v0  ;;  %v16273_v34 = vld [vmem:[#allocation56_spill] sm:$0xff]  ;;  %v16302_v0 = vand.u32 4294901760, %v16301_v62  ;;  %v16303_v46 = vld [vmem:[#allocation103_spill] sm:$0xff] }
 0x597   : > { %v16274_v40 = vand.u32 4294901760, %v16273_v34 }
 0x599   : > { %v7180_v30 = vpack.c.bf16 %v16274_v40, %v16272_v31  ;;  %v16306_v31 = vand.u32 4294901760, %v16305_v52  ;;  %v16307_v40 = vld [vmem:[#allocation91_spill] sm:$0xff] }
 0x59b   : > { %7171 = vmatpush1.bf16.xpose.msra.mxu0 %v7170_v35  ;;  %v16275_v35 = vld [vmem:[#allocation46_spill] sm:$0xff] }
 0x59c   : > { %7173 = vmatprep.subr.bf16.mxu0 %v7172_v60  ;;  %v16276_v58 = vand.u32 4294901760, %v16275_v35  ;;  %v16278_v60 = vand.u32 4294901760, %v16277_v17  ;;  %v16309_v35 = vld [vmem:[#allocation93_spill] sm:$0xff] }
 0x59d   : > { %7555 = vmatpush1.bf16.xpose.msra.mxu1 %v7554_v21  ;;  %v16280_v21 = vand.u32 4294901760, %v16279_v5  ;;  %v16313_v5 = vld [vmem:[#allocation108_spill] sm:$0xff] }
 0x59e   : > { %7557 = vmatprep.subr.bf16.mxu1 %v7556_v28  ;;  %v7562_v24 = vpack.c.bf16 %v16278_v60, %v16276_v58  ;;  %v16284_v28 = vand.u32 4294901760, %v16283_v16  ;;  %v16310_v58 = vand.u32 4294901760, %v16309_v35  ;;  %v16311_v60 = vld [vmem:[#allocation106_spill] sm:$0xff] }
 0x59f   : > { %v7564_v50 = vpack.c.bf16 %v16282_v26, %v16280_v21  ;;  %v16314_v21 = vand.u32 4294901760, %v16313_v5  ;;  %v16315_v26 = vld [vmem:[#allocation109_spill] sm:$0xff]  ;;  %v16317_v16 = vld [vmem:[#allocation114_spill] sm:$0xff] }
 0x5a0   : > { %v7182_v45 = vpack.c.bf16 %v16286_v57, %v16284_v28  ;;  %v16318_v28 = vand.u32 4294901760, %v16317_v16  ;;  %v16319_v57 = vld [vmem:[#allocation156_spill] sm:$0xff] }
 0x5a3   : > { %7175 = vmatpush1.bf16.xpose.msra.mxu0 %v7174_v61  ;;  %v16288_v61 = vand.u32 4294901760, %v16287_v19  ;;  %v16321_v19 = vld [vmem:[#allocation157_spill] sm:$0xff] }
 0x5a4   : > { %7177 = vmatprep.subr.bf16.mxu0 %v7176_v4  ;;  %v16292_v4 = vand.u32 4294901760, %v16291_v63  ;;  %v16325_v63 = vld [vmem:[#allocation117_spill] sm:$0xff] }
 0x5a5   : > { %7559 = vmatpush1.bf16.xpose.msra.mxu1 %v7558_v36  ;;  %v7184_v15 = vpack.c.bf16 %v16290_v43, %v16288_v61  ;;  %v16296_v36 = vand.u32 4294901760, %v16295_v33  ;;  %v16322_v61 = vand.u32 4294901760, %v16321_v19  ;;  %v16323_v43 = vld [vmem:[#allocation115_spill] sm:$0xff]  ;;  %v16329_v33 = vld [vmem:[#allocation172_spill] sm:$0xff] }
 0x5a6   : > { %7561 = vmatprep.subr.bf16.mxu1 %v7560_v3  ;;  %v7566_v48 = vpack.c.bf16 %v16294_v14, %v16292_v4  ;;  %v16300_v3 = vand.u32 4294901760, %v16299_v18  ;;  %v16326_v4 = vand.u32 4294901760, %v16325_v63  ;;  %v16327_v14 = vld [vmem:[#allocation163_spill] sm:$0xff]  ;;  %v16333_v18 = vld [vmem:[#allocation202_spill] sm:$0xff] }
 0x5a7   : > { %v7568_v55 = vpack.c.bf16 %v16298_v51, %v16296_v36  ;;  %v16330_v36 = vand.u32 4294901760, %v16329_v33  ;;  %v16331_v51 = vld [vmem:[#allocation201_spill] sm:$0xff] }
 0x5a8   : > { %v7186_v49 = vpack.c.bf16 %v16302_v0, %v16300_v3  ;;  %v16334_v3 = vand.u32 4294901760, %v16333_v18  ;;  %v16335_v0 = vld [vmem:[#allocation219_spill] sm:$0xff] }
 0x5ab   : > { %7179 = vmatpush1.bf16.xpose.msra.mxu0 %v7178_v54  ;;  %v16304_v54 = vand.u32 4294901760, %v16303_v46  ;;  %v16337_v46 = vld [vmem:[#allocation220_spill] sm:$0xff] }
 0x5ac   : > { %7181 = vmatprep.subr.bf16.mxu0 %v7180_v30  ;;  %v16308_v30 = vand.u32 4294901760, %v16307_v40  ;;  %v16341_v40 = vld [vmem:[#allocation208_spill] sm:$0xff] }
 0x5ad   : > { %7563 = vmatpush1.bf16.xpose.msra.mxu1 %v7562_v24  ;;  %v7188_v34 = vpack.c.bf16 %v16306_v31, %v16304_v54  ;;  %v16312_v24 = vand.u32 4294901760, %v16311_v60  ;;  %v16338_v54 = vand.u32 4294901760, %v16337_v46  ;;  %v16339_v31 = vld [vmem:[#allocation207_spill] sm:$0xff] }
 0x5ae   : > { %7565 = vmatprep.subr.bf16.mxu1 %v7564_v50  ;;  %v7570_v17 = vpack.c.bf16 %v16310_v58, %v16308_v30  ;;  %v16316_v50 = vand.u32 4294901760, %v16315_v26  ;;  %v16342_v30 = vand.u32 4294901760, %v16341_v40  ;;  %v16343_v58 = vld [vmem:[#allocation216_spill] sm:$0xff]  ;;  %v16345_v60 = vld [vmem:[#allocation223_spill] sm:$0xff] }
 0x5af   : > { %v7572_v11 = vpack.c.bf16 %v16314_v21, %v16312_v24  ;;  %v16346_v24 = vand.u32 4294901760, %v16345_v60  ;;  %v16347_v21 = vld [vmem:[#allocation226_spill] sm:$0xff]  ;;  %v16349_v26 = vld [vmem:[#allocation227_spill] sm:$0xff] }
 0x5b0   : > { %v7190_v42 = vpack.c.bf16 %v16318_v28, %v16316_v50  ;;  %v16350_v50 = vand.u32 4294901760, %v16349_v26  ;;  %v16351_v28 = vld [vmem:[#allocation57_spill] sm:$0xff] }
 0x5b3   : > { %7183 = vmatpush1.bf16.xpose.msra.mxu0 %v7182_v45  ;;  %v16320_v45 = vand.u32 4294901760, %v16319_v57  ;;  %v16353_v57 = vld [vmem:[#allocation62_spill] sm:$0xff] }
 0x5b4   : > { %7185 = vmatprep.subr.bf16.mxu0 %v7184_v15  ;;  %v16324_v15 = vand.u32 4294901760, %v16323_v43  ;;  %v16357_v43 = vld [vmem:[#allocation230_spill] sm:$0xff] }
 0x5b5   : > { %7567 = vmatpush1.bf16.xpose.msra.mxu1 %v7566_v48  ;;  %v7192_v9 = vpack.c.bf16 %v16322_v61, %v16320_v45  ;;  %v16328_v48 = vand.u32 4294901760, %v16327_v14  ;;  %v16354_v45 = vand.u32 4294901760, %v16353_v57  ;;  %v16355_v61 = vld [vmem:[#allocation229_spill] sm:$0xff]  ;;  %v16361_v14 = vld [vmem:[#allocation74_spill] sm:$0xff] }
 0x5b6   : > { %7569 = vmatprep.subr.bf16.mxu1 %v7568_v55  ;;  %v7574_v12 = vpack.c.bf16 %v16326_v4, %v16324_v15  ;;  %v16332_v55 = vand.u32 4294901760, %v16331_v51  ;;  %v16358_v15 = vand.u32 4294901760, %v16357_v43  ;;  %v16359_v4 = vld [vmem:[#allocation60_spill] sm:$0xff]  ;;  %v16365_v51 = vld [vmem:[#allocation77_spill] sm:$0xff]  ;;  %v16390_v43 = vand.u32 4294901760, %v16134_v13 }
 0x5b7   : > { %v7576_v27 = vpack.c.bf16 %v16330_v36, %v16328_v48  ;;  %v16362_v48 = vand.u32 4294901760, %v16361_v14  ;;  %v16363_v36 = vld [vmem:[#allocation71_spill] sm:$0xff] }
 0x5b8   : > { %v7194_v62 = vpack.c.bf16 %v16334_v3, %v16332_v55  ;;  %v16366_v55 = vand.u32 4294901760, %v16365_v51  ;;  %v16367_v3 = vld [vmem:[#allocation104_spill] sm:$0xff] }
 0x5bb   : > { %7187 = vmatpush1.bf16.xpose.msra.mxu0 %v7186_v49  ;;  %v16336_v49 = vand.u32 4294901760, %v16335_v0  ;;  %v16369_v0 = vld [vmem:[#allocation110_spill] sm:$0xff] }
 0x5bc   : > { %7189 = vmatprep.subr.bf16.mxu0 %v7188_v34  ;;  %v16340_v34 = vand.u32 4294901760, %v16339_v31  ;;  %v16373_v31 = vld [vmem:[#allocation86_spill] sm:$0xff] }
 0x5bd   : > { %7571 = vmatpush1.bf16.xpose.msra.mxu1 %v7570_v17  ;;  %v7196_v52 = vpack.c.bf16 %v16338_v54, %v16336_v49  ;;  %v16344_v17 = vand.u32 4294901760, %v16343_v58  ;;  %v16370_v49 = vand.u32 4294901760, %v16369_v0  ;;  %v16371_v54 = vld [vmem:[#allocation80_spill] sm:$0xff]  ;;  %v16377_v58 = vld [vmem:[#allocation122_spill] sm:$0xff]  ;;  %v16406_v0 = vld [vmem:[#allocation215_spill] sm:$0xff] }
 0x5be   : > { %7573 = vmatprep.subr.bf16.mxu1 %v7572_v11  ;;  %v7578_v35 = vpack.c.bf16 %v16342_v30, %v16340_v34  ;;  %v16348_v11 = vand.u32 4294901760, %v16347_v21  ;;  %v16374_v34 = vand.u32 4294901760, %v16373_v31  ;;  %v16375_v30 = vld [vmem:[#allocation107_spill] sm:$0xff]  ;;  %v16381_v21 = vld [vmem:[#allocation125_spill] sm:$0xff] }
 0x5bf   : > { %v7580_v5 = vpack.c.bf16 %v16346_v24, %v16344_v17  ;;  %v16378_v17 = vand.u32 4294901760, %v16377_v58  ;;  %v16379_v24 = vld [vmem:[#allocation119_spill] sm:$0xff]  ;;  %v16423_v58 = vld [vmem:[#allocation236_spill] sm:$0xff] }
 0x5c0   : > { %v7198_v16 = vpack.c.bf16 %v16350_v50, %v16348_v11  ;;  %v16382_v11 = vand.u32 4294901760, %v16381_v21  ;;  %v16383_v50 = vld [vmem:[#allocation152_spill] sm:$0xff] }
 0x5c3   : > { %7191 = vmatpush1.bf16.xpose.msra.mxu0 %v7190_v42  ;;  %v16352_v42 = vand.u32 4294901760, %v16351_v28  ;;  %v16385_v28 = vld [vmem:[#allocation158_spill] sm:$0xff] }
 0x5c4   : > { %7193 = vmatprep.subr.bf16.mxu0 %v7192_v9  ;;  %v16356_v9 = vand.u32 4294901760, %v16355_v61 }
 0x5c5   : > { %7575 = vmatpush1.bf16.xpose.msra.mxu1 %v7574_v12  ;;  %v7200_v19 = vpack.c.bf16 %v16354_v45, %v16352_v42  ;;  %v16360_v12 = vand.u32 4294901760, %v16359_v4  ;;  %v16386_v42 = vand.u32 4294901760, %v16385_v28  ;;  %v16387_v45 = vand.u32 4294901760, %v16132_v2 }
 0x5c6   : > { %7577 = vmatprep.subr.bf16.mxu1 %v7576_v27  ;;  %v7582_v63 = vpack.c.bf16 %v16358_v15, %v16356_v9  ;;  %v16364_v27 = vand.u32 4294901760, %v16363_v36  ;;  %v16391_v15 = vand.u32 4294901760, %v16135_v39  ;;  %v16392_v4 = vand.u32 4294901760, %v16136_v47 }
 0x5c7   : > { %v7584_v33 = vpack.c.bf16 %v16362_v48, %v16360_v12  ;;  %v16393_v12 = vand.u32 4294901760, %v16137_v53  ;;  %v16394_v48 = vand.u32 4294901760, %v16138_v41  ;;  %v16395_v2 = vand.u32 4294901760, %v16139_v22 }
 0x5c8   : > { %v7202_v18 = vpack.c.bf16 %v16366_v55, %v16364_v27  ;;  %v16396_v36 = vand.u32 4294901760, %v16140_v29  ;;  %v16397_v27 = vld [vmem:[#allocation182_spill] sm:$0xff]  ;;  %v16399_v39 = vand.u32 4294901760, %v16142_v23  ;;  %v16400_v55 = vand.u32 4294901760, %v16143_v20 }
 0x5c9   : > { %v7210_v14 = vpack.c.bf16 %v16393_v12, %v16392_v4  ;;  %v16398_v13 = vand.u32 4294901760, %v16397_v27  ;;  %v16401_v47 = vand.u32 4294901760, %v16046_v7  ;;  %v16402_v53 = vand.u32 4294901760, %v16047_v59 }
 0x5ca   : > { %v16403_v41 = vand.u32 4294901760, %v16048_v8  ;;  %v16404_v29 = vand.u32 4294901760, %v16049_v38  ;;  %v16407_v23 = vand.u32 4294901760, %v16406_v0  ;;  %v16408_v20 = vand.u32 4294901760, %v16144_v32  ;;  %v16417_v32 = vld [vmem:[#allocation225_spill] sm:$0xff] }
 0x5cb   : > { %7195 = vmatpush1.bf16.xpose.msra.mxu0 %v7194_v62  ;;  %v16368_v62 = vand.u32 4294901760, %v16367_v3  ;;  %v7594_v51 = vpack.c.bf16 %v16398_v13, %v16396_v36  ;;  %v7214_v22 = vpack.c.bf16 %v16402_v53, %v16401_v47  ;;  %v16411_v7 = vand.u32 4294901760, %v11541_v6  ;;  %v16420_v6 = vld [vmem:[#allocation249_spill] sm:$0xff] }
 0x5cc   : > { %7197 = vmatprep.subr.bf16.mxu0 %v7196_v52  ;;  %v16372_v52 = vand.u32 4294901760, %v16371_v54  ;;  %v7216_v3 = vpack.c.bf16 %v16404_v29, %v16403_v41  ;;  %v16412_v8 = vand.u32 4294901760, %v16054_v44  ;;  %v16413_v38 = vand.u32 4294901760, %v11555_v37  ;;  %v16421_v37 = vld [vmem:[#allocation250_spill] sm:$0xff]  ;;  %v16422_v44 = vld [vmem:[#allocation251_spill] sm:$0xff] }
 0x5cd   : > { %7579 = vmatpush1.bf16.xpose.msra.mxu1 %v7578_v35  ;;  %v7204_v46 = vpack.c.bf16 %v16370_v49, %v16368_v62  ;;  %v16376_v35 = vand.u32 4294901760, %v16375_v30  ;;  %v16405_v62 = vand.u32 4294901760, %v16051_v25  ;;  %v16414_v25 = vld [vmem:[#allocation228_spill] sm:$0xff] }
 0x5ce   : > { %7581 = vmatprep.subr.bf16.mxu1 %v7580_v5  ;;  %v7586_v40 = vpack.c.bf16 %v16374_v34, %v16372_v52  ;;  %v16380_v5 = vand.u32 4294901760, %v16379_v24  ;;  %v7218_v59 = vpack.c.bf16 %v16412_v8, %v16411_v7  ;;  %v16415_v31 = vand.u32 4294901760, %v16414_v25  ;;  %v16418_v30 = vld [vmem:[#allocation232_spill] sm:$0xff] }
 0x5cf   : > { %v7588_v60 = vpack.c.bf16 %v16378_v17, %v16376_v35  ;;  %v7598_v49 = vpack.c.bf16 %v16407_v23, %v16405_v62  ;;  %v16419_v35 = vld [vmem:[#allocation248_spill] sm:$0xff] }
 0x5d0   : > { %v7206_v26 = vpack.c.bf16 %v16382_v11, %v16380_v5  ;;  %v7602_v34 = vpack.c.bf16 %v16415_v31, %v16413_v38  ;;  %v16424_v17 = vld [vmem:[#allocation252_spill] sm:$0xff] }
 0x5d3   : > { %7199 = vmatpush1.bf16.xpose.msra.mxu0 %v7198_v16  ;;  %v16384_v16 = vand.u32 4294901760, %v16383_v50 }
 0x5d4   : > { %7201 = vmatprep.subr.bf16.mxu0 %v7200_v19  ;;  %v16388_v19 = vld [vmem:[#allocation134_spill] sm:$0xff] }
 0x5d5   : > { %7583 = vmatpush1.bf16.xpose.msra.mxu1 %v7582_v63  ;;  %v7208_v57 = vpack.c.bf16 %v16386_v42, %v16384_v16  ;;  %v16389_v61 = vand.u32 4294901760, %v16388_v19  ;;  %v7592_v63 = vpack.c.bf16 %v16391_v15, %v16390_v43 }
 0x5d6   : > { %7585 = vmatprep.subr.bf16.mxu1 %v7584_v33  ;;  %v7212_v33 = vpack.c.bf16 %v16395_v2, %v16394_v48 }
 0x5d7   : > { %v7590_v9 = vpack.c.bf16 %v16389_v61, %v16387_v45 }
 0x5db   : > { %7203 = vmatpush1.bf16.xpose.msra.mxu0 %v7202_v18  ;;  %v7596_v18 = vpack.c.bf16 %v16400_v55, %v16399_v39 }
 0x5dc   : > { %7205 = vmatprep.subr.bf16.mxu0 %v7204_v46  ;;  %v16409_v46 = vld [vmem:[#allocation246_spill] sm:$0xff] }
 0x5dd   : > { %7587 = vmatpush1.bf16.xpose.msra.mxu1 %v7586_v40  ;;  %v16410_v54 = vand.u32 4294901760, %v16409_v46  ;;  %v16416_v40 = vld [vmem:[#allocation221_spill] sm:$0xff] }
 0x5de   : > { %7589 = vmatprep.subr.bf16.mxu1 %v7588_v60  ;;  %v16428_v60 = vld [vmem:[#allocation254_spill] sm:$0xff] }
 0x5df   : > { %v7600_v52 = vpack.c.bf16 %v16410_v54, %v16408_v20 }
 0x5e3   : > { %7207 = vmatpush1.bf16.xpose.msra.mxu0 %v7206_v26 }
 0x5e4   : > { %7209 = vmatprep.subr.bf16.mxu0 %v7208_v57 }
 0x5e5   : > { %7591 = vmatpush1.bf16.xpose.msra.mxu1 %v7590_v9 }
 0x5e6   : > { %7593 = vmatprep.subr.bf16.mxu1 %v7592_v63 }
 0x5eb   : > { %7211 = vmatpush1.bf16.xpose.msra.mxu0 %v7210_v14 }
 0x5ec   : > { %7213 = vmatprep.subr.bf16.mxu0 %v7212_v33 }
 0x5ed   : > { %7595 = vmatpush1.bf16.xpose.msra.mxu1 %v7594_v51 }
 0x5ee   : > { %7597 = vmatprep.subr.bf16.mxu1 %v7596_v18 }
 0x5f3   : > { %7215 = vmatpush1.bf16.xpose.msra.mxu0 %v7214_v22 }
 0x5f4   : > { %7217 = vmatprep.subr.bf16.mxu0 %v7216_v3 }
 0x5f5   : > { %7599 = vmatpush1.bf16.xpose.msra.mxu1 %v7598_v49 }
 0x5f6   : > { %7601 = vmatprep.subr.bf16.mxu1 %v7600_v52 }
 0x5fb   : > { %7219 = vmatpush1.bf16.xpose.msra.mxu0 %v7218_v59 }
 0x5fc   : > { %7221 = vmatprep.subr.bf16.mxu0 %v16416_v40 }
 0x5fd   : > { %7603 = vmatpush1.bf16.xpose.msra.mxu1 %v7602_v34 }
 0x5fe   : > { %7605 = vmatprep.subr.bf16.mxu1 %v16417_v32 }
 0x602   : > { %4304 = vmatmul.mubr.f32.vlgmr.msra.gmra.mrb[2].mxu0 %v16418_v30 }
 0x603   : > { %7223 = vmatpush1.bf16.xpose.msra.mxu0 %v16419_v35  ;;  %4439 = vmatprep.mubr.f32.mxu0 %v16224_v56 }
 0x604   : > { %7225 = vmatprep.subr.bf16.mxu0 %v16420_v6  ;;  %5588 = vmatmul.mubr.f32.vlgmr.msra.gmra.mrb[2].mxu1 %v16418_v30 }
 0x605   : > { %7607 = vmatpush1.bf16.xpose.msra.mxu1 %v16421_v37  ;;  %5723 = vmatprep.mubr.f32.mxu1 %v16224_v56  ;;  %v16427_v56 = vld [vmem:[#allocation253_spill] sm:$0xff] }
 0x606   : > { %7609 = vmatprep.subr.bf16.mxu1 %v16422_v44 }
 0x60b   : > { %7227 = vmatpush1.bf16.xpose.msra.mxu0 %v16423_v58 }
 0x60c   : > { %7229 = vmatprep.subr.bf16.mxu0 %v16424_v17 }
 0x60d   : > { %7611 = vmatpush1.bf16.xpose.msra.mxu1 %v16427_v56 }
 0x60e   : > { %7613 = vmatprep.subr.bf16.mxu1 %v16428_v60 }
 0x60f   : > { %7936 = shalt.err (!%p7933_p13)  }
 0x610   : > { %s7937_s13 = scalar_lea.vmem %s12996_s19, 32  ;;  %s13044_s7 = scalar_lea.vmem %s12996_s19, 256 }
 0x611   : > { %p7938_p3 = scmp.ne.s32.totalorder %s12996_s19, %s7937_s13  ;;  %p7945_p10 = scmp.lt.s32.totalorder %s12996_s19, %s12996_s19 }
 0x612   : > { %p7946_p12 = scmp.lt.s32.totalorder %s13044_s7, %s7937_s13 }
 0x613   : > { %p7940_p9 = pnand %p7938_p3, %p7924_p5 }
 0x614   : > { %p7947_p4 = por %p7946_p12, %p7945_p10 }
 0x615   : > { %p7941_p0 = pneg %p7940_p9 }
 0x617   : > { %p7948_p2 = pnand %p7947_p4, %p7941_p0 }
 0x619   : > { %7951 = shalt.err (!%p7948_p2)  }
 0x61a   : > { %s14521_s25 = smov 128   ;;  %s14523_s26 = smov 1   ;;  %v16429_v24 = vld [vmem:[#allocation255_spill] sm:$0xff]  ;;  %v16430_v5 = vld [vmem:[#allocation256_spill] sm:$0xff]  ;;  %v16431_v21 = vld [vmem:[#allocation257_spill] sm:$0xff] }
 0x61b   : > { %7759 = dma.hbm_to_vmem [thread:$0]  (!%p13009_p1), %s13018_s23, 32, %s12996_s19, [#allocation3], %s14521_s25, %s14521_s25, %s14523_s26  ;;  %7231 = vmatpush1.bf16.xpose.msra.mxu0 %v16429_v24  ;;  %7615 = vmatpush1.bf16.xpose.msra.mxu1 %v16431_v21  ;;  %v16432_v11 = vld [vmem:[#allocation258_spill] sm:$0xff] }
 0x61c   : > { %7233 = vmatprep.subr.bf16.mxu0 %v16430_v5  ;;  %p7790_p5 = scmp.gt.s32.totalorder %s12991_s21, 1  ;;  %s216_s27 = sshrl.u32 %s12998_s17, 3  ;;  %7617 = vmatprep.subr.bf16.mxu1 %v16432_v11 }
 0x61d   : > { %s217_s10 = sand.u32 7, %s12998_s17   ;;  %s6080_s12 = sshll.u32 %s216_s27, 4 }
 0x61e   : > { %s219_s22 = sadd.s32 %s6080_s12, %s217_s10  ;;  %p16433_p7 = scmp.eq.s32.totalorder %s8348_s30, 0 }
 0x61f   : > { %s6081_s23 = sshll.u32 %s219_s22, 4 }
 0x620   : > { %p13068_p8 = pnand %p7790_p5, %p16433_p7  ;;  %s221_s17 = scalar_lea.hbm %s13400_s4, %s6081_s23 }
 0x621   : > { %s7952_s2 = scalar_lea.hbm %s221_s17, 32  ;;  %p7958_p9 = scmp.lt.u32.totalorder %s221_s17, %s13400_s4 }
 0x622   : > { %s16434_s13 = scalar_select %p13068_p8, 1, 0 }
 0x623   : > { %p7953_p11 = scmp.ne.s32.totalorder %s221_s17, %s7952_s2  ;;  %p7954_p6 = pneg %p13068_p8 }
 0x624   : > { %p7959_p0 = scmp.lt.u32.totalorder %s13030_s9, %s7952_s2  ;;  %p7961_p12 = scmp.lt.u32.totalorder %s7952_s2, %s221_s17 }
 0x625   : > { %p7955_p13 = pnand %p7954_p6, %p7953_p11 }
 0x626   : > { %p7960_p10 = por %p7959_p0, %p7958_p9 }
 0x627   : > { %p7956_p3 = pneg %p7955_p13 }
 0x628   : > { %p7962_p4 = por %p7961_p12, %p7960_p10 }
 0x62a   : > { %p7963_p2 = pnand %p7962_p4, %p7956_p3 }
 0x62c   : > { %7966 = shalt.err (!%p7963_p2)  }
 0x62d   : > { %s7967_s25 = scalar_lea.vmem %s13063_s24, 32  ;;  %p7975_p13 = scmp.lt.s32.totalorder %s13063_s24, %s12996_s19 }
 0x62e   : > { %p7968_p5 = scmp.ne.s32.totalorder %s13063_s24, %s7967_s25  ;;  %p7976_p1 = scmp.lt.s32.totalorder %s13044_s7, %s7967_s25 }
 0x630   : > { %p7970_p7 = pnand %p7968_p5, %p7954_p6  ;;  %p7977_p8 = por %p7976_p1, %p7975_p13 }
 0x632   : > { %p7971_p11 = pneg %p7970_p7 }
 0x634   : > { %p7978_p0 = pnand %p7977_p8, %p7971_p11 }
 0x636   : > { %7981 = shalt.err (!%p7978_p0)  }
 0x637   : > { %p16435_p9 = scmp.ne.s32.totalorder %s16434_s13, 0  ;;  %s16436_s2 = smov 1   ;;  %v16438_v26 = vld [vmem:[#allocation259_spill] sm:$0xff]  ;;  %v16439_v50 = vld [vmem:[#allocation260_spill] sm:$0xff]  ;;  %v16440_v16 = vld [vmem:[#allocation261_spill] sm:$0xff] }
 0x638   : > { %s16437_s26 = smov 128   ;;  %7235 = vmatpush1.bf16.xpose.msra.mxu0 %v16438_v26  ;;  %s234_s12 = sshrl.u32 %s13000_s20, 3  ;;  %7619 = vmatpush1.bf16.xpose.msra.mxu1 %v16440_v16  ;;  %v16444_v28 = vld [vmem:[#allocation262_spill] sm:$0xff] }
 0x639   : > { %7762 = dma.hbm_to_vmem [thread:$0]  (!%p16435_p9), %s221_s17, 32, %s13063_s24, [#allocation3 + $0x1], %s16437_s26, %s16437_s26, %s16436_s2  ;;  %7237 = vmatprep.subr.bf16.mxu0 %v16439_v50  ;;  %7621 = vmatprep.subr.bf16.mxu1 %v16444_v28 }
 0x63a   : > { %s235_s22 = sand.u32 7, %s13000_s20   ;;  %s6084_s23 = sshll.u32 %s234_s12, 4 }
 0x63b   : > { %s8279_s27 = smov [#allocation2 + $0x2]   ;;  %s237_s13 = sadd.s32 %s6084_s23, %s235_s22 }
 0x63c   : > { %s243_s10 = sshll.u32 %s8279_s27, 4  ;;  %s6085_s25 = sshll.u32 %s237_s13, 4  ;;  %s13097_s10 = int_to_ptr.vmem [resolvable:$true] %s243_s10 }
 0x63d   : > { %p16441_p8 = scmp.eq.s32.totalorder %s8348_s30, 0  ;;  %p16442_p1 = scmp.gt.s32.totalorder %s12991_s21, 2 }
 0x63e   : > { %s239_s12 = scalar_lea.hbm %s13400_s4, %s6085_s25  ;;  %s13113_s22 = sld [smem:[#allocation5 + $0x3]] }
 0x63f   : > { %p13104_p6 = pnand %p16442_p1, %p16441_p8  ;;  %s7982_s23 = scalar_lea.hbm %s239_s12, 32 }
 0x640   : > { %p7983_p10 = scmp.ne.s32.totalorder %s239_s12, %s7982_s23  ;;  %p7988_p5 = scmp.lt.u32.totalorder %s239_s12, %s13400_s4 }
 0x641   : > { %s16443_s24 = scalar_select %p13104_p6, 1, 0 }
 0x642   : > { %p7984_p12 = pneg %p13104_p6  ;;  %p7989_p7 = scmp.lt.u32.totalorder %s13030_s9, %s7982_s23 }
 0x643   : > { %p7991_p13 = scmp.lt.u32.totalorder %s7982_s23, %s239_s12 }
 0x644   : > { %p7985_p4 = pnand %p7984_p12, %p7983_p10  ;;  %p7990_p11 = por %p7989_p7, %p7988_p5 }
 0x646   : > { %p7986_p2 = pneg %p7985_p4  ;;  %p7992_p0 = por %p7991_p13, %p7990_p11 }
 0x648   : > { %p7993_p9 = pnand %p7992_p0, %p7986_p2 }
 0x64a   : > { %7996 = shalt.err (!%p7993_p9)  }
 0x64b   : > { %s7997_s25 = scalar_lea.vmem %s13097_s10, 32  ;;  %p8005_p4 = scmp.lt.s32.totalorder %s13097_s10, %s12996_s19 }
 0x64c   : > { %p7998_p8 = scmp.ne.s32.totalorder %s13097_s10, %s7997_s25  ;;  %p8006_p3 = scmp.lt.s32.totalorder %s13044_s7, %s7997_s25 }
 0x64e   : > { %p8000_p1 = pnand %p7998_p8, %p7984_p12  ;;  %p8007_p6 = por %p8006_p3, %p8005_p4 }
 0x650   : > { %p8001_p10 = pneg %p8000_p1 }
 0x652   : > { %p8008_p5 = pnand %p8007_p6, %p8001_p10 }
 0x654   : > { %8011 = shalt.err (!%p8008_p5)  }
 0x655   : > { %p16445_p7 = scmp.ne.s32.totalorder %s16443_s24, 0  ;;  %p16446_p2 = scmp.eq.s32.totalorder %s8348_s30, 0  ;;  %v16449_v42 = vld [vmem:[#allocation263_spill] sm:$0xff]  ;;  %v16450_v57 = vld [vmem:[#allocation264_spill] sm:$0xff]  ;;  %v16451_v45 = vld [vmem:[#allocation265_spill] sm:$0xff] }
 0x656   : > { %p16447_p12 = scmp.gt.s32.totalorder %s12991_s21, 3  ;;  %7239 = vmatpush1.bf16.xpose.msra.mxu0 %v16449_v42  ;;  %s8280_s17 = smov [#allocation2 + $0x3]   ;;  %7623 = vmatpush1.bf16.xpose.msra.mxu1 %v16451_v45  ;;  %v16452_v19 = vld [vmem:[#allocation266_spill] sm:$0xff]  ;;  %v16455_v61 = vld [vmem:[#allocation267_spill] sm:$0xff] }
 0x657   : > { %7765 = dma.hbm_to_vmem [thread:$0]  (!%p16445_p7), %s239_s12, 32, %s13097_s10, [#allocation3 + $0x2], %s16437_s26, %s16437_s26, %s16436_s2  ;;  %7241 = vmatprep.subr.bf16.mxu0 %v16450_v57  ;;  %7625 = vmatprep.subr.bf16.mxu1 %v16452_v19 }
 0x658   : > { %p13136_p11 = pnand %p16447_p12, %p16446_p2  ;;  %s261_s24 = sshll.u32 %s8280_s17, 4  ;;  %s13149_s24 = int_to_ptr.vmem [resolvable:$true] %s261_s24 }
 0x659   : > { %p7793_p6 = scmp.gt.s32.totalorder %s12991_s21, 4  ;;  %s13143_s23 = sld [smem:[#allocation5 + $0x4]] }
 0x65a   : > { %s16448_s20 = scalar_select %p13136_p11, 1, 0 }
 0x65b   : > { %s252_s10 = sshrl.u32 %s13113_s22, 3  ;;  %s253_s12 = sand.u32 7, %s13113_s22  }
 0x65c   : > { %s6088_s27 = sshll.u32 %s252_s10, 4  ;;  %s8281_s13 = smov [#allocation2 + $0x4]  }
 0x65d   : > { %s279_s25 = sshll.u32 %s8281_s13, 4  ;;  %s255_s3 = sadd.s32 %s6088_s27, %s253_s12  ;;  %s13151_s25 = int_to_ptr.vmem [resolvable:$true] %s279_s25 }
 0x65e   : > { %s6089_s17 = sshll.u32 %s255_s3, 4  ;;  %p16453_p3 = pmov %p16446_p2  ;;  %7243 = vmatpush1.bf16.xpose.msra.mxu0 %v16455_v61 }
 0x65f   : > { %s257_s1 = scalar_lea.hbm %s13400_s4, %s6089_s17  ;;  %p8014_p9 = pneg %p13136_p11 }
 0x660   : > { %p13160_p13 = pnand %p7793_p6, %p16453_p3  ;;  %s8012_s10 = scalar_lea.hbm %s257_s1, 32 }
 0x661   : > { %p8013_p0 = scmp.ne.s32.totalorder %s257_s1, %s8012_s10  ;;  %p8018_p10 = scmp.lt.u32.totalorder %s257_s1, %s13400_s4 }
 0x662   : > { %s16454_s22 = scalar_select %p13160_p13, 1, 0 }
 0x663   : > { %p8015_p8 = pnand %p8014_p9, %p8013_p0  ;;  %p8019_p4 = scmp.lt.u32.totalorder %s13030_s9, %s8012_s10 }
 0x664   : > { %p8021_p7 = scmp.lt.u32.totalorder %s8012_s10, %s257_s1 }
 0x665   : > { %p8016_p1 = pneg %p8015_p8  ;;  %p8020_p5 = por %p8019_p4, %p8018_p10 }
 0x667   : > { %p8022_p2 = por %p8021_p7, %p8020_p5 }
 0x669   : > { %p8023_p12 = pnand %p8022_p2, %p8016_p1 }
 0x66b   : > { %8026 = shalt.err (!%p8023_p12)  }
 0x66c   : > { %s8027_s28 = scalar_lea.vmem %s13149_s24, 32  ;;  %p8035_p8 = scmp.lt.s32.totalorder %s13149_s24, %s12996_s19 }
 0x66d   : > { %p8028_p6 = scmp.ne.s32.totalorder %s13149_s24, %s8027_s28  ;;  %p8036_p13 = scmp.lt.s32.totalorder %s13044_s7, %s8027_s28 }
 0x66f   : > { %p8030_p3 = pnand %p8028_p6, %p8014_p9  ;;  %p8037_p11 = por %p8036_p13, %p8035_p8 }
 0x671   : > { %p8031_p0 = pneg %p8030_p3 }
 0x673   : > { %p8038_p4 = pnand %p8037_p11, %p8031_p0 }
 0x675   : > { %8041 = shalt.err (!%p8038_p4)  }
 0x676   : > { %p16456_p10 = scmp.ne.s32.totalorder %s16448_s20, 0  ;;  %v16457_v9 = vld [vmem:[#allocation268_spill] sm:$0xff]  ;;  %s270_s11 = sshrl.u32 %s13143_s23, 3  ;;  %v16458_v43 = vld [vmem:[#allocation39_spill] sm:$0xff] }
 0x677   : > { %7245 = vmatprep.subr.bf16.mxu0 %v16457_v9  ;;  %s271_s27 = sand.u32 7, %s13143_s23   ;;  %s6092_s13 = sshll.u32 %s270_s11, 4  ;;  %7627 = vmatpush1.bf16.xpose.msra.mxu1 %v16458_v43  ;;  %v16459_v15 = vld [vmem:[#allocation40_spill] sm:$0xff] }
 0x678   : > { %7768 = dma.hbm_to_vmem [thread:$0]  (!%p16456_p10), %s257_s1, 32, %s13149_s24, [#allocation3 + $0x3], %s16437_s26, %s16437_s26, %s16436_s2  ;;  %7629 = vmatprep.subr.bf16.mxu1 %v16459_v15 }
 0x679   : > { %s273_s17 = sadd.s32 %s6092_s13, %s271_s27  ;;  %s13186_s10 = sld [smem:[#allocation5 + $0x5]] }
 0x67a   : > { %s6093_s20 = sshll.u32 %s273_s17, 4  ;;  %p16460_p9 = scmp.ne.s32.totalorder %s16454_s22, 0 }
 0x67b   : > { %s275_s28 = scalar_lea.hbm %s13400_s4, %s6093_s20 }
 0x67c   : > { %s8042_s1 = scalar_lea.hbm %s275_s28, 32  ;;  %p8044_p1 = pneg %p16460_p9 }
 0x67d   : > { %p8043_p13 = scmp.ne.s32.totalorder %s275_s28, %s8042_s1  ;;  %p8048_p2 = scmp.lt.u32.totalorder %s275_s28, %s13400_s4 }
 0x67e   : > { %p8049_p12 = scmp.lt.u32.totalorder %s13030_s9, %s8042_s1  ;;  %p8051_p3 = scmp.lt.u32.totalorder %s8042_s1, %s275_s28 }
 0x67f   : > { %p8045_p5 = pnand %p8044_p1, %p8043_p13 }
 0x680   : > { %p8050_p6 = por %p8049_p12, %p8048_p2 }
 0x681   : > { %p8046_p7 = pneg %p8045_p5 }
 0x682   : > { %p8052_p0 = por %p8051_p3, %p8050_p6 }
 0x684   : > { %p8053_p8 = pnand %p8052_p0, %p8046_p7 }
 0x686   : > { %8056 = shalt.err (!%p8053_p8)  }
 0x687   : > { %s8057_s11 = scalar_lea.vmem %s13151_s25, 32  ;;  %p8065_p5 = scmp.lt.s32.totalorder %s13151_s25, %s12996_s19 }
 0x688   : > { %p8058_p4 = scmp.ne.s32.totalorder %s13151_s25, %s8057_s11  ;;  %p8066_p11 = scmp.lt.s32.totalorder %s13044_s7, %s8057_s11 }
 0x68a   : > { %p8060_p10 = pnand %p8058_p4, %p8044_p1  ;;  %p8067_p9 = por %p8066_p11, %p8065_p5 }
 0x68c   : > { %p8061_p13 = pneg %p8060_p10 }
 0x68e   : > { %p8068_p2 = pnand %p8067_p9, %p8061_p13 }
 0x690   : > { %8071 = shalt.err (!%p8068_p2)  }
 0x691   : > { %p16461_p12 = scmp.ne.s32.totalorder %s16454_s22, 0  ;;  %v16462_v63 = vld [vmem:[#allocation52_spill] sm:$0xff]  ;;  %s8282_s27 = smov [#allocation2 + $0x5]   ;;  %v16467_v12 = vld [vmem:[#allocation49_spill] sm:$0xff]  ;;  %v16468_v14 = vld [vmem:[#allocation54_spill] sm:$0xff] }
 0x692   : > { %7247 = vmatpush1.bf16.xpose.msra.mxu0 %v16462_v63  ;;  %s297_s13 = sshll.u32 %s8282_s27, 4  ;;  %p16463_p1 = scmp.eq.s32.totalorder %s8348_s30, 0  ;;  %v16466_v4 = vld [vmem:[#allocation48_spill] sm:$0xff]  ;;  %7631 = vmatpush1.bf16.xpose.msra.mxu1 %v16467_v12  ;;  %s298_s13 = int_to_ptr.vmem [resolvable:$true] %s297_s13 }
 0x693   : > { %7771 = dma.hbm_to_vmem [thread:$0]  (!%p16461_p12), %s275_s28, 32, %s13151_s25, [#allocation3 + $0x4], %s16437_s26, %s16437_s26, %s16436_s2  ;;  %7249 = vmatprep.subr.bf16.mxu0 %v16466_v4  ;;  %7633 = vmatprep.subr.bf16.mxu1 %v16468_v14 }
 0x694   : > { %p16464_p7 = scmp.gt.s32.totalorder %s12991_s21, 5  ;;  %s288_s22 = sshrl.u32 %s13186_s10, 3 }
 0x695   : > { %s289_s20 = sand.u32 7, %s13186_s10   ;;  %s6096_s3 = sshll.u32 %s288_s22, 4 }
 0x696   : > { %p13215_p11 = pnand %p16464_p7, %p16463_p1  ;;  %s291_s25 = sadd.s32 %s6096_s3, %s289_s20 }
 0x697   : > { %s6097_s12 = sshll.u32 %s291_s25, 4 }
 0x698   : > { %s16465_s17 = scalar_select %p13215_p11, 1, 0 }
 0x699   : > { %s293_s24 = scalar_lea.hbm %s13400_s4, %s6097_s12  ;;  %p8074_p6 = pneg %p13215_p11 }
 0x69a   : > { %s8072_s23 = scalar_lea.hbm %s293_s24, 32  ;;  %p8078_p8 = scmp.lt.u32.totalorder %s293_s24, %s13400_s4 }
 0x69b   : > { %p8073_p9 = scmp.ne.s32.totalorder %s293_s24, %s8072_s23  ;;  %p8079_p4 = scmp.lt.u32.totalorder %s13030_s9, %s8072_s23 }
 0x69c   : > { %p8081_p13 = scmp.lt.u32.totalorder %s8072_s23, %s293_s24 }
 0x69d   : > { %p8075_p3 = pnand %p8074_p6, %p8073_p9  ;;  %p8080_p10 = por %p8079_p4, %p8078_p8 }
 0x69f   : > { %p8076_p0 = pneg %p8075_p3  ;;  %p8082_p5 = por %p8081_p13, %p8080_p10 }
 0x6a1   : > { %p8083_p2 = pnand %p8082_p5, %p8076_p0 }
 0x6a3   : > { %8086 = shalt.err (!%p8083_p2)  }
 0x6a4   : > { %s8087_s27 = scalar_lea.vmem %s298_s13, 32  ;;  %p8095_p11 = scmp.lt.s32.totalorder %s298_s13, %s12996_s19 }
 0x6a5   : > { %p8088_p12 = scmp.ne.s32.totalorder %s298_s13, %s8087_s27  ;;  %p8096_p9 = scmp.lt.s32.totalorder %s13044_s7, %s8087_s27 }
 0x6a7   : > { %p8090_p1 = pnand %p8088_p12, %p8074_p6  ;;  %p8097_p3 = por %p8096_p9, %p8095_p11 }
 0x6a9   : > { %p8091_p7 = pneg %p8090_p1 }
 0x6ab   : > { %p8098_p4 = pnand %p8097_p3, %p8091_p7 }
 0x6ad   : > { %8101 = shalt.err (!%p8098_p4)  }
 0x6ae   : > { %p16469_p8 = scmp.ne.s32.totalorder %s16465_s17, 0  ;;  %v16470_v48 = vld [vmem:[#allocation70_spill] sm:$0xff]  ;;  %v16471_v2 = vld [vmem:[#allocation75_spill] sm:$0xff]  ;;  %v16473_v36 = vld [vmem:[#allocation64_spill] sm:$0xff]  ;;  %s13276_s17 = sld [smem:[#allocation5 + $0x7]] }
 0x6af   : > { %7251 = vmatpush1.bf16.xpose.msra.mxu0 %v16470_v48  ;;  %v16472_v33 = vld [vmem:[#allocation63_spill] sm:$0xff]  ;;  %v16474_v27 = vld [vmem:[#allocation76_spill] sm:$0xff]  ;;  %v16476_v51 = vld [vmem:[#allocation73_spill] sm:$0xff]  ;;  %p7795_p11 = scmp.gt.s32.totalorder %s12991_s21, 6  ;;  %s8283_s12 = smov [#allocation2 + $0x6]  }
 0x6b0   : > { %7774 = dma.hbm_to_vmem [thread:$0]  (!%p16469_p8), %s293_s24, 32, %s298_s13, [#allocation3 + $0x5], %s16437_s26, %s16437_s26, %s16436_s2  ;;  %7253 = vmatprep.subr.bf16.mxu0 %v16471_v2  ;;  %7635 = vmatpush1.bf16.xpose.msra.mxu1 %v16472_v33  ;;  %v16475_v13 = vld [vmem:[#allocation72_spill] sm:$0xff]  ;;  %v16477_v39 = vld [vmem:[#allocation78_spill] sm:$0xff]  ;;  %v16479_v18 = vld [vmem:[#allocation99_spill] sm:$0xff] }
 0x6b1   : > { %7637 = vmatprep.subr.bf16.mxu1 %v16473_v36  ;;  %v16478_v55 = vld [vmem:[#allocation94_spill] sm:$0xff]  ;;  %v16480_v47 = vld [vmem:[#allocation87_spill] sm:$0xff]  ;;  %v16481_v53 = vld [vmem:[#allocation88_spill] sm:$0xff]  ;;  %s6099_s13 = sld [smem:[#allocation5 + $0x6]]  ;;  %s315_s28 = sshll.u32 %s8283_s12, 4  ;;  %s13279_s28 = int_to_ptr.vmem [resolvable:$true] %s315_s28 }
 0x6b2   : > { %v16482_v22 = vld [vmem:[#allocation100_spill] sm:$0xff]  ;;  %v16484_v29 = vld [vmem:[#allocation97_spill] sm:$0xff]  ;;  %v16485_v3 = vld [vmem:[#allocation102_spill] sm:$0xff]  ;;  %p16502_p6 = scmp.eq.s32.totalorder %s8348_s30, 0 }
 0x6b3   : > { %v16483_v41 = vld [vmem:[#allocation96_spill] sm:$0xff]  ;;  %v16486_v62 = vld [vmem:[#allocation118_spill] sm:$0xff]  ;;  %v16488_v23 = vld [vmem:[#allocation111_spill] sm:$0xff] }
 0x6b4   : > { %v16487_v0 = vld [vmem:[#allocation148_spill] sm:$0xff]  ;;  %v16490_v20 = vld [vmem:[#allocation145_spill] sm:$0xff]  ;;  %v16491_v46 = vld [vmem:[#allocation151_spill] sm:$0xff]  ;;  %p13288_p0 = pnand %p7795_p11, %p16502_p6  ;;  %s324_s27 = sshrl.u32 %s13276_s17, 3 }
 0x6b5   : > { %v16489_v49 = vld [vmem:[#allocation112_spill] sm:$0xff]  ;;  %v16492_v54 = vld [vmem:[#allocation154_spill] sm:$0xff]  ;;  %v16495_v8 = vld [vmem:[#allocation205_spill] sm:$0xff] }
 0x6b6   : > { %v16493_v52 = vld [vmem:[#allocation160_spill] sm:$0xff]  ;;  %v16496_v59 = vld [vmem:[#allocation165_spill] sm:$0xff]  ;;  %v16497_v38 = vld [vmem:[#allocation166_spill] sm:$0xff]  ;;  %s16503_s10 = scalar_select %p13288_p0, 1, 0 }
 0x6b7   : > { %7255 = vmatpush1.bf16.xpose.msra.mxu0 %v16474_v27  ;;  %v16494_v7 = vld [vmem:[#allocation204_spill] sm:$0xff]  ;;  %v16498_v25 = vld [vmem:[#allocation210_spill] sm:$0xff]  ;;  %v16499_v31 = vld [vmem:[#allocation211_spill] sm:$0xff]  ;;  %s306_s22 = sshrl.u32 %s6099_s13, 3  ;;  %s307_s20 = sand.u32 7, %s6099_s13  }
 0x6b8   : > { %7257 = vmatprep.subr.bf16.mxu0 %v16475_v13  ;;  %7639 = vmatpush1.bf16.xpose.msra.mxu1 %v16476_v51  ;;  %v16500_v34 = vld [vmem:[#allocation213_spill] sm:$0xff]  ;;  %v16501_v40 = vld [vmem:[#allocation214_spill] sm:$0xff]  ;;  %s6100_s3 = sshll.u32 %s306_s22, 4  ;;  %s325_s13 = sand.u32 7, %s13276_s17  }
 0x6b9   : > { %7641 = vmatprep.subr.bf16.mxu1 %v16477_v39  ;;  %s309_s25 = sadd.s32 %s6100_s3, %s307_s20  ;;  %p8104_p5 = pneg %p13288_p0 }
 0x6ba   : > { %s6101_s1 = sshll.u32 %s309_s25, 4 }
 0x6bb   : > { %s13284_s11 = scalar_lea.hbm %s13400_s4, %s6101_s1 }
 0x6bc   : > { %s8102_s22 = scalar_lea.hbm %s13284_s11, 32  ;;  %p8108_p1 = scmp.lt.u32.totalorder %s13284_s11, %s13400_s4 }
 0x6bd   : > { %p8103_p13 = scmp.ne.s32.totalorder %s13284_s11, %s8102_s22  ;;  %p8109_p7 = scmp.lt.u32.totalorder %s13030_s9, %s8102_s22 }
 0x6be   : > { %p8111_p3 = scmp.lt.u32.totalorder %s8102_s22, %s13284_s11 }
 0x6bf   : > { %7259 = vmatpush1.bf16.xpose.msra.mxu0 %v16478_v55  ;;  %p8105_p2 = pnand %p8104_p5, %p8103_p13  ;;  %p8110_p9 = por %p8109_p7, %p8108_p1 }
 0x6c0   : > { %7261 = vmatprep.subr.bf16.mxu0 %v16479_v18  ;;  %7643 = vmatpush1.bf16.xpose.msra.mxu1 %v16480_v47 }
 0x6c1   : > { %7645 = vmatprep.subr.bf16.mxu1 %v16481_v53  ;;  %p8106_p12 = pneg %p8105_p2  ;;  %p8112_p4 = por %p8111_p3, %p8110_p9 }
 0x6c3   : > { %p8113_p8 = pnand %p8112_p4, %p8106_p12 }
 0x6c7   : > { %7263 = vmatpush1.bf16.xpose.msra.mxu0 %v16482_v22 }
 0x6c8   : > { %7265 = vmatprep.subr.bf16.mxu0 %v16483_v41  ;;  %7647 = vmatpush1.bf16.xpose.msra.mxu1 %v16484_v29 }
 0x6c9   : > { %7649 = vmatprep.subr.bf16.mxu1 %v16485_v3 }
 0x6cf   : > { %7267 = vmatpush1.bf16.xpose.msra.mxu0 %v16486_v62 }
 0x6d0   : > { %7269 = vmatprep.subr.bf16.mxu0 %v16487_v0  ;;  %7651 = vmatpush1.bf16.xpose.msra.mxu1 %v16488_v23 }
 0x6d1   : > { %7653 = vmatprep.subr.bf16.mxu1 %v16489_v49 }
 0x6d7   : > { %7271 = vmatpush1.bf16.xpose.msra.mxu0 %v16490_v20 }
 0x6d8   : > { %7273 = vmatprep.subr.bf16.mxu0 %v16491_v46  ;;  %7655 = vmatpush1.bf16.xpose.msra.mxu1 %v16492_v54 }
 0x6d9   : > { %7657 = vmatprep.subr.bf16.mxu1 %v16493_v52 }
 0x6df   : > { %7275 = vmatpush1.bf16.xpose.msra.mxu0 %v16494_v7 }
 0x6e0   : > { %7277 = vmatprep.subr.bf16.mxu0 %v16495_v8  ;;  %7659 = vmatpush1.bf16.xpose.msra.mxu1 %v16496_v59 }
 0x6e1   : > { %7661 = vmatprep.subr.bf16.mxu1 %v16497_v38 }
 0x6e7   : > { %7279 = vmatpush1.bf16.xpose.msra.mxu0 %v16498_v25 }
 0x6e8   : > { %7281 = vmatprep.subr.bf16.mxu0 %v16499_v31  ;;  %7663 = vmatpush1.bf16.xpose.msra.mxu1 %v16500_v34 }
 0x6e9   : > { %7665 = vmatprep.subr.bf16.mxu1 %v16501_v40 }
 0x6ef   : > { %7283 = vmatpush1.bf16.xpose.msra.mxu0 %v16211_v1 }
 0x6f0   : > { %7667 = vmatpush1.bf16.xpose.msra.mxu1 %v16214_v10 }
 0x6f6   : > { %4441 = vmatmul.mubr.f32.vlgmr.msra.gmra.mrb[2].mxu0 %v16418_v30 }
 0x6f7   : > { %5725 = vmatmul.mubr.f32.vlgmr.msra.gmra.mrb[2].mxu1 %v16418_v30 }
 0x6f8   : > { %8116 = shalt.err (!%p8113_p8)  }
 0x6f9   : > { %s8117_s17 = scalar_lea.vmem %s13279_s28, 32  ;;  %p8125_p2 = scmp.lt.s32.totalorder %s13279_s28, %s12996_s19 }
 0x6fa   : > { %p8118_p11 = scmp.ne.s32.totalorder %s13279_s28, %s8117_s17  ;;  %p8126_p10 = scmp.lt.s32.totalorder %s13044_s7, %s8117_s17 }
 0x6fc   : > { %p8120_p6 = pnand %p8118_p11, %p8104_p5  ;;  %p8127_p0 = por %p8126_p10, %p8125_p2 }
 0x6fe   : > { %p8121_p13 = pneg %p8120_p6 }
 0x700   : > { %p8128_p1 = pnand %p8127_p0, %p8121_p13 }
 0x702   : > { %8131 = shalt.err (!%p8128_p1)  }
 0x703   : > { %p16504_p7 = scmp.ne.s32.totalorder %s16503_s10, 0  ;;  %s6104_s25 = sshll.u32 %s324_s27, 4 }
 0x704   : > { %s327_s12 = sadd.s32 %s6104_s25, %s325_s13  ;;  %s8284_s1 = smov [#allocation2 + $0x7]  }
 0x705   : > { %7777 = dma.hbm_to_vmem [thread:$0]  (!%p16504_p7), %s13284_s11, 32, %s13279_s28, [#allocation3 + $0x6], %s16437_s26, %s16437_s26, %s16436_s2 }
 0x706   : > { %s333_s24 = sshll.u32 %s8284_s1, 4  ;;  %s6105_s23 = sshll.u32 %s327_s12, 4  ;;  %s334_s24 = int_to_ptr.vmem [resolvable:$true] %s333_s24 }
 0x707   : > { %s329_s3 = scalar_lea.hbm %s13400_s4, %s6105_s23  ;;  %p16505_p0 = scmp.eq.s32.totalorder %s8348_s30, 0 }
 0x708   : > { %p16506_p10 = scmp.gt.s32.totalorder %s12991_s21, 7  ;;  %s8132_s17 = scalar_lea.hbm %s329_s3, 32 }
 0x709   : > { %p8133_p12 = scmp.ne.s32.totalorder %s329_s3, %s8132_s17  ;;  %p8138_p8 = scmp.lt.u32.totalorder %s329_s3, %s13400_s4 }
 0x70a   : > { %p13324_p5 = pnand %p16506_p10, %p16505_p0  ;;  %p8139_p11 = scmp.lt.u32.totalorder %s13030_s9, %s8132_s17 }
 0x70b   : > { %p8141_p13 = scmp.lt.u32.totalorder %s8132_s17, %s329_s3 }
 0x70c   : > { %s16507_s10 = scalar_select %p13324_p5, 1, 0 }
 0x70d   : > { %p8134_p9 = pneg %p13324_p5  ;;  %p8140_p6 = por %p8139_p11, %p8138_p8 }
 0x70f   : > { %p8135_p3 = pnand %p8134_p9, %p8133_p12  ;;  %p8142_p2 = por %p8141_p13, %p8140_p6 }
 0x711   : > { %p8136_p4 = pneg %p8135_p3 }
 0x713   : > { %p8143_p1 = pnand %p8142_p2, %p8136_p4 }
 0x715   : > { %8146 = shalt.err (!%p8143_p1)  }
 0x716   : > { %s8147_s21 = scalar_lea.vmem %s334_s24, 32  ;;  %p8155_p5 = scmp.lt.s32.totalorder %s334_s24, %s12996_s19 }
 0x717   : > { %p8148_p7 = scmp.ne.s32.totalorder %s334_s24, %s8147_s21  ;;  %p8156_p12 = scmp.lt.s32.totalorder %s13044_s7, %s8147_s21 }
 0x719   : > { %p8150_p0 = pnand %p8148_p7, %p8134_p9  ;;  %p8157_p3 = por %p8156_p12, %p8155_p5 }
 0x71b   : > { %p8151_p10 = pneg %p8150_p0 }
 0x71d   : > { %p8158_p8 = pnand %p8157_p3, %p8151_p10 }
 0x71f   : > { %8161 = shalt.err (!%p8158_p8)  }
 0x720   : > { %p16508_p11 = scmp.ne.s32.totalorder %s16507_s10, 0  ;;  %p16509_p5 = scmp.ne.s32.totalorder %s8348_s30, 0 }
 0x721   : > { %s5742_s19 = sld [smem:[#allocation6]] (!%p16509_p5) }
 0x722   : > { %7780 = dma.hbm_to_vmem [thread:$0]  (!%p16508_p11), %s329_s3, 32, %s334_s24, [#allocation3 + $0x7], %s16437_s26, %s16437_s26, %s16436_s2 }
 0x727   : > { %p7797_p9 = scmp.gt.s32.totalorder (!%p16509_p5), %s5742_s19, 0 }
 0x7c6   : > { %5741 = sbr.rel (%p16509_p5) target bundleno = 2024 (0x7e8), region = 76 }
 0x7c9   : > { %v4442_v1 = vpop.f32.mrb[2].mxu0 }
 0x7ca   : > { %5735 = vst [vmem:[%s12414_s16 + $0x20] sm:$0xff] %v4442_v1  ;;  %v4444_v10 = vpop.f32.mrb[3].mxu0  ;;  %v5726_v32 = vpop.f32.mrb[2].mxu1 }
 0x7cb   : > { %5736 = vst [vmem:[%s12414_s16 + $0x28] sm:$0xff] %v4444_v10  ;;  %5737 = vst [vmem:[%s12414_s16 + $0x30] sm:$0xff] %v5726_v32  ;;  %v5728_v30 = vpop.f32.mrb[3].mxu1 }
 0x7cc   : > { %5738 = vst [vmem:[%s12414_s16 + $0x38] sm:$0xff] %v5728_v30 }
 0x7cd   : > { %8217 = dma.done.wait (%p7797_p9), [#allocation3], 32 }
 0x7ce   : > { %8219 = vsyncadd (%p7797_p9), [#allocation3], 4294967264  ;;  %p7798_p4 = scmp.gt.s32.totalorder %s5742_s19, 1 }
 0x7d0   : > { %8221 = dma.done.wait (%p7798_p4), [#allocation3 + $0x1], 32 }
 0x7d1   : > { %8223 = vsyncadd (%p7798_p4), [#allocation3 + $0x1], 4294967264  ;;  %p7799_p6 = scmp.gt.s32.totalorder %s5742_s19, 2 }
 0x7d3   : > { %8225 = dma.done.wait (%p7799_p6), [#allocation3 + $0x2], 32 }
 0x7d4   : > { %8227 = vsyncadd (%p7799_p6), [#allocation3 + $0x2], 4294967264  ;;  %p7800_p13 = scmp.gt.s32.totalorder %s5742_s19, 3 }
 0x7d6   : > { %8229 = dma.done.wait (%p7800_p13), [#allocation3 + $0x3], 32 }
 0x7d7   : > { %8231 = vsyncadd (%p7800_p13), [#allocation3 + $0x3], 4294967264  ;;  %p7801_p2 = scmp.gt.s32.totalorder %s5742_s19, 4 }
 0x7d9   : > { %8233 = dma.done.wait (%p7801_p2), [#allocation3 + $0x4], 32 }
 0x7da   : > { %8235 = vsyncadd (%p7801_p2), [#allocation3 + $0x4], 4294967264  ;;  %p7802_p1 = scmp.gt.s32.totalorder %s5742_s19, 5 }
 0x7dc   : > { %8237 = dma.done.wait (%p7802_p1), [#allocation3 + $0x5], 32 }
 0x7dd   : > { %8239 = vsyncadd (%p7802_p1), [#allocation3 + $0x5], 4294967264  ;;  %p7803_p7 = scmp.gt.s32.totalorder %s5742_s19, 6 }
 0x7df   : > { %8241 = dma.done.wait (%p7803_p7), [#allocation3 + $0x6], 32 }
 0x7e0   : > { %8243 = vsyncadd (%p7803_p7), [#allocation3 + $0x6], 4294967264  ;;  %p7804_p0 = scmp.gt.s32.totalorder %s5742_s19, 7 }
 0x7e2   : > { %8245 = dma.done.wait (%p7804_p0), [#allocation3 + $0x7], 32 }
 0x7e3   : > { %8247 = vsyncadd (%p7804_p0), [#allocation3 + $0x7], 4294967264  ;;  %v5847_v35 = vld [vmem:[#allocation2] sm:$0xff]  ;;  %v5849_v6 = vld [vmem:[#allocation2 + $0x8] sm:$0xff] }
 0x7e4   : > { %5848 = vst [vmem:[%s13402_s6] sm:$0xff] %v5847_v35  ;;  %5850 = vst [vmem:[%s13402_s6 + $0x8] sm:$0xff] %v5849_v6 }
 0x7e5   : > { %5858 = vsyncadd [#allocation3 + $0x8], 256 }
 0x7e6   : > { %8248 = dma.done.wait [#allocation3 + $0x8], 256 }
 0x7e7   : > { %8249 = vsyncadd [#allocation3 + $0x8], 4294967040 }
 0x7e8 PF: > { %s6131_s27 = sshll.u32 %s8348_s30, 10  ;;  %s5878_s1 = sshll.u32 %s12414_s16, 4  ;;  %s5879_s1 = int_to_ptr.vmem [resolvable:$true] %s5878_s1 }
 0x7e9   : > { %s13357_s12 = scalar_lea.hbm %s13401_s5, %s6131_s27  ;;  %s5864_s24 = scalar_lea.sflag [#allocation9], %s8468_s18 }
 0x7ea   : > { %s8162_s23 = scalar_lea.vmem %s5879_s1, 1024  ;;  %p16510_p12 = scmp.ne.s32.totalorder %s14541_s14, 0 }
 0x7eb   : > { %p8163_p10 = scmp.ne.s32.totalorder %s5879_s1, %s8162_s23  ;;  %s8285_s22 = smov [#allocation12]  }
 0x7ec   : > { %s8166_s20 = sshll.u32 %s8285_s22, 4  ;;  %s8167_s20 = int_to_ptr.vmem [resolvable:$false] %s8166_s20 }
 0x7ed   : > { %p8164_p3 = pnand %p8163_p10, %p16510_p12  ;;  %s8168_s3 = scalar_lea.vmem %s8167_s20, 2048 }
 0x7ee   : > { %p8169_p11 = scmp.lt.s32.totalorder %s5879_s1, %s8167_s20  ;;  %p8170_p5 = scmp.lt.s32.totalorder %s8168_s3, %s8162_s23 }
 0x7ef   : > { %p8165_p8 = pneg %p8164_p3 }
 0x7f0   : > { %p8171_p9 = por %p8170_p5, %p8169_p11 }
 0x7f2   : > { %p8172_p4 = pnand %p8171_p9, %p8165_p8 }
 0x7f4   : > { %8175 = shalt.err (!%p8172_p4)
}
 0x7f5   : > { %s8176_s30 = scalar_lea.hbm %s13357_s12, 1024  ;;  %s8180_s10 = scalar_lea.hbm %s13401_s5, 2048 }
 0x7f6   : > { %p8177_p6 = scmp.ne.s32.totalorder %s13357_s12, %s8176_s30  ;;  %p8181_p1 = scmp.lt.u32.totalorder %s13357_s12, %s13401_s5 }
 0x7f7   : > { %p8182_p7 = scmp.lt.u32.totalorder %s8180_s10, %s8176_s30  ;;  %p8184_p10 = scmp.lt.u32.totalorder %s8176_s30, %s13357_s12 }
 0x7f8   : > { %p8178_p13 = pnand %p8177_p6, %p16510_p12 }
 0x7f9   : > { %p8183_p0 = por %p8182_p7, %p8181_p1 }
 0x7fa   : > { %p8179_p2 = pneg %p8178_p13 }
 0x7fb   : > { %p8185_p3 = por %p8184_p10, %p8183_p0 }
 0x7fd   : > { %p8186_p8 = pnand %p8185_p3, %p8179_p2 }
 0x7ff   : > { %8189 = shalt.err (!%p8186_p8)
}
 0x800   : > { %7746 = dma.vmem_to_hbm [thread:$0]  (%p16510_p12), %s5879_s1, 1024, %s13357_s12, %s5864_s24  }
 0x801 PF: > { %s5890_s11 = sand.u32 1, %s8256_s0   ;;  %p16511_p11 = scmp.ne.s32.totalorder %s14542_s15, 0 }
 0x802   : > { %p16512_p5 = scmp.ge.s32.totalorder %s8268_s29, 2  ;;  %s5891_s21 = scalar_lea.sflag [#allocation9], %s5890_s11 }
 0x804   : > { %p7782_p9 = pnand %p16512_p5, %p16511_p11 }
 0x806   : > { %8251 = dma.done.wait (!%p7782_p9), %s5891_s21, 1024  }
 0x807   : > { %8253 = vsyncadd (!%p7782_p9), %s5891_s21, 4294966272  ;;  %s16513_s0 = sld [smem:[#allocation35_spill]]  ;;  %s16514_s1 = sld [smem:[#allocation36_spill]] }
 0x808   : > { %s16515_s28 = sld [smem:[#allocation37_spill]]  ;;  %p28_p4 = scmp.ge.s32.totalorder %s8352_s8, 4  }
 0x809   : > { %s16516_s29 = smov %s8352_s8 }
 0x80a   :  { %30 = sbr.rel (!%p28_p4) target bundleno = 22 (0x16), region = 230 }
 0x811   :  { %5896 = vsyncpa [#allocation8], 1 }
 0x812   :  { %5898 = vsyncpa [#allocation8 + $0x1], 1 }
 0x813   :  { %5899 = vsyncpa [#allocation11], 1 }
 0x814   :  { %5901 = vsyncpa [#allocation11 + $0x1], 1 }
 0x815   :  { %5902 = vsyncpa [#allocation9], 1 }
 0x816   :  { %5904 = vsyncpa [#allocation9 + $0x1], 1 }
 0x817   :  { %5905 = vsyncmov [#allocation3] }
 0x81a   :  { %s5906_s29 = vpop.sfrf %5905 }
 0x81b   :  { %p6120_p12 = scmp.ne.s32.totalorder %s5906_s29, 0 }
 0x81d   :  { %5910 = shalt.err (%p6120_p12)  }
 0x81e   :  { %5912 = vsyncmov [#allocation3 + $0x1] }
 0x821   :  { %s5913_s14 = vpop.sfrf %5912 }
 0x822   :  { %p6121_p6 = scmp.ne.s32.totalorder %s5913_s14, 0 }
 0x824   :  { %5917 = shalt.err (%p6121_p6)  }
 0x825   :  { %5919 = vsyncmov [#allocation3 + $0x2] }
 0x828   :  { %s5920_s15 = vpop.sfrf %5919 }
 0x829   :  { %p6122_p13 = scmp.ne.s32.totalorder %s5920_s15, 0 }
 0x82b   :  { %5924 = shalt.err (%p6122_p13)  }
 0x82c   :  { %5926 = vsyncmov [#allocation3 + $0x3] }
 0x82f   :  { %s5927_s8 = vpop.sfrf %5926 }
 0x830   :  { %p6123_p2 = scmp.ne.s32.totalorder %s5927_s8, 0 }
 0x832   :  { %5931 = shalt.err (%p6123_p2)  }
 0x833   :  { %5933 = vsyncmov [#allocation3 + $0x4] }
 0x836   :  { %s5934_s4 = vpop.sfrf %5933 }
 0x837   :  { %p6124_p1 = scmp.ne.s32.totalorder %s5934_s4, 0 }
 0x839   :  { %5938 = shalt.err (%p6124_p1)  }
 0x83a   :  { %5940 = vsyncmov [#allocation3 + $0x5] }
 0x83d   :  { %s5941_s5 = vpop.sfrf %5940 }
 0x83e   :  { %p6125_p7 = scmp.ne.s32.totalorder %s5941_s5, 0 }
 0x840   :  { %5945 = shalt.err (%p6125_p7)  }
 0x841   :  { %5947 = vsyncmov [#allocation3 + $0x6] }
 0x844   :  { %s5948_s6 = vpop.sfrf %5947 }
 0x845   :  { %p6126_p0 = scmp.ne.s32.totalorder %s5948_s6, 0 }
 0x847   :  { %5952 = shalt.err (%p6126_p0)  }
 0x848   :  { %5954 = vsyncmov [#allocation3 + $0x7] }
 0x84b   :  { %s5955_s0 = vpop.sfrf %5954 }
 0x84c   :  { %p6127_p10 = scmp.ne.s32.totalorder %s5955_s0, 0 }
 0x84e   :  { %5959 = shalt.err (%p6127_p10)  }
 0x84f   :  { %5961 = vsyncmov [#allocation3 + $0x8] }
 0x852   :  { %s5962_s19 = vpop.sfrf %5961 }
 0x853   :  { %p6128_p3 = scmp.ne.s32.totalorder %s5962_s19, 0 }
 0x855   :  { %5966 = shalt.err (%p6128_p3)  }

</bundles_post_ra>
